<compile_context>
chip_gen: v7x
topology: tpu7x:2x2x1
jax: 0.10.0
libtpu: 0.0.40
codegen_flags: <defaults>
</compile_context>

<pallas_src>
import jax
import jax.numpy as jnp
from jax.experimental import pallas as pl
from jax.experimental.pallas import tpu as pltpu  # noqa: F401  (TPU backend / params)


# ---------------------------------------------------------------------------
# In-kernel helpers (operate on values; shapes are static at trace time)
# ---------------------------------------------------------------------------
def _same_conv_relu(x, w_ref, b_ref):
    """Odd-k, stride-1, "same"-padded conv + bias + ReLU as ONE im2col GEMM.

    x     : (N, H, W, Cin) f32 value
    w_ref : (Kh*Kw*Cin, Cout) bf16 ref, rows ordered (kh, kw, cin)
    b_ref : (1, Cout) f32 ref
    Returns (N*H*W, Cout) f32, rows ordered (n, h, w).
    """
    n, h, w, cin = x.shape
    ktot, cout = w_ref.shape
    k = int(round((ktot // cin) ** 0.5))
    assert k * k * cin == ktot and k % 2 == 1, (ktot, cin, k)
    p = (k - 1) // 2

    # Zero-pad H / W as values (no scratch buffer, no masked interior store).
    if p:
        zw = jnp.zeros((n, h, p, cin), x.dtype)
        x = jnp.concatenate([zw, x, zw], axis=2)          # pad W
        zh = jnp.zeros((n, p, w + 2 * p, cin), x.dtype)
        x = jnp.concatenate([zh, x, zh], axis=1)          # pad H

    # im2col patch matrix without HBM materialization: Kw column shifts then
    # Kh row shifts, concatenated along the channel/lane dim.  Resulting
    # channel order is (kh, kw, cin), matching w_ref's row layout.
    cols = jnp.concatenate([x[:, :, kw:kw + w, :] for kw in range(k)], axis=-1)
    patches = jnp.concatenate([cols[:, kh:kh + h] for kh in range(k)], axis=-1)
    patches = patches.reshape(n * h * w, ktot)            # rows ordered (n,h,w)

    acc = jnp.dot(patches.astype(jnp.bfloat16), w_ref[...],
                  preferred_element_type=jnp.float32)     # single MXU GEMM
    return jnp.maximum(acc + b_ref[...], 0.0)             # bias + ReLU in f32


def _pool2x2(y2d, n, h, w, c):
    """2x2 / stride-2 max pool of an (n*h*w, c) value with rows in (n,h,w)
    order.  Row-regrouping reshape (last dim unchanged) + max of slices; no
    scratch store / strided reload."""
    y = y2d.reshape(n, h // 2, 2, w // 2, 2, c)
    y = jnp.maximum(y[..., 0, :], y[..., 1, :])            # pool along W
    return jnp.maximum(y[:, :, 0], y[:, :, 1])             # pool along H


def _mycnn_kernel(x_ref, w1_ref, b1_ref, w2_ref, b2_ref, w3_ref, b3_ref,
                  w4_ref, b4_ref, o_ref):
    n, h, w, _ = x_ref.shape

    # conv1 (5x5, pad 2) + ReLU + maxpool 2x2
    x = _pool2x2(_same_conv_relu(x_ref[...], w1_ref, b1_ref),
                 n, h, w, w1_ref.shape[1])
    h, w = h // 2, w // 2

    # conv2 (3x3, pad 1) + ReLU + maxpool 2x2
    x = _pool2x2(_same_conv_relu(x, w2_ref, b2_ref), n, h, w, w2_ref.shape[1])
    h, w = h // 2, w // 2

    # conv3 (3x3, pad 1) + ReLU + maxpool 2x2
    x = _pool2x2(_same_conv_relu(x, w3_ref, b3_ref), n, h, w, w3_ref.shape[1])
    h, w = h // 2, w // 2                                  # x: (n, h, w, c3)

    # Flatten (torch NCHW order already folded into w4's row layout) via a
    # lane concat, then one (N, 256) x (256, n_class) GEMM.
    xf = jnp.concatenate([x[:, hh, ww, :] for hh in range(h)
                          for ww in range(w)], axis=-1)    # (n, h*w*c3)
    o_ref[...] = jnp.dot(xf.astype(jnp.bfloat16), w4_ref[...],
                         preferred_element_type=jnp.float32) + b4_ref[...]


# ---------------------------------------------------------------------------
# One-time parameter preparation (outside the per-call jit path)
# ---------------------------------------------------------------------------
def prepare_params(params, input_hw):
    """Fold PyTorch-layout weights into GEMM-ready layouts once.

    Conv weights OIHW -> (Kh*Kw*Cin, Cout) bf16 with row order (kh, kw, cin);
    linear weight gets torch's NCHW flatten order folded into its rows and
    becomes (h3*w3*c3, n_class) bf16; biases become (1, C) f32.
    """
    hh, ww = input_hw
    assert hh % 8 == 0 and ww % 8 == 0, "three 2x2 pools need H, W % 8 == 0"

    def fold_conv(w):
        co, ci, kh, kw = w.shape
        assert kh == kw and kh % 2 == 1, (kh, kw)
        return (jnp.transpose(w, (2, 3, 1, 0))
                .reshape(kh * kw * ci, co).astype(jnp.bfloat16))

    c3 = params["w3"].shape[0]
    n_class, dim_final = params["w_out"].shape
    h3, w3 = hh // 8, ww // 8
    assert dim_final == c3 * h3 * w3, (dim_final, c3, h3, w3)
    # w_out[k, c*h3*w3 + y*w3 + x] -> w4[y*w3*c3 + x*c3 + c, k]
    w4 = (jnp.transpose(params["w_out"].reshape(n_class, c3, h3, w3),
                        (2, 3, 1, 0))
          .reshape(h3 * w3 * c3, n_class).astype(jnp.bfloat16))

    f32 = jnp.float32
    return dict(
        w1=fold_conv(params["w1"]), b1=params["b1"].reshape(1, -1).astype(f32),
        w2=fold_conv(params["w2"]), b2=params["b2"].reshape(1, -1).astype(f32),
        w3=fold_conv(params["w3"]), b3=params["b3"].reshape(1, -1).astype(f32),
        w4=w4, b4=params["b_out"].reshape(1, -1).astype(f32))


# ---------------------------------------------------------------------------
# Forward: one pallas_call for the whole network (NHWC input)
# ---------------------------------------------------------------------------
def my_cnn_forward(x_nhwc, fp):
    n, h, w, _ = x_nhwc.shape
    assert h % 8 == 0 and w % 8 == 0
    n_class = fp["b4"].shape[-1]
    return pl.pallas_call(
        _mycnn_kernel,
        out_shape=jax.ShapeDtypeStruct((n, n_class), jnp.float32),
    )(x_nhwc, fp["w1"], fp["b1"], fp["w2"], fp["b2"],
      fp["w3"], fp["b3"], fp["w4"], fp["b4"])


# ---------------------------------------------------------------------------
# Pure-JAX reference (sanity check against the torch semantics)
# ---------------------------------------------------------------------------
def _reference_forward(x_nchw, p):
    x = jnp.transpose(x_nchw, (0, 2, 3, 1))
    hp = jax.lax.Precision.HIGHEST

    def block(x, w, b, pad):
        w_hwio = jnp.transpose(w, (2, 3, 1, 0))
        y = jax.lax.conv_general_dilated(
            x, w_hwio, (1, 1), [(pad, pad), (pad, pad)],
            dimension_numbers=("NHWC", "HWIO", "NHWC"), precision=hp)
        y = jnp.maximum(y + b, 0.0)
        return jax.lax.reduce_window(y, -jnp.inf, jax.lax.max,
                                     (1, 2, 2, 1), (1, 2, 2, 1), "VALID")

    x = block(x, p["w1"], p["b1"], 2)
    x = block(x, p["w2"], p["b2"], 1)
    x = block(x, p["w3"], p["b3"], 1)
    x = jnp.transpose(x, (0, 3, 1, 2)).reshape(x.shape[0], -1)
    return jnp.dot(x, p["w_out"].T, precision=hp) + p["b_out"]


# ---------------------------------------------------------------------------
# Main
# ---------------------------------------------------------------------------
if __name__ == "__main__":
    # MyCNN(data_dim=4, n_class=10, dim_final=256) on 16x16 inputs:
    # 16 -> pool -> 8 -> pool -> 4 -> pool -> 2; dim_final = 64*2*2 = 256.
    N, data_dim, S = 2, 4, 16
    n_class = 10
    dim_final = 64 * (S // 8) * (S // 8)

    key = jax.random.PRNGKey(0)
    ks = jax.random.split(key, 9)
    x_nchw = jax.random.normal(ks[0], (N, data_dim, S, S), jnp.float32)

    params = {
        "w1": jax.random.normal(ks[1], (32, data_dim, 5, 5), jnp.float32) * 0.10,
        "b1": jax.random.normal(ks[2], (32,), jnp.float32) * 0.10,
        "w2": jax.random.normal(ks[3], (64, 32, 3, 3), jnp.float32) * 0.05,
        "b2": jax.random.normal(ks[4], (64,), jnp.float32) * 0.05,
        "w3": jax.random.normal(ks[5], (64, 64, 3, 3), jnp.float32) * 0.05,
        "b3": jax.random.normal(ks[6], (64,), jnp.float32) * 0.05,
        "w_out": jax.random.normal(ks[7], (n_class, dim_final), jnp.float32) * 0.05,
        "b_out": jax.random.normal(ks[8], (n_class,), jnp.float32) * 0.05,
    }

    # One-time layout folding (outside the jitted per-call path) + NHWC input.
    prepped = prepare_params(params, (S, S))
    x_nhwc = jnp.transpose(x_nchw, (0, 2, 3, 1))

    fwd = jax.jit(my_cnn_forward)
    out = jax.block_until_ready(fwd(x_nhwc, prepped))
    assert out.shape == (N, n_class), out.shape

    ref = jax.block_until_ready(_reference_forward(x_nchw, params))
    # bf16 MXU inputs with f32 accumulation -> loose-ish tolerance vs f32 ref.
    assert jnp.allclose(out, ref, atol=5e-2, rtol=5e-2), (
        float(jnp.max(jnp.abs(out - ref))))

    # TODO(synk): partial_grad / calculate_loss_grad / power_method are
    # training-time autograd / Hessian power-iteration utilities, not part of
    # forward(); not translated.
    print("KERNEL_OK")
</pallas_src>

<mosaic_0001>
module attributes {stable_mosaic.version = 11 : i64} {
  func.func @_mycnn_kernel(%arg0: memref<2x16x16x4xf32, #tpu.memory_space<vmem>>, %arg1: memref<100x32xbf16, #tpu.memory_space<vmem>>, %arg2: memref<1x32xf32, #tpu.memory_space<vmem>>, %arg3: memref<288x64xbf16, #tpu.memory_space<vmem>>, %arg4: memref<1x64xf32, #tpu.memory_space<vmem>>, %arg5: memref<576x64xbf16, #tpu.memory_space<vmem>>, %arg6: memref<1x64xf32, #tpu.memory_space<vmem>>, %arg7: memref<256x10xbf16, #tpu.memory_space<vmem>>, %arg8: memref<1x10xf32, #tpu.memory_space<vmem>>, %arg9: memref<2x10xf32, #tpu.memory_space<vmem>>) attributes {dimension_semantics = [], scalar_prefetch = 0 : i64, scratch_operands = 0 : i64, tpu.core_type = #tpu.core_type<tc>} {
    %c0 = arith.constant 0 : index
    %c0_0 = arith.constant 0 : index
    %c0_1 = arith.constant 0 : index
    %c0_2 = arith.constant 0 : index
    %0 = vector.load %arg0[%c0, %c0_0, %c0_1, %c0_2] : memref<2x16x16x4xf32, #tpu.memory_space<vmem>>, vector<2x16x16x4xf32>
    %cst = arith.constant 0.000000e+00 : f32
    %1 = vector.broadcast %cst : f32 to vector<2x16x2x4xf32>
    %2 = tpu.concatenate %1, %0, %1 in 2 : vector<2x16x2x4xf32>, vector<2x16x16x4xf32>, vector<2x16x2x4xf32> -> vector<2x16x20x4xf32>
    %cst_3 = arith.constant 0.000000e+00 : f32
    %3 = vector.broadcast %cst_3 : f32 to vector<2x2x20x4xf32>
    %4 = tpu.concatenate %3, %2, %3 in 1 : vector<2x2x20x4xf32>, vector<2x16x20x4xf32>, vector<2x2x20x4xf32> -> vector<2x20x20x4xf32>
    %5 = vector.extract_strided_slice %4 {offsets = [0, 0, 0, 0], sizes = [2, 20, 16, 4], strides = [1, 1, 1, 1]} : vector<2x20x20x4xf32> to vector<2x20x16x4xf32>
    %6 = vector.extract_strided_slice %4 {offsets = [0, 0, 1, 0], sizes = [2, 20, 16, 4], strides = [1, 1, 1, 1]} : vector<2x20x20x4xf32> to vector<2x20x16x4xf32>
    %7 = vector.extract_strided_slice %4 {offsets = [0, 0, 2, 0], sizes = [2, 20, 16, 4], strides = [1, 1, 1, 1]} : vector<2x20x20x4xf32> to vector<2x20x16x4xf32>
    %8 = vector.extract_strided_slice %4 {offsets = [0, 0, 3, 0], sizes = [2, 20, 16, 4], strides = [1, 1, 1, 1]} : vector<2x20x20x4xf32> to vector<2x20x16x4xf32>
    %9 = vector.extract_strided_slice %4 {offsets = [0, 0, 4, 0], sizes = [2, 20, 16, 4], strides = [1, 1, 1, 1]} : vector<2x20x20x4xf32> to vector<2x20x16x4xf32>
    %10 = tpu.concatenate %5, %6, %7, %8, %9 in 3 : vector<2x20x16x4xf32>, vector<2x20x16x4xf32>, vector<2x20x16x4xf32>, vector<2x20x16x4xf32>, vector<2x20x16x4xf32> -> vector<2x20x16x20xf32>
    %11 = vector.extract_strided_slice %10 {offsets = [0, 0, 0, 0], sizes = [2, 16, 16, 20], strides = [1, 1, 1, 1]} : vector<2x20x16x20xf32> to vector<2x16x16x20xf32>
    %12 = vector.extract_strided_slice %10 {offsets = [0, 1, 0, 0], sizes = [2, 16, 16, 20], strides = [1, 1, 1, 1]} : vector<2x20x16x20xf32> to vector<2x16x16x20xf32>
    %13 = vector.extract_strided_slice %10 {offsets = [0, 2, 0, 0], sizes = [2, 16, 16, 20], strides = [1, 1, 1, 1]} : vector<2x20x16x20xf32> to vector<2x16x16x20xf32>
    %14 = vector.extract_strided_slice %10 {offsets = [0, 3, 0, 0], sizes = [2, 16, 16, 20], strides = [1, 1, 1, 1]} : vector<2x20x16x20xf32> to vector<2x16x16x20xf32>
    %15 = vector.extract_strided_slice %10 {offsets = [0, 4, 0, 0], sizes = [2, 16, 16, 20], strides = [1, 1, 1, 1]} : vector<2x20x16x20xf32> to vector<2x16x16x20xf32>
    %16 = tpu.concatenate %11, %12, %13, %14, %15 in 3 : vector<2x16x16x20xf32>, vector<2x16x16x20xf32>, vector<2x16x16x20xf32>, vector<2x16x16x20xf32>, vector<2x16x16x20xf32> -> vector<2x16x16x100xf32>
    %17 = vector.shape_cast %16 : vector<2x16x16x100xf32> to vector<512x100xf32>
    %18 = arith.truncf %17 : vector<512x100xf32> to vector<512x100xbf16>
    %c0_4 = arith.constant 0 : index
    %c0_5 = arith.constant 0 : index
    %19 = vector.load %arg1[%c0_4, %c0_5] : memref<100x32xbf16, #tpu.memory_space<vmem>>, vector<100x32xbf16>
    %cst_6 = arith.constant dense<0.000000e+00> : vector<512x32xf32>
    %20 = tpu.matmul %18, %19, %cst_6 {dimension_numbers = #tpu.dot_dimension_numbers<[1], [0], [0], [1], [0, 0, 1, 1], [], []>} : vector<512x100xbf16>, vector<100x32xbf16>, vector<512x32xf32> -> vector<512x32xf32>
    %c0_7 = arith.constant 0 : index
    %c0_8 = arith.constant 0 : index
    %21 = vector.load %arg2[%c0_7, %c0_8] : memref<1x32xf32, #tpu.memory_space<vmem>>, vector<1x32xf32>
    %22 = vector.broadcast %21 : vector<1x32xf32> to vector<512x32xf32>
    %23 = arith.addf %20, %22 : vector<512x32xf32>
    %cst_9 = arith.constant 0.000000e+00 : f32
    %24 = vector.broadcast %cst_9 : f32 to vector<512x32xf32>
    %25 = arith.maximumf %23, %24 : vector<512x32xf32>
    %26 = vector.shape_cast %25 : vector<512x32xf32> to vector<2x8x2x8x2x32xf32>
    %27 = vector.extract_strided_slice %26 {offsets = [0, 0, 0, 0, 0, 0], sizes = [2, 8, 2, 8, 1, 32], strides = [1, 1, 1, 1, 1, 1]} : vector<2x8x2x8x2x32xf32> to vector<2x8x2x8x1x32xf32>
    %28 = vector.shape_cast %27 : vector<2x8x2x8x1x32xf32> to vector<2x8x2x8x32xf32>
    %29 = vector.extract_strided_slice %26 {offsets = [0, 0, 0, 0, 1, 0], sizes = [2, 8, 2, 8, 1, 32], strides = [1, 1, 1, 1, 1, 1]} : vector<2x8x2x8x2x32xf32> to vector<2x8x2x8x1x32xf32>
    %30 = vector.shape_cast %29 : vector<2x8x2x8x1x32xf32> to vector<2x8x2x8x32xf32>
    %31 = arith.maximumf %28, %30 : vector<2x8x2x8x32xf32>
    %32 = vector.extract_strided_slice %31 {offsets = [0, 0, 0, 0, 0], sizes = [2, 8, 1, 8, 32], strides = [1, 1, 1, 1, 1]} : vector<2x8x2x8x32xf32> to vector<2x8x1x8x32xf32>
    %33 = vector.shape_cast %32 : vector<2x8x1x8x32xf32> to vector<2x8x8x32xf32>
    %34 = vector.extract_strided_slice %31 {offsets = [0, 0, 1, 0, 0], sizes = [2, 8, 1, 8, 32], strides = [1, 1, 1, 1, 1]} : vector<2x8x2x8x32xf32> to vector<2x8x1x8x32xf32>
    %35 = vector.shape_cast %34 : vector<2x8x1x8x32xf32> to vector<2x8x8x32xf32>
    %36 = arith.maximumf %33, %35 : vector<2x8x8x32xf32>
    %cst_10 = arith.constant 0.000000e+00 : f32
    %37 = vector.broadcast %cst_10 : f32 to vector<2x8x1x32xf32>
    %38 = tpu.concatenate %37, %36, %37 in 2 : vector<2x8x1x32xf32>, vector<2x8x8x32xf32>, vector<2x8x1x32xf32> -> vector<2x8x10x32xf32>
    %cst_11 = arith.constant 0.000000e+00 : f32
    %39 = vector.broadcast %cst_11 : f32 to vector<2x1x10x32xf32>
    %40 = tpu.concatenate %39, %38, %39 in 1 : vector<2x1x10x32xf32>, vector<2x8x10x32xf32>, vector<2x1x10x32xf32> -> vector<2x10x10x32xf32>
    %41 = vector.extract_strided_slice %40 {offsets = [0, 0, 0, 0], sizes = [2, 10, 8, 32], strides = [1, 1, 1, 1]} : vector<2x10x10x32xf32> to vector<2x10x8x32xf32>
    %42 = vector.extract_strided_slice %40 {offsets = [0, 0, 1, 0], sizes = [2, 10, 8, 32], strides = [1, 1, 1, 1]} : vector<2x10x10x32xf32> to vector<2x10x8x32xf32>
    %43 = vector.extract_strided_slice %40 {offsets = [0, 0, 2, 0], sizes = [2, 10, 8, 32], strides = [1, 1, 1, 1]} : vector<2x10x10x32xf32> to vector<2x10x8x32xf32>
    %44 = tpu.concatenate %41, %42, %43 in 3 : vector<2x10x8x32xf32>, vector<2x10x8x32xf32>, vector<2x10x8x32xf32> -> vector<2x10x8x96xf32>
    %45 = vector.extract_strided_slice %44 {offsets = [0, 0, 0, 0], sizes = [2, 8, 8, 96], strides = [1, 1, 1, 1]} : vector<2x10x8x96xf32> to vector<2x8x8x96xf32>
    %46 = vector.extract_strided_slice %44 {offsets = [0, 1, 0, 0], sizes = [2, 8, 8, 96], strides = [1, 1, 1, 1]} : vector<2x10x8x96xf32> to vector<2x8x8x96xf32>
    %47 = vector.extract_strided_slice %44 {offsets = [0, 2, 0, 0], sizes = [2, 8, 8, 96], strides = [1, 1, 1, 1]} : vector<2x10x8x96xf32> to vector<2x8x8x96xf32>
    %48 = tpu.concatenate %45, %46, %47 in 3 : vector<2x8x8x96xf32>, vector<2x8x8x96xf32>, vector<2x8x8x96xf32> -> vector<2x8x8x288xf32>
    %49 = vector.shape_cast %48 : vector<2x8x8x288xf32> to vector<128x288xf32>
    %50 = arith.truncf %49 : vector<128x288xf32> to vector<128x288xbf16>
    %c0_12 = arith.constant 0 : index
    %c0_13 = arith.constant 0 : index
    %51 = vector.load %arg3[%c0_12, %c0_13] : memref<288x64xbf16, #tpu.memory_space<vmem>>, vector<288x64xbf16>
    %cst_14 = arith.constant dense<0.000000e+00> : vector<128x64xf32>
    %52 = tpu.matmul %50, %51, %cst_14 {dimension_numbers = #tpu.dot_dimension_numbers<[1], [0], [0], [1], [0, 0, 1, 1], [], []>} : vector<128x288xbf16>, vector<288x64xbf16>, vector<128x64xf32> -> vector<128x64xf32>
    %c0_15 = arith.constant 0 : index
    %c0_16 = arith.constant 0 : index
    %53 = vector.load %arg4[%c0_15, %c0_16] : memref<1x64xf32, #tpu.memory_space<vmem>>, vector<1x64xf32>
    %54 = vector.broadcast %53 : vector<1x64xf32> to vector<128x64xf32>
    %55 = arith.addf %52, %54 : vector<128x64xf32>
    %cst_17 = arith.constant 0.000000e+00 : f32
    %56 = vector.broadcast %cst_17 : f32 to vector<128x64xf32>
    %57 = arith.maximumf %55, %56 : vector<128x64xf32>
    %58 = vector.shape_cast %57 : vector<128x64xf32> to vector<2x4x2x4x2x64xf32>
    %59 = vector.extract_strided_slice %58 {offsets = [0, 0, 0, 0, 0, 0], sizes = [2, 4, 2, 4, 1, 64], strides = [1, 1, 1, 1, 1, 1]} : vector<2x4x2x4x2x64xf32> to vector<2x4x2x4x1x64xf32>
    %60 = vector.shape_cast %59 : vector<2x4x2x4x1x64xf32> to vector<2x4x2x4x64xf32>
    %61 = vector.extract_strided_slice %58 {offsets = [0, 0, 0, 0, 1, 0], sizes = [2, 4, 2, 4, 1, 64], strides = [1, 1, 1, 1, 1, 1]} : vector<2x4x2x4x2x64xf32> to vector<2x4x2x4x1x64xf32>
    %62 = vector.shape_cast %61 : vector<2x4x2x4x1x64xf32> to vector<2x4x2x4x64xf32>
    %63 = arith.maximumf %60, %62 : vector<2x4x2x4x64xf32>
    %64 = vector.extract_strided_slice %63 {offsets = [0, 0, 0, 0, 0], sizes = [2, 4, 1, 4, 64], strides = [1, 1, 1, 1, 1]} : vector<2x4x2x4x64xf32> to vector<2x4x1x4x64xf32>
    %65 = vector.shape_cast %64 : vector<2x4x1x4x64xf32> to vector<2x4x4x64xf32>
    %66 = vector.extract_strided_slice %63 {offsets = [0, 0, 1, 0, 0], sizes = [2, 4, 1, 4, 64], strides = [1, 1, 1, 1, 1]} : vector<2x4x2x4x64xf32> to vector<2x4x1x4x64xf32>
    %67 = vector.shape_cast %66 : vector<2x4x1x4x64xf32> to vector<2x4x4x64xf32>
    %68 = arith.maximumf %65, %67 : vector<2x4x4x64xf32>
    %cst_18 = arith.constant 0.000000e+00 : f32
    %69 = vector.broadcast %cst_18 : f32 to vector<2x4x1x64xf32>
    %70 = tpu.concatenate %69, %68, %69 in 2 : vector<2x4x1x64xf32>, vector<2x4x4x64xf32>, vector<2x4x1x64xf32> -> vector<2x4x6x64xf32>
    %cst_19 = arith.constant 0.000000e+00 : f32
    %71 = vector.broadcast %cst_19 : f32 to vector<2x1x6x64xf32>
    %72 = tpu.concatenate %71, %70, %71 in 1 : vector<2x1x6x64xf32>, vector<2x4x6x64xf32>, vector<2x1x6x64xf32> -> vector<2x6x6x64xf32>
    %73 = vector.extract_strided_slice %72 {offsets = [0, 0, 0, 0], sizes = [2, 6, 4, 64], strides = [1, 1, 1, 1]} : vector<2x6x6x64xf32> to vector<2x6x4x64xf32>
    %74 = vector.extract_strided_slice %72 {offsets = [0, 0, 1, 0], sizes = [2, 6, 4, 64], strides = [1, 1, 1, 1]} : vector<2x6x6x64xf32> to vector<2x6x4x64xf32>
    %75 = vector.extract_strided_slice %72 {offsets = [0, 0, 2, 0], sizes = [2, 6, 4, 64], strides = [1, 1, 1, 1]} : vector<2x6x6x64xf32> to vector<2x6x4x64xf32>
    %76 = tpu.concatenate %73, %74, %75 in 3 : vector<2x6x4x64xf32>, vector<2x6x4x64xf32>, vector<2x6x4x64xf32> -> vector<2x6x4x192xf32>
    %77 = vector.extract_strided_slice %76 {offsets = [0, 0, 0, 0], sizes = [2, 4, 4, 192], strides = [1, 1, 1, 1]} : vector<2x6x4x192xf32> to vector<2x4x4x192xf32>
    %78 = vector.extract_strided_slice %76 {offsets = [0, 1, 0, 0], sizes = [2, 4, 4, 192], strides = [1, 1, 1, 1]} : vector<2x6x4x192xf32> to vector<2x4x4x192xf32>
    %79 = vector.extract_strided_slice %76 {offsets = [0, 2, 0, 0], sizes = [2, 4, 4, 192], strides = [1, 1, 1, 1]} : vector<2x6x4x192xf32> to vector<2x4x4x192xf32>
    %80 = tpu.concatenate %77, %78, %79 in 3 : vector<2x4x4x192xf32>, vector<2x4x4x192xf32>, vector<2x4x4x192xf32> -> vector<2x4x4x576xf32>
    %81 = vector.shape_cast %80 : vector<2x4x4x576xf32> to vector<32x576xf32>
    %82 = arith.truncf %81 : vector<32x576xf32> to vector<32x576xbf16>
    %c0_20 = arith.constant 0 : index
    %c0_21 = arith.constant 0 : index
    %83 = vector.load %arg5[%c0_20, %c0_21] : memref<576x64xbf16, #tpu.memory_space<vmem>>, vector<576x64xbf16>
    %cst_22 = arith.constant dense<0.000000e+00> : vector<32x64xf32>
    %84 = tpu.matmul %82, %83, %cst_22 {dimension_numbers = #tpu.dot_dimension_numbers<[1], [0], [0], [1], [0, 0, 1, 1], [], []>} : vector<32x576xbf16>, vector<576x64xbf16>, vector<32x64xf32> -> vector<32x64xf32>
    %c0_23 = arith.constant 0 : index
    %c0_24 = arith.constant 0 : index
    %85 = vector.load %arg6[%c0_23, %c0_24] : memref<1x64xf32, #tpu.memory_space<vmem>>, vector<1x64xf32>
    %86 = vector.broadcast %85 : vector<1x64xf32> to vector<32x64xf32>
    %87 = arith.addf %84, %86 : vector<32x64xf32>
    %cst_25 = arith.constant 0.000000e+00 : f32
    %88 = vector.broadcast %cst_25 : f32 to vector<32x64xf32>
    %89 = arith.maximumf %87, %88 : vector<32x64xf32>
    %90 = vector.shape_cast %89 : vector<32x64xf32> to vector<2x2x2x2x2x64xf32>
    %91 = vector.extract_strided_slice %90 {offsets = [0, 0, 0, 0, 0, 0], sizes = [2, 2, 2, 2, 1, 64], strides = [1, 1, 1, 1, 1, 1]} : vector<2x2x2x2x2x64xf32> to vector<2x2x2x2x1x64xf32>
    %92 = vector.shape_cast %91 : vector<2x2x2x2x1x64xf32> to vector<2x2x2x2x64xf32>
    %93 = vector.extract_strided_slice %90 {offsets = [0, 0, 0, 0, 1, 0], sizes = [2, 2, 2, 2, 1, 64], strides = [1, 1, 1, 1, 1, 1]} : vector<2x2x2x2x2x64xf32> to vector<2x2x2x2x1x64xf32>
    %94 = vector.shape_cast %93 : vector<2x2x2x2x1x64xf32> to vector<2x2x2x2x64xf32>
    %95 = arith.maximumf %92, %94 : vector<2x2x2x2x64xf32>
    %96 = vector.extract_strided_slice %95 {offsets = [0, 0, 0, 0, 0], sizes = [2, 2, 1, 2, 64], strides = [1, 1, 1, 1, 1]} : vector<2x2x2x2x64xf32> to vector<2x2x1x2x64xf32>
    %97 = vector.shape_cast %96 : vector<2x2x1x2x64xf32> to vector<2x2x2x64xf32>
    %98 = vector.extract_strided_slice %95 {offsets = [0, 0, 1, 0, 0], sizes = [2, 2, 1, 2, 64], strides = [1, 1, 1, 1, 1]} : vector<2x2x2x2x64xf32> to vector<2x2x1x2x64xf32>
    %99 = vector.shape_cast %98 : vector<2x2x1x2x64xf32> to vector<2x2x2x64xf32>
    %100 = arith.maximumf %97, %99 : vector<2x2x2x64xf32>
    %101 = vector.extract_strided_slice %100 {offsets = [0, 0, 0, 0], sizes = [2, 1, 1, 64], strides = [1, 1, 1, 1]} : vector<2x2x2x64xf32> to vector<2x1x1x64xf32>
    %102 = vector.shape_cast %101 : vector<2x1x1x64xf32> to vector<2x64xf32>
    %103 = vector.extract_strided_slice %100 {offsets = [0, 0, 1, 0], sizes = [2, 1, 1, 64], strides = [1, 1, 1, 1]} : vector<2x2x2x64xf32> to vector<2x1x1x64xf32>
    %104 = vector.shape_cast %103 : vector<2x1x1x64xf32> to vector<2x64xf32>
    %105 = vector.extract_strided_slice %100 {offsets = [0, 1, 0, 0], sizes = [2, 1, 1, 64], strides = [1, 1, 1, 1]} : vector<2x2x2x64xf32> to vector<2x1x1x64xf32>
    %106 = vector.shape_cast %105 : vector<2x1x1x64xf32> to vector<2x64xf32>
    %107 = vector.extract_strided_slice %100 {offsets = [0, 1, 1, 0], sizes = [2, 1, 1, 64], strides = [1, 1, 1, 1]} : vector<2x2x2x64xf32> to vector<2x1x1x64xf32>
    %108 = vector.shape_cast %107 : vector<2x1x1x64xf32> to vector<2x64xf32>
    %109 = tpu.concatenate %102, %104, %106, %108 in 1 : vector<2x64xf32>, vector<2x64xf32>, vector<2x64xf32>, vector<2x64xf32> -> vector<2x256xf32>
    %110 = arith.truncf %109 : vector<2x256xf32> to vector<2x256xbf16>
    %c0_26 = arith.constant 0 : index
    %c0_27 = arith.constant 0 : index
    %111 = vector.load %arg7[%c0_26, %c0_27] : memref<256x10xbf16, #tpu.memory_space<vmem>>, vector<256x10xbf16>
    %cst_28 = arith.constant dense<0.000000e+00> : vector<2x10xf32>
    %112 = tpu.matmul %110, %111, %cst_28 {dimension_numbers = #tpu.dot_dimension_numbers<[1], [0], [0], [1], [0, 0, 1, 1], [], []>} : vector<2x256xbf16>, vector<256x10xbf16>, vector<2x10xf32> -> vector<2x10xf32>
    %c0_29 = arith.constant 0 : index
    %c0_30 = arith.constant 0 : index
    %113 = vector.load %arg8[%c0_29, %c0_30] : memref<1x10xf32, #tpu.memory_space<vmem>>, vector<1x10xf32>
    %114 = vector.broadcast %113 : vector<1x10xf32> to vector<2x10xf32>
    %115 = arith.addf %112, %114 : vector<2x10xf32>
    %c0_31 = arith.constant 0 : index
    %c0_32 = arith.constant 0 : index
    %116 = vector.load %arg9[%c0_31, %c0_32] : memref<2x10xf32, #tpu.memory_space<vmem>>, vector<2x10xf32>
    tpu.vector_store %arg9[%c0_31, %c0_32], %115 {strides = array<i32>} : memref<2x10xf32, #tpu.memory_space<vmem>>, vector<2x10xf32>,
    return
  }
}

</mosaic_0001>

<bundles_post_ra>
// kernel: my_cnn_forward.1
= control target key start
LH: loop header
LB: loop body
LE: loop exit
PB: predicated region body
PF: predicated region fallthrough
CT: control target
= control target key end

     0   :  { %vm162_vm0 = vcmask 1041408   ;;  %vm842_vm1 = vcmask 1045504   ;;  %v12170_v4 = vmov 0.0   ;;  %vm484_vm2 = vcmask 1046528   ;;  %s12171_s21 = smov 8   ;;  %s12172_s22 = smov 4   ;;  %s17619_s0 = inlined_call_operand.vmem [shape: f32[2,16,16,4], index: 0, kind: input, shape index: {}]   ;;  %s17620_s1 = inlined_call_operand.vmem [shape: bf16[100,32], index: 1, kind: input, shape index: {}]   ;;  %s17621_s2 = inlined_call_operand.vmem [shape: f32[1,32], index: 2, kind: input, shape index: {}]   ;;  %s17622_s3 = inlined_call_operand.vmem [shape: bf16[288,64], index: 3, kind: input, shape index: {}]   ;;  %s17623_s4 = inlined_call_operand.vmem [shape: f32[1,64], index: 4, kind: input, shape index: {}]   ;;  %s17624_s5 = inlined_call_operand.vmem [shape: bf16[576,64], index: 5, kind: input, shape index: {}]   ;;  %s17625_s6 = inlined_call_operand.vmem [shape: f32[1,64], index: 6, kind: input, shape index: {}]   ;;  %s17626_s7 = inlined_call_operand.vmem [shape: bf16[256,10], index: 7, kind: input, shape index: {}]   ;;  %s17627_s8 = inlined_call_operand.vmem [shape: f32[1,10], index: 8, kind: input, shape index: {}]   ;;  %s17628_s9 = inlined_call_operand.hbm [shape: f32[2,10], index: 9, kind: output, shape index: {}]  }
   0x1   :  { %v34_v0 = vld [vmem:[%s17619_s0] sm:$0xff]  ;;  %v35_v1 = vld [vmem:[%s17619_s0 + $0x8] sm:$0xff]  ;;  %v12241_v5 = vrot.slane %v12170_v4, 2  ;;  %v36_v6 = vld [vmem:[%s17619_s0 + $0x10] sm:$0xff]  ;;  %v12247_v7 = vrot.slane %v12170_v4, 1  ;;  %vm1200_vm3 = vcmask 1044480  }
   0x2   :  { %v163_v2 = vrot.slane %v34_v0, 6  ;;  %v164_v3 = vrot.slane %v35_v1, 6  ;;  %v37_v8 = vld [vmem:[%s17619_s0 + $0x18] sm:$0xff]  ;;  %v38_v9 = vld [vmem:[%s17619_s0 + $0x20] sm:$0xff]  ;;  %v39_v10 = vld [vmem:[%s17619_s0 + $0x28] sm:$0xff]  ;;  %v166_v11 = vrot.slane %v36_v6, 6 }
   0x3   :  { %17773 = vst [vmem:[#allocation5_spill] sm:$0xff] %v12241_v5  ;;  %17774 = vst [vmem:[#allocation6_spill] sm:$0xff] %v12247_v7  ;;  %v167_v14 = vrot.slane %v37_v8, 6  ;;  %v169_v15 = vrot.slane %v38_v9, 6  ;;  %v170_v21 = vrot.slane %v39_v10, 6  ;;  %v1201_v38 = vrot.slane %v12170_v4, 3 }
   0x4   :  { %v12259_v12 = vsel %vm162_vm0, %v163_v2, %v164_v3  ;;  %v12262_v13 = vsel %vm162_vm0, 0.0, %v163_v2  ;;  %v12290_v34 = vsel %vm162_vm0, 0.0, %v166_v11  ;;  %v12293_v35 = vsel %vm162_vm0, %v164_v3, 0.0  ;;  %v40_v48 = vld [vmem:[%s17619_s0 + $0x30] sm:$0xff]  ;;  %v41_v49 = vld [vmem:[%s17619_s0 + $0x38] sm:$0xff]  ;;  %s12173_s27 = smov 12  }
   0x5   :  { %v845_v16 = vrot.slane %v12262_v13, 2  ;;  %v846_v17 = vrot.slane %v12259_v12, 2  ;;  %v487_v18 = vrot.slane %v12262_v13, 1  ;;  %v488_v19 = vrot.slane %v12259_v12, 1  ;;  %s12174_s11 = smov 16  }
   0x6   :  { %v12269_v20 = vsel %vm162_vm0, %v166_v11, %v167_v14  ;;  %v12272_v22 = vsel %vm162_vm0, 0.0, %v169_v15  ;;  %v12275_v23 = vsel %vm162_vm0, %v167_v14, 0.0  ;;  %v12284_v30 = vsel %vm162_vm0, %v169_v15, %v170_v21  ;;  %v42_v11 = vld [vmem:[%s17619_s0 + $0x40] sm:$0xff] }
   0x7   :  { %v847_v24 = vsel %vm842_vm1, %v845_v16, %v846_v17  ;;  %v489_v25 = vsel %vm484_vm2, %v487_v18, %v488_v19  ;;  %v493_v26 = vrot.slane %v12269_v20, 1  ;;  %v495_v27 = vrot.slane %v12275_v23, 1  ;;  %v12351_v18 = vld [vmem:[%s17619_s0 + $0x48] sm:$0xff] }
   0x8   :  { %v10681_v28 = vpack.i.bf16 %v847_v24, %v12241_v5  ;;  %v10671_v29 = vpack.i.bf16 %v489_v25, %v12247_v7  ;;  %v497_v31 = vrot.slane %v12272_v22, 1  ;;  %v498_v33 = vrot.slane %v12284_v30, 1 }
   0x9   :  { %v496_v32 = vsel %vm484_vm2, %v493_v26, %v495_v27  ;;  %v490_v36 = vrot.slane %v12293_v35, 1  ;;  %v492_v37 = vrot.slane %v12290_v34, 1  ;;  %v1203_v39 = vrot.slane %v12262_v13, 3 }
   0xa   :  { %10682 = vrot.lane.b32.xlu1 %v10681_v28, %s12171_s21  ;;  %10672 = vrot.lane.b32.xlu0 %v10671_v29, %s12172_s22  ;;  %v499_v40 = vsel %vm484_vm2, %v497_v31, %v498_v33  ;;  %v1204_v41 = vrot.slane %v12259_v12, 3  ;;  %v848_v42 = vrot.slane %v12293_v35, 2  ;;  %v850_v43 = vrot.slane %v12290_v34, 2 }
   0xb   :  { %v10686_v44 = vpack.i.bf16 %v499_v40, %v496_v32  ;;  %v491_v45 = vsel %vm484_vm2, %v488_v19, %v490_v36  ;;  %v494_v46 = vsel %vm484_vm2, %v492_v37, %v493_v26  ;;  %v851_v47 = vrot.slane %v12269_v20, 2 }
   0xc   :  { %v10676_v50 = vpack.i.bf16 %v494_v46, %v491_v45  ;;  %v1205_v51 = vsel %vm1200_vm3, %v1203_v39, %v1204_v41  ;;  %v849_v52 = vsel %vm842_vm1, %v846_v17, %v848_v42  ;;  %v853_v53 = vrot.slane %v12275_v23, 2 }
   0xd   :  { %v10696_v54 = vpack.i.bf16 %v1205_v51, %v1201_v38  ;;  %v852_v55 = vsel %vm842_vm1, %v850_v43, %v851_v47  ;;  %v855_v56 = vrot.slane %v12272_v22, 2  ;;  %v856_v57 = vrot.slane %v12284_v30, 2 }
   0xe   :  { %10687 = vrot.lane.b32.xlu1 %v10686_v44, %s12172_s22  ;;  %10677 = vrot.lane.b32.xlu0 %v10676_v50, %s12172_s22  ;;  %v10691_v58 = vpack.i.bf16 %v852_v55, %v849_v52  ;;  %v854_v59 = vsel %vm842_vm1, %v851_v47, %v853_v53  ;;  %v172_v60 = vrot.slane %v40_v48, 6  ;;  %v173_v61 = vrot.slane %v41_v49, 6 }
   0xf   :  { %v857_v62 = vsel %vm842_vm1, %v855_v56, %v856_v57  ;;  %v12325_v63 = vsel %vm162_vm0, %v170_v21, 0.0  ;;  %vm1558_vm4 = vcmask 1043456   ;;  %v1559_v0 = vrot.slane %v12170_v4, 4 }
  0x10   :  { %v10706_v1 = vpack.i.bf16 %v857_v62, %v854_v59  ;;  %v12329_v2 = vsel %vm162_vm0, %v172_v60, %v173_v61  ;;  %v12332_v3 = vsel %vm162_vm0, 0.0, %v172_v60  ;;  %v500_v6 = vrot.slane %v12325_v63, 1 }
  0x11   :  { %v502_v8 = vrot.slane %v12332_v3, 1  ;;  %v503_v9 = vrot.slane %v12329_v2, 1  ;;  %v1561_v10 = vrot.slane %v12262_v13, 4  ;;  %v1562_v4 = vrot.slane %v12259_v12, 4 }
  0x12   :  { %10697 = vrot.lane.b32.xlu1 %v10696_v54, %s12173_s27  ;;  %10692 = vrot.lane.b32.xlu0 %v10691_v58, %s12171_s21  ;;  %v501_v14 = vsel %vm484_vm2, %v498_v33, %v500_v6  ;;  %v1206_v15 = vrot.slane %v12293_v35, 3  ;;  %v1208_v16 = vrot.slane %v12290_v34, 3  ;;  %v1209_v17 = vrot.slane %v12269_v20, 3 }
  0x13   :  { %v504_v19 = vsel %vm484_vm2, %v502_v8, %v503_v9  ;;  %v1563_v21 = vsel %vm1558_vm4, %v1561_v10, %v1562_v4  ;;  %v858_v24 = vrot.slane %v12325_v63, 2  ;;  %v860_v25 = vrot.slane %v12332_v3, 2 }
  0x14   :  { %v10701_v26 = vpack.i.bf16 %v504_v19, %v501_v14  ;;  %v10716_v27 = vpack.i.bf16 %v1563_v21, %v1559_v0  ;;  %v1207_v28 = vsel %vm1200_vm3, %v1204_v41, %v1206_v15  ;;  %v1210_v29 = vsel %vm1200_vm3, %v1208_v16, %v1209_v17  ;;  %v44_v21 = vld [vmem:[%s17619_s0 + $0x50] sm:$0xff] }
  0x15   :  { %v10711_v31 = vpack.i.bf16 %v1210_v29, %v1207_v28  ;;  %v859_v32 = vsel %vm842_vm1, %v856_v57, %v858_v24  ;;  %v861_v33 = vrot.slane %v12329_v2, 2  ;;  %v175_v36 = vrot.slane %v42_v11, 6 }
  0x16   :  { %10707 = vrot.lane.b32.xlu1 %v10706_v1, %s12171_s21  ;;  %10702 = vrot.lane.b32.xlu0 %v10701_v26, %s12172_s22  ;;  %v176_v37 = vrot.slane %v12351_v18, 6  ;;  %v12365_v38 = vsel %vm162_vm0, %v173_v61, 0.0  ;;  %v1564_v39 = vrot.slane %v12293_v35, 4  ;;  %v1566_v40 = vrot.slane %v12290_v34, 4 }
  0x17   :  { %v862_v41 = vsel %vm842_vm1, %v860_v25, %v861_v33  ;;  %v12371_v42 = vsel %vm162_vm0, 0.0, %v175_v36  ;;  %v505_v43 = vrot.slane %v12365_v38, 1  ;;  %v1567_v44 = vrot.slane %v12269_v20, 4 }
  0x18   :  { %v10726_v45 = vpack.i.bf16 %v862_v41, %v859_v32  ;;  %v12378_v46 = vsel %vm162_vm0, %v175_v36, %v176_v37  ;;  %v507_v47 = vrot.slane %v12371_v42, 1  ;;  %v1565_v35 = vsel %vm1558_vm4, %v1562_v4, %v1564_v39  ;;  %v45_v32 = vld [vmem:[%s17619_s0 + $0x58] sm:$0xff]  ;;  %v12436_v36 = vld [vmem:[%s17619_s0 + $0x68] sm:$0xff] }
  0x19   :  { %v506_v48 = vsel %vm484_vm2, %v503_v9, %v505_v43  ;;  %v508_v49 = vrot.slane %v12378_v46, 1  ;;  %v1568_v50 = vsel %vm1558_vm4, %v1566_v40, %v1567_v44  ;;  %v1211_v51 = vrot.slane %v12275_v23, 3 }
  0x1a   :  { %10717 = vrot.lane.b32.xlu1 %v10716_v27, %s12174_s11  ;;  %10712 = vrot.lane.b32.xlu0 %v10711_v31, %s12173_s27  ;;  %v10736_v52 = vpack.i.bf16 %v1568_v50, %v1565_v35  ;;  %v1213_v53 = vrot.slane %v12272_v22, 3  ;;  %v1214_v54 = vrot.slane %v12284_v30, 3  ;;  %v1216_v55 = vrot.slane %v12325_v63, 3 }
  0x1b   :  { %v509_v56 = vsel %vm484_vm2, %v507_v47, %v508_v49  ;;  %v1212_v57 = vsel %vm1200_vm3, %v1209_v17, %v1211_v51  ;;  %v1218_v58 = vrot.slane %v12332_v3, 3  ;;  %v1219_v59 = vrot.slane %v12329_v2, 3 }
  0x1c   :  { %v10721_v60 = vpack.i.bf16 %v509_v56, %v506_v48  ;;  %v1215_v61 = vsel %vm1200_vm3, %v1213_v53, %v1214_v54  ;;  %v1217_v62 = vsel %vm1200_vm3, %v1214_v54, %v1216_v55  ;;  %v863_v0 = vrot.slane %v12365_v38, 2 }
  0x1d   :  { %v10731_v1 = vpack.i.bf16 %v1215_v61, %v1212_v57  ;;  %v1220_v6 = vsel %vm1200_vm3, %v1218_v58, %v1219_v59  ;;  %v865_v8 = vrot.slane %v12371_v42, 2  ;;  %v866_v9 = vrot.slane %v12378_v46, 2 }
  0x1e   :  { %10727 = vrot.lane.b32.xlu1 %v10726_v45, %s12171_s21  ;;  %10722 = vrot.lane.b32.xlu0 %v10721_v60, %s12172_s22  ;;  %v10746_v10 = vpack.i.bf16 %v1220_v6, %v1217_v62  ;;  %v864_v4 = vsel %vm842_vm1, %v861_v33, %v863_v0  ;;  %v1221_v11 = vrot.slane %v12365_v38, 3  ;;  %v1223_v14 = vrot.slane %v12371_v42, 3  ;;  %v46_v33 = vld [vmem:[%s17619_s0 + $0x60] sm:$0xff] }
  0x1f   :  { %v867_v15 = vsel %vm842_vm1, %v865_v8, %v866_v9  ;;  %v1224_v16 = vrot.slane %v12378_v46, 3  ;;  %v1569_v17 = vrot.slane %v12275_v23, 4  ;;  %v1571_v19 = vrot.slane %v12272_v22, 4 }
  0x20   :  { %v10741_v24 = vpack.i.bf16 %v867_v15, %v864_v4  ;;  %v1222_v25 = vsel %vm1200_vm3, %v1219_v59, %v1221_v11  ;;  %v1572_v26 = vrot.slane %v12284_v30, 4  ;;  %v1577_v27 = vrot.slane %v12329_v2, 4 }
  0x21   :  { %v1225_v28 = vsel %vm1200_vm3, %v1223_v14, %v1224_v16  ;;  %v1570_v23 = vsel %vm1558_vm4, %v1567_v44, %v1569_v17  ;;  %v1579_v29 = vrot.slane %v12365_v38, 4  ;;  %v1581_v31 = vrot.slane %v12371_v42, 4 }
  0x22   :  { %10737 = vrot.lane.b32.xlu1 %v10736_v52, %s12174_s11  ;;  %10732 = vrot.lane.b32.xlu0 %v10731_v1, %s12173_s27  ;;  %v10756_v39 = vpack.i.bf16 %v1225_v28, %v1222_v25  ;;  %v1573_v38 = vsel %vm1558_vm4, %v1571_v19, %v1572_v26  ;;  %v1582_v40 = vrot.slane %v12378_v46, 4  ;;  %v1574_v41 = vrot.slane %v12325_v63, 4 }
  0x23   :  { %v10751_v43 = vpack.i.bf16 %v1573_v38, %v1570_v23  ;;  %v1580_v44 = vsel %vm1558_vm4, %v1577_v27, %v1579_v29  ;;  %v1576_v45 = vrot.slane %v12332_v3, 4  ;;  %v178_v47 = vrot.slane %v44_v21, 6  ;;  %v48_v38 = vld [vmem:[%s17619_s0 + $0x70] sm:$0xff] }
  0x24   :  { %v1583_v35 = vsel %vm1558_vm4, %v1581_v31, %v1582_v40  ;;  %v1575_v48 = vsel %vm1558_vm4, %v1572_v26, %v1574_v41  ;;  %v179_v50 = vrot.slane %v45_v32, 6  ;;  %v181_v51 = vrot.slane %v46_v33, 6 }
  0x25   :  { %v10766_v52 = vpack.i.bf16 %v1583_v35, %v1580_v44  ;;  %v1578_v53 = vsel %vm1558_vm4, %v1576_v45, %v1577_v27  ;;  %v182_v63 = vrot.slane %v12436_v36, 6  ;;  %v12452_v54 = vsel %vm162_vm0, 0.0, %v178_v47 }
  0x26   :  { %10747 = vrot.lane.b32.xlu1 %v10746_v10, %s12173_s27  ;;  %10742 = vrot.lane.b32.xlu0 %v10741_v24, %s12171_s21  ;;  %v10761_v55 = vpack.i.bf16 %v1578_v53, %v1575_v48  ;;  %v12456_v56 = vsel %vm162_vm0, %v178_v47, %v179_v50  ;;  %v12459_v57 = vsel %vm162_vm0, 0.0, %v181_v51  ;;  %v392_v58 = vsel %vm162_vm0, %v179_v50, 0.0  ;;  %v50_v47 = vld [vmem:[%s17619_s0 + $0x80] sm:$0xff] }
  0x27   :  { %v12465_v59 = vsel %vm162_vm0, %v181_v51, %v182_v63  ;;  %v513_v60 = vrot.slane %v12456_v56, 1  ;;  %v515_v61 = vrot.slane %v392_v58, 1  ;;  %v517_v62 = vrot.slane %v12459_v57, 1 }
  0x28   :  { %v518_v0 = vrot.slane %v12465_v59, 1  ;;  %v391_v1 = vsel %vm162_vm0, %v176_v37, 0.0  ;;  %v512_v6 = vrot.slane %v12452_v54, 1  ;;  %v871_v8 = vrot.slane %v12456_v56, 2 }
  0x29   :  { %v516_v10 = vsel %vm484_vm2, %v513_v60, %v515_v61  ;;  %v510_v4 = vrot.slane %v391_v1, 1  ;;  %v873_v11 = vrot.slane %v392_v58, 2  ;;  %v875_v14 = vrot.slane %v12459_v57, 2 }
  0x2a   :  { %10757 = vrot.lane.b32.xlu1 %v10756_v39, %s12173_s27  ;;  %10752 = vrot.lane.b32.xlu0 %v10751_v43, %s12174_s11  ;;  %v519_v18 = vsel %vm484_vm2, %v517_v62, %v518_v0  ;;  %v514_v37 = vsel %vm484_vm2, %v512_v6, %v513_v60  ;;  %v876_v15 = vrot.slane %v12465_v59, 2  ;;  %v868_v17 = vrot.slane %v391_v1, 2 }
  0x2b   :  { %v511_v19 = vsel %vm484_vm2, %v508_v49, %v510_v4  ;;  %v870_v21 = vrot.slane %v12452_v54, 2  ;;  %v10776_v24 = vpack.i.bf16 %v519_v18, %v516_v10  ;;  %v874_v26 = vsel %vm842_vm1, %v871_v8, %v873_v11 }
  0x2c   :  { %v10771_v25 = vpack.i.bf16 %v514_v37, %v511_v19  ;;  %v1229_v27 = vrot.slane %v12456_v56, 3  ;;  %v877_v28 = vsel %vm842_vm1, %v875_v14, %v876_v15  ;;  %v869_v23 = vsel %vm842_vm1, %v866_v9, %v868_v17  ;;  %v49_v9 = vld [vmem:[%s17619_s0 + $0x78] sm:$0xff] }
  0x2d   :  { %v1231_v29 = vrot.slane %v392_v58, 3  ;;  %v1233_v49 = vrot.slane %v12459_v57, 3  ;;  %v872_v31 = vsel %vm842_vm1, %v870_v21, %v871_v8  ;;  %v1234_v32 = vrot.slane %v12465_v59, 3 }
  0x2e   :  { %10767 = vrot.lane.b32.xlu1 %v10766_v52, %s12174_s11  ;;  %10762 = vrot.lane.b32.xlu0 %v10761_v55, %s12174_s11  ;;  %v1226_v33 = vrot.slane %v391_v1, 3  ;;  %v1228_v39 = vrot.slane %v12452_v54, 3  ;;  %v1587_v43 = vrot.slane %v12456_v56, 4  ;;  %v1589_v44 = vrot.slane %v392_v58, 4  ;;  %v12525_v52 = vld [vmem:[%s17619_s0 + $0x88] sm:$0xff] }
  0x2f   :  { %v1232_v41 = vsel %vm1200_vm3, %v1229_v27, %v1231_v29  ;;  %v1591_v45 = vrot.slane %v12459_v57, 4  ;;  %v1235_v35 = vsel %vm1200_vm3, %v1233_v49, %v1234_v32  ;;  %v1592_v51 = vrot.slane %v12465_v59, 4 }
  0x30   :  { %v1227_v48 = vsel %vm1200_vm3, %v1224_v16, %v1226_v33  ;;  %v1230_v50 = vsel %vm1200_vm3, %v1228_v39, %v1229_v27  ;;  %v10786_v53 = vpack.i.bf16 %v877_v28, %v874_v26  ;;  %v10781_v55 = vpack.i.bf16 %v872_v31, %v869_v23 }
  0x31   :  { %v10796_v58 = vpack.i.bf16 %v1235_v35, %v1232_v41  ;;  %v1584_v60 = vrot.slane %v391_v1, 4  ;;  %v10791_v61 = vpack.i.bf16 %v1230_v50, %v1227_v48  ;;  %v1586_v16 = vrot.slane %v12452_v54, 4 }
  0x32   :  { %10777 = vrot.lane.b32.xlu1 %v10776_v24, %s12172_s22  ;;  %10772 = vrot.lane.b32.xlu0 %v10771_v25, %s12172_s22  ;;  %v184_v62 = vrot.slane %v48_v38, 6  ;;  %v185_v6 = vrot.slane %v49_v9, 6  ;;  %v1590_v8 = vsel %vm1558_vm4, %v1587_v43, %v1589_v44  ;;  %v1593_v10 = vsel %vm1558_vm4, %v1591_v45, %v1592_v51 }
  0x33   :  { %v187_v4 = vrot.slane %v50_v47, 6  ;;  %v188_v11 = vrot.slane %v12525_v52, 6  ;;  %v1585_v1 = vsel %vm1558_vm4, %v1582_v40, %v1584_v60  ;;  %v1588_v17 = vsel %vm1558_vm4, %v1586_v16, %v1587_v43  ;;  %v54_v16 = vld [vmem:[%s17619_s0 + $0xa0] sm:$0xff] }
  0x34   :  { %v12539_v14 = vsel %vm162_vm0, %v184_v62, %v185_v6  ;;  %v12542_v18 = vsel %vm162_vm0, %v185_v6, 0.0  ;;  %v12545_v37 = vsel %vm162_vm0, 0.0, %v184_v62  ;;  %v12565_v27 = vsel %vm162_vm0, %v182_v63, 0.0 }
  0x35   :  { %v12552_v19 = vsel %vm162_vm0, %v187_v4, %v188_v11  ;;  %v12555_v40 = vsel %vm162_vm0, 0.0, %v187_v4  ;;  %v523_v21 = vrot.slane %v12539_v14, 1  ;;  %v525_v24 = vrot.slane %v12542_v18, 1  ;;  %v12613_v4 = vld [vmem:[%s17619_s0 + $0xa8] sm:$0xff] }
  0x36   :  { %10787 = vrot.lane.b32.xlu1 %v10786_v53, %s12171_s21  ;;  %17775 = vst [vmem:[#allocation7_spill] sm:$0xff] %v12552_v19  ;;  %17776 = vst [vmem:[#allocation8_spill] sm:$0xff] %v12555_v40  ;;  %10782 = vrot.lane.b32.xlu0 %v10781_v55, %s12171_s21  ;;  %v527_v25 = vrot.slane %v12555_v40, 1  ;;  %v528_v26 = vrot.slane %v12552_v19, 1  ;;  %v520_v28 = vrot.slane %v12565_v27, 1  ;;  %v522_v23 = vrot.slane %v12545_v37, 1 }
  0x37   :  { %v881_v29 = vrot.slane %v12539_v14, 2  ;;  %v883_v49 = vrot.slane %v12542_v18, 2  ;;  %v526_v31 = vsel %vm484_vm2, %v523_v21, %v525_v24  ;;  %v885_v39 = vrot.slane %v12555_v40, 2 }
  0x38   :  { %v529_v33 = vsel %vm484_vm2, %v527_v25, %v528_v26  ;;  %v886_v36 = vrot.slane %v12552_v19, 2  ;;  %v10806_v63 = vpack.i.bf16 %v1593_v10, %v1590_v8  ;;  %v521_v38 = vsel %vm484_vm2, %v518_v0, %v520_v28  ;;  %v52_v0 = vld [vmem:[%s17619_s0 + $0x90] sm:$0xff] }
  0x39   :  { %v524_v9 = vsel %vm484_vm2, %v522_v23, %v523_v21  ;;  %v10801_v41 = vpack.i.bf16 %v1588_v17, %v1585_v1  ;;  %v10816_v43 = vpack.i.bf16 %v529_v33, %v526_v31  ;;  %v878_v44 = vrot.slane %v12565_v27, 2 }
  0x3a   :  { %10797 = vrot.lane.b32.xlu1 %v10796_v58, %s12173_s27  ;;  %10792 = vrot.lane.b32.xlu0 %v10791_v61, %s12173_s27  ;;  %v880_v45 = vrot.slane %v12545_v37, 2  ;;  %v884_v47 = vsel %vm842_vm1, %v881_v29, %v883_v49  ;;  %v1239_v35 = vrot.slane %v12539_v14, 3  ;;  %v1241_v48 = vrot.slane %v12542_v18, 3  ;;  %v53_v61 = vld [vmem:[%s17619_s0 + $0x98] sm:$0xff] }
  0x3b   :  { %v1243_v50 = vrot.slane %v12555_v40, 3  ;;  %v10811_v53 = vpack.i.bf16 %v524_v9, %v521_v38  ;;  %v887_v55 = vsel %vm842_vm1, %v885_v39, %v886_v36  ;;  %v1244_v58 = vrot.slane %v12552_v19, 3 }
  0x3c   :  { %v1236_v60 = vrot.slane %v12565_v27, 3  ;;  %v879_v62 = vsel %vm842_vm1, %v876_v15, %v878_v44  ;;  %v882_v6 = vsel %vm842_vm1, %v880_v45, %v881_v29  ;;  %v1238_v8 = vrot.slane %v12545_v37, 3 }
  0x3d   :  { %v1597_v10 = vrot.slane %v12539_v14, 4  ;;  %v1242_v1 = vsel %vm1200_vm3, %v1239_v35, %v1241_v48  ;;  %v1245_v17 = vsel %vm1200_vm3, %v1243_v50, %v1244_v58  ;;  %v1599_v15 = vrot.slane %v12542_v18, 4 }
  0x3e   :  { %10807 = vrot.lane.b32.xlu1 %v10806_v63, %s12174_s11  ;;  %10802 = vrot.lane.b32.xlu0 %v10801_v41, %s12174_s11  ;;  %v1601_v21 = vrot.slane %v12555_v40, 4  ;;  %v1237_v24 = vsel %vm1200_vm3, %v1234_v32, %v1236_v60  ;;  %v1240_v25 = vsel %vm1200_vm3, %v1238_v8, %v1239_v35  ;;  %v1602_v28 = vrot.slane %v12552_v19, 4 }
  0x3f   :  { %v1594_v23 = vrot.slane %v12565_v27, 4  ;;  %v10826_v29 = vpack.i.bf16 %v887_v55, %v884_v47  ;;  %v1596_v49 = vrot.slane %v12545_v37, 4  ;;  %v190_v31 = vrot.slane %v52_v0, 6 }
  0x40   :  { %v10821_v33 = vpack.i.bf16 %v882_v6, %v879_v62  ;;  %v10836_v18 = vpack.i.bf16 %v1245_v17, %v1242_v1  ;;  %v191_v39 = vrot.slane %v53_v61, 6  ;;  %v193_v63 = vrot.slane %v54_v16, 6 }
  0x41   :  { %v10831_v38 = vpack.i.bf16 %v1240_v25, %v1237_v24  ;;  %v1600_v32 = vsel %vm1558_vm4, %v1597_v10, %v1599_v15  ;;  %v194_v9 = vrot.slane %v12613_v4, 6  ;;  %v12634_v41 = vsel %vm162_vm0, 0.0, %v190_v31 }
  0x42   :  { %10817 = vrot.lane.b32.xlu1 %v10816_v43, %s12172_s22  ;;  %10812 = vrot.lane.b32.xlu0 %v10811_v53, %s12172_s22  ;;  %17777 = vst [vmem:[#allocation9_spill] sm:$0xff] %v12634_v41  ;;  %v1603_v27 = vsel %vm1558_vm4, %v1601_v21, %v1602_v28  ;;  %v12640_v43 = vsel %vm162_vm0, %v190_v31, %v191_v39  ;;  %v12643_v44 = vsel %vm162_vm0, 0.0, %v193_v63  ;;  %v12646_v45 = vsel %vm162_vm0, %v191_v39, 0.0 }
  0x43   :  { %17778 = vst [vmem:[#allocation10_spill] sm:$0xff] %v12640_v43  ;;  %17779 = vst [vmem:[#allocation11_spill] sm:$0xff] %v12643_v44  ;;  %v12651_v47 = vsel %vm162_vm0, %v193_v63, %v194_v9  ;;  %v533_v35 = vrot.slane %v12640_v43, 1  ;;  %v535_v48 = vrot.slane %v12646_v45, 1  ;;  %v537_v50 = vrot.slane %v12643_v44, 1  ;;  %v56_v63 = vld [vmem:[%s17619_s0 + $0xb0] sm:$0xff] }
  0x44   :  { %17780 = vst [vmem:[#allocation12_spill] sm:$0xff] %v12651_v47  ;;  %v538_v0 = vrot.slane %v12651_v47, 1  ;;  %v12661_v53 = vsel %vm162_vm0, %v188_v11, 0.0  ;;  %v532_v55 = vrot.slane %v12634_v41, 1  ;;  %v891_v60 = vrot.slane %v12640_v43, 2 }
  0x45   :  { %v1595_v61 = vsel %vm1558_vm4, %v1592_v51, %v1594_v23  ;;  %v530_v16 = vrot.slane %v12661_v53, 1  ;;  %v893_v62 = vrot.slane %v12646_v45, 2  ;;  %v895_v6 = vrot.slane %v12643_v44, 2 }
  0x46   :  { %10827 = vrot.lane.b32.xlu1 %v10826_v29, %s12171_s21  ;;  %10822 = vrot.lane.b32.xlu0 %v10821_v33, %s12171_s21  ;;  %v10846_v52 = vpack.i.bf16 %v1603_v27, %v1600_v32  ;;  %v1598_v11 = vsel %vm1558_vm4, %v1596_v49, %v1597_v10  ;;  %v896_v8 = vrot.slane %v12651_v47, 2  ;;  %v888_v1 = vrot.slane %v12661_v53, 2 }
  0x47   :  { %v536_v17 = vsel %vm484_vm2, %v533_v35, %v535_v48  ;;  %v539_v15 = vsel %vm484_vm2, %v537_v50, %v538_v0  ;;  %v534_v51 = vsel %vm484_vm2, %v532_v55, %v533_v35  ;;  %v890_v21 = vrot.slane %v12634_v41, 2  ;;  %v12712_v50 = vld [vmem:[%s17619_s0 + $0xc8] sm:$0xff] }
  0x48   :  { %v531_v10 = vsel %vm484_vm2, %v528_v26, %v530_v16  ;;  %v894_v24 = vsel %vm842_vm1, %v891_v60, %v893_v62  ;;  %v897_v25 = vsel %vm842_vm1, %v895_v6, %v896_v8  ;;  %v1249_v23 = vrot.slane %v12640_v43, 3 }
  0x49   :  { %v10841_v29 = vpack.i.bf16 %v1598_v11, %v1595_v61  ;;  %v1251_v49 = vrot.slane %v12646_v45, 3  ;;  %v1253_v31 = vrot.slane %v12643_v44, 3  ;;  %v889_v33 = vsel %vm842_vm1, %v886_v36, %v888_v1  ;;  %v58_v36 = vld [vmem:[%s17619_s0 + $0xc0] sm:$0xff] }
  0x4a   :  { %10837 = vrot.lane.b32.xlu1 %v10836_v18, %s12173_s27  ;;  %10832 = vrot.lane.b32.xlu0 %v10831_v38, %s12173_s27  ;;  %v892_v26 = vsel %vm842_vm1, %v890_v21, %v891_v60  ;;  %v1254_v18 = vrot.slane %v12651_v47, 3  ;;  %v1246_v39 = vrot.slane %v12661_v53, 3  ;;  %v57_v38 = vld [vmem:[%s17619_s0 + $0xb8] sm:$0xff]  ;;  %v10856_v32 = vpack.i.bf16 %v539_v15, %v536_v17 }
  0x4b   :  { %v10851_v27 = vpack.i.bf16 %v534_v51, %v531_v10  ;;  %v10866_v35 = vpack.i.bf16 %v897_v25, %v894_v24  ;;  %v1248_v48 = vrot.slane %v12634_v41, 3  ;;  %v1252_v55 = vsel %vm1200_vm3, %v1249_v23, %v1251_v49 }
  0x4c   :  { %v1255_v60 = vsel %vm1200_vm3, %v1253_v31, %v1254_v18  ;;  %v1607_v61 = vrot.slane %v12640_v43, 4  ;;  %v1609_v16 = vrot.slane %v12646_v45, 4  ;;  %v10861_v62 = vpack.i.bf16 %v892_v26, %v889_v33 }
  0x4d   :  { %v1247_v6 = vsel %vm1200_vm3, %v1244_v58, %v1246_v39  ;;  %v1611_v11 = vrot.slane %v12643_v44, 4  ;;  %v1604_v1 = vrot.slane %v12661_v53, 4  ;;  %v1606_v17 = vrot.slane %v12634_v41, 4 }
  0x4e   :  { %10847 = vrot.lane.b32.xlu1 %v10846_v52, %s12174_s11  ;;  %10842 = vrot.lane.b32.xlu0 %v10841_v29, %s12174_s11  ;;  %v1612_v52 = vrot.slane %v12651_v47, 4  ;;  %v196_v15 = vrot.slane %v56_v63, 6  ;;  %v197_v51 = vrot.slane %v57_v38, 6  ;;  %v10876_v21 = vpack.i.bf16 %v1255_v60, %v1252_v55 }
  0x4f   :  { %v1250_v45 = vsel %vm1200_vm3, %v1248_v48, %v1249_v23  ;;  %v199_v10 = vrot.slane %v58_v36, 6  ;;  %v200_v24 = vrot.slane %v12712_v50, 6  ;;  %v1610_v58 = vsel %vm1558_vm4, %v1607_v61, %v1609_v16 }
  0x50   :  { %v12734_v25 = vsel %vm162_vm0, %v196_v15, %v197_v51  ;;  %v12737_v29 = vsel %vm162_vm0, %v197_v51, 0.0  ;;  %v12740_v53 = vsel %vm162_vm0, 0.0, %v196_v15  ;;  %v1613_v23 = vsel %vm1558_vm4, %v1611_v11, %v1612_v52 }
  0x51   :  { %17781 = vst [vmem:[#allocation13_spill] sm:$0xff] %v12734_v25  ;;  %17782 = vst [vmem:[#allocation14_spill] sm:$0xff] %v12740_v53  ;;  %v12749_v49 = vsel %vm162_vm0, %v199_v10, %v200_v24  ;;  %v12752_v31 = vsel %vm162_vm0, 0.0, %v199_v10  ;;  %v543_v33 = vrot.slane %v12734_v25, 1  ;;  %v545_v26 = vrot.slane %v12737_v29, 1 }
  0x52   :  { %10857 = vrot.lane.b32.xlu1 %v10856_v32, %s12172_s22  ;;  %10852 = vrot.lane.b32.xlu0 %v10851_v27, %s12172_s22  ;;  %17783 = vst [vmem:[#allocation15_spill] sm:$0xff] %v12749_v49  ;;  %17784 = vst [vmem:[#allocation16_spill] sm:$0xff] %v12752_v31  ;;  %v547_v39 = vrot.slane %v12752_v31, 1  ;;  %v548_v63 = vrot.slane %v12749_v49, 1  ;;  %v12761_v38 = vsel %vm162_vm0, %v194_v9, 0.0  ;;  %v542_v27 = vrot.slane %v12740_v53, 1 }
  0x53   :  { %v540_v32 = vrot.slane %v12761_v38, 1  ;;  %v901_v48 = vrot.slane %v12734_v25, 2  ;;  %v903_v36 = vrot.slane %v12737_v29, 2  ;;  %v1605_v55 = vsel %vm1558_vm4, %v1602_v28, %v1604_v1  ;;  %v60_v28 = vld [vmem:[%s17619_s0 + $0xd0] sm:$0xff] }
  0x54   :  { %v1608_v60 = vsel %vm1558_vm4, %v1606_v17, %v1607_v61  ;;  %v905_v4 = vrot.slane %v12752_v31, 2  ;;  %v17629_v9 = vrot.slane %v12749_v49, 2  ;;  %v10871_v16 = vpack.i.bf16 %v1250_v45, %v1247_v6  ;;  %v61_v17 = vld [vmem:[%s17619_s0 + $0xd8] sm:$0xff] }
  0x55   :  { %v10886_v11 = vpack.i.bf16 %v1613_v23, %v1610_v58  ;;  %v10881_v15 = vpack.i.bf16 %v1608_v60, %v1605_v55  ;;  %v546_v51 = vsel %vm484_vm2, %v543_v33, %v545_v26  ;;  %v541_v61 = vsel %vm484_vm2, %v538_v0, %v540_v32  ;;  %v12807_v26 = vld [vmem:[%s17619_s0 + $0xe8] sm:$0xff] }
  0x56   :  { %10867 = vrot.lane.b32.xlu1 %v10866_v35, %s12171_s21  ;;  %10862 = vrot.lane.b32.xlu0 %v10861_v62, %s12171_s21  ;;  %v549_v35 = vsel %vm484_vm2, %v547_v39, %v548_v63  ;;  %v544_v62 = vsel %vm484_vm2, %v542_v27, %v543_v33  ;;  %v898_v6 = vrot.slane %v12761_v38, 2  ;;  %v900_v1 = vrot.slane %v12740_v53, 2  ;;  %v62_v33 = vld [vmem:[%s17619_s0 + $0xe0] sm:$0xff] }
  0x57   :  { %v904_v45 = vsel %vm842_vm1, %v901_v48, %v903_v36  ;;  %v1259_v0 = vrot.slane %v12734_v25, 3  ;;  %v1261_v10 = vrot.slane %v12737_v29, 3  ;;  %v1263_v58 = vrot.slane %v12752_v31, 3 }
  0x58   :  { %v17634_v23 = vrot.slane %v12749_v49, 3  ;;  %v10896_v39 = vpack.i.bf16 %v549_v35, %v546_v51  ;;  %v10891_v32 = vpack.i.bf16 %v544_v62, %v541_v61  ;;  %v1256_v27 = vrot.slane %v12761_v38, 3 }
  0x59   :  { %v1258_v36 = vrot.slane %v12740_v53, 3  ;;  %v899_v60 = vsel %vm842_vm1, %v896_v8, %v898_v6  ;;  %v1262_v51 = vsel %vm1200_vm3, %v1259_v0, %v1261_v10  ;;  %v203_v35 = vrot.slane %v61_v17, 6 }
  0x5a   :  { %10877 = vrot.lane.b32.xlu1 %v10876_v21, %s12173_s27  ;;  %10872 = vrot.lane.b32.xlu0 %v10871_v16, %s12173_s27  ;;  %v907_v21 = vsel %vm842_vm1, %v905_v4, %v17629_v9  ;;  %v1617_v4 = vrot.slane %v12734_v25, 4  ;;  %v202_v16 = vrot.slane %v60_v28, 6  ;;  %v902_v9 = vsel %vm842_vm1, %v900_v1, %v901_v48 }
  0x5b   :  { %v10906_v55 = vpack.i.bf16 %v907_v21, %v904_v45  ;;  %v205_v61 = vrot.slane %v62_v33, 6  ;;  %v1619_v62 = vrot.slane %v12737_v29, 4  ;;  %v1621_v45 = vrot.slane %v12752_v31, 4 }
  0x5c   :  { %v17633_v8 = vrot.slane %v12807_v26, 6  ;;  %v12829_v48 = vsel %vm162_vm0, %v202_v16, %v203_v35  ;;  %v12835_v6 = vsel %vm162_vm0, %v203_v35, 0.0  ;;  %v1260_v29 = vsel %vm1200_vm3, %v1258_v36, %v1259_v0 }
  0x5d   :  { %17785 = vst [vmem:[#allocation17_spill] sm:$0xff] %v12829_v48  ;;  %v12832_v28 = vsel %vm162_vm0, 0.0, %v205_v61  ;;  %v17632_v1 = vrot.slane %v12749_v49, 4  ;;  %v10901_v21 = vpack.i.bf16 %v902_v9, %v899_v60  ;;  %v1614_v10 = vrot.slane %v12761_v38, 4 }
  0x5e   :  { %10887 = vrot.lane.b32.xlu1 %v10886_v11, %s12174_s11  ;;  %10882 = vrot.lane.b32.xlu0 %v10881_v15, %s12174_s11  ;;  %v1265_v11 = vsel %vm1200_vm3, %v1263_v58, %v17634_v23  ;;  %v1257_v15 = vsel %vm1200_vm3, %v1254_v18, %v1256_v27  ;;  %17786 = vst [vmem:[#allocation18_spill] sm:$0xff] %v12832_v28  ;;  %v12846_v18 = vsel %vm162_vm0, 0.0, %v202_v16  ;;  %v1616_v58 = vrot.slane %v12740_v53, 4 }
  0x5f   :  { %v12843_v17 = vsel %vm162_vm0, %v205_v61, %v17633_v8  ;;  %17788 = vst [vmem:[#allocation20_spill] sm:$0xff] %v12846_v18  ;;  %v12854_v0 = vsel %vm162_vm0, %v200_v24, 0.0  ;;  %v553_v33 = vrot.slane %v12829_v48, 1  ;;  %v557_v27 = vrot.slane %v12832_v28, 1 }
  0x60   :  { %17787 = vst [vmem:[#allocation19_spill] sm:$0xff] %v12843_v17  ;;  %v17630_v36 = vrot.slane %v12843_v17, 1  ;;  %v10916_v16 = vpack.i.bf16 %v1265_v11, %v1262_v51  ;;  %v552_v9 = vrot.slane %v12846_v18, 1  ;;  %v911_v38 = vrot.slane %v12829_v48, 2 }
  0x61   :  { %v1620_v50 = vsel %vm1558_vm4, %v1617_v4, %v1619_v62  ;;  %v1623_v24 = vsel %vm1558_vm4, %v1621_v45, %v17632_v1  ;;  %v550_v60 = vrot.slane %v12854_v0, 1  ;;  %v913_v35 = vrot.slane %v12835_v6, 2 }
  0x62   :  { %10897 = vrot.lane.b32.xlu1 %v10896_v39, %s12172_s22  ;;  %10892 = vrot.lane.b32.xlu0 %v10891_v32, %s12172_s22  ;;  %v555_v39 = vrot.slane %v12835_v6, 1  ;;  %v10911_v32 = vpack.i.bf16 %v1260_v29, %v1257_v15  ;;  %v1615_v51 = vsel %vm1558_vm4, %v1612_v52, %v1614_v10  ;;  %v1618_v61 = vsel %vm1558_vm4, %v1616_v58, %v1617_v4  ;;  %v64_v52 = vld [vmem:[%s17619_s0 + $0xf0] sm:$0xff]  ;;  %v65_v58 = vld [vmem:[%s17619_s0 + $0xf8] sm:$0xff] }
  0x63   :  { %v17631_v11 = vrot.slane %v12843_v17, 2  ;;  %v559_v45 = vsel %vm484_vm2, %v557_v27, %v17630_v36  ;;  %v908_v15 = vrot.slane %v12854_v0, 2  ;;  %v910_v29 = vrot.slane %v12846_v18, 2 }
  0x64   :  { %v556_v62 = vsel %vm484_vm2, %v553_v33, %v555_v39  ;;  %v10926_v4 = vpack.i.bf16 %v1623_v24, %v1620_v50  ;;  %v554_v10 = vsel %vm484_vm2, %v552_v9, %v553_v33  ;;  %v66_v39 = vld [vmem:[%s17619_s0 + $0x100] sm:$0xff]  ;;  %v551_v36 = vsel %vm484_vm2, %v548_v63, %v550_v60  ;;  %v12904_v9 = vld [vmem:[%s17619_s0 + $0x108] sm:$0xff] }
  0x65   :  { %v10936_v27 = vpack.i.bf16 %v559_v45, %v556_v62  ;;  %v17789_v50 = vrot.slane %v12749_v49, 2  ;;  %v912_v24 = vsel %vm842_vm1, %v910_v29, %v911_v38  ;;  %v1271_v63 = vrot.slane %v12835_v6, 3 }
  0x66   :  { %10907 = vrot.lane.b32.xlu1 %v10906_v55, %s12171_s21  ;;  %10902 = vrot.lane.b32.xlu0 %v10901_v21, %s12171_s21  ;;  %v915_v55 = vrot.slane %v12832_v28, 2  ;;  %v10921_v21 = vpack.i.bf16 %v1618_v61, %v1615_v51  ;;  %v1269_v51 = vrot.slane %v12829_v48, 3  ;;  %v1273_v60 = vrot.slane %v12832_v28, 3 }
  0x67   :  { %v1266_v61 = vrot.slane %v12854_v0, 3 }
  0x68   :  { %v917_v33 = vsel %vm842_vm1, %v915_v55, %v17631_v11  ;;  %v1268_v55 = vrot.slane %v12846_v18, 3 }
  0x6a   :  { %10917 = vrot.lane.b32.xlu1 %v10916_v16, %s12173_s27  ;;  %10912 = vrot.lane.b32.xlu0 %v10911_v32, %s12173_s27  ;;  %v914_v16 = vsel %vm842_vm1, %v911_v38, %v913_v35  ;;  %v909_v32 = vsel %vm842_vm1, %v17789_v50, %v908_v15  ;;  %v17638_v35 = vrot.slane %v12843_v17, 3 }
  0x6b   :  { %14 = vsyncpa [#allocation3], 0  ;;  %v208_v62 = vrot.slane %v64_v52, 6  ;;  %v209_v45 = vrot.slane %v65_v58, 6  ;;  %v211_v15 = vrot.slane %v66_v39, 6  ;;  %v17635_v38 = vrot.slane %v12904_v9, 6 }
  0x6c   :  { %v10931_v29 = vpack.i.bf16 %v554_v10, %v551_v36  ;;  %v10946_v50 = vpack.i.bf16 %v917_v33, %v914_v16  ;;  %v10941_v11 = vpack.i.bf16 %v912_v24, %v909_v32  ;;  %v1272_v1 = vsel %vm1200_vm3, %v1269_v51, %v1271_v63  ;;  %s12175_s25 = smov 20   ;;  %s12176_s13 = smov 40  }
  0x6d   :  { %v1627_v8 = vrot.slane %v12829_v48, 4  ;;  %v1275_v23 = vsel %vm1200_vm3, %v1273_v60, %v17638_v35  ;;  %v12930_v58 = vsel %vm162_vm0, %v211_v15, %v17635_v38  ;;  %v12933_v36 = vsel %vm162_vm0, 0.0, %v211_v15  ;;  %s12177_s24 = smov 60  }
  0x6e   :  { %10927 = vrot.lane.b32.xlu1 %v10926_v4, %s12174_s11  ;;  %10922 = vrot.lane.b32.xlu0 %v10921_v21, %s12174_s11  ;;  %v17790_v4 = vrot.slane %v12749_v49, 3  ;;  %17791 = vst [vmem:[#allocation21_spill] sm:$0xff] %v12930_v58  ;;  %17792 = vst [vmem:[#allocation22_spill] sm:$0xff] %v12933_v36  ;;  %v1270_v21 = vsel %vm1200_vm3, %v1268_v55, %v1269_v51  ;;  %v1629_v10 = vrot.slane %v12835_v6, 4  ;;  %v12942_v16 = vsel %vm162_vm0, %v209_v45, 0.0 }
  0x6f   :  { %v12939_v39 = vsel %vm162_vm0, %v208_v62, %v209_v45  ;;  %v1631_v33 = vrot.slane %v12832_v28, 4  ;;  %v17637_v32 = vrot.slane %v12843_v17, 4  ;;  %v1624_v24 = vrot.slane %v12854_v0, 4 }
  0x70   :  { %v1267_v52 = vsel %vm1200_vm3, %v17790_v4, %v1266_v61  ;;  %17793 = vst [vmem:[#allocation23_spill] sm:$0xff] %v12939_v39  ;;  %v567_v51 = vrot.slane %v12933_v36, 1  ;;  %v17636_v6 = vrot.slane %v12930_v58, 1  ;;  %v12952_v63 = vsel %vm162_vm0, 0.0, %v208_v62 }
  0x71   :  { %17794 = vst [vmem:[#allocation24_spill] sm:$0xff] %v12952_v63  ;;  %v563_v60 = vrot.slane %v12939_v39, 1  ;;  %v565_v61 = vrot.slane %v12942_v16, 1  ;;  %v17795_v55 = vrot.slane %v12807_v26, 6  ;;  %v10956_v0 = vpack.i.bf16 %v1275_v23, %v1272_v1 }
  0x72   :  { %10937 = vrot.lane.b32.xlu1 %v10936_v27, %s12172_s22  ;;  %10932 = vrot.lane.b32.xlu0 %v10931_v29, %s12172_s22  ;;  %v1626_v27 = vrot.slane %v12846_v18, 4  ;;  %v10951_v15 = vpack.i.bf16 %v1270_v21, %v1267_v52  ;;  %v1630_v29 = vsel %vm1558_vm4, %v1627_v8, %v1629_v10  ;;  %v1633_v62 = vsel %vm1558_vm4, %v1631_v33, %v17637_v32 }
  0x73   :  { %v12959_v45 = vsel %vm162_vm0, %v17795_v55, 0.0  ;;  %v17796_v4 = vrot.slane %v12749_v49, 4  ;;  %v562_v55 = vrot.slane %v12952_v63, 1  ;;  %v569_v23 = vsel %vm484_vm2, %v567_v51, %v17636_v6 }
  0x74   :  { %v1628_v26 = vsel %vm1558_vm4, %v1626_v27, %v1627_v8  ;;  %v560_v1 = vrot.slane %v12959_v45, 1  ;;  %v566_v52 = vsel %vm484_vm2, %v563_v60, %v565_v61  ;;  %v925_v21 = vrot.slane %v12933_v36, 2 }
  0x75   :  { %v1625_v38 = vsel %vm1558_vm4, %v17796_v4, %v1624_v24  ;;  %v918_v8 = vrot.slane %v12959_v45, 2  ;;  %v10966_v33 = vpack.i.bf16 %v1633_v62, %v1630_v29  ;;  %v920_v24 = vrot.slane %v12952_v63, 2 }
  0x76   :  { %10947 = vrot.lane.b32.xlu1 %v10946_v50, %s12171_s21  ;;  %10942 = vrot.lane.b32.xlu0 %v10941_v11, %s12171_s21  ;;  %v921_v11 = vrot.slane %v12939_v39, 2  ;;  %v923_v50 = vrot.slane %v12942_v16, 2  ;;  %v10961_v27 = vpack.i.bf16 %v1628_v26, %v1625_v38  ;;  %v10976_v6 = vpack.i.bf16 %v569_v23, %v566_v52 }
  0x77   :  { %v17797_v61 = vrot.slane %v12843_v17, 1  ;;  %v564_v35 = vsel %vm484_vm2, %v562_v55, %v563_v60  ;;  %v17799_v62 = vrot.slane %v12843_v17, 2  ;;  %v1281_v26 = vrot.slane %v12942_v16, 3 }
  0x78   :  { %v924_v10 = vsel %vm842_vm1, %v921_v11, %v923_v50  ;;  %v922_v23 = vsel %vm842_vm1, %v920_v24, %v921_v11  ;;  %v1283_v60 = vrot.slane %v12933_v36, 3  ;;  %v17639_v55 = vrot.slane %v12930_v58, 3 }
  0x79   :  { %v561_v32 = vsel %vm484_vm2, %v17797_v61, %v560_v1  ;;  %v919_v38 = vsel %vm842_vm1, %v17799_v62, %v918_v8  ;;  %v1276_v1 = vrot.slane %v12959_v45, 3  ;;  %v1278_v52 = vrot.slane %v12952_v63, 3 }
  0x7a   :  { %10957 = vrot.lane.b32.xlu1 %v10956_v0, %s12173_s27  ;;  %10952 = vrot.lane.b32.xlu0 %v10951_v15, %s12173_s27  ;;  %v17798_v0 = vrot.slane %v12930_v58, 2  ;;  %v1279_v15 = vrot.slane %v12939_v39, 3  ;;  %v10971_v50 = vpack.i.bf16 %v564_v35, %v561_v32  ;;  %v17800_v24 = vrot.slane %v12843_v17, 3 }
  0x7b   :  { %v1637_v32 = vrot.slane %v12939_v39, 4  ;;  %vm1916_vm5 = vcmask 31744   ;;  %vm1982_vm6 = vcmask 64512   ;;  %vm2048_vm7 = vcmask 97280   ;;  %v13154_v39 = vld [vmem:[%s17619_s0 + $0x138] sm:$0xff] }
  0x7c   :  { %v12985_v51 = vpop.permute.xlu1 %10682  ;;  %v10673_v4 = vpop.permute.xlu0 %10672  ;;  %v927_v29 = vsel %vm842_vm1, %v925_v21, %v17798_v0  ;;  %v10981_v0 = vpack.i.bf16 %v922_v23, %v919_v38  ;;  %v1282_v11 = vsel %vm1200_vm3, %v1279_v15, %v1281_v26  ;;  %v1277_v35 = vsel %vm1200_vm3, %v17800_v24, %v1276_v1  ;;  %v68_v23 = vld [vmem:[%s17619_s0 + $0x110] sm:$0xff] }
  0x7d   :  { %v10986_v61 = vpack.i.bf16 %v927_v29, %v924_v10  ;;  %v1639_v10 = vrot.slane %v12942_v16, 4  ;;  %v17645_v29 = vrot.slane %v12930_v58, 4  ;;  %v1634_v38 = vrot.slane %v12959_v45, 4  ;;  %v13035_v16 = vld [vmem:[%s17619_s0 + $0x118] sm:$0xff] }
  0x7e   :  { %10967 = vrot.lane.b32.xlu1 %v10966_v33, %s12174_s11  ;;  %10962 = vrot.lane.b32.xlu0 %v10961_v27, %s12174_s11  ;;  %v1285_v33 = vsel %vm1200_vm3, %v1283_v60, %v17639_v55  ;;  %v1280_v27 = vsel %vm1200_vm3, %v1278_v52, %v1279_v15  ;;  %v1636_v26 = vrot.slane %v12952_v63, 4  ;;  %v10675_v60 = vunpack.i.h.bf16 %v10673_v4 }
  0x7f   :  { %v10674_v1 = vunpack.i.l.bf16 %v10673_v4  ;;  %v10996_v15 = vpack.i.bf16 %v1285_v33, %v1282_v11  ;;  %v10991_v45 = vpack.i.bf16 %v1280_v27, %v1277_v35  ;;  %v10685_v52 = vunpack.i.h.bf16 %v12985_v51 }
  0x80   :  { %v13007_v21 = vpop.permute.xlu1 %10687  ;;  %v13009_v8 = vpop.permute.xlu0 %10677  ;;  %v1640_v24 = vsel %vm1558_vm4, %v1637_v32, %v1639_v10  ;;  %v214_v55 = vrot.slane %v68_v23, 6  ;;  %v10684_v7 = vunpack.i.l.bf16 %v12985_v51  ;;  %v1638_v11 = vsel %vm1558_vm4, %v1636_v26, %v1637_v32 }
  0x81   :  { %v215_v33 = vrot.slane %v13035_v16, 6  ;;  %v1918_v35 = vsel %vm1916_vm5, %v12262_v13, %v10675_v60  ;;  %v1917_v51 = vsel %vm1916_vm5, 0.0, %v10674_v1  ;;  %vm2114_vm8 = vcmask 130048   ;;  %v70_v60 = vld [vmem:[%s17619_s0 + $0x120] sm:$0xff]  ;;  %v13076_v1 = vld [vmem:[%s17619_s0 + $0x128] sm:$0xff] }
  0x82   :  { %10977 = vrot.lane.b32.xlu1 %v10976_v6, %s12172_s22  ;;  %10972 = vrot.lane.b32.xlu0 %v10971_v50, %s12172_s22  ;;  %v1641_v6 = vrot.slane %v12933_v36, 4  ;;  %v17801_v36 = vrot.slane %v12843_v17, 4  ;;  %v1983_v13 = vsel %vm1982_vm6, %v1917_v51, %v10684_v7  ;;  %v1984_v26 = vsel %vm1982_vm6, %v1918_v35, %v10685_v52 }
  0x83   :  { %v10690_v16 = vunpack.i.h.bf16 %v13007_v21  ;;  %v17804_v52 = vrot.slane %v12904_v9, 6  ;;  %v217_v35 = vrot.slane %v70_v60, 6  ;;  %v218_v51 = vrot.slane %v13076_v1, 6 }
  0x84   :  { %v10698_v62 = vpop.permute.xlu1 %10697  ;;  %v13030_v50 = vpop.permute.xlu0 %10692  ;;  %v1643_v4 = vsel %vm1558_vm4, %v1641_v6, %v17645_v29  ;;  %v17835_v44 = vrot.slane %v12930_v58, 4  ;;  %vm2974_vm9 = vcmask 162816   ;;  %vm3036_vm10 = vcmask 326656  }
  0x85   :  { %v10700_v10 = vunpack.i.h.bf16 %v10698_v62  ;;  %v10699_v6 = vunpack.i.l.bf16 %v10698_v62  ;;  %v13068_v62 = vsel %vm162_vm0, %v214_v55, %v215_v33  ;;  %v10695_v60 = vunpack.i.h.bf16 %v13030_v50 }
  0x86   :  { %10987 = vrot.lane.b32.xlu1 %v10986_v61, %s12171_s21  ;;  %10982 = vrot.lane.b32.xlu0 %v10981_v0, %s12171_s21  ;;  %v1635_v61 = vsel %vm1558_vm4, %v17801_v36, %v1634_v38  ;;  %v12066_v0 = vld [vmem:[%s17620_s1] sm:$0xff]   ;;  %v11006_v36 = vpack.i.bf16 %v1643_v4, %v1640_v24  ;;  %v13063_v38 = vsel %vm162_vm0, 0.0, %v214_v55  ;;  %17803 = vst [vmem:[#allocation26_spill] sm:$0xff] %v13068_v62  ;;  %v13082_v24 = vsel %vm162_vm0, %v17804_v52, 0.0 }
  0x87   :  { %10546 = vmatprep.subr.bf16.mxu0 %v12066_v0  ;;  %v11001_v32 = vpack.i.bf16 %v1638_v11, %v1635_v61  ;;  %17802 = vst [vmem:[#allocation25_spill] sm:$0xff] %v13063_v38  ;;  %v10680_v55 = vunpack.i.h.bf16 %v13009_v8  ;;  %v2049_v4 = vsel %vm2048_vm7, %v1983_v13, %v10699_v6  ;;  %v2050_v61 = vsel %vm2048_vm7, %v1984_v26, %v10700_v10  ;;  %v12067_v6 = vld [vmem:[%s17620_s1 + $0x8] sm:$0xff]   ;;  %v12068_v10 = vld [vmem:[%s17620_s1 + $0x10] sm:$0xff]  }
  0x88   :  { %v13045_v5 = vpop.permute.xlu1 %10707  ;;  %v13058_v27 = vpop.permute.xlu0 %10702  ;;  %10547 = vmatpush3.bf16.msra.mxu0 %v12066_v0  ;;  %v572_v11 = vrot.slane %v13063_v38, 1  ;;  %v570_v26 = vrot.slane %v13082_v24, 1  ;;  %v10694_v1 = vunpack.i.l.bf16 %v13030_v50  ;;  %v13124_v50 = vsel %vm162_vm0, %v217_v35, %v218_v51 }
  0x89   :  { %10548 = vmatprep.subr.bf16.mxu0 %v12067_v6  ;;  %v1920_v29 = vsel %vm1916_vm5, %v12290_v34, %v10680_v55  ;;  %17807 = vst [vmem:[#allocation29_spill] sm:$0xff] %v13124_v50  ;;  %v72_v55 = vld [vmem:[%s17619_s0 + $0x130] sm:$0xff]  ;;  %v578_v17 = vrot.slane %v13124_v50, 1  ;;  %v17816_v49 = vrot.slane %v13068_v62, 2  ;;  %vm3101_vm11 = vcmask 490496  }
  0x8a   :  { %10997 = vrot.lane.b32.xlu1 %v10996_v15, %s12173_s27  ;;  %10992 = vrot.lane.b32.xlu0 %v10991_v45, %s12173_s27  ;;  %vm3166_vm12 = vcmask 654336   ;;  %vm3322_vm13 = vcmask 818176   ;;  %vm6975_vm14 = vcmask 1042434   ;;  %vm6977_vm15 = vcmask 1043459  }
  0x8c   :  { %v10718_v23 = vpop.permute.xlu1 %10717  ;;  %v10713_v45 = vpop.permute.xlu0 %10712  ;;  %10549 = vmatpush3.bf16.msra.mxu0 %v12067_v6  ;;  %v17809_v6 = vrot.slane %v12930_v58, 1 }
  0x8d   :  { %v10720_v15 = vunpack.i.h.bf16 %v10718_v23  ;;  %v10719_v7 = vunpack.i.l.bf16 %v10718_v23  ;;  %v573_v23 = vrot.slane %v13068_v62, 1  ;;  %v10715_v52 = vunpack.i.h.bf16 %v10713_v45  ;;  %10550 = vmatprep.subr.bf16.mxu0 %v12068_v10 }
  0x8e   :  { %11007 = vrot.lane.b32.xlu1 %v11006_v36, %s12174_s11  ;;  %11002 = vrot.lane.b32.xlu0 %v11001_v32, %s12174_s11  ;;  %v10679_v36 = vunpack.i.l.bf16 %v13009_v8  ;;  %v10689_v8 = vunpack.i.l.bf16 %v13007_v21 }
  0x8f   :  { %v13090_v0 = vsel %vm2114_vm8, %v2049_v4, %v10719_v7  ;;  %v13094_v9 = vsel %vm2114_vm8, %v2050_v61, %v10720_v15  ;;  %v13115_v7 = vsel %vm162_vm0, %v215_v33, 0.0  ;;  %v10714_v4 = vunpack.i.l.bf16 %v10713_v45 }
  0x90   :  { %17805 = vst [vmem:[#allocation27_spill] sm:$0xff] %v13090_v0  ;;  %17806 = vst [vmem:[#allocation28_spill] sm:$0xff] %v13094_v9  ;;  %v13104_v13 = vpop.permute.xlu1 %10727  ;;  %v11011_v32 = vpack.i.bf16 %v13094_v9, %v13090_v0  ;;  %v13112_v15 = vpop.permute.xlu0 %10722  ;;  %v1922_v61 = vsel %vm1916_vm5, %v12272_v22, %v10690_v16  ;;  %v13127_v33 = vsel %vm162_vm0, 0.0, %v217_v35  ;;  %v1919_v21 = vsel %vm1916_vm5, %v12259_v12, %v10679_v36 }
  0x91   :  { %17808 = vst [vmem:[#allocation30_spill] sm:$0xff] %v13127_v33  ;;  %v13134_v22 = vsel %vm484_vm2, %v17809_v6, %v570_v26  ;;  %v13137_v34 = vsel %vm484_vm2, %v572_v11, %v573_v23  ;;  %v575_v16 = vrot.slane %v13115_v7, 1  ;;  %v1985_v35 = vsel %vm1982_vm6, %v1919_v21, %v10694_v1  ;;  %10551 = vmatpush3.bf16.msra.mxu0 %v12068_v10 }
  0x92   :  { %11012 = vrot.lane.b32.xlu0 %v11011_v32, %s12175_s25  ;;  %v1986_v32 = vsel %vm1982_vm6, %v1920_v29, %v10695_v60  ;;  %v2051_v26 = vsel %vm2048_vm7, %v1985_v35, %v10714_v4  ;;  %v577_v11 = vrot.slane %v13127_v33, 1  ;;  %v928_v1 = vrot.slane %v13082_v24, 2 }
  0x93   :  { %v2052_v6 = vsel %vm2048_vm7, %v1986_v32, %v10715_v52  ;;  %v220_v4 = vrot.slane %v72_v55, 6  ;;  %v10710_v52 = vunpack.i.h.bf16 %v13045_v5  ;;  %v10709_v21 = vunpack.i.l.bf16 %v13045_v5  ;;  %v12069_v32 = vld [vmem:[%s17620_s1 + $0x18] sm:$0xff]  }
  0x94   :  { %v10738_v45 = vpop.permute.xlu1 %10737  ;;  %v13145_v63 = vpop.permute.xlu0 %10732  ;;  %v10704_v55 = vunpack.i.l.bf16 %v13058_v27  ;;  %v13188_v28 = vsel %vm484_vm2, %v577_v11, %v578_v17  ;;  %v1921_v5 = vsel %vm1916_vm5, %v12269_v20, %v10689_v8  ;;  %10552 = vmatprep.subr.bf16.mxu0 %v12069_v32  ;;  %v12070_v8 = vld [vmem:[%s17620_s1 + $0x20] sm:$0xff]  }
  0x95   :  { %v10740_v12 = vunpack.i.h.bf16 %v10738_v45  ;;  %v10739_v36 = vunpack.i.l.bf16 %v10738_v45  ;;  %10553 = vmatpush3.bf16.msra.mxu0 %v12069_v32  ;;  %v10729_v32 = vunpack.i.l.bf16 %v13104_v13 }
  0x96   :  { %10554 = vmatprep.subr.bf16.mxu0 %v12070_v8 }
  0x97   :  { %v13157_v29 = vsel %vm2114_vm8, %v2051_v26, %v10739_v36  ;;  %v13160_v60 = vsel %vm2114_vm8, %v2052_v6, %v10740_v12  ;;  %v10705_v12 = vunpack.i.h.bf16 %v13058_v27  ;;  %v13180_v26 = vsel %vm162_vm0, %v218_v51, 0.0 }
  0x98   :  { %17810 = vst [vmem:[#allocation31_spill] sm:$0xff] %v13157_v29  ;;  %17811 = vst [vmem:[#allocation32_spill] sm:$0xff] %v13160_v60  ;;  %v13165_v45 = vpop.permute.xlu1 %10747  ;;  %v11016_v35 = vpack.i.bf16 %v13160_v60, %v13157_v29  ;;  %v11021_v10 = vpack.i.bf16 %v13157_v29, %v13094_v9  ;;  %v13176_v36 = vpop.permute.xlu0 %10742  ;;  %v13185_v6 = vsel %vm484_vm2, %v573_v23, %v575_v16  ;;  %v930_v27 = vrot.slane %v13063_v38, 2 }
  0x99   :  { %v10734_v51 = vunpack.i.l.bf16 %v13145_v63  ;;  %v1987_v23 = vsel %vm1982_vm6, %v1921_v5, %v10709_v21  ;;  %v1988_v16 = vsel %vm1982_vm6, %v1922_v61, %v10710_v52  ;;  %v17813_v29 = vrot.slane %v12930_v58, 2  ;;  %10555 = vmatpush3.bf16.msra.mxu0 %v12070_v8 }
  0x9a   :  { %11017 = vrot.lane.b32.xlu1 %v11016_v35, %s12175_s25  ;;  %11022 = vrot.lane.b32.xlu0 %v11021_v10, %s12176_s13  ;;  %v13198_v10 = vsel %vm162_vm0, 0.0, %v220_v4  ;;  %v580_v20 = vrot.slane %v13180_v26, 1  ;;  %v1924_v35 = vsel %vm1916_vm5, %v12332_v3, %v10705_v12  ;;  %v1923_v61 = vsel %vm1916_vm5, %v12284_v30, %v10704_v55 }
  0x9b   :  { %17812 = vst [vmem:[#allocation33_spill] sm:$0xff] %v13198_v10  ;;  %v13207_v9 = vsel %vm842_vm1, %v17813_v29, %v928_v1  ;;  %v17814_v29 = vrot.slane %v13154_v39, 6  ;;  %v13228_v18 = vsel %vm842_vm1, %v930_v27, %v17816_v49  ;;  %v582_v3 = vrot.slane %v13198_v10, 1 }
  0x9c   :  { %v13202_v11 = vpop.permute.xlu1 %10757  ;;  %v10753_v52 = vpop.permute.xlu0 %10752  ;;  %v10730_v30 = vunpack.i.h.bf16 %v13104_v13  ;;  %v10735_v12 = vunpack.i.h.bf16 %v13145_v63  ;;  %v2053_v55 = vsel %vm2048_vm7, %v1987_v23, %v10734_v51  ;;  %v13241_v49 = vsel %vm484_vm2, %v578_v17, %v580_v20  ;;  %v74_v13 = vld [vmem:[%s17619_s0 + $0x140] sm:$0xff]  ;;  %v13250_v63 = vld [vmem:[%s17619_s0 + $0x148] sm:$0xff] }
  0x9d   :  { %v13222_v1 = vsel %vm162_vm0, %v220_v4, %v17814_v29  ;;  %v10754_v5 = vunpack.i.l.bf16 %v10753_v52  ;;  %v10749_v4 = vunpack.i.l.bf16 %v13165_v45  ;;  %v10755_v29 = vunpack.i.h.bf16 %v10753_v52  ;;  %v12071_v51 = vld [vmem:[%s17620_s1 + $0x28] sm:$0xff]  }
  0x9e   :  { %17815 = vst [vmem:[#allocation34_spill] sm:$0xff] %v13222_v1  ;;  %v10724_v23 = vunpack.i.l.bf16 %v13112_v15  ;;  %v933_v52 = vrot.slane %v13115_v7, 2  ;;  %v935_v27 = vrot.slane %v13127_v33, 2  ;;  %10556 = vmatprep.subr.bf16.mxu0 %v12071_v51  ;;  %v2054_v8 = vsel %vm2048_vm7, %v1988_v16, %v10735_v12  ;;  %v13280_v12 = vld [vmem:[%s17620_s1 + $0x30] ss:$0 sps:$4 sm:$0x33]  }
  0x9f   :  { %v13238_v48 = vsel %vm2114_vm8, %v2053_v55, %v10754_v5  ;;  %v1989_v5 = vsel %vm1982_vm6, %v1923_v61, %v10729_v32  ;;  %v17660_v25 = vrot.slane %v13250_v63, 6  ;;  %v1990_v61 = vsel %vm1982_vm6, %v1924_v35, %v10730_v30  ;;  %10557 = vmatpush3.bf16.msra.mxu0 %v12071_v51  ;;  %17820 = vst [vmem:[#allocation38_spill] sm:$0xff] %v13280_v12  ;;  %s12178_s1 = smov 80  }
  0xa0   :  { %v13235_v21 = vpop.permute.xlu1 %10767  ;;  %17817 = vst [vmem:[#allocation35_spill] sm:$0xff] %v13238_v48  ;;  %v10763_v17 = vpop.permute.xlu0 %10762  ;;  %v11026_v20 = vpack.i.bf16 %v13238_v48, %v13160_v60  ;;  %v2055_v53 = vsel %vm2048_vm7, %v1989_v5, %v10749_v4  ;;  %v223_v60 = vrot.slane %v74_v13, 6  ;;  %v10744_v32 = vunpack.i.l.bf16 %v13176_v36  ;;  %10656 = vmatprep.subr.msk.bf16.mxu0 %vm162_vm0, %v13280_v12 }
  0xa1   :  { %v10764_v55 = vunpack.i.l.bf16 %v10763_v17  ;;  %v13270_v47 = vsel %vm2114_vm8, %v2054_v8, %v10755_v29  ;;  %v10750_v4 = vunpack.i.h.bf16 %v13165_v45  ;;  %v10759_v35 = vunpack.i.l.bf16 %v13202_v11 }
  0xa2   :  { %11027 = vrot.lane.b32.xlu1 %v11026_v20, %s12176_s13  ;;  %11032 = vrot.lane.b32.xlu0 %v11026_v20, %s12177_s24  ;;  %17818 = vst [vmem:[#allocation36_spill] sm:$0xff] %v13270_v47  ;;  %v1925_v51 = vsel %vm1916_vm5, %v12329_v2, %v10724_v23  ;;  %v10769_v20 = vunpack.i.l.bf16 %v13235_v21  ;;  %v10765_v5 = vunpack.i.h.bf16 %v10763_v17  ;;  %v17822_v45 = vrot.slane %v13154_v39, 6 }
  0xa3   :  { %v13273_v31 = vsel %vm2114_vm8, %v2055_v53, %v10764_v55  ;;  %v17821_v53 = vrot.slane %v13222_v1, 1  ;;  %v17823_v8 = vpack.i.bf16 %v13137_v34, %v13134_v22  ;;  %v17824_v2 = vrot.slane %v13068_v62, 2 }
  0xa4   :  { %17819 = vst [vmem:[#allocation37_spill] sm:$0xff] %v13273_v31  ;;  %v13275_v16 = vpop.permute.xlu1 %10777  ;;  %v13284_v30 = vpop.permute.xlu0 %10772  ;;  %v13288_v29 = vpack.i.bf16 %v13273_v31, %v13270_v47  ;;  %v13299_v55 = vsel %vm162_vm0, %v17822_v45, 0.0  ;;  %v17825_v39 = vrot.slane %v13124_v50, 2  ;;  %v13318_v17 = vsel %vm162_vm0, %v223_v60, %v17660_v25 }
  0xa5   :  { %v584_v13 = vsel %vm484_vm2, %v582_v3, %v17821_v53  ;;  %v934_v3 = vsel %vm842_vm1, %v17824_v2, %v933_v52  ;;  %17826 = vst [vmem:[#allocation39_spill] sm:$0xff] %v13318_v17  ;;  %v13321_v53 = vsel %vm162_vm0, 0.0, %v223_v60  ;;  %v1991_v22 = vsel %vm1982_vm6, %v1925_v51, %v10744_v32 }
  0xa6   :  { %11037 = vrot.lane.b32.xlu1 %v17823_v8, %s12172_s22  ;;  %11042 = vrot.lane.b32.xlu0 %v13288_v29, %s12177_s24  ;;  %v937_v23 = vsel %vm842_vm1, %v935_v27, %v17825_v39  ;;  %17827 = vst [vmem:[#allocation40_spill] sm:$0xff] %v13321_v53  ;;  %v1286_v45 = vrot.slane %v13082_v24, 3  ;;  %v1288_v52 = vrot.slane %v13063_v38, 3  ;;  %v1289_v8 = vrot.slane %v13068_v62, 3 }
  0xa7   :  { %v2056_v27 = vsel %vm2048_vm7, %v1990_v61, %v10750_v4  ;;  %v2057_v2 = vsel %vm2048_vm7, %v1991_v22, %v10759_v35  ;;  %v585_v25 = vrot.slane %v13299_v55, 1  ;;  %v587_v51 = vrot.slane %v13321_v53, 1 }
  0xa8   :  { %v13324_v34 = vpop.permute.xlu1 %10787  ;;  %v13331_v39 = vpop.permute.xlu0 %10782  ;;  %v13335_v60 = vsel %vm2114_vm8, %v2057_v2, %v10769_v20  ;;  %v13338_v32 = vsel %vm2114_vm8, %v2056_v27, %v10765_v5  ;;  %v17830_v61 = vpack.i.bf16 %v13188_v28, %v13185_v6  ;;  %v11056_v4 = vpack.i.bf16 %v13228_v18, %v13207_v9 }
  0xa9   :  { %17828 = vst [vmem:[#allocation41_spill] sm:$0xff] %v13335_v60  ;;  %17829 = vst [vmem:[#allocation42_spill] sm:$0xff] %v13338_v32  ;;  %v13356_v5 = vpack.i.bf16 %v13335_v60, %v13338_v32  ;;  %v11066_v22 = vpack.i.bf16 %v584_v13, %v13241_v49  ;;  %v11071_v27 = vpack.i.bf16 %v937_v23, %v934_v3  ;;  %v17831_v2 = vrot.slane %v12930_v58, 3 }
  0xaa   :  { %11047 = vrot.lane.b32.xlu1 %v13288_v29, %s12178_s1  ;;  %11052 = vrot.lane.b32.xlu0 %v17830_v61, %s12172_s22  ;;  %v1290_v28 = vsel %vm1200_vm3, %v1288_v52, %v1289_v8  ;;  %v17832_v6 = vrot.slane %v13222_v1, 1  ;;  %v17833_v9 = vrot.slane %v13318_v17, 1  ;;  %v938_v12 = vrot.slane %v13180_v26, 2 }
  0xab   :  { %v1287_v0 = vsel %vm1200_vm3, %v17831_v2, %v1286_v45  ;;  %v940_v49 = vrot.slane %v13198_v10, 2  ;;  %v941_v13 = vrot.slane %v13222_v1, 2  ;;  %v1291_v3 = vrot.slane %v13115_v7, 3 }
  0xac   :  { %v13350_v35 = vpop.permute.xlu1 %10797  ;;  %v13352_v20 = vpop.permute.xlu0 %10792  ;;  %v586_v18 = vsel %vm484_vm2, %v17832_v6, %v585_v25  ;;  %v589_v61 = vsel %vm484_vm2, %v587_v51, %v17833_v9  ;;  %v1293_v23 = vrot.slane %v13127_v33, 3  ;;  %v1294_v45 = vrot.slane %v13124_v50, 3 }
  0xad   :  { %v1644_v52 = vrot.slane %v13082_v24, 4  ;;  %v1646_v51 = vrot.slane %v13063_v38, 4  ;;  %v943_v6 = vrot.slane %v13299_v55, 2  ;;  %v945_v9 = vrot.slane %v13321_v53, 2 }
  0xae   :  { %11057 = vrot.lane.b32.xlu1 %v11056_v4, %s12171_s21  ;;  %11062 = vrot.lane.b32.xlu0 %v13356_v5, %s12178_s1  ;;  %v1647_v4 = vrot.slane %v13068_v62, 4  ;;  %v11076_v41 = vpack.i.bf16 %v1290_v28, %v1287_v0  ;;  %v11081_v19 = vpack.i.bf16 %v589_v61, %v586_v18  ;;  %v17834_v24 = vrot.slane %v13124_v50, 2 }
  0xaf   :  { %v942_v62 = vsel %vm842_vm1, %v940_v49, %v941_v13  ;;  %v1292_v40 = vsel %vm1200_vm3, %v1289_v8, %v1291_v3  ;;  %v1295_v60 = vsel %vm1200_vm3, %v1293_v23, %v1294_v45  ;;  %v1645_v0 = vsel %vm1558_vm4, %v17835_v44, %v1644_v52 }
  0xb0   :  { %v13377_v25 = vpop.permute.xlu1 %10807  ;;  %v13383_v2 = vpop.permute.xlu0 %10802  ;;  %v939_v38 = vsel %vm842_vm1, %v17834_v24, %v938_v12  ;;  %v944_v28 = vsel %vm842_vm1, %v941_v13, %v943_v6  ;;  %v17836_v12 = vrot.slane %v13318_v17, 2  ;;  %v1296_v61 = vrot.slane %v13180_v26, 3 }
  0xb1   :  { %v1298_v8 = vrot.slane %v13198_v10, 3  ;;  %v1299_v49 = vrot.slane %v13222_v1, 3  ;;  %v1649_v3 = vrot.slane %v13115_v7, 4  ;;  %v1651_v44 = vrot.slane %v13127_v33, 4 }
  0xb2   :  { %11067 = vrot.lane.b32.xlu1 %v11066_v22, %s12172_s22  ;;  %11072 = vrot.lane.b32.xlu0 %v11071_v27, %s12171_s21  ;;  %v1648_v22 = vsel %vm1558_vm4, %v1646_v51, %v1647_v4  ;;  %v947_v18 = vsel %vm842_vm1, %v945_v9, %v17836_v12  ;;  %v1652_v23 = vrot.slane %v13124_v50, 4  ;;  %v11086_v13 = vpack.i.bf16 %v942_v62, %v939_v38 }
  0xb3   :  { %v11091_v52 = vpack.i.bf16 %v1295_v60, %v1292_v40  ;;  %v11096_v9 = vpack.i.bf16 %v1648_v22, %v1645_v0  ;;  %v11101_v24 = vpack.i.bf16 %v947_v18, %v944_v28  ;;  %v1297_v12 = vsel %vm1200_vm3, %v1294_v45, %v1296_v61 }
  0xb4   :  { %v13394_v43 = vpop.permute.xlu1 %10817  ;;  %v13402_v27 = vpop.permute.xlu0 %10812  ;;  %v1300_v7 = vsel %vm1200_vm3, %v1298_v8, %v1299_v49  ;;  %v1650_v33 = vsel %vm1558_vm4, %v1647_v4, %v1649_v3  ;;  %v1653_v50 = vsel %vm1558_vm4, %v1651_v44, %v1652_v23  ;;  %v1303_v40 = vrot.slane %v13321_v53, 3 }
  0xb5   :  { %v1654_v38 = vrot.slane %v13180_v26, 4  ;;  %v1656_v60 = vrot.slane %v13198_v10, 4  ;;  %v1657_v45 = vrot.slane %v13222_v1, 4  ;;  %v11106_v0 = vpack.i.bf16 %v1300_v7, %v1297_v12 }
  0xb6   :  { %11077 = vrot.lane.b32.xlu1 %v11076_v41, %s12173_s27  ;;  %11082 = vrot.lane.b32.xlu0 %v11081_v19, %s12172_s22  ;;  %v1301_v19 = vrot.slane %v13299_v55, 3  ;;  %v17677_v41 = vrot.slane %v13318_v17, 3  ;;  %v11111_v22 = vpack.i.bf16 %v1653_v50, %v1650_v33  ;;  %v1659_v3 = vrot.slane %v13299_v55, 4 }
  0xb7   :  { %v1655_v18 = vsel %vm1558_vm4, %v1652_v23, %v1654_v38  ;;  %v1658_v8 = vsel %vm1558_vm4, %v1656_v60, %v1657_v45  ;;  %v1661_v50 = vrot.slane %v13321_v53, 4  ;;  %v17676_v33 = vrot.slane %v13318_v17, 4 }
  0xb8   :  { %v13416_v51 = vpop.permute.xlu1 %10827  ;;  %v13418_v6 = vpop.permute.xlu0 %10822  ;;  %v1302_v28 = vsel %vm1200_vm3, %v1299_v49, %v1301_v19  ;;  %v1305_v26 = vsel %vm1200_vm3, %v1303_v40, %v17677_v41  ;;  %v10779_v44 = vunpack.i.l.bf16 %v13275_v16  ;;  %v10774_v49 = vunpack.i.l.bf16 %v13284_v30 }
  0xb9   :  { %v11116_v23 = vpack.i.bf16 %v1305_v26, %v1302_v28  ;;  %v10789_v55 = vunpack.i.l.bf16 %v13324_v34  ;;  %v1660_v12 = vsel %vm1558_vm4, %v1657_v45, %v1659_v3  ;;  %v1663_v7 = vsel %vm1558_vm4, %v1661_v50, %v17676_v33  ;;  %v76_v45 = vld [vmem:[%s17619_s0 + $0x150] sm:$0xff]  ;;  %v13487_v28 = vld [vmem:[%s17619_s0 + $0x168] sm:$0xff] }
  0xba   :  { %11087 = vrot.lane.b32.xlu1 %v11086_v13, %s12171_s21  ;;  %11092 = vrot.lane.b32.xlu0 %v11091_v52, %s12173_s27  ;;  %v11121_v52 = vpack.i.bf16 %v1658_v8, %v1655_v18  ;;  %v1929_v19 = vsel %vm1916_vm5, %v12456_v56, %v10779_v44  ;;  %v10784_v40 = vunpack.i.l.bf16 %v13331_v39  ;;  %v10725_v60 = vunpack.i.h.bf16 %v13112_v15 }
  0xbb   :  { %v10785_v56 = vunpack.i.h.bf16 %v13331_v39  ;;  %v11131_v15 = vpack.i.bf16 %v1663_v7, %v1660_v12  ;;  %v10799_v39 = vunpack.i.l.bf16 %v13350_v35  ;;  %v10794_v18 = vunpack.i.l.bf16 %v13352_v20 }
  0xbc   :  { %v13430_v62 = vpop.permute.xlu1 %10837  ;;  %v13434_v4 = vpop.permute.xlu0 %10832  ;;  %v11126_v44 = vpack.i.bf16 %v13270_v47, %v13238_v48  ;;  %v10760_v7 = vunpack.i.h.bf16 %v13202_v11 }
  0xbe   :  { %11097 = vrot.lane.b32.xlu1 %v11096_v9, %s12174_s11  ;;  %11102 = vrot.lane.b32.xlu0 %v11101_v24, %s12171_s21  ;;  %v10775_v9 = vunpack.i.h.bf16 %v13284_v30  ;;  %v1927_v30 = vsel %vm1916_vm5, %v12378_v46, %v10774_v49  ;;  %v78_v46 = vld [vmem:[%s17619_s0 + $0x160] sm:$0xff]  ;;  %v226_v49 = vrot.slane %v76_v45, 6  ;;  %v11136_v45 = vpack.i.bf16 %v13338_v32, %v13273_v31 }
  0xbf   :  { %v1993_v3 = vsel %vm1982_vm6, %v1927_v30, %v10784_v40  ;;  %v10804_v40 = vunpack.i.l.bf16 %v13383_v2  ;;  %v10770_v30 = vunpack.i.h.bf16 %v13235_v21 }
  0xc0   :  { %v13443_v61 = vpop.permute.xlu1 %10847  ;;  %v13450_v13 = vpop.permute.xlu0 %10842  ;;  %v1928_v26 = vsel %vm1916_vm5, %v12452_v54, %v10775_v9  ;;  %v1926_v54 = vsel %vm1916_vm5, %v12371_v42, %v10725_v60  ;;  %v229_v9 = vrot.slane %v78_v46, 6 }
  0xc2   :  { %11107 = vrot.lane.b32.xlu1 %v11106_v0, %s12173_s27  ;;  %11112 = vrot.lane.b32.xlu0 %v11111_v22, %s12174_s11  ;;  %v77_v0 = vld [vmem:[%s17619_s0 + $0x158] sm:$0xff]  ;;  %v10745_v22 = vunpack.i.h.bf16 %v13176_v36  ;;  %v1995_v36 = vsel %vm1982_vm6, %v1929_v19, %v10789_v55  ;;  %v17675_v55 = vrot.slane %v13487_v28, 6  ;;  %v1994_v19 = vsel %vm1982_vm6, %v1928_v26, %v10785_v56 }
  0xc3   :  { %v2061_v42 = vsel %vm2048_vm7, %v1995_v36, %v10799_v39  ;;  %v17839_v56 = vrot.slane %v13250_v63, 6  ;;  %v13538_v26 = vsel %vm162_vm0, 0.0, %v229_v9  ;;  %v10809_v39 = vunpack.i.l.bf16 %v13377_v25 }
  0xc4   :  { %v13457_v24 = vpop.permute.xlu1 %10857  ;;  %v13466_v38 = vpop.permute.xlu0 %10852  ;;  %v1992_v12 = vsel %vm1982_vm6, %v1926_v54, %v10745_v22  ;;  %v13524_v22 = vsel %vm162_vm0, 0.0, %v226_v49  ;;  %v13535_v46 = vsel %vm162_vm0, %v229_v9, %v17675_v55  ;;  %17841 = vst [vmem:[#allocation46_spill] sm:$0xff] %v13538_v26  ;;  %v10805_v63 = vunpack.i.h.bf16 %v13383_v2 }
  0xc5   :  { %17838 = vst [vmem:[#allocation44_spill] sm:$0xff] %v13524_v22  ;;  %v13529_v21 = vsel %vm162_vm0, %v17839_v56, 0.0  ;;  %17840 = vst [vmem:[#allocation45_spill] sm:$0xff] %v13535_v46  ;;  %v17679_v9 = vrot.slane %v13535_v46, 1  ;;  %v13569_v56 = vsel %vm2114_vm8, %v2061_v42, %v10809_v39  ;;  %v17848_v10 = vrot.slane %v13535_v46, 2 }
  0xc6   :  { %11117 = vrot.lane.b32.xlu1 %v11116_v23, %s12173_s27  ;;  %11122 = vrot.lane.b32.xlu0 %v11121_v52, %s12174_s11  ;;  %v227_v23 = vrot.slane %v77_v0, 6  ;;  %v10795_v52 = vunpack.i.h.bf16 %v13352_v20  ;;  %v2059_v20 = vsel %vm2048_vm7, %v1993_v3, %v10794_v18  ;;  %17844 = vst [vmem:[#allocation49_spill] sm:$0xff] %v13569_v56 }
  0xc7   :  { %v13546_v18 = vsel %vm2114_vm8, %v2059_v20, %v10804_v40  ;;  %v950_v40 = vrot.slane %v13524_v22, 2 }
  0xc8   :  { %v13494_v8 = vpop.permute.xlu1 %10867  ;;  %v13497_v50 = vpop.permute.xlu0 %10862  ;;  %v13521_v0 = vsel %vm162_vm0, %v226_v49, %v227_v23  ;;  %v13541_v36 = vsel %vm162_vm0, %v227_v23, 0.0  ;;  %17842 = vst [vmem:[#allocation47_spill] sm:$0xff] %v13546_v18  ;;  %v592_v49 = vrot.slane %v13524_v22, 1 }
  0xc9   :  { %17837 = vst [vmem:[#allocation43_spill] sm:$0xff] %v13521_v0  ;;  %v593_v23 = vrot.slane %v13521_v0, 1  ;;  %v595_v2 = vrot.slane %v13541_v36, 1  ;;  %v951_v20 = vrot.slane %v13521_v0, 2  ;;  %v953_v41 = vrot.slane %v13541_v36, 2 }
  0xca   :  { %11127 = vrot.lane.b32.xlu1 %v11126_v44, %s12175_s25  ;;  %11132 = vrot.lane.b32.xlu0 %v11131_v15, %s12174_s11  ;;  %v2060_v15 = vsel %vm2048_vm7, %v1994_v19, %v10795_v52  ;;  %v590_v44 = vrot.slane %v13529_v21, 1  ;;  %v597_v52 = vrot.slane %v13538_v26, 1  ;;  %v948_v19 = vrot.slane %v13529_v21, 2 }
  0xcb   :  { %v13572_v55 = vsel %vm2114_vm8, %v2060_v15, %v10805_v63  ;;  %v594_v39 = vsel %vm484_vm2, %v592_v49, %v593_v23  ;;  %v596_v63 = vsel %vm484_vm2, %v593_v23, %v595_v2  ;;  %v952_v1 = vsel %vm842_vm1, %v950_v40, %v951_v20 }
  0xcc   :  { %v13514_v60 = vpop.permute.xlu1 %10877  ;;  %v13518_v11 = vpop.permute.xlu0 %10872  ;;  %17845 = vst [vmem:[#allocation50_spill] sm:$0xff] %v13572_v55  ;;  %v1308_v2 = vrot.slane %v13524_v22, 3  ;;  %v954_v53 = vsel %vm842_vm1, %v951_v20, %v953_v41  ;;  %v1311_v32 = vrot.slane %v13541_v36, 3  ;;  %v17687_v41 = vrot.slane %v13535_v46, 3 }
  0xcd   :  { %v1666_v20 = vrot.slane %v13524_v22, 4  ;;  %v17850_v22 = vrot.slane %v13318_v17, 4 }
  0xce   :  { %11137 = vrot.lane.b32.xlu1 %v11136_v45, %s12175_s25  ;;  %11142 = vrot.lane.b32.xlu0 %v13288_v29, %s12176_s13  ;;  %v2058_v29 = vsel %vm2048_vm7, %v1992_v12, %v10760_v7 }
  0xcf   :  { %v13566_v45 = vsel %vm2114_vm8, %v2058_v29, %v10770_v30  ;;  %v17846_v30 = vrot.slane %v13318_v17, 1  ;;  %v17847_v29 = vrot.slane %v13318_v17, 2 }
  0xd0   :  { %v13551_v3 = vpop.permute.xlu1 %10887  ;;  %v13556_v54 = vpop.permute.xlu0 %10882  ;;  %17843 = vst [vmem:[#allocation48_spill] sm:$0xff] %v13566_v45  ;;  %v13582_v7 = vpack.i.bf16 %v13546_v18, %v13566_v45 }
  0xd1   :  { %v591_v42 = vsel %vm484_vm2, %v17846_v30, %v590_v44  ;;  %v949_v33 = vsel %vm842_vm1, %v17847_v29, %v948_v19  ;;  %v955_v44 = vrot.slane %v13538_v26, 2  ;;  %v1306_v30 = vrot.slane %v13529_v21, 3 }
  0xd2   :  { %11147 = vrot.lane.b32.xlu1 %v13356_v5, %s12176_s13  ;;  %11152 = vrot.lane.b32.xlu0 %v13356_v5, %s12177_s24  ;;  %v599_v5 = vsel %vm484_vm2, %v597_v52, %v17679_v9  ;;  %v11171_v23 = vpack.i.bf16 %v594_v39, %v591_v42  ;;  %v1309_v52 = vrot.slane %v13521_v0, 3  ;;  %v13614_v29 = vpack.i.bf16 %v13569_v56, %v13572_v55 }
  0xd3   :  { %v11176_v9 = vpack.i.bf16 %v599_v5, %v596_v63  ;;  %v11181_v49 = vpack.i.bf16 %v952_v1, %v949_v33  ;;  %v957_v42 = vsel %vm842_vm1, %v955_v44, %v17848_v10  ;;  %v17849_v39 = vrot.slane %v13318_v17, 3 }
  0xd4   :  { %v13578_v12 = vpop.permute.xlu1 %10897  ;;  %v13588_v15 = vpop.permute.xlu0 %10892  ;;  %v1310_v63 = vsel %vm1200_vm3, %v1308_v2, %v1309_v52  ;;  %v1313_v1 = vrot.slane %v13538_v26, 3  ;;  %v1664_v33 = vrot.slane %v13529_v21, 4  ;;  %v1667_v5 = vrot.slane %v13521_v0, 4 }
  0xd5   :  { %v1307_v58 = vsel %vm1200_vm3, %v17849_v39, %v1306_v30  ;;  %v11186_v30 = vpack.i.bf16 %v957_v42, %v954_v53  ;;  %v1312_v2 = vsel %vm1200_vm3, %v1309_v52, %v1311_v32  ;;  %v1671_v53 = vrot.slane %v13538_v26, 4 }
  0xd6   :  { %11157 = vrot.lane.b32.xlu1 %v13582_v7, %s12177_s24  ;;  %11162 = vrot.lane.b32.xlu0 %v13582_v7, %s12178_s1  ;;  %v11191_v39 = vpack.i.bf16 %v1310_v63, %v1307_v58  ;;  %v1315_v21 = vsel %vm1200_vm3, %v1313_v1, %v17687_v41  ;;  %v1665_v0 = vsel %vm1558_vm4, %v17850_v22, %v1664_v33  ;;  %v10819_v32 = vunpack.i.l.bf16 %v13394_v43 }
  0xd7   :  { %v1668_v58 = vsel %vm1558_vm4, %v1666_v20, %v1667_v5  ;;  %v10814_v52 = vunpack.i.l.bf16 %v13402_v27  ;;  %v10790_v22 = vunpack.i.h.bf16 %v13324_v34  ;;  %v10815_v1 = vunpack.i.h.bf16 %v13402_v27 }
  0xd8   :  { %v13608_v19 = vpop.permute.xlu1 %10907  ;;  %v13610_v40 = vpop.permute.xlu0 %10902  ;;  %v11201_v63 = vpack.i.bf16 %v1668_v58, %v1665_v0  ;;  %v10829_v33 = vunpack.i.l.bf16 %v13416_v51  ;;  %v1933_v34 = vsel %vm1916_vm5, %v12539_v14, %v10819_v32  ;;  %v80_v0 = vld [vmem:[%s17619_s0 + $0x170] sm:$0xff]  ;;  %v10825_v14 = vunpack.i.h.bf16 %v13418_v6  ;;  %v13694_v58 = vld [vmem:[%s17619_s0 + $0x188] sm:$0xff] }
  0xd9   :  { %v1931_v27 = vsel %vm1916_vm5, %v12465_v59, %v10814_v52  ;;  %v82_v59 = vld [vmem:[%s17619_s0 + $0x180] sm:$0xff]  ;;  %v17861_v26 = vrot.slane %v13535_v46, 1  ;;  %v17865_v17 = vrot.slane %v13535_v46, 2 }
  0xda   :  { %11167 = vrot.lane.b32.xlu1 %v13614_v29, %s12178_s1  ;;  %11172 = vrot.lane.b32.xlu0 %v11171_v23, %s12172_s22  ;;  %v10780_v23 = vunpack.i.h.bf16 %v13275_v16  ;;  %v1669_v16 = vrot.slane %v13541_v36, 4  ;;  %v11196_v36 = vpack.i.bf16 %v1315_v21, %v1312_v2  ;;  %v10800_v2 = vunpack.i.h.bf16 %v13350_v35 }
  0xdb   :  { %v1999_v35 = vsel %vm1982_vm6, %v1933_v34, %v10829_v33 }
  0xdc   :  { %v13631_v10 = vpop.permute.xlu1 %10917  ;;  %v13635_v44 = vpop.permute.xlu0 %10912  ;;  %v1930_v42 = vsel %vm1916_vm5, %v12459_v57, %v10780_v23  ;;  %v1670_v41 = vsel %vm1558_vm4, %v1667_v5, %v1669_v16  ;;  %v81_v5 = vld [vmem:[%s17619_s0 + $0x178] sm:$0xff]  ;;  %v1932_v16 = vsel %vm1916_vm5, %v12545_v37, %v10815_v1  ;;  %v235_v37 = vrot.slane %v82_v59, 6 }
  0xdd   :  { %v1996_v23 = vsel %vm1982_vm6, %v1930_v42, %v10790_v22  ;;  %v17851_v42 = vld [vmem:[#allocation41_spill] sm:$0xff]  ;;  %v17688_v1 = vrot.slane %v13694_v58, 6  ;;  %v1998_v34 = vsel %vm1982_vm6, %v1932_v16, %v10825_v14  ;;  %v17854_v14 = vrot.slane %v13487_v28, 6 }
  0xde   :  { %11177 = vrot.lane.b32.xlu1 %v11176_v9, %s12172_s22  ;;  %11182 = vrot.lane.b32.xlu0 %v11181_v49, %s12171_s21  ;;  %v17689_v9 = vrot.slane %v13535_v46, 4  ;;  %v11206_v22 = vpack.i.bf16 %v13566_v45, %v17851_v42  ;;  %v2062_v33 = vsel %vm2048_vm7, %v1996_v23, %v10800_v2  ;;  %v10845_v28 = vunpack.i.h.bf16 %v13450_v13 }
  0xdf   :  { %v13737_v16 = vsel %vm162_vm0, %v235_v37, %v17688_v1 }
  0xe0   :  { %v13647_v31 = vpop.permute.xlu1 %10927  ;;  %v13654_v49 = vpop.permute.xlu0 %10922  ;;  %v1673_v57 = vsel %vm1558_vm4, %v1671_v53, %v17689_v9  ;;  %v10834_v53 = vunpack.i.l.bf16 %v13434_v4  ;;  %17855 = vst [vmem:[#allocation53_spill] sm:$0xff] %v13737_v16  ;;  %v17866_v42 = vrot.slane %v13737_v16, 2 }
  0xe1   :  { %v11211_v21 = vpack.i.bf16 %v1673_v57, %v1670_v41  ;;  %v10835_v57 = vunpack.i.h.bf16 %v13434_v4  ;;  %v11216_v4 = vpack.i.bf16 %v13572_v55, %v13546_v18 }
  0xe2   :  { %11187 = vrot.lane.b32.xlu1 %v11186_v30, %s12171_s21  ;;  %11192 = vrot.lane.b32.xlu0 %v11191_v39, %s12173_s27  ;;  %v10824_v30 = vunpack.i.l.bf16 %v13418_v6  ;;  %v10839_v6 = vunpack.i.l.bf16 %v13430_v62 }
  0xe4   :  { %v13664_v20 = vpop.permute.xlu1 %10937  ;;  %v13673_v39 = vpop.permute.xlu0 %10932  ;;  %v1997_v41 = vsel %vm1982_vm6, %v1931_v27, %v10824_v30  ;;  %v10844_v30 = vunpack.i.l.bf16 %v13450_v13  ;;  %v10810_v27 = vunpack.i.h.bf16 %v13377_v25  ;;  %v2064_v25 = vsel %vm2048_vm7, %v1998_v34, %v10835_v57 }
  0xe5   :  { %v13773_v9 = vsel %vm2114_vm8, %v2064_v25, %v10845_v28  ;;  %v17864_v28 = vrot.slane %v13737_v16, 1 }
  0xe6   :  { %11197 = vrot.lane.b32.xlu1 %v11196_v36, %s12173_s27  ;;  %11202 = vrot.lane.b32.xlu0 %v11201_v63, %s12174_s11  ;;  %v232_v36 = vrot.slane %v80_v0, 6  ;;  %v233_v63 = vrot.slane %v81_v5, 6  ;;  %v2065_v0 = vsel %vm2048_vm7, %v1999_v35, %v10839_v6  ;;  %v2063_v5 = vsel %vm2048_vm7, %v1997_v41, %v10834_v53  ;;  %17860 = vst [vmem:[#allocation58_spill] sm:$0xff] %v13773_v9 }
  0xe7   :  { %v13740_v35 = vsel %vm162_vm0, 0.0, %v235_v37  ;;  %v10849_v53 = vunpack.i.l.bf16 %v13443_v61  ;;  %v13748_v41 = vsel %vm2114_vm8, %v2063_v5, %v10844_v30 }
  0xe8   :  { %v13702_v32 = vpop.permute.xlu1 %10947  ;;  %v13704_v52 = vpop.permute.xlu0 %10942  ;;  %v13723_v23 = vsel %vm162_vm0, %v232_v36, %v233_v63  ;;  %v13726_v2 = vsel %vm162_vm0, 0.0, %v232_v36  ;;  %17856 = vst [vmem:[#allocation54_spill] sm:$0xff] %v13740_v35  ;;  %v13743_v6 = vsel %vm162_vm0, %v233_v63, 0.0  ;;  %17857 = vst [vmem:[#allocation55_spill] sm:$0xff] %v13748_v41  ;;  %v607_v34 = vrot.slane %v13740_v35, 1 }
  0xe9   :  { %17852 = vst [vmem:[#allocation51_spill] sm:$0xff] %v13723_v23  ;;  %17853 = vst [vmem:[#allocation52_spill] sm:$0xff] %v13726_v2  ;;  %v602_v57 = vrot.slane %v13726_v2, 1  ;;  %v603_v63 = vrot.slane %v13723_v23, 1  ;;  %v605_v13 = vrot.slane %v13743_v6, 1  ;;  %v13770_v1 = vsel %vm2114_vm8, %v2065_v0, %v10849_v53 }
  0xea   :  { %11207 = vrot.lane.b32.xlu1 %v11206_v22, %s12175_s25  ;;  %11212 = vrot.lane.b32.xlu0 %v11211_v21, %s12174_s11  ;;  %v13731_v21 = vsel %vm162_vm0, %v17854_v14, 0.0  ;;  %v13767_v14 = vsel %vm2114_vm8, %v2062_v33, %v10810_v27  ;;  %17859 = vst [vmem:[#allocation57_spill] sm:$0xff] %v13770_v1  ;;  %v963_v18 = vrot.slane %v13743_v6, 2 }
  0xeb   :  { %v600_v36 = vrot.slane %v13731_v21, 1  ;;  %v958_v5 = vrot.slane %v13731_v21, 2  ;;  %17858 = vst [vmem:[#allocation56_spill] sm:$0xff] %v13767_v14  ;;  %v13781_v30 = vpack.i.bf16 %v13748_v41, %v13767_v14  ;;  %v604_v27 = vsel %vm484_vm2, %v602_v57, %v603_v63 }
  0xec   :  { %v13720_v59 = vpop.permute.xlu0 %10952  ;;  %v13750_v22 = vpop.permute.xlu1 %10957  ;;  %v606_v53 = vsel %vm484_vm2, %v603_v63, %v605_v13  ;;  %v1316_v45 = vrot.slane %v13731_v21, 3  ;;  %v1318_v13 = vrot.slane %v13726_v2, 3 }
  0xed   :  { %v601_v33 = vsel %vm484_vm2, %v17861_v26, %v600_v36  ;;  %v959_v55 = vsel %vm842_vm1, %v17865_v17, %v958_v5  ;;  %v965_v36 = vrot.slane %v13740_v35, 2  ;;  %v1319_v17 = vrot.slane %v13723_v23, 3 }
  0xee   :  { %11217 = vrot.lane.b32.xlu1 %v11216_v4, %s12175_s25  ;;  %11222 = vrot.lane.b32.xlu0 %v13582_v7, %s12176_s13  ;;  %v960_v4 = vrot.slane %v13726_v2, 2  ;;  %v961_v7 = vrot.slane %v13723_v23, 2  ;;  %v11251_v63 = vpack.i.bf16 %v604_v27, %v601_v33  ;;  %v13812_v5 = vpack.i.bf16 %v13770_v1, %v13773_v9 }
  0xef   :  { %v967_v47 = vsel %vm842_vm1, %v965_v36, %v17866_v42  ;;  %v17867_v33 = vrot.slane %v13535_v46, 3  ;;  %v17701_v42 = vrot.slane %v13737_v16, 3  ;;  %v10830_v36 = vunpack.i.h.bf16 %v13416_v51 }
  0xf0   :  { %v13758_v37 = vpop.permute.xlu0 %10962  ;;  %v13787_v0 = vpop.permute.xlu1 %10967  ;;  %v962_v26 = vsel %vm842_vm1, %v960_v4, %v961_v7  ;;  %v964_v57 = vsel %vm842_vm1, %v961_v7, %v963_v18  ;;  %v1323_v18 = vrot.slane %v13740_v35, 3  ;;  %v1674_v7 = vrot.slane %v13731_v21, 4 }
  0xf1   :  { %17862 = vst [vmem:[#allocation59_spill] sm:$0xff] %v13787_v0  ;;  %v1317_v27 = vsel %vm1200_vm3, %v17867_v33, %v1316_v45  ;;  %v1676_v45 = vrot.slane %v13726_v2, 4  ;;  %v10859_v33 = vunpack.i.l.bf16 %v13457_v24  ;;  %v17871_v51 = vrot.slane %v13535_v46, 4 }
  0xf2   :  { %11227 = vrot.lane.b32.xlu1 %v13614_v29, %s12176_s13  ;;  %11232 = vrot.lane.b32.xlu0 %v13614_v29, %s12177_s24  ;;  %v609_v29 = vsel %vm484_vm2, %v607_v34, %v17864_v28  ;;  %v10820_v34 = vunpack.i.h.bf16 %v13394_v43  ;;  %v11261_v28 = vpack.i.bf16 %v962_v26, %v959_v55  ;;  %v1320_v55 = vsel %vm1200_vm3, %v1318_v13, %v1319_v17 }
  0xf3   :  { %v11256_v4 = vpack.i.bf16 %v609_v29, %v606_v53  ;;  %v1677_v53 = vrot.slane %v13723_v23, 4  ;;  %v17870_v29 = vld [vmem:[#allocation8_spill] sm:$0xff]  ;;  %v11266_v13 = vpack.i.bf16 %v967_v47, %v964_v57  ;;  %v1679_v47 = vrot.slane %v13743_v6, 4  ;;  %v17876_v57 = vld [vmem:[#allocation9_spill] sm:$0xff] }
  0xf4   :  { %v13789_v25 = vpop.permute.xlu0 %10972  ;;  %v13822_v48 = vpop.permute.xlu1 %10977  ;;  %v1934_v26 = vsel %vm1916_vm5, %v17870_v29, %v10820_v34  ;;  %v1325_v34 = vsel %vm1200_vm3, %v1323_v18, %v17701_v42  ;;  %v1675_v29 = vsel %vm1558_vm4, %v17871_v51, %v1674_v7  ;;  %v10864_v7 = vunpack.i.l.bf16 %v13497_v50 }
  0xf5   :  { %17863 = vst [vmem:[#allocation60_spill] sm:$0xff] %v13789_v25  ;;  %v1321_v25 = vrot.slane %v13743_v6, 3  ;;  %17868 = vst [vmem:[#allocation61_spill] sm:$0xff] %v13822_v48  ;;  %v10854_v48 = vunpack.i.l.bf16 %v13466_v38  ;;  %v1678_v23 = vsel %vm1558_vm4, %v1676_v45, %v1677_v53  ;;  %v17875_v6 = vld [vmem:[#allocation7_spill] sm:$0xff]  ;;  %v10865_v51 = vunpack.i.h.bf16 %v13497_v50 }
  0xf6   :  { %11237 = vrot.lane.b32.xlu1 %v13781_v30, %s12177_s24  ;;  %11242 = vrot.lane.b32.xlu0 %v13781_v30, %s12178_s1  ;;  %v11281_v42 = vpack.i.bf16 %v1678_v23, %v1675_v29  ;;  %v85_v50 = vld [vmem:[%s17619_s0 + $0x198] sm:$0xff] }
  0xf7   :  { %v1322_v21 = vsel %vm1200_vm3, %v1319_v17, %v1321_v25  ;;  %v10869_v25 = vunpack.i.l.bf16 %v13494_v8  ;;  %v1935_v45 = vsel %vm1916_vm5, %v17875_v6, %v10854_v48  ;;  %v84_v48 = vld [vmem:[%s17619_s0 + $0x190] sm:$0xff]  ;;  %v17880_v6 = vrot.slane %v13694_v58, 6 }
  0xf8   :  { %v13824_v43 = vpop.permute.xlu0 %10982  ;;  %v13856_v17 = vpop.permute.xlu1 %10987 }
  0xf9   :  { %17869 = vst [vmem:[#allocation62_spill] sm:$0xff] %v13824_v43  ;;  %v11271_v43 = vpack.i.bf16 %v1320_v55, %v1317_v27  ;;  %17872 = vst [vmem:[#allocation8_spill] sm:$0xff] %v13856_v17  ;;  %v2000_v27 = vsel %vm1982_vm6, %v1934_v26, %v10830_v36  ;;  %v17874_v55 = vld [vmem:[#allocation10_spill] sm:$0xff]  ;;  %v10879_v26 = vunpack.i.l.bf16 %v13514_v60  ;;  %v1680_v36 = vsel %vm1558_vm4, %v1677_v53, %v1679_v47 }
  0xfa   :  { %11247 = vrot.lane.b32.xlu1 %v13812_v5, %s12178_s1  ;;  %11252 = vrot.lane.b32.xlu0 %v11251_v63, %s12172_s22  ;;  %v10855_v63 = vunpack.i.h.bf16 %v13466_v38  ;;  %v1681_v38 = vrot.slane %v13740_v35, 4  ;;  %v1937_v18 = vsel %vm1916_vm5, %v17874_v55, %v10859_v33  ;;  %v17877_v33 = vrot.slane %v13737_v16, 4 }
  0xfb   :  { %v10850_v53 = vunpack.i.h.bf16 %v13443_v61  ;;  %v86_v61 = vld [vmem:[%s17619_s0 + $0x1a0] sm:$0xff] }
  0xfc   :  { %v1936_v35 = vsel %vm1916_vm5, %v17876_v57, %v10855_v63  ;;  %v1683_v55 = vsel %vm1558_vm4, %v1681_v38, %v17877_v33  ;;  %v10874_v63 = vunpack.i.l.bf16 %v13518_v11  ;;  %v13890_v47 = vpop.permute.xlu1 %10997  ;;  %v17882_v33 = vld [vmem:[#allocation11_spill] sm:$0xff] }
  0xfd   :  { %v2002_v29 = vsel %vm1982_vm6, %v1936_v35, %v10865_v51  ;;  %17878 = vst [vmem:[#allocation10_spill] sm:$0xff] %v13890_v47  ;;  %v11291_v57 = vpack.i.bf16 %v1683_v55, %v1680_v36  ;;  %v10889_v35 = vunpack.i.l.bf16 %v13551_v3 }
  0xfe   :  { %11257 = vrot.lane.b32.xlu1 %v11256_v4, %s12172_s22  ;;  %11262 = vrot.lane.b32.xlu0 %v11261_v28, %s12171_s21  ;;  %v10840_v4 = vunpack.i.h.bf16 %v13430_v62  ;;  %v13858_v28 = vpop.permute.xlu0 %10992  ;;  %v11276_v62 = vpack.i.bf16 %v1325_v34, %v1322_v21  ;;  %v2001_v21 = vsel %vm1982_vm6, %v1935_v45, %v10864_v7  ;;  %v10875_v34 = vunpack.i.h.bf16 %v13518_v11 }
  0xff   :  { %17873 = vst [vmem:[#allocation63_spill] sm:$0xff] %v13858_v28  ;;  %v11286_v7 = vpack.i.bf16 %v13767_v14, %v13569_v56  ;;  %v13914_v45 = vsel %vm162_vm0, %v17880_v6, 0.0  ;;  %v17896_v28 = vrot.slane %v13737_v16, 2 }
 0x100   :  { %v2066_v23 = vsel %vm2048_vm7, %v2000_v27, %v10840_v4  ;;  %v238_v4 = vrot.slane %v84_v48, 6  ;;  %v10884_v27 = vunpack.i.l.bf16 %v13556_v54 }
 0x101   :  { %v13917_v51 = vsel %vm2114_vm8, %v2066_v23, %v10850_v53 }
 0x102   :  { %11267 = vrot.lane.b32.xlu1 %v11266_v13, %s12171_s21  ;;  %11272 = vrot.lane.b32.xlu0 %v11271_v43, %s12173_s27  ;;  %v2003_v43 = vsel %vm1982_vm6, %v1937_v18, %v10869_v25  ;;  %v10860_v13 = vunpack.i.h.bf16 %v13457_v24  ;;  %v13892_v38 = vpop.permute.xlu0 %11002  ;;  %v239_v25 = vrot.slane %v85_v50, 6  ;;  %v13902_v24 = vld [vmem:[%s17619_s0 + $0x1a8] sm:$0xff]  ;;  %v10885_v18 = vunpack.i.h.bf16 %v13556_v54  ;;  %17881 = vst [vmem:[#allocation9_spill] sm:$0xff] %v13917_v51 }
 0x103   :  { %17879 = vst [vmem:[#allocation7_spill] sm:$0xff] %v13892_v38  ;;  %v2069_v11 = vsel %vm2048_vm7, %v2003_v43, %v10879_v26  ;;  %v241_v26 = vrot.slane %v86_v61, 6  ;;  %v17703_v36 = vrot.slane %v13902_v24, 6  ;;  %v13932_v48 = vsel %vm162_vm0, 0.0, %v238_v4 }
 0x104   :  { %v13923_v55 = vsel %vm1916_vm5, %v17882_v33, %v10860_v13  ;;  %v13929_v58 = vsel %vm162_vm0, %v238_v4, %v239_v25  ;;  %17884 = vst [vmem:[#allocation64_spill] sm:$0xff] %v13932_v48  ;;  %v13936_v23 = vsel %vm2114_vm8, %v2069_v11, %v10889_v35  ;;  %v970_v35 = vrot.slane %v13932_v48, 2 }
 0x105   :  { %17883 = vst [vmem:[#allocation11_spill] sm:$0xff] %v13929_v58  ;;  %17885 = vst [vmem:[#allocation65_spill] sm:$0xff] %v13936_v23  ;;  %v613_v4 = vrot.slane %v13929_v58, 1  ;;  %v13957_v61 = vsel %vm162_vm0, %v241_v26, %v17703_v36  ;;  %v13960_v11 = vsel %vm162_vm0, 0.0, %v241_v26  ;;  %v1329_v46 = vrot.slane %v13929_v58, 3 }
 0x106   :  { %11277 = vrot.lane.b32.xlu1 %v11276_v62, %s12173_s27  ;;  %11282 = vrot.lane.b32.xlu0 %v11281_v42, %s12174_s11  ;;  %v2067_v42 = vsel %vm2048_vm7, %v2001_v21, %v10874_v63  ;;  %v2068_v62 = vsel %vm2048_vm7, %v2002_v29, %v10875_v34  ;;  %v610_v63 = vrot.slane %v13914_v45, 1  ;;  %v13946_v21 = vpop.permute.xlu1 %11007  ;;  %v13948_v34 = vpop.permute.xlu0 %11012  ;;  %v11296_v29 = vpack.i.bf16 %v13773_v9, %v13748_v41 }
 0x107   :  { %v13939_v43 = vsel %vm2114_vm8, %v2067_v42, %v10884_v27  ;;  %v13943_v53 = vsel %vm2114_vm8, %v2068_v62, %v10885_v18  ;;  %17888 = vst [vmem:[#allocation68_spill] sm:$0xff] %v13946_v21  ;;  %17889 = vst [vmem:[#allocation69_spill] sm:$0xff] %v13957_v61  ;;  %v13967_v27 = vsel %vm162_vm0, %v239_v25, 0.0  ;;  %v11015_v42 = vunpack.i.h.bf16 %v13948_v34 }
 0x108   :  { %17886 = vst [vmem:[#allocation66_spill] sm:$0xff] %v13939_v43  ;;  %17887 = vst [vmem:[#allocation67_spill] sm:$0xff] %v13943_v53  ;;  %v13972_v18 = vpack.i.bf16 %v13939_v43, %v13917_v51  ;;  %v617_v33 = vrot.slane %v13960_v11, 1  ;;  %v968_v25 = vrot.slane %v13914_v45, 2  ;;  %v615_v50 = vrot.slane %v13967_v27, 1 }
 0x109   :  { %17890 = vst [vmem:[#allocation70_spill] sm:$0xff] %v13960_v11  ;;  %v975_v54 = vrot.slane %v13960_v11, 2  ;;  %v11014_v9 = vunpack.i.l.bf16 %v13948_v34  ;;  %v14007_v14 = vpack.i.bf16 %v13936_v23, %v13943_v53  ;;  %v17895_v21 = vrot.slane %v13957_v61, 1 }
 0x10a   :  { %11287 = vrot.lane.b32.xlu1 %v11286_v7, %s12175_s25  ;;  %11292 = vrot.lane.b32.xlu0 %v11291_v57, %s12174_s11  ;;  %v612_v57 = vrot.slane %v13932_v48, 1  ;;  %v17891_v7 = vrot.slane %v13737_v16, 1  ;;  %v616_v56 = vsel %vm484_vm2, %v613_v4, %v615_v50 }
 0x10b   :  { %v619_v38 = vsel %vm484_vm2, %v617_v33, %v17895_v21 }
 0x10c   :  { %v611_v6 = vsel %vm484_vm2, %v17891_v7, %v610_v63  ;;  %v13977_v62 = vpop.permute.xlu1 %11017  ;;  %v11023_v26 = vpop.permute.xlu0 %11022  ;;  %v614_v13 = vsel %vm484_vm2, %v612_v57, %v613_v4  ;;  %v971_v63 = vrot.slane %v13929_v58, 2  ;;  %v973_v7 = vrot.slane %v13967_v27, 2 }
 0x10d   :  { %17892 = vst [vmem:[#allocation71_spill] sm:$0xff] %v13977_v62  ;;  %v1326_v57 = vrot.slane %v13914_v45, 3  ;;  %v11025_v47 = vunpack.i.h.bf16 %v11023_v26  ;;  %v11024_v17 = vunpack.i.l.bf16 %v11023_v26  ;;  %v17898_v4 = vrot.slane %v13737_v16, 3 }
 0x10e   :  { %11297 = vrot.lane.b32.xlu1 %v11296_v29, %s12175_s25  ;;  %11302 = vrot.lane.b32.xlu0 %v13781_v30, %s12176_s13  ;;  %v17893_v29 = vld [vmem:[#allocation38_spill] sm:$0xff]  ;;  %v1328_v30 = vrot.slane %v13932_v48, 3  ;;  %v972_v34 = vsel %vm842_vm1, %v970_v35, %v971_v63  ;;  %v974_v50 = vsel %vm842_vm1, %v971_v63, %v973_v7  ;;  %v1333_v26 = vrot.slane %v13960_v11, 3 }
 0x10f   :  { %v3420_v36 = vsel %vm162_vm0, %v17893_v29, 0  ;;  %v11331_v29 = vpack.i.bf16 %v614_v13, %v611_v6  ;;  %v17897_v13 = vrot.slane %v13957_v61, 2  ;;  %v1331_v6 = vrot.slane %v13967_v27, 3 }
 0x110   :  { %10559 = vmatpush3.bf16.msra.mxu0 %v3420_v36  ;;  %v17894_v36 = vld [vmem:[#allocation27_spill] sm:$0xff]  ;;  %v1330_v35 = vsel %vm1200_vm3, %v1328_v30, %v1329_v46  ;;  %v1684_v63 = vrot.slane %v13914_v45, 4  ;;  %v1686_v7 = vrot.slane %v13932_v48, 4  ;;  %v11019_v30 = vunpack.i.l.bf16 %v13977_v62 }
 0x111   :  { %v14000_v2 = vsel %vm2974_vm9, %v17894_v36, %v11015_v42  ;;  %v969_v42 = vsel %vm842_vm1, %v17896_v28, %v968_v25  ;;  %v977_v21 = vsel %vm842_vm1, %v975_v54, %v17897_v13  ;;  %v1327_v28 = vsel %vm1200_vm3, %v17898_v4, %v1326_v57 }
 0x112   :  { %11307 = vrot.lane.b32.xlu1 %v13812_v5, %s12176_s13  ;;  %11312 = vrot.lane.b32.xlu0 %v13812_v5, %s12177_s24  ;;  %v1687_v54 = vrot.slane %v13929_v58, 4  ;;  %v14039_v57 = vsel %vm2974_vm9, %v17894_v36, %v11014_v9  ;;  %v11336_v13 = vpack.i.bf16 %v619_v38, %v616_v56  ;;  %v11341_v45 = vpack.i.bf16 %v972_v34, %v969_v42 }
 0x113   :  { %17900 = vst [vmem:[#allocation27_spill] sm:$0xff] %v14039_v57  ;;  %v3037_v23 = vsel %vm3036_vm10, %v14039_v57, %v11024_v17  ;;  %v11346_v58 = vpack.i.bf16 %v977_v21, %v974_v50  ;;  %v11351_v48 = vpack.i.bf16 %v1330_v35, %v1327_v28  ;;  %v3038_v9 = vsel %vm3036_vm10, %v14039_v57, %v11025_v47 }
 0x114   :  { %v14003_v5 = vpop.permute.xlu1 %11027  ;;  %v11033_v41 = vpop.permute.xlu0 %11032  ;;  %v1688_v17 = vsel %vm1558_vm4, %v1686_v7, %v1687_v54  ;;  %v1689_v34 = vrot.slane %v13967_v27, 4  ;;  %v1691_v7 = vrot.slane %v13960_v11, 4  ;;  %v10945_v57 = vunpack.i.h.bf16 %v13704_v52 }
 0x115   :  { %v11035_v4 = vunpack.i.h.bf16 %v11033_v41  ;;  %v11034_v0 = vunpack.i.l.bf16 %v11033_v41  ;;  %v17901_v41 = vrot.slane %v13957_v61, 3  ;;  %v11030_v50 = vunpack.i.h.bf16 %v14003_v5 }
 0x116   :  { %11317 = vrot.lane.b32.xlu1 %v13972_v18, %s12177_s24  ;;  %11322 = vrot.lane.b32.xlu0 %v13972_v18, %s12178_s1  ;;  %v11029_v47 = vunpack.i.l.bf16 %v14003_v5  ;;  %v17724_v5 = vrot.slane %v13957_v61, 4 }
 0x117   :  { %v1335_v62 = vsel %vm1200_vm3, %v1333_v26, %v17901_v41  ;;  %v3103_v26 = vsel %vm3101_vm11, %v3038_v9, %v11035_v4 }
 0x118   :  { %v14031_v33 = vpop.permute.xlu1 %11037  ;;  %v11043_v25 = vpop.permute.xlu0 %11042 }
 0x119   :  { %17899 = vst [vmem:[#allocation38_spill] sm:$0xff] %v14031_v33  ;;  %v1332_v33 = vsel %vm1200_vm3, %v1329_v46, %v1331_v6  ;;  %v11045_v28 = vunpack.i.h.bf16 %v11043_v25  ;;  %v11044_v35 = vunpack.i.l.bf16 %v11043_v25  ;;  %v3102_v6 = vsel %vm3101_vm11, %v3037_v23, %v11034_v0 }
 0x11a   :  { %11327 = vrot.lane.b32.xlu1 %v14007_v14, %s12178_s1  ;;  %11332 = vrot.lane.b32.xlu0 %v11331_v29, %s12172_s22  ;;  %v17902_v29 = vrot.slane %v13737_v16, 4  ;;  %v3039_v0 = vsel %vm3036_vm10, %v14000_v2, %v11029_v47  ;;  %v1693_v47 = vsel %vm1558_vm4, %v1691_v7, %v17724_v5  ;;  %v10905_v7 = vunpack.i.h.bf16 %v13610_v40 }
 0x11c   :  { %v11048_v56 = vpop.permute.xlu1 %11047  ;;  %v14050_v38 = vpop.permute.xlu0 %11052  ;;  %v1685_v42 = vsel %vm1558_vm4, %v17902_v29, %v1684_v63  ;;  %v10895_v29 = vunpack.i.h.bf16 %v13588_v15 }
 0x11d   :  { %v11050_v46 = vunpack.i.h.bf16 %v11048_v56  ;;  %v11049_v21 = vunpack.i.l.bf16 %v11048_v56  ;;  %v2977_v56 = vsel %vm2974_vm9, %v17894_v36, %v11019_v30  ;;  %v11361_v30 = vpack.i.bf16 %v1688_v17, %v1685_v42 }
 0x11e   :  { %11337 = vrot.lane.b32.xlu1 %v11336_v13, %s12172_s22  ;;  %11342 = vrot.lane.b32.xlu0 %v11341_v45, %s12171_s21  ;;  %v11356_v45 = vpack.i.bf16 %v1335_v62, %v1332_v33  ;;  %v3040_v23 = vsel %vm3036_vm10, %v2977_v56, %v11030_v50  ;;  %v88_v62 = vld [vmem:[%s17619_s0 + $0x1b0] sm:$0xff]  ;;  %v1690_v50 = vsel %vm1558_vm4, %v1687_v54, %v1689_v34  ;;  %v10900_v17 = vunpack.i.h.bf16 %v13578_v12 }
 0x11f   :  { %v3167_v63 = vsel %vm3166_vm12, %v3102_v6, %v11049_v21  ;;  %v3168_v27 = vsel %vm3166_vm12, %v3103_v26, %v11050_v46  ;;  %v3104_v46 = vsel %vm3101_vm11, %v3039_v0, %v11044_v35  ;;  %v3105_v21 = vsel %vm3101_vm11, %v3040_v23, %v11045_v28  ;;  %v17905_v26 = vld [vmem:[#allocation12_spill] sm:$0xff] }
 0x120   :  { %v14072_v25 = vpop.permute.xlu1 %11057  ;;  %v11063_v13 = vpop.permute.xlu0 %11062  ;;  %v3231_v41 = vpack.c.bf16 %v3168_v27, %v3167_v63  ;;  %v10904_v28 = vunpack.i.l.bf16 %v13610_v40  ;;  %v17904_v6 = vunpack.i.l.bf16 %v13588_v15  ;;  %v244_v27 = vrot.slane %v88_v62, 6  ;;  %v14119_v15 = vld [vmem:[%s17619_s0 + $0x1c8] sm:$0xff] }
 0x121   :  { %v11065_v4 = vunpack.i.h.bf16 %v11063_v13  ;;  %v11064_v9 = vunpack.i.l.bf16 %v11063_v13  ;;  %v90_v13 = vld [vmem:[%s17619_s0 + $0x1c0] sm:$0xff]  ;;  %v17907_v40 = vunpack.i.l.bf16 %v13578_v12 }
 0x122   :  { %11347 = vrot.lane.b32.xlu1 %v11346_v58, %s12171_s21  ;;  %11352 = vrot.lane.b32.xlu0 %v11351_v48, %s12173_s27  ;;  %v89_v58 = vld [vmem:[%s17619_s0 + $0x1b8] sm:$0xff]  ;;  %v17903_v48 = vunpack.i.h.bf16 %v13494_v8  ;;  %v1939_v63 = vsel %vm1916_vm5, %v17905_v26, %v17904_v6  ;;  %v10909_v8 = vunpack.i.l.bf16 %v13608_v19  ;;  %v10924_v26 = vunpack.i.l.bf16 %v13654_v49 }
 0x123   :  { %v3169_v2 = vsel %vm3166_vm12, %v3104_v46, %v11064_v9  ;;  %v3170_v33 = vsel %vm3166_vm12, %v3105_v21, %v11065_v4  ;;  %10560 = vmatprep.mubr.msk.bf16.mxu0 %vm3322_vm13, %v3231_v41  ;;  %v245_v56 = vrot.slane %v89_v58, 6  ;;  %v17906_v41 = vunpack.i.h.bf16 %v13514_v60  ;;  %v17909_v4 = vld [vmem:[#allocation14_spill] sm:$0xff] }
 0x124   :  { %v2004_v42 = vsel %vm1982_vm6, %v13923_v55, %v17903_v48  ;;  %v14101_v35 = vpop.permute.xlu1 %11067  ;;  %v14103_v54 = vpop.permute.xlu0 %11072  ;;  %v3232_v34 = vpack.c.bf16 %v3170_v33, %v3169_v2  ;;  %v11371_v55 = vpack.i.bf16 %v1693_v47, %v1690_v50  ;;  %v1940_v9 = vsel %vm1916_vm5, %v17909_v4, %v10895_v29 }
 0x125   :  { %v2070_v0 = vsel %vm2048_vm7, %v2004_v42, %v17906_v41  ;;  %v10914_v46 = vunpack.i.l.bf16 %v13635_v44  ;;  %v10890_v21 = vunpack.i.h.bf16 %v13551_v3  ;;  %v2005_v60 = vsel %vm1982_vm6, %v1939_v63, %v10904_v28 }
 0x126   :  { %11357 = vrot.lane.b32.xlu1 %v11356_v45, %s12173_s27  ;;  %11362 = vrot.lane.b32.xlu0 %v11361_v30, %s12174_s11  ;;  %v17908_v45 = vld [vmem:[#allocation13_spill] sm:$0xff]  ;;  %v17910_v30 = vld [vmem:[#allocation16_spill] sm:$0xff]  ;;  %v11366_v33 = vpack.i.bf16 %v13917_v51, %v13770_v1  ;;  %v14143_v29 = vsel %vm162_vm0, 0.0, %v244_v27  ;;  %v17912_v50 = vrot.slane %v13902_v24, 6  ;;  %v247_v3 = vrot.slane %v90_v13, 6 }
 0x127   :  { %v1941_v23 = vsel %vm1916_vm5, %v17908_v45, %v17907_v40  ;;  %10561 = vmatmul.mubr.msk.bf16.vlgmr.msra.gmra.mrb[0].mxu0 %vm3322_vm13, %v3232_v34  ;;  %v1942_v62 = vsel %vm1916_vm5, %v17910_v30, %v10900_v17  ;;  %17911 = vst [vmem:[#allocation12_spill] sm:$0xff] %v14143_v29  ;;  %v17722_v58 = vrot.slane %v14119_v15, 6  ;;  %v10910_v48 = vunpack.i.h.bf16 %v13608_v19 }
 0x128   :  { %v14136_v2 = vpop.permute.xlu1 %11077  ;;  %v14138_v12 = vpop.permute.xlu0 %11082  ;;  %v14148_v47 = vsel %vm162_vm0, %v17912_v50, 0.0  ;;  %v2007_v42 = vsel %vm1982_vm6, %v1941_v23, %v10909_v8  ;;  %v2006_v17 = vsel %vm1982_vm6, %v1940_v9, %v10905_v7  ;;  %v14157_v28 = vsel %vm162_vm0, %v244_v27, %v245_v56 }
 0x129   :  { %17913 = vst [vmem:[#allocation13_spill] sm:$0xff] %v14157_v28  ;;  %v10919_v24 = vunpack.i.l.bf16 %v13631_v10  ;;  %v10915_v34 = vunpack.i.h.bf16 %v13635_v44  ;;  %v2071_v6 = vsel %vm2048_vm7, %v2005_v60, %v10914_v46  ;;  %v11376_v8 = vpack.i.bf16 %v13943_v53, %v13939_v43  ;;  %v17924_v60 = vld [vmem:[#allocation15_spill] sm:$0xff] }
 0x12a   :  { %11367 = vrot.lane.b32.xlu1 %v11366_v33, %s12175_s25  ;;  %11372 = vrot.lane.b32.xlu0 %v11371_v55, %s12174_s11  ;;  %v620_v7 = vrot.slane %v14148_v47, 1  ;;  %v622_v27 = vrot.slane %v14143_v29, 1  ;;  %v623_v55 = vrot.slane %v14157_v28, 1  ;;  %v14175_v44 = vsel %vm162_vm0, %v247_v3, %v17722_v58 }
 0x12b   :  { %17914 = vst [vmem:[#allocation14_spill] sm:$0xff] %v14175_v44  ;;  %v14178_v13 = vsel %vm162_vm0, 0.0, %v247_v3  ;;  %v14181_v41 = vsel %vm162_vm0, %v245_v56, 0.0  ;;  %v14184_v40 = vsel %vm2114_vm8, %v2070_v0, %v10890_v21  ;;  %v14187_v45 = vsel %vm1982_vm6, %v1942_v62, %v10910_v48 }
 0x12c   :  { %v14163_v19 = vpop.permute.xlu1 %11087  ;;  %v14165_v63 = vpop.permute.xlu0 %11092  ;;  %17915 = vst [vmem:[#allocation16_spill] sm:$0xff] %v14178_v13  ;;  %17916 = vst [vmem:[#allocation72_spill] sm:$0xff] %v14184_v40  ;;  %v10929_v23 = vunpack.i.l.bf16 %v13647_v31  ;;  %v10925_v4 = vunpack.i.h.bf16 %v13654_v49  ;;  %v2073_v9 = vsel %vm2048_vm7, %v2007_v42, %v10919_v24  ;;  %v2072_v56 = vsel %vm2048_vm7, %v2006_v17, %v10915_v34 }
 0x12d   :  { %v14197_v46 = vsel %vm2114_vm8, %v2071_v6, %v10924_v26  ;;  %v625_v30 = vrot.slane %v14181_v41, 1  ;;  %v627_v49 = vrot.slane %v14178_v13, 1  ;;  %v17723_v62 = vrot.slane %v14175_v44, 1 }
 0x12e   :  { %11377 = vrot.lane.b32.xlu1 %v11376_v8, %s12175_s25  ;;  %11382 = vrot.lane.b32.xlu0 %v13972_v18, %s12176_s13  ;;  %17917 = vst [vmem:[#allocation73_spill] sm:$0xff] %v14197_v46  ;;  %v17918_v18 = vrot.slane %v13957_v61, 1  ;;  %v624_v50 = vsel %vm484_vm2, %v622_v27, %v623_v55  ;;  %v978_v3 = vrot.slane %v14148_v47, 2  ;;  %v14213_v48 = vsel %vm2114_vm8, %v2073_v9, %v10929_v23 }
 0x12f   :  { %17919 = vst [vmem:[#allocation74_spill] sm:$0xff] %v14213_v48  ;;  %v14216_v42 = vsel %vm2114_vm8, %v2072_v56, %v10925_v4  ;;  %v980_v17 = vrot.slane %v14143_v29, 2  ;;  %v981_v24 = vrot.slane %v14157_v28, 2  ;;  %v10939_v34 = vunpack.i.l.bf16 %v13664_v20 }
 0x130   :  { %v14199_v0 = vpop.permute.xlu1 %11097  ;;  %v14201_v21 = vpop.permute.xlu0 %11102  ;;  %v621_v33 = vsel %vm484_vm2, %v17918_v18, %v620_v7  ;;  %17920 = vst [vmem:[#allocation75_spill] sm:$0xff] %v14216_v42  ;;  %v10935_v6 = vunpack.i.h.bf16 %v13673_v39  ;;  %v10934_v26 = vunpack.i.l.bf16 %v13673_v39  ;;  %v14229_v8 = vpack.i.bf16 %v14197_v46, %v14184_v40 }
 0x131   :  { %v11411_v23 = vpack.i.bf16 %v624_v50, %v621_v33  ;;  %v629_v4 = vsel %vm484_vm2, %v627_v49, %v17723_v62  ;;  %v17921_v9 = vrot.slane %v13957_v61, 2  ;;  %v983_v39 = vrot.slane %v14181_v41, 2  ;;  %v17922_v50 = vld [vmem:[#allocation17_spill] sm:$0xff] }
 0x132   :  { %11387 = vrot.lane.b32.xlu1 %v14007_v14, %s12176_s13  ;;  %11392 = vrot.lane.b32.xlu0 %v14007_v14, %s12177_s24  ;;  %v626_v14 = vsel %vm484_vm2, %v623_v55, %v625_v30  ;;  %v985_v18 = vrot.slane %v14178_v13, 2  ;;  %v982_v55 = vsel %vm842_vm1, %v980_v17, %v981_v24  ;;  %v1336_v30 = vrot.slane %v14148_v47, 3 }
 0x133   :  { %v979_v56 = vsel %vm842_vm1, %v17921_v9, %v978_v3  ;;  %v1338_v49 = vrot.slane %v14143_v29, 3  ;;  %v1339_v33 = vrot.slane %v14157_v28, 3  ;;  %v1945_v3 = vsel %vm1916_vm5, %v17922_v50, %v10939_v34  ;;  %v17923_v9 = vld [vmem:[#allocation20_spill] sm:$0xff] }
 0x134   :  { %v14231_v7 = vpop.permute.xlu1 %11107  ;;  %v14233_v27 = vpop.permute.xlu0 %11112  ;;  %v1944_v62 = vsel %vm1916_vm5, %v17923_v9, %v10935_v6  ;;  %v1943_v5 = vsel %vm1916_vm5, %v17924_v60, %v10934_v26  ;;  %v10949_v58 = vunpack.i.l.bf16 %v13702_v32  ;;  %v10944_v17 = vunpack.i.l.bf16 %v13704_v52 }
 0x135   :  { %v14268_v51 = vpack.i.bf16 %v14213_v48, %v14216_v42  ;;  %v11416_v34 = vpack.i.bf16 %v629_v4, %v626_v14  ;;  %v11421_v50 = vpack.i.bf16 %v982_v55, %v979_v56  ;;  %v984_v6 = vsel %vm842_vm1, %v981_v24, %v983_v39 }
 0x136   :  { %11397 = vrot.lane.b32.xlu1 %v14229_v8, %s12177_s24  ;;  %11402 = vrot.lane.b32.xlu0 %v14229_v8, %s12178_s1  ;;  %v17925_v60 = vrot.slane %v14175_v44, 2  ;;  %v1341_v9 = vrot.slane %v14181_v41, 3  ;;  %v17926_v52 = vrot.slane %v13957_v61, 3  ;;  %v1340_v14 = vsel %vm1200_vm3, %v1338_v49, %v1339_v33 }
 0x137   :  { %v1343_v4 = vrot.slane %v14178_v13, 3  ;;  %v2011_v56 = vsel %vm1982_vm6, %v1945_v3, %v10949_v58  ;;  %v1694_v39 = vrot.slane %v14148_v47, 4  ;;  %v1697_v55 = vrot.slane %v14157_v28, 4 }
 0x138   :  { %v14262_v53 = vpop.permute.xlu1 %11117  ;;  %v14264_v43 = vpop.permute.xlu0 %11122  ;;  %v987_v26 = vsel %vm842_vm1, %v985_v18, %v17925_v60  ;;  %v1337_v11 = vsel %vm1200_vm3, %v17926_v52, %v1336_v30  ;;  %v1696_v18 = vrot.slane %v14143_v29, 4  ;;  %v2010_v60 = vsel %vm1982_vm6, %v1944_v62, %v10945_v57 }
 0x139   :  { %v10959_v30 = vunpack.i.l.bf16 %v13750_v22  ;;  %v10954_v49 = vunpack.i.l.bf16 %v13720_v59  ;;  %v10955_v24 = vunpack.i.h.bf16 %v13720_v59  ;;  %v11426_v58 = vpack.i.bf16 %v987_v26, %v984_v6 }
 0x13a   :  { %11407 = vrot.lane.b32.xlu1 %v14268_v51, %s12178_s1  ;;  %11412 = vrot.lane.b32.xlu0 %v11411_v23, %s12172_s22  ;;  %v2009_v23 = vsel %vm1982_vm6, %v1943_v5, %v10944_v17  ;;  %v11431_v3 = vpack.i.bf16 %v1340_v14, %v1337_v11  ;;  %v1342_v47 = vsel %vm1200_vm3, %v1339_v33, %v1341_v9  ;;  %v17927_v5 = vrot.slane %v14175_v44, 3  ;;  %v17930_v14 = vld [vmem:[#allocation71_spill] sm:$0xff] }
 0x13b   :  { %v1699_v62 = vrot.slane %v14181_v41, 4  ;;  %v1701_v17 = vrot.slane %v14178_v13, 4  ;;  %v10964_v59 = vunpack.i.l.bf16 %v13758_v37  ;;  %v17928_v11 = vrot.slane %v13957_v61, 4 }
 0x13c   :  { %v11128_v52 = vpop.permute.xlu1 %11127  ;;  %v14292_v16 = vpop.permute.xlu0 %11132  ;;  %v1345_v57 = vsel %vm1200_vm3, %v1343_v4, %v17927_v5  ;;  %v17929_v6 = vunpack.i.h.bf16 %v13631_v10  ;;  %v2075_v9 = vsel %vm2048_vm7, %v2009_v23, %v10954_v49  ;;  %v11020_v4 = vunpack.i.h.bf16 %v17930_v14  ;;  %v17931_v10 = vld [vmem:[#allocation59_spill] sm:$0xff] }
 0x13d   :  { %v1695_v33 = vsel %vm1558_vm4, %v17928_v11, %v1694_v39  ;;  %v14327_v11 = vsel %vm2048_vm7, %v2010_v60, %v10955_v24  ;;  %v11436_v13 = vpack.i.bf16 %v1345_v57, %v1342_v47  ;;  %v1700_v23 = vsel %vm1558_vm4, %v1697_v55, %v1699_v62 }
 0x13e   :  { %11417 = vrot.lane.b32.xlu1 %v11416_v34, %s12172_s22  ;;  %11422 = vrot.lane.b32.xlu0 %v11421_v50, %s12171_s21  ;;  %v1698_v34 = vsel %vm1558_vm4, %v1696_v18, %v1697_v55  ;;  %v92_v50 = vld [vmem:[%s17619_s0 + $0x1d0] sm:$0xff]  ;;  %v14316_v41 = vsel %vm2048_vm7, %v14187_v45, %v17929_v6  ;;  %v14324_v18 = vsel %vm2048_vm7, %v2011_v56, %v10959_v30  ;;  %v17932_v49 = vrot.slane %v14175_v44, 4  ;;  %v17937_v56 = vld [vmem:[#allocation32_spill] sm:$0xff] }
 0x13f   :  { %v11441_v45 = vpack.i.bf16 %v1698_v34, %v1695_v33  ;;  %v250_v14 = vrot.slane %v92_v50, 6  ;;  %v14338_v24 = vsel %vm2114_vm8, %v2075_v9, %v10964_v59  ;;  %v11130_v60 = vunpack.i.h.bf16 %v11128_v52  ;;  %v94_v59 = vld [vmem:[%s17619_s0 + $0x1e0] sm:$0xff]  ;;  %v14355_v9 = vld [vmem:[%s17619_s0 + $0x1e8] sm:$0xff] }
 0x140   :  { %v14321_v5 = vpop.permute.xlu1 %11137  ;;  %v11143_v39 = vpop.permute.xlu0 %11142  ;;  %v1703_v6 = vsel %vm1558_vm4, %v1701_v17, %v17932_v49  ;;  %17933 = vst [vmem:[#allocation17_spill] sm:$0xff] %v14338_v24  ;;  %v11129_v30 = vunpack.i.l.bf16 %v11128_v52  ;;  %v17935_v17 = vld [vmem:[#allocation65_spill] sm:$0xff]  ;;  %v11456_v52 = vpack.i.bf16 %v14216_v42, %v14197_v46  ;;  %v17939_v26 = vrot.slane %v14119_v15, 6 }
 0x141   :  { %v11145_v55 = vunpack.i.h.bf16 %v11143_v39  ;;  %v11144_v57 = vunpack.i.l.bf16 %v11143_v39  ;;  %v11446_v34 = vpack.i.bf16 %v14184_v40, %v17935_v17  ;;  %v11451_v50 = vpack.i.bf16 %v1703_v6, %v1700_v23  ;;  %v17938_v6 = vld [vmem:[#allocation31_spill] sm:$0xff] }
 0x142   :  { %11427 = vrot.lane.b32.xlu1 %v11426_v58, %s12171_s21  ;;  %11432 = vrot.lane.b32.xlu0 %v11431_v3, %s12173_s27  ;;  %v93_v58 = vld [vmem:[%s17619_s0 + $0x1d8] sm:$0xff]  ;;  %v2980_v23 = vsel %vm2974_vm9, %v17937_v56, %v11130_v60  ;;  %v2979_v28 = vsel %vm2974_vm9, %v17938_v6, %v11129_v30  ;;  %v14369_v42 = vsel %vm162_vm0, %v17939_v26, 0.0  ;;  %v17740_v61 = vrot.slane %v14355_v9, 6 }
 0x143   :  { %v17934_v3 = vld [vmem:[#allocation28_spill] sm:$0xff]  ;;  %v251_v49 = vrot.slane %v93_v58, 6 }
 0x144   :  { %v2978_v47 = vsel %vm2974_vm9, %v17934_v3, %v11020_v4  ;;  %v11148_v62 = vpop.permute.xlu1 %11147  ;;  %v11153_v33 = vpop.permute.xlu0 %11152  ;;  %v14360_v3 = vsel %vm162_vm0, 0.0, %v250_v14 }
 0x145   :  { %v11155_v4 = vunpack.i.h.bf16 %v11153_v33  ;;  %v11154_v39 = vunpack.i.l.bf16 %v11153_v33  ;;  %17936 = vst [vmem:[#allocation20_spill] sm:$0xff] %v14360_v3  ;;  %v253_v33 = vrot.slane %v94_v59, 6  ;;  %v3041_v58 = vsel %vm3036_vm10, %v2978_v47, %v11144_v57 }
 0x146   :  { %11437 = vrot.lane.b32.xlu1 %v11436_v13, %s12173_s27  ;;  %11442 = vrot.lane.b32.xlu0 %v11441_v45, %s12174_s11  ;;  %v11139_v13 = vunpack.i.l.bf16 %v14321_v5  ;;  %v3042_v45 = vsel %vm3036_vm10, %v2979_v28, %v11145_v55  ;;  %v11150_v56 = vunpack.i.h.bf16 %v11148_v62  ;;  %v11149_v60 = vunpack.i.l.bf16 %v11148_v62 }
 0x147   :  { %v3106_v15 = vsel %vm3101_vm11, %v3041_v58, %v11154_v39  ;;  %v3107_v26 = vsel %vm3101_vm11, %v3042_v45, %v11155_v4  ;;  %v14382_v55 = vsel %vm162_vm0, %v250_v14, %v251_v49  ;;  %v14385_v57 = vsel %vm162_vm0, 0.0, %v253_v33 }
 0x148   :  { %v11158_v46 = vpop.permute.xlu1 %11157  ;;  %v11163_v40 = vpop.permute.xlu0 %11162  ;;  %17940 = vst [vmem:[#allocation15_spill] sm:$0xff] %v14382_v55  ;;  %17941 = vst [vmem:[#allocation71_spill] sm:$0xff] %v14385_v57  ;;  %v3043_v14 = vsel %vm3036_vm10, %v2980_v23, %v11149_v60  ;;  %v632_v23 = vrot.slane %v14360_v3, 1 }
 0x149   :  { %v11165_v29 = vunpack.i.h.bf16 %v11163_v40  ;;  %v11164_v30 = vunpack.i.l.bf16 %v11163_v40  ;;  %v11160_v6 = vunpack.i.h.bf16 %v11158_v46  ;;  %v11159_v59 = vunpack.i.l.bf16 %v11158_v46  ;;  %v17942_v40 = vld [vmem:[#allocation35_spill] sm:$0xff] }
 0x14a   :  { %11447 = vrot.lane.b32.xlu1 %v11446_v34, %s12175_s25  ;;  %11452 = vrot.lane.b32.xlu0 %v11451_v50, %s12174_s11  ;;  %v2981_v62 = vsel %vm2974_vm9, %v17942_v40, %v11139_v13  ;;  %v14394_v34 = vsel %vm162_vm0, %v253_v33, %v17740_v61  ;;  %v630_v33 = vrot.slane %v14369_v42, 1  ;;  %v10940_v40 = vunpack.i.h.bf16 %v13664_v20 }
 0x14b   :  { %v3171_v28 = vsel %vm3166_vm12, %v3106_v15, %v11164_v30  ;;  %v3172_v47 = vsel %vm3166_vm12, %v3107_v26, %v11165_v29  ;;  %17943 = vst [vmem:[#allocation59_spill] sm:$0xff] %v14394_v34  ;;  %v14397_v29 = vsel %vm162_vm0, %v251_v49, 0.0  ;;  %v3044_v50 = vsel %vm3036_vm10, %v2981_v62, %v11150_v56 }
 0x14c   :  { %v11168_v4 = vpop.permute.xlu1 %11167  ;;  %v14389_v39 = vpop.permute.xlu0 %11172  ;;  %v3233_v46 = vpack.c.bf16 %v3172_v47, %v3171_v28  ;;  %v3108_v13 = vsel %vm3101_vm11, %v3043_v14, %v11159_v59  ;;  %v3109_v30 = vsel %vm3101_vm11, %v3044_v50, %v11160_v6  ;;  %v633_v56 = vrot.slane %v14382_v55, 1 }
 0x14d   :  { %v11170_v45 = vunpack.i.h.bf16 %v11168_v4  ;;  %v11169_v58 = vunpack.i.l.bf16 %v11168_v4  ;;  %v635_v6 = vrot.slane %v14397_v29, 1  ;;  %v17739_v59 = vrot.slane %v14394_v34, 1 }
 0x14e   :  { %11457 = vrot.lane.b32.xlu1 %v11456_v52, %s12175_s25  ;;  %11462 = vrot.lane.b32.xlu0 %v14229_v8, %s12176_s13  ;;  %v637_v8 = vrot.slane %v14385_v57, 1  ;;  %v17945_v28 = vunpack.i.h.bf16 %v13647_v31  ;;  %v17947_v62 = vunpack.i.l.bf16 %v17931_v10  ;;  %v988_v31 = vrot.slane %v14369_v42, 2 }
 0x14f   :  { %v3173_v49 = vsel %vm3166_vm12, %v3108_v13, %v11169_v58  ;;  %v3174_v15 = vsel %vm3166_vm12, %v3109_v30, %v11170_v45  ;;  %10564 = vmatprep.mubr.msk.bf16.mxu0 %vm3322_vm13, %v3233_v46  ;;  %v17948_v46 = vunpack.i.h.bf16 %v13758_v37  ;;  %v990_v20 = vrot.slane %v14360_v3, 2 }
 0x150   :  { %v14412_v60 = vpop.permute.xlu1 %11177  ;;  %v14414_v26 = vpop.permute.xlu0 %11182  ;;  %v3234_v52 = vpack.c.bf16 %v3174_v15, %v3173_v49  ;;  %v14423_v47 = vsel %vm2114_vm8, %v14316_v41, %v17945_v28  ;;  %v14430_v4 = vsel %vm2114_vm8, %v14324_v18, %v17947_v62  ;;  %v991_v41 = vrot.slane %v14382_v55, 2  ;;  %v17954_v62 = vld [vmem:[#allocation18_spill] sm:$0xff]  ;;  %v17956_v15 = vld [vmem:[#allocation60_spill] sm:$0xff] }
 0x151   :  { %17944 = vst [vmem:[#allocation28_spill] sm:$0xff] %v14414_v26  ;;  %17946 = vst [vmem:[#allocation32_spill] sm:$0xff] %v14423_v47  ;;  %v14436_v14 = vsel %vm2114_vm8, %v14327_v11, %v17948_v46  ;;  %v14448_v37 = vpack.i.bf16 %v14338_v24, %v14423_v47  ;;  %v17950_v18 = vrot.slane %v14175_v44, 1  ;;  %v634_v50 = vsel %vm484_vm2, %v632_v23, %v633_v56 }
 0x152   :  { %17949 = vst [vmem:[#allocation31_spill] sm:$0xff] %v14436_v14  ;;  %11467 = vrot.lane.b32.xlu1 %v14268_v51, %s12176_s13  ;;  %11472 = vrot.lane.b32.xlu0 %v14268_v51, %s12177_s24  ;;  %v636_v58 = vsel %vm484_vm2, %v633_v56, %v635_v6  ;;  %v639_v13 = vsel %vm484_vm2, %v637_v8, %v17739_v59  ;;  %v993_v30 = vrot.slane %v14397_v29, 2  ;;  %v995_v49 = vrot.slane %v14385_v57, 2  ;;  %v17955_v59 = vld [vmem:[#allocation61_spill] sm:$0xff] }
 0x153   :  { %10565 = vmatmul.mubr.msk.bf16.gmra.mrb[4].mxu0 %vm3322_vm13, %v3234_v52  ;;  %v631_v11 = vsel %vm484_vm2, %v17950_v18, %v630_v33  ;;  %v1346_v33 = vrot.slane %v14369_v42, 3  ;;  %v1348_v23 = vrot.slane %v14360_v3, 3  ;;  %v1349_v52 = vrot.slane %v14382_v55, 3 }
 0x154   :  { %v14454_v45 = vpop.permute.xlu1 %11187  ;;  %v14456_v51 = vpop.permute.xlu0 %11192  ;;  %v11491_v56 = vpack.i.bf16 %v634_v50, %v631_v11  ;;  %v17953_v6 = vrot.slane %v14175_v44, 2  ;;  %v992_v28 = vsel %vm842_vm1, %v990_v20, %v991_v41  ;;  %v1946_v46 = vsel %vm1916_vm5, %v17954_v62, %v10940_v40 }
 0x155   :  { %17951 = vst [vmem:[#allocation35_spill] sm:$0xff] %v14454_v45  ;;  %17952 = vst [vmem:[#allocation76_spill] sm:$0xff] %v14456_v51  ;;  %v10950_v18 = vunpack.i.h.bf16 %v13702_v32  ;;  %v10979_v61 = vunpack.i.l.bf16 %v17955_v59  ;;  %v10974_v17 = vunpack.i.l.bf16 %v17956_v15  ;;  %v14487_v11 = vpack.i.bf16 %v14430_v4, %v14436_v14 }
 0x156   :  { %11477 = vrot.lane.b32.xlu1 %v14448_v37, %s12177_s24  ;;  %11482 = vrot.lane.b32.xlu0 %v14448_v37, %s12178_s1  ;;  %v989_v8 = vsel %vm842_vm1, %v17953_v6, %v988_v31  ;;  %v11496_v31 = vpack.i.bf16 %v639_v13, %v636_v58  ;;  %v994_v20 = vsel %vm842_vm1, %v991_v41, %v993_v30  ;;  %v17959_v40 = vrot.slane %v14394_v34, 2 }
 0x157   :  { %v11501_v50 = vpack.i.bf16 %v992_v28, %v989_v8  ;;  %v17960_v6 = vrot.slane %v14175_v44, 3  ;;  %v1351_v58 = vrot.slane %v14397_v29, 3  ;;  %v1353_v41 = vrot.slane %v14385_v57, 3  ;;  %v17961_v28 = vld [vmem:[#allocation23_spill] sm:$0xff] }
 0x158   :  { %v14481_v1 = vpop.permute.xlu1 %11197  ;;  %v14483_v51 = vpop.permute.xlu0 %11202  ;;  %v997_v32 = vsel %vm842_vm1, %v995_v49, %v17959_v40  ;;  %v1704_v30 = vrot.slane %v14369_v42, 4  ;;  %v2012_v49 = vsel %vm1982_vm6, %v1946_v46, %v10950_v18  ;;  %v1706_v8 = vrot.slane %v14360_v3, 4  ;;  %v17964_v42 = vld [vmem:[#allocation8_spill] sm:$0xff]  ;;  %v17965_v18 = vld [vmem:[#allocation62_spill] sm:$0xff] }
 0x159   :  { %17957 = vst [vmem:[#allocation18_spill] sm:$0xff] %v14481_v1  ;;  %17958 = vst [vmem:[#allocation61_spill] sm:$0xff] %v14483_v51  ;;  %v1347_v62 = vsel %vm1200_vm3, %v17960_v6, %v1346_v33  ;;  %v1350_v1 = vsel %vm1200_vm3, %v1348_v23, %v1349_v52  ;;  %v1707_v33 = vrot.slane %v14382_v55, 4  ;;  %v10960_v23 = vunpack.i.h.bf16 %v13750_v22  ;;  %v17962_v6 = vld [vmem:[#allocation19_spill] sm:$0xff] }
 0x15a   :  { %11487 = vrot.lane.b32.xlu1 %v14487_v11, %s12178_s1  ;;  %11492 = vrot.lane.b32.xlu0 %v11491_v56, %s12172_s22  ;;  %v1949_v40 = vsel %vm1916_vm5, %v17961_v28, %v10979_v61  ;;  %v10975_v56 = vunpack.i.h.bf16 %v17956_v15  ;;  %v1947_v51 = vsel %vm1916_vm5, %v17962_v6, %v10974_v17  ;;  %v10989_v46 = vunpack.i.l.bf16 %v17964_v42 }
 0x15b   :  { %v10985_v3 = vunpack.i.h.bf16 %v17965_v18  ;;  %v11506_v26 = vpack.i.bf16 %v997_v32, %v994_v20  ;;  %v11511_v55 = vpack.i.bf16 %v1350_v1, %v1347_v62  ;;  %v10984_v22 = vunpack.i.l.bf16 %v17965_v18  ;;  %v17968_v32 = vld [vmem:[#allocation24_spill] sm:$0xff] }
 0x15c   :  { %v14513_v45 = vpop.permute.xlu1 %11207  ;;  %v14515_v13 = vpop.permute.xlu0 %11212  ;;  %v1352_v61 = vsel %vm1200_vm3, %v1349_v52, %v1351_v58  ;;  %v17966_v17 = vrot.slane %v14394_v34, 3  ;;  %v17967_v28 = vrot.slane %v14175_v44, 4  ;;  %v1709_v1 = vrot.slane %v14397_v29, 4 }
 0x15d   :  { %17963 = vst [vmem:[#allocation60_spill] sm:$0xff] %v14515_v13  ;;  %v1708_v13 = vsel %vm1558_vm4, %v1706_v8, %v1707_v33  ;;  %v1711_v20 = vrot.slane %v14385_v57, 4  ;;  %v14538_v58 = vsel %vm2048_vm7, %v2012_v49, %v10960_v23  ;;  %v2013_v8 = vsel %vm1982_vm6, %v1947_v51, %v10984_v22  ;;  %v17970_v51 = vld [vmem:[#allocation63_spill] sm:$0xff] }
 0x15e   :  { %11497 = vrot.lane.b32.xlu1 %v11496_v31, %s12172_s22  ;;  %11502 = vrot.lane.b32.xlu0 %v11501_v50, %s12171_s21  ;;  %v1355_v15 = vsel %vm1200_vm3, %v1353_v41, %v17966_v17  ;;  %v1705_v6 = vsel %vm1558_vm4, %v17967_v28, %v1704_v30  ;;  %v17750_v31 = vrot.slane %v14394_v34, 4  ;;  %v1948_v50 = vsel %vm1916_vm5, %v17968_v32, %v10975_v56  ;;  %v14570_v32 = vld [vmem:[%s17619_s0 + $0x1f8] sm:$0xff] }
 0x15f   :  { %v14541_v41 = vsel %vm1982_vm6, %v1949_v40, %v10989_v46  ;;  %v11140_v30 = vunpack.i.h.bf16 %v14321_v5  ;;  %v11516_v56 = vpack.i.bf16 %v1355_v15, %v1352_v61  ;;  %v11521_v18 = vpack.i.bf16 %v1708_v13, %v1705_v6  ;;  %v17969_v40 = vld [vmem:[#allocation10_spill] sm:$0xff]  ;;  %v17971_v15 = vld [vmem:[#allocation7_spill] sm:$0xff]  ;;  %v17972_v6 = vld [vmem:[#allocation36_spill] sm:$0xff] }
 0x160   :  { %v14535_v52 = vpop.permute.xlu1 %11217  ;;  %v11223_v62 = vpop.permute.xlu0 %11222  ;;  %v14549_v17 = vsel %vm1982_vm6, %v1948_v50, %v10985_v3  ;;  %v11209_v49 = vunpack.i.l.bf16 %v14513_v45  ;;  %v1710_v23 = vsel %vm1558_vm4, %v1707_v33, %v1709_v1  ;;  %v1713_v5 = vsel %vm1558_vm4, %v1711_v20, %v17750_v31  ;;  %v96_v3 = vld [vmem:[%s17619_s0 + $0x1f0] sm:$0xff] }
 0x161   :  { %v11224_v28 = vunpack.i.l.bf16 %v11223_v62  ;;  %v10994_v13 = vunpack.i.l.bf16 %v17970_v51  ;;  %v11004_v33 = vunpack.i.l.bf16 %v17971_v15  ;;  %v2982_v1 = vsel %vm2974_vm9, %v17972_v6, %v11140_v30  ;;  %v17973_v6 = vld [vmem:[#allocation37_spill] sm:$0xff] }
 0x162   :  { %11507 = vrot.lane.b32.xlu1 %v11506_v26, %s12171_s21  ;;  %11512 = vrot.lane.b32.xlu0 %v11511_v55, %s12173_s27  ;;  %v11225_v26 = vunpack.i.h.bf16 %v11223_v62  ;;  %v11526_v20 = vpack.i.bf16 %v14423_v47, %v14213_v48  ;;  %v11531_v31 = vpack.i.bf16 %v1713_v5, %v1710_v23  ;;  %v11536_v22 = vpack.i.bf16 %v14436_v14, %v14338_v24 }
 0x163   :  { %v11210_v30 = vunpack.i.h.bf16 %v14513_v45  ;;  %v2983_v46 = vsel %vm2974_vm9, %v17973_v6, %v11209_v49  ;;  %v256_v29 = vrot.slane %v96_v3, 6  ;;  %v11219_v47 = vunpack.i.l.bf16 %v14535_v52 }
 0x164   :  { %v11228_v55 = vpop.permute.xlu1 %11227  ;;  %v11233_v61 = vpop.permute.xlu0 %11232  ;;  %v3046_v48 = vsel %vm3036_vm10, %v2983_v46, %v11225_v26  ;;  %v17974_v46 = vld [vmem:[#allocation42_spill] sm:$0xff]  ;;  %v2079_v6 = vsel %vm2048_vm7, %v2013_v8, %v10994_v13  ;;  %v17979_v13 = vunpack.i.h.bf16 %v17931_v10  ;;  %v17981_v10 = vunpack.i.l.bf16 %v17969_v40 }
 0x165   :  { %v11235_v50 = vunpack.i.h.bf16 %v11233_v61  ;;  %v11234_v62 = vunpack.i.l.bf16 %v11233_v61  ;;  %v3045_v61 = vsel %vm3036_vm10, %v2982_v1, %v11224_v28  ;;  %v11230_v23 = vunpack.i.h.bf16 %v11228_v55 }
 0x166   :  { %11517 = vrot.lane.b32.xlu1 %v11516_v56, %s12173_s27  ;;  %11522 = vrot.lane.b32.xlu0 %v11521_v18, %s12174_s11  ;;  %v257_v18 = vrot.slane %v14570_v32, 6  ;;  %v11229_v5 = vunpack.i.l.bf16 %v11228_v55  ;;  %v2984_v26 = vsel %vm2974_vm9, %v17974_v46, %v11210_v30  ;;  %v17975_v55 = vrot.slane %v14355_v9, 6  ;;  %v17980_v46 = vld [vmem:[#allocation68_spill] sm:$0xff] }
 0x167   :  { %v3110_v45 = vsel %vm3101_vm11, %v3045_v61, %v11234_v62  ;;  %v3111_v14 = vsel %vm3101_vm11, %v3046_v48, %v11235_v50  ;;  %v17976_v62 = vld [vmem:[#allocation41_spill] sm:$0xff]  ;;  %v14604_v30 = vsel %vm162_vm0, 0.0, %v256_v29 }
 0x168   :  { %v11238_v57 = vpop.permute.xlu1 %11237  ;;  %v11243_v56 = vpop.permute.xlu0 %11242  ;;  %v14594_v32 = vsel %vm162_vm0, %v17975_v55, 0.0  ;;  %v2985_v48 = vsel %vm2974_vm9, %v17976_v62, %v11219_v47  ;;  %17978 = vst [vmem:[#allocation19_spill] sm:$0xff] %v14604_v30  ;;  %v17982_v55 = vunpack.i.h.bf16 %v17970_v51 }
 0x169   :  { %v11245_v44 = vunpack.i.h.bf16 %v11243_v56  ;;  %v11244_v24 = vunpack.i.l.bf16 %v11243_v56  ;;  %v11240_v49 = vunpack.i.h.bf16 %v11238_v57  ;;  %v11239_v3 = vunpack.i.l.bf16 %v11238_v57 }
 0x16a   :  { %11527 = vrot.lane.b32.xlu1 %v11526_v20, %s12175_s25  ;;  %11532 = vrot.lane.b32.xlu0 %v11531_v31, %s12174_s11  ;;  %v14601_v31 = vsel %vm162_vm0, %v256_v29, %v257_v18  ;;  %v640_v29 = vrot.slane %v14594_v32, 1  ;;  %v2080_v62 = vsel %vm2048_vm7, %v14549_v17, %v17982_v55  ;;  %v998_v51 = vrot.slane %v14594_v32, 2 }
 0x16b   :  { %v3175_v28 = vsel %vm3166_vm12, %v3110_v45, %v11244_v24  ;;  %v3176_v1 = vsel %vm3166_vm12, %v3111_v14, %v11245_v44  ;;  %17977 = vst [vmem:[#allocation23_spill] sm:$0xff] %v14601_v31  ;;  %v3047_v44 = vsel %vm3036_vm10, %v2984_v26, %v11229_v5  ;;  %v3048_v24 = vsel %vm3036_vm10, %v2985_v48, %v11230_v23 }
 0x16c   :  { %v11248_v57 = vpop.permute.xlu1 %11247  ;;  %v14598_v50 = vpop.permute.xlu0 %11252  ;;  %v3235_v20 = vpack.c.bf16 %v3176_v1, %v3175_v28  ;;  %v3112_v47 = vsel %vm3101_vm11, %v3047_v44, %v11239_v3  ;;  %v3113_v61 = vsel %vm3101_vm11, %v3048_v24, %v11240_v49  ;;  %v642_v23 = vrot.slane %v14604_v30, 1 }
 0x16d   :  { %v11250_v9 = vunpack.i.h.bf16 %v11248_v57  ;;  %v11249_v14 = vunpack.i.l.bf16 %v11248_v57  ;;  %v643_v8 = vrot.slane %v14601_v31, 1  ;;  %v10980_v3 = vunpack.i.h.bf16 %v17955_v59 }
 0x16e   :  { %11537 = vrot.lane.b32.xlu1 %v11536_v22, %s12175_s25  ;;  %11542 = vrot.lane.b32.xlu0 %v14448_v37, %s12176_s13  ;;  %v14624_v22 = vsel %vm2114_vm8, %v14538_v58, %v17979_v13  ;;  %v11009_v26 = vunpack.i.l.bf16 %v17980_v46  ;;  %v11005_v28 = vunpack.i.h.bf16 %v17971_v15  ;;  %v14634_v1 = vsel %vm2114_vm8, %v2079_v6, %v11004_v33 }
 0x16f   :  { %v3177_v56 = vsel %vm3166_vm12, %v3112_v47, %v11249_v14  ;;  %v3178_v5 = vsel %vm3166_vm12, %v3113_v61, %v11250_v9  ;;  %10568 = vmatprep.mubr.msk.bf16.mxu0 %vm3322_vm13, %v3235_v20  ;;  %v2081_v58 = vsel %vm2048_vm7, %v14541_v41, %v17981_v10  ;;  %v17983_v59 = vrot.slane %v14394_v34, 1  ;;  %v17984_v9 = vld [vmem:[#allocation22_spill] sm:$0xff] }
 0x170   :  { %v14626_v45 = vpop.permute.xlu1 %11257  ;;  %v14628_v37 = vpop.permute.xlu0 %11262  ;;  %v3236_v49 = vpack.c.bf16 %v3178_v5, %v3177_v56  ;;  %v14652_v33 = vsel %vm162_vm0, %v257_v18, 0.0  ;;  %v644_v41 = vsel %vm484_vm2, %v642_v23, %v643_v8  ;;  %v1000_v17 = vrot.slane %v14604_v30, 2 }
 0x171   :  { %v641_v15 = vsel %vm484_vm2, %v17983_v59, %v640_v29  ;;  %v1001_v48 = vrot.slane %v14601_v31, 2  ;;  %v14665_v20 = vpack.i.bf16 %v14634_v1, %v14624_v22  ;;  %v10990_v18 = vunpack.i.h.bf16 %v17964_v42 }
 0x172   :  { %11547 = vrot.lane.b32.xlu1 %v14487_v11, %s12176_s13  ;;  %11552 = vrot.lane.b32.xlu0 %v14487_v11, %s12177_s24  ;;  %v2147_v44 = vsel %vm2114_vm8, %v2081_v58, %v11009_v26  ;;  %v2146_v24 = vsel %vm2114_vm8, %v2080_v62, %v11005_v28  ;;  %v1950_v14 = vsel %vm1916_vm5, %v17984_v9, %v10980_v3  ;;  %v645_v47 = vrot.slane %v14652_v33, 1 }
 0x173   :  { %10569 = vmatmul.mubr.msk.bf16.gmra.mrb[8].mxu0 %vm3322_vm13, %v3236_v49  ;;  %v11571_v6 = vpack.i.bf16 %v644_v41, %v641_v15  ;;  %v1356_v61 = vrot.slane %v14594_v32, 3  ;;  %v17985_v42 = vrot.slane %v14394_v34, 2  ;;  %v1002_v56 = vsel %vm842_vm1, %v1000_v17, %v1001_v48 }
 0x174   :  { %v14659_v57 = vpop.permute.xlu1 %11267  ;;  %v14661_v11 = vpop.permute.xlu0 %11272  ;;  %v1358_v5 = vrot.slane %v14604_v30, 3  ;;  %v1359_v23 = vrot.slane %v14601_v31, 3  ;;  %v14688_v3 = vpack.i.bf16 %v2147_v44, %v2146_v24  ;;  %v2016_v26 = vsel %vm1982_vm6, %v1950_v14, %v10990_v18  ;;  %v17987_v24 = vld [vmem:[#allocation38_spill] sm:$0xff] }
 0x175   :  { %v999_v29 = vsel %vm842_vm1, %v17985_v42, %v998_v51  ;;  %v11000_v28 = vunpack.i.h.bf16 %v17969_v40  ;;  %v646_v10 = vsel %vm484_vm2, %v643_v8, %v645_v47  ;;  %v1003_v55 = vrot.slane %v14652_v33, 2 }
 0x176   :  { %11557 = vrot.lane.b32.xlu1 %v14665_v20, %s12177_s24  ;;  %11562 = vrot.lane.b32.xlu0 %v14665_v20, %s12178_s1  ;;  %v11576_v58 = vpack.i.bf16 %v1002_v56, %v999_v29  ;;  %v17986_v62 = vrot.slane %v14394_v34, 3  ;;  %v1360_v15 = vsel %vm1200_vm3, %v1358_v5, %v1359_v23  ;;  %v1714_v41 = vrot.slane %v14594_v32, 4 }
 0x177   :  { %v1716_v40 = vrot.slane %v14604_v30, 4  ;;  %v1717_v51 = vrot.slane %v14601_v31, 4  ;;  %v11010_v8 = vunpack.i.h.bf16 %v17980_v46  ;;  %v2082_v44 = vsel %vm2048_vm7, %v2016_v26, %v11000_v28 }
 0x178   :  { %v14684_v13 = vpop.permute.xlu1 %11277  ;;  %v14686_v49 = vpop.permute.xlu0 %11282  ;;  %v1357_v59 = vsel %vm1200_vm3, %v17986_v62, %v1356_v61  ;;  %v11040_v9 = vunpack.i.h.bf16 %v17987_v24  ;;  %v11039_v14 = vunpack.i.l.bf16 %v17987_v24  ;;  %v1361_v47 = vrot.slane %v14652_v33, 3 }
 0x179   :  { %v11581_v32 = vpack.i.bf16 %v1360_v15, %v1357_v59  ;;  %v17988_v61 = vrot.slane %v14394_v34, 4  ;;  %v1718_v46 = vsel %vm1558_vm4, %v1716_v40, %v1717_v51  ;;  %v11055_v29 = vunpack.i.h.bf16 %v14050_v38 }
 0x17a   :  { %11567 = vrot.lane.b32.xlu1 %v14688_v3, %s12178_s1  ;;  %11572 = vrot.lane.b32.xlu0 %v11571_v6, %s12172_s22  ;;  %v1004_v6 = vsel %vm842_vm1, %v1001_v48, %v1003_v55  ;;  %v14724_v26 = vsel %vm2114_vm8, %v2082_v44, %v11010_v8  ;;  %v11060_v28 = vunpack.i.h.bf16 %v14072_v25  ;;  %v11220_v59 = vunpack.i.h.bf16 %v14535_v52  ;;  %v17991_v8 = vld [vmem:[#allocation30_spill] sm:$0xff] }
 0x17b   :  { %v1715_v42 = vsel %vm1558_vm4, %v17988_v61, %v1714_v41  ;;  %v1362_v41 = vsel %vm1200_vm3, %v1359_v23, %v1361_v47  ;;  %v1719_v40 = vrot.slane %v14652_v33, 4  ;;  %v1954_v44 = vsel %vm1916_vm5, %v17991_v8, %v11055_v29 }
 0x17c   :  { %v14704_v17 = vpop.permute.xlu1 %11287  ;;  %v14706_v18 = vpop.permute.xlu0 %11292  ;;  %v11586_v62 = vpack.i.bf16 %v1718_v46, %v1715_v42  ;;  %v11075_v52 = vunpack.i.h.bf16 %v14103_v54  ;;  %v11080_v46 = vunpack.i.h.bf16 %v14136_v2  ;;  %v11095_v23 = vunpack.i.h.bf16 %v14165_v63 }
 0x17d   :  { %v11289_v15 = vunpack.i.l.bf16 %v14704_v17  ;;  %v11100_v33 = vunpack.i.h.bf16 %v14199_v0  ;;  %v1720_v8 = vsel %vm1558_vm4, %v1717_v51, %v1719_v40  ;;  %vm6979_vm0 = vcmask 1044484  }
 0x17e   :  { %775 = vrot.lane.b32.xlu1 %v646_v10, %s12172_s22  ;;  %11577 = vrot.lane.b32.xlu0 %v11576_v58, %s12171_s21  ;;  %v17989_v10 = vld [vmem:[#allocation25_spill] sm:$0xff]  ;;  %vm6981_vm4 = vcmask 1045509   ;;  %s12180_s22 = smov 32  }
 0x17f   :  { %v1952_v48 = vsel %vm1916_vm5, %v17989_v10, %v11040_v9  ;;  %v17990_v58 = vld [vmem:[#allocation21_spill] sm:$0xff] }
 0x180   :  { %v14721_v56 = vpop.permute.xlu1 %11297  ;;  %v11303_v5 = vpop.permute.xlu0 %11302  ;;  %v14731_v55 = vsel %vm1916_vm5, %v17990_v58, %v11039_v14  ;;  %v2018_v42 = vsel %vm1982_vm6, %v1952_v48, %v11060_v28  ;;  %v17993_v58 = vld [vmem:[#allocation47_spill] sm:$0xff]  ;;  %v11591_v48 = vpack.i.bf16 %v14624_v22, %v14430_v4 }
 0x181   :  { %v11305_v9 = vunpack.i.h.bf16 %v11303_v5  ;;  %v11304_v14 = vunpack.i.l.bf16 %v11303_v5  ;;  %v17992_v5 = vld [vmem:[#allocation48_spill] sm:$0xff]  ;;  %v2987_v28 = vsel %vm2974_vm9, %v17993_v58, %v11289_v15  ;;  %v11299_v24 = vunpack.i.l.bf16 %v14721_v56 }
 0x182   :  { %1133 = vrot.lane.b32.xlu1 %v1004_v6, %s12171_s21  ;;  %11582 = vrot.lane.b32.xlu0 %v11581_v32, %s12173_s27  ;;  %v2986_v10 = vsel %vm2974_vm9, %v17992_v5, %v11220_v59  ;;  %v11290_v32 = vunpack.i.h.bf16 %v14704_v17  ;;  %v11115_v17 = vunpack.i.h.bf16 %v14233_v27 }
 0x184   :  { %v11308_v61 = vpop.permute.xlu1 %11307  ;;  %v11313_v6 = vpop.permute.xlu0 %11312 }
 0x185   :  { %v11315_v47 = vunpack.i.h.bf16 %v11313_v6  ;;  %v11314_v29 = vunpack.i.l.bf16 %v11313_v6  ;;  %v3050_v6 = vsel %vm3036_vm10, %v2987_v28, %v11305_v9  ;;  %v11310_v34 = vunpack.i.h.bf16 %v11308_v61 }
 0x186   :  { %1491 = vrot.lane.b32.xlu1 %v1362_v41, %s12173_s27  ;;  %11587 = vrot.lane.b32.xlu0 %v11586_v62, %s12174_s11  ;;  %v3049_v41 = vsel %vm3036_vm10, %v2986_v10, %v11304_v14  ;;  %v11309_v59 = vunpack.i.l.bf16 %v11308_v61  ;;  %v11596_v14 = vpack.i.bf16 %v14724_v26, %v14634_v1  ;;  %v2020_v1 = vsel %vm1982_vm6, %v1954_v44, %v11075_v52  ;;  %s12181_s27 = smov 64  }
 0x187   :  { %v3114_v15 = vsel %vm3101_vm11, %v3049_v41, %v11314_v29  ;;  %v3115_v22 = vsel %vm3101_vm11, %v3050_v6, %v11315_v47  ;;  %v17995_v29 = vld [vmem:[#allocation49_spill] sm:$0xff]  ;;  %v2086_v44 = vsel %vm2048_vm7, %v2020_v1, %v11095_v23  ;;  %v18002_v1 = vld [vmem:[#allocation34_spill] sm:$0xff] }
 0x188   :  { %v11318_v62 = vpop.permute.xlu1 %11317  ;;  %v11323_v31 = vpop.permute.xlu0 %11322  ;;  %v2989_v47 = vsel %vm2974_vm9, %v17995_v29, %v11299_v24  ;;  %v11079_v24 = vunpack.i.l.bf16 %v14136_v2 }
 0x189   :  { %v11325_v5 = vunpack.i.h.bf16 %v11323_v31  ;;  %v11324_v30 = vunpack.i.l.bf16 %v11323_v31  ;;  %v11320_v58 = vunpack.i.h.bf16 %v11318_v62  ;;  %v11319_v51 = vunpack.i.l.bf16 %v11318_v62  ;;  %v17994_v31 = vld [vmem:[#allocation50_spill] sm:$0xff] }
 0x18a   :  { %11592 = vrot.lane.b32.xlu1 %v11591_v48, %s12175_s25  ;;  %1849 = vrot.lane.b32.xlu0 %v1720_v8, %s12174_s11  ;;  %v2988_v61 = vsel %vm2974_vm9, %v17994_v31, %v11290_v32  ;;  %v3052_v6 = vsel %vm3036_vm10, %v2989_v47, %v11310_v34  ;;  %v11070_v62 = vunpack.i.h.bf16 %v14101_v35  ;;  %v18000_v47 = vld [vmem:[#allocation29_spill] sm:$0xff] }
 0x18b   :  { %v3179_v40 = vsel %vm3166_vm12, %v3114_v15, %v11324_v30  ;;  %v3180_v9 = vsel %vm3166_vm12, %v3115_v22, %v11325_v5  ;;  %v3051_v8 = vsel %vm3036_vm10, %v2988_v61, %v11309_v59  ;;  %v3117_v32 = vsel %vm3101_vm11, %v3052_v6, %v11320_v58 }
 0x18c   :  { %v11328_v10 = vpop.permute.xlu1 %11327  ;;  %v14774_v28 = vpop.permute.xlu0 %11332  ;;  %v3237_v48 = vpack.c.bf16 %v3180_v9, %v3179_v40  ;;  %v3116_v5 = vsel %vm3101_vm11, %v3051_v8, %v11319_v51  ;;  %v2084_v59 = vsel %vm2048_vm7, %v2018_v42, %v11080_v46  ;;  %v11069_v51 = vunpack.i.l.bf16 %v14101_v35  ;;  %v17997_v40 = vld [vmem:[#allocation26_spill] sm:$0xff] }
 0x18d   :  { %v11330_v30 = vunpack.i.h.bf16 %v11328_v10  ;;  %v11329_v41 = vunpack.i.l.bf16 %v11328_v10  ;;  %v14798_v2 = vsel %vm2114_vm8, %v2084_v59, %v11100_v33  ;;  %v14801_v42 = vsel %vm2114_vm8, %v2086_v44, %v11115_v17 }
 0x18e   :  { %11597 = vrot.lane.b32.xlu1 %v11596_v14, %s12175_s25  ;;  %11602 = vrot.lane.b32.xlu0 %v14665_v20, %s12176_s13  ;;  %v11099_v20 = vunpack.i.l.bf16 %v14199_v0  ;;  %v17996_v46 = vunpack.i.l.bf16 %v14050_v38  ;;  %v17998_v9 = vunpack.i.l.bf16 %v14072_v25  ;;  %v11074_v35 = vunpack.i.l.bf16 %v14103_v54  ;;  %v17999_v0 = vld [vmem:[#allocation33_spill] sm:$0xff] }
 0x18f   :  { %v3181_v34 = vsel %vm3166_vm12, %v3116_v5, %v11329_v41  ;;  %v3182_v15 = vsel %vm3166_vm12, %v3117_v32, %v11330_v30  ;;  %10572 = vmatprep.mubr.msk.bf16.mxu0 %vm3322_vm13, %v3237_v48  ;;  %v1956_v33 = vsel %vm1916_vm5, %v17999_v0, %v11070_v62  ;;  %v11085_v17 = vunpack.i.h.bf16 %v14138_v12  ;;  %v18001_v62 = vld [vmem:[#allocation40_spill] sm:$0xff] }
 0x190   :  { %v14791_v52 = vpop.permute.xlu1 %11337  ;;  %v14793_v22 = vpop.permute.xlu0 %11342  ;;  %v3238_v58 = vpack.c.bf16 %v3182_v15, %v3181_v34  ;;  %v1953_v23 = vsel %vm1916_vm5, %v17997_v40, %v17996_v46  ;;  %v2017_v14 = vsel %vm1982_vm6, %v14731_v55, %v17998_v9  ;;  %v11084_v25 = vunpack.i.l.bf16 %v14138_v12 }
 0x191   :  { %v2083_v38 = vsel %vm2048_vm7, %v2017_v14, %v11079_v24  ;;  %v11089_v55 = vunpack.i.l.bf16 %v14163_v19  ;;  %v11094_v54 = vunpack.i.l.bf16 %v14165_v63  ;;  %v11621_v29 = vpack.i.bf16 %v14801_v42, %v17894_v36 }
 0x192   :  { %11607 = vrot.lane.b32.xlu1 %v14688_v3, %s12176_s13  ;;  %11612 = vrot.lane.b32.xlu0 %v14688_v3, %s12177_s24  ;;  %v11616_v3 = vpack.i.bf16 %v14798_v2, %v17894_v36  ;;  %v1955_v10 = vsel %vm1916_vm5, %v18000_v47, %v11069_v51  ;;  %v11090_v12 = vunpack.i.h.bf16 %v14163_v19  ;;  %v14836_v48 = vsel %vm2114_vm8, %v2083_v38, %v11099_v20  ;;  %v18003_v47 = vld [vmem:[#allocation28_spill] sm:$0xff] }
 0x193   :  { %10573 = vmatmul.mubr.msk.bf16.gmra.mrb[12].mxu0 %vm3322_vm13, %v3238_v58  ;;  %v11114_v63 = vunpack.i.l.bf16 %v14233_v27  ;;  %v2019_v8 = vsel %vm1982_vm6, %v1953_v23, %v11074_v35  ;;  %v11105_v6 = vunpack.i.h.bf16 %v14201_v21  ;;  %v11104_v30 = vunpack.i.l.bf16 %v14201_v21 }
 0x194   :  { %v14824_v31 = vpop.permute.xlu1 %11347  ;;  %v14826_v61 = vpop.permute.xlu0 %11352  ;;  %v11109_v41 = vunpack.i.l.bf16 %v14231_v7  ;;  %v1958_v19 = vsel %vm1916_vm5, %v18001_v62, %v11085_v17  ;;  %v1957_v5 = vsel %vm1916_vm5, %v18002_v1, %v11084_v25  ;;  %v11110_v27 = vunpack.i.h.bf16 %v14231_v7 }
 0x195   :  { %v11119_v32 = vunpack.i.l.bf16 %v14262_v53  ;;  %v2021_v24 = vsel %vm1982_vm6, %v1955_v10, %v11089_v55  ;;  %v2085_v21 = vsel %vm2048_vm7, %v2019_v8, %v11094_v54  ;;  %v11626_v15 = vpack.i.bf16 %v14798_v2, %v14836_v48 }
 0x196   :  { %11617 = vrot.lane.b32.xlu1 %v11616_v3, %s12177_s24  ;;  %11622 = vrot.lane.b32.xlu0 %v11621_v29, %s12178_s1  ;;  %v11631_v44 = vpack.i.bf16 %v14836_v48, %v14724_v26  ;;  %v2022_v58 = vsel %vm1982_vm6, %v1956_v33, %v11090_v12  ;;  %v14863_v7 = vsel %vm2114_vm8, %v2085_v21, %v11114_v63  ;;  %v11125_v51 = vunpack.i.h.bf16 %v14264_v43  ;;  %v18004_v63 = vld [vmem:[#allocation35_spill] sm:$0xff] }
 0x197   :  { %v11124_v20 = vunpack.i.l.bf16 %v14264_v43  ;;  %v2023_v46 = vsel %vm1982_vm6, %v1957_v5, %v11104_v30  ;;  %v2024_v40 = vsel %vm1982_vm6, %v1958_v19, %v11105_v6  ;;  %v2087_v23 = vsel %vm2048_vm7, %v2021_v24, %v11109_v41  ;;  %v18005_v41 = vld [vmem:[#allocation76_spill] sm:$0xff]  ;;  %v18007_v5 = vld [vmem:[#allocation39_spill] sm:$0xff] }
 0x198   :  { %v14853_v59 = vpop.permute.xlu1 %11357  ;;  %v14855_v34 = vpop.permute.xlu0 %11362  ;;  %v11120_v9 = vunpack.i.h.bf16 %v14262_v53  ;;  %v2088_v14 = vsel %vm2048_vm7, %v2022_v58, %v11110_v27  ;;  %v2089_v35 = vsel %vm2048_vm7, %v2023_v46, %v11119_v32  ;;  %v11135_v0 = vunpack.i.h.bf16 %v14292_v16  ;;  %v18006_v19 = vld [vmem:[#allocation44_spill] sm:$0xff]  ;;  %v18009_v58 = vld [vmem:[#allocation43_spill] sm:$0xff]  ;;  %v18010_v46 = vld [vmem:[#allocation61_spill] sm:$0xff] }
 0x199   :  { %v11134_v43 = vunpack.i.l.bf16 %v14292_v16  ;;  %v11175_v33 = vunpack.i.h.bf16 %v14389_v39  ;;  %v11174_v38 = vunpack.i.l.bf16 %v14389_v39  ;;  %v11641_v53 = vpack.i.bf16 %v14801_v42, %v14863_v7 }
 0x19a   :  { %11627 = vrot.lane.b32.xlu1 %v11626_v15, %s12175_s25  ;;  %11632 = vrot.lane.b32.xlu0 %v11631_v44, %s12176_s13  ;;  %v11636_v55 = vpack.i.bf16 %v14863_v7, %v14798_v2  ;;  %v14888_v54 = vsel %vm2114_vm8, %v2088_v14, %v11125_v51  ;;  %v14891_v3 = vsel %vm2114_vm8, %v2087_v23, %v11124_v20  ;;  %v11180_v16 = vunpack.i.h.bf16 %v14412_v60  ;;  %v18008_v15 = vld [vmem:[#allocation46_spill] sm:$0xff] }
 0x19b   :  { %v11179_v39 = vunpack.i.l.bf16 %v14412_v60  ;;  %v2090_v29 = vsel %vm2048_vm7, %v2024_v40, %v11120_v9  ;;  %v11185_v10 = vunpack.i.h.bf16 %v18003_v47  ;;  %v11184_v12 = vunpack.i.l.bf16 %v18003_v47 }
 0x19c   :  { %v14879_v17 = vpop.permute.xlu1 %11367  ;;  %v14881_v25 = vpop.permute.xlu0 %11372  ;;  %v11189_v8 = vunpack.i.l.bf16 %v18004_v63  ;;  %v14902_v6 = vsel %vm2114_vm8, %v2089_v35, %v11134_v43  ;;  %v14905_v30 = vsel %vm2114_vm8, %v2090_v29, %v11135_v0  ;;  %v11190_v60 = vunpack.i.h.bf16 %v18004_v63 }
 0x19d   :  { %v11194_v62 = vunpack.i.l.bf16 %v18005_v41  ;;  %v1960_v1 = vsel %vm1916_vm5, %v18006_v19, %v11175_v33  ;;  %v1959_v27 = vsel %vm1916_vm5, %v18007_v5, %v11174_v38  ;;  %v11651_v21 = vpack.i.bf16 %v14888_v54, %v14891_v3  ;;  %v18013_v5 = vld [vmem:[#allocation56_spill] sm:$0xff] }
 0x19e   :  { %11642 = vrot.lane.b32.xlu0 %v11641_v53, %s12177_s24  ;;  %11637 = vrot.lane.b32.xlu1 %v11636_v55, %s12176_s13  ;;  %v1962_v44 = vsel %vm1916_vm5, %v18008_v15, %v11180_v16  ;;  %v1961_v51 = vsel %vm1916_vm5, %v18009_v58, %v11179_v39  ;;  %v11195_v20 = vunpack.i.h.bf16 %v18005_v41  ;;  %v11204_v40 = vunpack.i.l.bf16 %v18010_v46  ;;  %v18012_v41 = vld [vmem:[#allocation60_spill] sm:$0xff] }
 0x19f   :  { %v2025_v23 = vsel %vm1982_vm6, %v1959_v27, %v11184_v12  ;;  %v2026_v9 = vsel %vm1982_vm6, %v1960_v1, %v11185_v10  ;;  %v2027_v14 = vsel %vm1982_vm6, %v1961_v51, %v11189_v8  ;;  %v11205_v35 = vunpack.i.h.bf16 %v18010_v46  ;;  %v18011_v12 = vld [vmem:[#allocation18_spill] sm:$0xff] }
 0x1a0   :  { %v14913_v32 = vpop.permute.xlu1 %11377  ;;  %v11383_v24 = vpop.permute.xlu0 %11382  ;;  %v2028_v0 = vsel %vm1982_vm6, %v1962_v44, %v11190_v60  ;;  %v2091_v43 = vsel %vm2048_vm7, %v2025_v23, %v11194_v62  ;;  %v11300_v33 = vunpack.i.h.bf16 %v14721_v56  ;;  %v11369_v38 = vunpack.i.l.bf16 %v14879_v17 }
 0x1a1   :  { %v11385_v55 = vunpack.i.h.bf16 %v11383_v24  ;;  %v11384_v16 = vunpack.i.l.bf16 %v11383_v24  ;;  %v14935_v47 = vpack.i.bf16 %v14905_v30, %v14902_v6  ;;  %v2092_v10 = vsel %vm2048_vm7, %v2026_v9, %v11195_v20  ;;  %v18014_v24 = vld [vmem:[#allocation55_spill] sm:$0xff] }
 0x1a2   :  { %11652 = vrot.lane.b32.xlu0 %v11651_v21, %s12178_s1  ;;  %11647 = vrot.lane.b32.xlu1 %v11651_v21, %s12177_s24  ;;  %v11200_v63 = vunpack.i.h.bf16 %v18011_v12  ;;  %v11199_v8 = vunpack.i.l.bf16 %v18011_v12  ;;  %v14941_v60 = vsel %vm2114_vm8, %v2091_v43, %v11204_v40  ;;  %v14944_v56 = vsel %vm2114_vm8, %v2092_v10, %v11205_v35  ;;  %v18015_v12 = vld [vmem:[#allocation58_spill] sm:$0xff] }
 0x1a3   :  { %v11215_v62 = vunpack.i.h.bf16 %v18012_v41  ;;  %v2990_v27 = vsel %vm2974_vm9, %v18013_v5, %v11300_v33  ;;  %v2991_v15 = vsel %vm2974_vm9, %v18014_v24, %v11369_v38  ;;  %v11671_v44 = vpack.i.bf16 %v14891_v3, %v14801_v42  ;;  %v18016_v5 = vld [vmem:[#allocation57_spill] sm:$0xff] }
 0x1a4   :  { %v11388_v39 = vpop.permute.xlu1 %11387  ;;  %v11393_v29 = vpop.permute.xlu0 %11392  ;;  %v11370_v58 = vunpack.i.h.bf16 %v14879_v17  ;;  %v11379_v51 = vunpack.i.l.bf16 %v14913_v32  ;;  %v3054_v20 = vsel %vm3036_vm10, %v2991_v15, %v11385_v55  ;;  %v11214_v17 = vunpack.i.l.bf16 %v18012_v41 }
 0x1a5   :  { %v11395_v19 = vunpack.i.h.bf16 %v11393_v29  ;;  %v11394_v1 = vunpack.i.l.bf16 %v11393_v29  ;;  %v11390_v23 = vunpack.i.h.bf16 %v11388_v39  ;;  %v11389_v9 = vunpack.i.l.bf16 %v11388_v39 }
 0x1a6   :  { %11662 = vrot.lane.b32.xlu0 %v11641_v53, %s12175_s25  ;;  %11657 = vrot.lane.b32.xlu1 %v14935_v47, %s12178_s1  ;;  %v3053_v53 = vsel %vm3036_vm10, %v2990_v27, %v11384_v16  ;;  %v2992_v39 = vsel %vm2974_vm9, %v18015_v12, %v11370_v58  ;;  %v11676_v24 = vpack.i.bf16 %v14902_v6, %v14888_v54  ;;  %v11260_v12 = vunpack.i.h.bf16 %v14626_v45 }
 0x1a7   :  { %v3118_v33 = vsel %vm3101_vm11, %v3053_v53, %v11394_v1  ;;  %v3119_v38 = vsel %vm3101_vm11, %v3054_v20, %v11395_v19  ;;  %v2993_v1 = vsel %vm2974_vm9, %v18016_v5, %v11379_v51  ;;  %v2093_v53 = vsel %vm2048_vm7, %v2027_v14, %v11199_v8 }
 0x1a8   :  { %v11398_v46 = vpop.permute.xlu1 %11397  ;;  %v11403_v40 = vpop.permute.xlu0 %11402  ;;  %v3056_v41 = vsel %vm3036_vm10, %v2993_v1, %v11390_v23  ;;  %v2094_v51 = vsel %vm2048_vm7, %v2028_v0, %v11200_v63  ;;  %v11254_v14 = vunpack.i.l.bf16 %v14598_v50  ;;  %v14999_v63 = vsel %vm2114_vm8, %v2093_v53, %v11214_v17 }
 0x1a9   :  { %v11405_v35 = vunpack.i.h.bf16 %v11403_v40  ;;  %v11404_v43 = vunpack.i.l.bf16 %v11403_v40  ;;  %v11400_v29 = vunpack.i.h.bf16 %v11398_v46  ;;  %v11399_v10 = vunpack.i.l.bf16 %v11398_v46 }
 0x1aa   :  { %11672 = vrot.lane.b32.xlu0 %v11671_v44, %s12176_s13  ;;  %11667 = vrot.lane.b32.xlu1 %v11651_v21, %s12175_s25  ;;  %v3055_v21 = vsel %vm3036_vm10, %v2992_v39, %v11389_v9  ;;  %v11255_v40 = vunpack.i.h.bf16 %v14598_v50  ;;  %v14996_v0 = vsel %vm2114_vm8, %v2094_v51, %v11215_v62  ;;  %v18017_v50 = vld [vmem:[#allocation52_spill] sm:$0xff]  ;;  %v11265_v39 = vunpack.i.h.bf16 %v14628_v37 }
 0x1ab   :  { %v3183_v55 = vsel %vm3166_vm12, %v3118_v33, %v11404_v43  ;;  %v3184_v16 = vsel %vm3166_vm12, %v3119_v38, %v11405_v35  ;;  %v3120_v58 = vsel %vm3101_vm11, %v3055_v21, %v11399_v10  ;;  %v3121_v46 = vsel %vm3101_vm11, %v3056_v41, %v11400_v29  ;;  %v18018_v10 = vld [vmem:[#allocation45_spill] sm:$0xff] }
 0x1ac   :  { %v11408_v27 = vpop.permute.xlu1 %11407  ;;  %v14971_v19 = vpop.permute.xlu0 %11412  ;;  %v3239_v15 = vpack.c.bf16 %v3184_v16, %v3183_v55  ;;  %v11691_v43 = vpack.i.bf16 %v14944_v56, %v14941_v60  ;;  %v11259_v38 = vunpack.i.l.bf16 %v14626_v45  ;;  %v1964_v29 = vsel %vm1916_vm5, %v18017_v50, %v11255_v40 }
 0x1ad   :  { %v11410_v44 = vunpack.i.h.bf16 %v11408_v27  ;;  %v11409_v20 = vunpack.i.l.bf16 %v11408_v27  ;;  %v1963_v55 = vsel %vm1916_vm5, %v18018_v10, %v11254_v14  ;;  %v15015_v17 = vpack.i.bf16 %v14996_v0, %v14999_v63  ;;  %v18019_v27 = vld [vmem:[#allocation51_spill] sm:$0xff] }
 0x1ae   :  { %11682 = vrot.lane.b32.xlu0 %v14935_v47, %s12177_s24  ;;  %11677 = vrot.lane.b32.xlu1 %v11676_v24, %s12176_s13  ;;  %v11264_v5 = vunpack.i.l.bf16 %v14628_v37  ;;  %v11269_v1 = vunpack.i.l.bf16 %v14659_v57  ;;  %v1965_v24 = vsel %vm1916_vm5, %v18019_v27, %v11259_v38  ;;  %v11275_v21 = vunpack.i.h.bf16 %v14661_v11 }
 0x1af   :  { %v3185_v9 = vsel %vm3166_vm12, %v3120_v58, %v11409_v20  ;;  %v3186_v23 = vsel %vm3166_vm12, %v3121_v46, %v11410_v44  ;;  %10576 = vmatprep.mubr.msk.bf16.mxu0 %vm3322_vm13, %v3239_v15  ;;  %v11270_v15 = vunpack.i.h.bf16 %v14659_v57  ;;  %v11274_v41 = vunpack.i.l.bf16 %v14661_v11  ;;  %v18020_v46 = vld [vmem:[#allocation54_spill] sm:$0xff] }
 0x1b0   :  { %v14989_v8 = vpop.permute.xlu1 %11417  ;;  %v14991_v35 = vpop.permute.xlu0 %11422  ;;  %v3240_v33 = vpack.c.bf16 %v3186_v23, %v3185_v9  ;;  %v11280_v45 = vunpack.i.h.bf16 %v14684_v13  ;;  %v11279_v37 = vunpack.i.l.bf16 %v14684_v13  ;;  %v11285_v44 = vunpack.i.h.bf16 %v14686_v49 }
 0x1b1   :  { %v11284_v20 = vunpack.i.l.bf16 %v14686_v49  ;;  %v11295_v57 = vunpack.i.h.bf16 %v14706_v18  ;;  %v11294_v53 = vunpack.i.l.bf16 %v14706_v18  ;;  %v1966_v51 = vsel %vm1916_vm5, %v18020_v46, %v11260_v12 }
 0x1b2   :  { %11692 = vrot.lane.b32.xlu0 %v11691_v43, %s12178_s1  ;;  %11687 = vrot.lane.b32.xlu1 %v11691_v43, %s12177_s24  ;;  %v2029_v13 = vsel %vm1982_vm6, %v1963_v55, %v11264_v5  ;;  %v2030_v40 = vsel %vm1982_vm6, %v1964_v29, %v11265_v39  ;;  %v2031_v49 = vsel %vm1982_vm6, %v1965_v24, %v11269_v1  ;;  %v11335_v39 = vunpack.i.h.bf16 %v14774_v28 }
 0x1b3   :  { %10577 = vmatmul.mubr.msk.bf16.gmra.mrb[16].mxu0 %vm3322_vm13, %v3240_v33  ;;  %v2032_v9 = vsel %vm1982_vm6, %v1966_v51, %v11270_v15  ;;  %v2095_v18 = vsel %vm2048_vm7, %v2029_v13, %v11274_v41  ;;  %v2096_v23 = vsel %vm2048_vm7, %v2030_v40, %v11275_v21  ;;  %v2097_v14 = vsel %vm2048_vm7, %v2031_v49, %v11279_v37  ;;  %v18024_v13 = vld [vmem:[#allocation11_spill] sm:$0xff] }
 0x1b4   :  { %v15009_v16 = vpop.permute.xlu1 %11427  ;;  %v15011_v62 = vpop.permute.xlu0 %11432  ;;  %v2098_v33 = vsel %vm2048_vm7, %v2032_v9, %v11280_v45  ;;  %v15055_v38 = vsel %vm2114_vm8, %v2095_v18, %v11284_v20  ;;  %v15058_v50 = vsel %vm2114_vm8, %v2096_v23, %v11285_v44  ;;  %v15064_v10 = vsel %vm2114_vm8, %v2097_v14, %v11294_v53 }
 0x1b5   :  { %v15061_v29 = vsel %vm2114_vm8, %v2098_v33, %v11295_v57  ;;  %v11334_v5 = vunpack.i.l.bf16 %v14774_v28  ;;  %v11340_v1 = vunpack.i.h.bf16 %v14791_v52  ;;  %v11731_v27 = vpack.i.bf16 %v15058_v50, %v15055_v38  ;;  %v18021_v57 = vld [vmem:[#allocation64_spill] sm:$0xff] }
 0x1b6   :  { %11702 = vrot.lane.b32.xlu0 %v14935_v47, %s12175_s25  ;;  %11697 = vrot.lane.b32.xlu1 %v15015_v17, %s12178_s1  ;;  %v11711_v47 = vpack.i.bf16 %v14941_v60, %v14905_v30  ;;  %v11339_v24 = vunpack.i.l.bf16 %v14791_v52  ;;  %v15083_v15 = vpack.i.bf16 %v15061_v29, %v15064_v10  ;;  %v11345_v21 = vunpack.i.h.bf16 %v14793_v22 }
 0x1b7   :  { %v11344_v28 = vunpack.i.l.bf16 %v14793_v22  ;;  %v11751_v37 = vpack.i.bf16 %v15055_v38, %v14996_v0  ;;  %v11355_v44 = vunpack.i.h.bf16 %v14826_v61  ;;  %v11354_v20 = vunpack.i.l.bf16 %v14826_v61  ;;  %v18023_v22 = vld [vmem:[#allocation70_spill] sm:$0xff] }
 0x1b8   :  { %v15036_v58 = vpop.permute.xlu1 %11437  ;;  %v15038_v11 = vpop.permute.xlu0 %11442  ;;  %v1968_v53 = vsel %vm1916_vm5, %v18021_v57, %v11335_v39  ;;  %v15101_v51 = vsel %vm1916_vm5, %v18023_v22, %v11340_v1  ;;  %v1969_v61 = vsel %vm1916_vm5, %v18024_v13, %v11339_v24  ;;  %v11364_v40 = vunpack.i.l.bf16 %v14855_v34 }
 0x1b9   :  { %v11380_v49 = vunpack.i.h.bf16 %v14913_v32  ;;  %v2034_v23 = vsel %vm1982_vm6, %v1968_v53, %v11345_v21  ;;  %v11349_v1 = vunpack.i.l.bf16 %v14824_v31  ;;  %v11360_v32 = vunpack.i.h.bf16 %v14853_v59 }
 0x1ba   :  { %11712 = vrot.lane.b32.xlu0 %v11711_v47, %s12176_s13  ;;  %11707 = vrot.lane.b32.xlu1 %v11691_v43, %s12175_s25  ;;  %v11716_v43 = vpack.i.bf16 %v14999_v63, %v14944_v56  ;;  %v18022_v47 = vld [vmem:[#allocation53_spill] sm:$0xff]  ;;  %v2100_v57 = vsel %vm2048_vm7, %v2034_v23, %v11355_v44  ;;  %v11365_v21 = vunpack.i.h.bf16 %v14855_v34 }
 0x1bb   :  { %v1967_v46 = vsel %vm1916_vm5, %v18022_v47, %v11334_v5  ;;  %v11350_v5 = vunpack.i.h.bf16 %v14824_v31  ;;  %v11359_v47 = vunpack.i.l.bf16 %v14853_v59 }
 0x1bc   :  { %v15066_v55 = vpop.permute.xlu1 %11447  ;;  %v15068_v12 = vpop.permute.xlu0 %11452  ;;  %v2033_v18 = vsel %vm1982_vm6, %v1967_v46, %v11344_v28 }
 0x1bd   :  { %v11449_v9 = vunpack.i.l.bf16 %v15066_v55  ;;  %v2099_v24 = vsel %vm2048_vm7, %v2033_v18, %v11354_v20  ;;  %v18026_v20 = vld [vmem:[#allocation66_spill] sm:$0xff]  ;;  %v11450_v59 = vunpack.i.h.bf16 %v15066_v55  ;;  %v15139_v55 = vsel %vm2114_vm8, %v2100_v57, %v11365_v21 }
 0x1be   :  { %11722 = vrot.lane.b32.xlu0 %v15015_v17, %s12177_s24  ;;  %11717 = vrot.lane.b32.xlu1 %v11716_v43, %s12176_s13  ;;  %v15124_v31 = vsel %vm2114_vm8, %v2099_v24, %v11364_v40 }
 0x1bf   :  { %v2995_v53 = vsel %vm2974_vm9, %v18026_v20, %v11449_v9  ;;  %v18028_v20 = vld [vmem:[#allocation65_spill] sm:$0xff] }
 0x1c0   :  { %v15087_v41 = vpop.permute.xlu1 %11457  ;;  %v11463_v45 = vpop.permute.xlu0 %11462 }
 0x1c1   :  { %v11465_v14 = vunpack.i.h.bf16 %v11463_v45  ;;  %v11464_v33 = vunpack.i.l.bf16 %v11463_v45  ;;  %v18025_v45 = vld [vmem:[#allocation9_spill] sm:$0xff]  ;;  %v11459_v46 = vunpack.i.l.bf16 %v15087_v41 }
 0x1c2   :  { %11732 = vrot.lane.b32.xlu0 %v11731_v27, %s12178_s1  ;;  %11727 = vrot.lane.b32.xlu1 %v11731_v27, %s12177_s24  ;;  %v2994_v44 = vsel %vm2974_vm9, %v18025_v45, %v11380_v49 }
 0x1c3   :  { %v3057_v13 = vsel %vm3036_vm10, %v2994_v44, %v11464_v33  ;;  %v11374_v44 = vunpack.i.l.bf16 %v14881_v25 }
 0x1c4   :  { %v11468_v43 = vpop.permute.xlu1 %11467  ;;  %v11473_v39 = vpop.permute.xlu0 %11472 }
 0x1c5   :  { %v11475_v22 = vunpack.i.h.bf16 %v11473_v39  ;;  %v11474_v28 = vunpack.i.l.bf16 %v11473_v39  ;;  %v11470_v34 = vunpack.i.h.bf16 %v11468_v43  ;;  %v11469_v39 = vunpack.i.l.bf16 %v11468_v43 }
 0x1c6   :  { %11742 = vrot.lane.b32.xlu0 %v15015_v17, %s12175_s25  ;;  %11737 = vrot.lane.b32.xlu1 %v15083_v15, %s12178_s1  ;;  %v3058_v17 = vsel %vm3036_vm10, %v2995_v53, %v11465_v14  ;;  %v11375_v14 = vunpack.i.h.bf16 %v14881_v25  ;;  %v2997_v53 = vsel %vm2974_vm9, %v18028_v20, %v11459_v46  ;;  %v2036_v46 = vsel %vm1982_vm6, %v15101_v51, %v11350_v5 }
 0x1c7   :  { %v3122_v52 = vsel %vm3101_vm11, %v3057_v13, %v11474_v28  ;;  %v3123_v49 = vsel %vm3101_vm11, %v3058_v17, %v11475_v22  ;;  %v18027_v28 = vld [vmem:[#allocation67_spill] sm:$0xff]  ;;  %v3060_v21 = vsel %vm3036_vm10, %v2997_v53, %v11470_v34  ;;  %v11420_v20 = vunpack.i.h.bf16 %v14989_v8 }
 0x1c8   :  { %v11478_v18 = vpop.permute.xlu1 %11477  ;;  %v11483_v23 = vpop.permute.xlu0 %11482  ;;  %v2996_v22 = vsel %vm2974_vm9, %v18027_v28, %v11450_v59  ;;  %v18029_v59 = vpack.i.bf16 %v15064_v10, %v15058_v50  ;;  %v11424_v28 = vunpack.i.l.bf16 %v14991_v35  ;;  %v11435_v53 = vunpack.i.h.bf16 %v15011_v62 }
 0x1c9   :  { %v11485_v40 = vunpack.i.h.bf16 %v11483_v23  ;;  %v11484_v24 = vunpack.i.l.bf16 %v11483_v23  ;;  %v11480_v45 = vunpack.i.h.bf16 %v11478_v18  ;;  %v11479_v9 = vunpack.i.l.bf16 %v11478_v18 }
 0x1ca   :  { %11752 = vrot.lane.b32.xlu0 %v11751_v37, %s12176_s13  ;;  %11747 = vrot.lane.b32.xlu1 %v11731_v27, %s12175_s25  ;;  %v3059_v57 = vsel %vm3036_vm10, %v2996_v22, %v11469_v39  ;;  %v2035_v18 = vsel %vm1982_vm6, %v1969_v61, %v11349_v1  ;;  %v2102_v1 = vsel %vm2048_vm7, %v2036_v46, %v11360_v32  ;;  %v11454_v46 = vunpack.i.l.bf16 %v15068_v12 }
 0x1cb   :  { %v3187_v33 = vsel %vm3166_vm12, %v3122_v52, %v11484_v24  ;;  %v3188_v43 = vsel %vm3166_vm12, %v3123_v49, %v11485_v40  ;;  %v3124_v25 = vsel %vm3101_vm11, %v3059_v57, %v11479_v9  ;;  %v3125_v23 = vsel %vm3101_vm11, %v3060_v21, %v11480_v45 }
 0x1cc   :  { %v11488_v37 = vpop.permute.xlu1 %11487  ;;  %v15149_v17 = vpop.permute.xlu0 %11492  ;;  %v3241_v27 = vpack.c.bf16 %v3188_v43, %v3187_v33  ;;  %v2101_v34 = vsel %vm2048_vm7, %v2035_v18, %v11359_v47  ;;  %v11771_v49 = vpack.i.bf16 %v15139_v55, %v15124_v31  ;;  %v15176_v51 = vsel %vm2114_vm8, %v2102_v1, %v11375_v14 }
 0x1cd   :  { %v11490_v13 = vunpack.i.h.bf16 %v11488_v37  ;;  %v11489_v52 = vunpack.i.l.bf16 %v11488_v37  ;;  %18030 = vst [vmem:[#allocation8_spill] sm:$0xff] %v15176_v51  ;;  %v15179_v5 = vsel %vm2114_vm8, %v2101_v34, %v11374_v44  ;;  %v11415_v14 = vunpack.i.h.bf16 %v14971_v19  ;;  %v18034_v34 = vld [vmem:[#allocation16_spill] sm:$0xff] }
 0x1ce   :  { %11762 = vrot.lane.b32.xlu0 %v15083_v15, %s12177_s24  ;;  %11757 = vrot.lane.b32.xlu1 %v18029_v59, %s12176_s13  ;;  %18031 = vst [vmem:[#allocation62_spill] sm:$0xff] %v15179_v5  ;;  %v15190_v9 = vpack.i.bf16 %v15176_v51, %v15179_v5  ;;  %v11414_v33 = vunpack.i.l.bf16 %v14971_v19  ;;  %v11791_v43 = vpack.i.bf16 %v15124_v31, %v15061_v29  ;;  %v11425_v44 = vunpack.i.h.bf16 %v14991_v35 }
 0x1cf   :  { %v3189_v39 = vsel %vm3166_vm12, %v3124_v25, %v11489_v52  ;;  %v3190_v61 = vsel %vm3166_vm12, %v3125_v23, %v11490_v13  ;;  %10580 = vmatprep.mubr.msk.bf16.mxu0 %vm3322_vm13, %v3241_v27  ;;  %v11796_v22 = vpack.i.bf16 %v15179_v5, %v15139_v55  ;;  %v11419_v19 = vunpack.i.l.bf16 %v14989_v8  ;;  %v18032_v52 = vld [vmem:[#allocation12_spill] sm:$0xff]  ;;  %v18033_v8 = vld [vmem:[#allocation69_spill] sm:$0xff] }
 0x1d0   :  { %v15169_v40 = vpop.permute.xlu1 %11497  ;;  %v15171_v24 = vpop.permute.xlu0 %11502  ;;  %v3242_v45 = vpack.c.bf16 %v3190_v61, %v3189_v39  ;;  %v11434_v37 = vunpack.i.l.bf16 %v15011_v62  ;;  %v11430_v27 = vunpack.i.h.bf16 %v15009_v16  ;;  %v11429_v35 = vunpack.i.l.bf16 %v15009_v16  ;;  %v18035_v61 = vld [vmem:[#allocation13_spill] sm:$0xff] }
 0x1d1   :  { %v11444_v57 = vunpack.i.l.bf16 %v15038_v11  ;;  %v1972_v18 = vsel %vm1916_vm5, %v18032_v52, %v11415_v14  ;;  %v1971_v25 = vsel %vm1916_vm5, %v18033_v8, %v11414_v33  ;;  %v11440_v62 = vunpack.i.h.bf16 %v15036_v58 }
 0x1d2   :  { %11772 = vrot.lane.b32.xlu0 %v11771_v49, %s12178_s1  ;;  %11767 = vrot.lane.b32.xlu1 %v11771_v49, %s12177_s24  ;;  %v11439_v23 = vunpack.i.l.bf16 %v15036_v58  ;;  %v2037_v16 = vsel %vm1982_vm6, %v1971_v25, %v11424_v28  ;;  %v2038_v59 = vsel %vm1982_vm6, %v1972_v18, %v11425_v44  ;;  %v1974_v39 = vsel %vm1916_vm5, %v18034_v34, %v11420_v20 }
 0x1d3   :  { %10581 = vmatmul.mubr.msk.bf16.gmra.mrb[20].mxu0 %vm3322_vm13, %v3242_v45  ;;  %v1973_v1 = vsel %vm1916_vm5, %v18035_v61, %v11419_v19  ;;  %v2103_v58 = vsel %vm2048_vm7, %v2037_v16, %v11434_v37  ;;  %v2104_v45 = vsel %vm2048_vm7, %v2038_v59, %v11435_v53  ;;  %v2040_v33 = vsel %vm1982_vm6, %v1974_v39, %v11430_v27  ;;  %v18040_v59 = vld [vmem:[#allocation72_spill] sm:$0xff]  ;;  %v18042_v39 = vld [vmem:[#allocation14_spill] sm:$0xff] }
 0x1d4   :  { %v15184_v32 = vpop.permute.xlu1 %11507  ;;  %v15186_v47 = vpop.permute.xlu0 %11512  ;;  %v2039_v14 = vsel %vm1982_vm6, %v1973_v1, %v11429_v35  ;;  %v2106_v20 = vsel %vm2048_vm7, %v2040_v33, %v11440_v62  ;;  %v12179_v19 = vmov 1983009808   ;;  %v11460_v35 = vunpack.i.h.bf16 %v15087_v41  ;;  %v18043_v1 = vld [vmem:[#allocation71_spill] sm:$0xff] }
 0x1d5   :  { %v2105_v28 = vsel %vm2048_vm7, %v2039_v14, %v11439_v23  ;;  %v15248_v53 = vunpack.c.l.s4 %v12179_v19  ;;  %v11500_v52 = vunpack.i.h.bf16 %v15169_v40  ;;  %v11499_v8 = vunpack.i.l.bf16 %v15169_v40  ;;  %v18041_v40 = vld [vmem:[#allocation20_spill] sm:$0xff]  ;;  %v18044_v33 = vld [vmem:[#allocation15_spill] sm:$0xff] }
 0x1d6   :  { %11782 = vrot.lane.b32.xlu0 %v15083_v15, %s12175_s25  ;;  %11777 = vrot.lane.b32.xlu1 %v15190_v9, %s12178_s1  ;;  %v11445_v15 = vunpack.i.h.bf16 %v15038_v11  ;;  %v11455_v11 = vunpack.i.h.bf16 %v15068_v12  ;;  %v15237_v12 = vsel %vm2114_vm8, %v2103_v58, %v11444_v57  ;;  %v15254_v27 = vsel %vm2114_vm8, %v2105_v28, %v11454_v46 }
 0x1d7   :  { %18036 = vst [vmem:[#allocation24_spill] sm:$0xff] %v15237_v12  ;;  %18039 = vst [vmem:[#allocation7_spill] sm:$0xff] %v15254_v27  ;;  %v11494_v57 = vunpack.i.l.bf16 %v15149_v17  ;;  %v11504_v25 = vunpack.i.l.bf16 %v15171_v24  ;;  %v11831_v23 = vpack.i.bf16 %v15237_v12, %v15176_v51  ;;  %v11505_v16 = vunpack.i.h.bf16 %v15171_v24 }
 0x1d8   :  { %v15212_v21 = vpop.permute.xlu1 %11517  ;;  %v15214_v13 = vpop.permute.xlu0 %11522  ;;  %v15251_v37 = vsel %vm2114_vm8, %v2106_v20, %v11455_v11  ;;  %v2998_v11 = vsel %vm2974_vm9, %v18040_v59, %v11460_v35  ;;  %v11515_v34 = vunpack.i.h.bf16 %v15186_v47  ;;  %v1978_v58 = vsel %vm1916_vm5, %v18043_v1, %v11500_v52 }
 0x1d9   :  { %18038 = vst [vmem:[#allocation63_spill] sm:$0xff] %v15251_v37  ;;  %v1975_v61 = vsel %vm1916_vm5, %v18042_v39, %v11494_v57  ;;  %v11510_v57 = vunpack.i.h.bf16 %v15184_v32  ;;  %v11520_v1 = vunpack.i.h.bf16 %v15212_v21 }
 0x1da   :  { %11792 = vrot.lane.b32.xlu0 %v11791_v43, %s12176_s13  ;;  %11787 = vrot.lane.b32.xlu1 %v11771_v49, %s12175_s25  ;;  %v15240_v43 = vsel %vm2114_vm8, %v2104_v45, %v11445_v15  ;;  %v11495_v15 = vunpack.i.h.bf16 %v15149_v17  ;;  %v15275_v17 = vpack.i.bf16 %v15251_v37, %v15254_v27  ;;  %v11524_v45 = vunpack.i.l.bf16 %v15214_v13 }
 0x1db   :  { %18037 = vst [vmem:[#allocation10_spill] sm:$0xff] %v15240_v43  ;;  %v11811_v18 = vpack.i.bf16 %v15240_v43, %v15237_v12  ;;  %v11836_v24 = vpack.i.bf16 %v15254_v27, %v15240_v43  ;;  %v2041_v28 = vsel %vm1982_vm6, %v1975_v61, %v11504_v25  ;;  %v11519_v25 = vunpack.i.l.bf16 %v15212_v21 }
 0x1dc   :  { %v15242_v49 = vpop.permute.xlu1 %11527  ;;  %v15244_v44 = vpop.permute.xlu0 %11532  ;;  %v1976_v46 = vsel %vm1916_vm5, %v18041_v40, %v11495_v15  ;;  %v11509_v40 = vunpack.i.l.bf16 %v15184_v32 }
 0x1dd   :  { %v11529_v14 = vunpack.i.l.bf16 %v15242_v49  ;;  %v2042_v59 = vsel %vm1982_vm6, %v1976_v46, %v11505_v16  ;;  %v18046_v16 = vld [vmem:[#allocation73_spill] sm:$0xff]  ;;  %v11530_v46 = vunpack.i.h.bf16 %v15242_v49 }
 0x1de   :  { %11802 = vrot.lane.b32.xlu0 %v15190_v9, %s12177_s24  ;;  %11797 = vrot.lane.b32.xlu1 %v11796_v22, %s12176_s13  ;;  %v11514_v22 = vunpack.i.l.bf16 %v15186_v47  ;;  %v1977_v47 = vsel %vm1916_vm5, %v18044_v33, %v11499_v8  ;;  %v2108_v39 = vsel %vm2048_vm7, %v2042_v59, %v11515_v34 }
 0x1e0   :  { %v15267_v62 = vpop.permute.xlu1 %11537  ;;  %v11543_v41 = vpop.permute.xlu0 %11542  ;;  %v2107_v52 = vsel %vm2048_vm7, %v2041_v28, %v11514_v22  ;;  %v2999_v22 = vsel %vm2974_vm9, %v18046_v16, %v11529_v14  ;;  %v18049_v16 = vld [vmem:[#allocation74_spill] sm:$0xff] }
 0x1e1   :  { %v11545_v20 = vunpack.i.h.bf16 %v11543_v41  ;;  %v11544_v19 = vunpack.i.l.bf16 %v11543_v41  ;;  %v11525_v41 = vunpack.i.h.bf16 %v15214_v13  ;;  %v15308_v32 = vsel %vm2114_vm8, %v2107_v52, %v11524_v45 }
 0x1e2   :  { %11812 = vrot.lane.b32.xlu0 %v11811_v18, %s12178_s1  ;;  %11807 = vrot.lane.b32.xlu1 %v11811_v18, %s12177_s24  ;;  %18045 = vst [vmem:[#allocation36_spill] sm:$0xff] %v15308_v32  ;;  %v11539_v34 = vunpack.i.l.bf16 %v15267_v62 }
 0x1e3   :  { %v3062_v61 = vsel %vm3036_vm10, %v2999_v22, %v11545_v20  ;;  %v15321_v49 = vsel %vm2114_vm8, %v2108_v39, %v11525_v41 }
 0x1e4   :  { %v11548_v35 = vpop.permute.xlu1 %11547  ;;  %v11553_v15 = vpop.permute.xlu0 %11552  ;;  %18047 = vst [vmem:[#allocation37_spill] sm:$0xff] %v15321_v49  ;;  %v3001_v22 = vsel %vm2974_vm9, %v18049_v16, %v11539_v34  ;;  %v2044_v34 = vsel %vm1982_vm6, %v1978_v58, %v11510_v57  ;;  %v3842_v57 = vunpack.c.0.s8 %v15248_v53 }
 0x1e5   :  { %v11555_v27 = vunpack.i.h.bf16 %v11553_v15  ;;  %v11554_v8 = vunpack.i.l.bf16 %v11553_v15  ;;  %v11550_v15 = vunpack.i.h.bf16 %v11548_v35  ;;  %v11549_v21 = vunpack.i.l.bf16 %v11548_v35  ;;  %v18048_v35 = vld [vmem:[#allocation75_spill] sm:$0xff] }
 0x1e6   :  { %11822 = vrot.lane.b32.xlu0 %v15190_v9, %s12175_s25  ;;  %11817 = vrot.lane.b32.xlu1 %v15275_v17, %s12178_s1  ;;  %v3061_v9 = vsel %vm3036_vm10, %v2998_v11, %v11544_v19  ;;  %v11535_v11 = vunpack.i.h.bf16 %v15244_v44 }
 0x1e7   :  { %v3126_v45 = vsel %vm3101_vm11, %v3061_v9, %v11554_v8  ;;  %v3127_v52 = vsel %vm3101_vm11, %v3062_v61, %v11555_v27  ;;  %v3000_v8 = vsel %vm2974_vm9, %v18048_v35, %v11530_v46  ;;  %v11534_v27 = vunpack.i.l.bf16 %v15244_v44 }
 0x1e8   :  { %v11558_v33 = vpop.permute.xlu1 %11557  ;;  %v11563_v28 = vpop.permute.xlu0 %11562  ;;  %v3063_v39 = vsel %vm3036_vm10, %v3000_v8, %v11549_v21  ;;  %v3064_v41 = vsel %vm3036_vm10, %v3001_v22, %v11550_v15  ;;  %v3843_v44 = vlaneseq  ;;  %v11871_v22 = vpack.i.bf16 %v15308_v32, %v15251_v37 }
 0x1e9   :  { %v11565_v59 = vunpack.i.h.bf16 %v11563_v28  ;;  %v11564_v13 = vunpack.i.l.bf16 %v11563_v28  ;;  %v11560_v12 = vunpack.i.h.bf16 %v11558_v33  ;;  %v11559_v14 = vunpack.i.l.bf16 %v11558_v33 }
 0x1ea   :  { %11832 = vrot.lane.b32.xlu0 %v11831_v23, %s12176_s13  ;;  %11827 = vrot.lane.b32.xlu1 %v11811_v18, %s12175_s25  ;;  %v2043_v28 = vsel %vm1982_vm6, %v1977_v47, %v11509_v40  ;;  %v2110_v47 = vsel %vm2048_vm7, %v2044_v34, %v11520_v1  ;;  %v3844_v1 = vshrl.u32 %v3843_v44, 7 }
 0x1eb   :  { %v3191_v20 = vsel %vm3166_vm12, %v3126_v45, %v11564_v13  ;;  %v3192_v19 = vsel %vm3166_vm12, %v3127_v52, %v11565_v59  ;;  %v3128_v59 = vsel %vm3101_vm11, %v3063_v39, %v11559_v14  ;;  %v3129_v46 = vsel %vm3101_vm11, %v3064_v41, %v11560_v12  ;;  %v18052_v39 = vld [vmem:[#allocation59_spill] sm:$0xff] }
 0x1ec   :  { %v11568_v23 = vpop.permute.xlu1 %11567  ;;  %v11573_v61 = vpop.permute.xlu0 %11572  ;;  %v3243_v18 = vpack.c.bf16 %v3192_v19, %v3191_v20  ;;  %v2109_v21 = vsel %vm2048_vm7, %v2043_v28, %v11519_v25  ;;  %v11851_v45 = vpack.i.bf16 %v15321_v49, %v15308_v32  ;;  %v15365_v53 = vsub.s32 %v3842_v57, %v3844_v1 }
 0x1ed   :  { %v11570_v9 = vunpack.i.h.bf16 %v11568_v23  ;;  %v11569_v33 = vunpack.i.l.bf16 %v11568_v23  ;;  %v15351_v58 = vsel %vm2114_vm8, %v2109_v21, %v11534_v27  ;;  %v11575_v25 = vunpack.i.h.bf16 %v11573_v61 }
 0x1ee   :  { %11842 = vrot.lane.b32.xlu0 %v15275_v17, %s12177_s24  ;;  %11837 = vrot.lane.b32.xlu1 %v11836_v24, %s12176_s13  ;;  %v15348_v24 = vsel %vm2114_vm8, %v2110_v47, %v11535_v11  ;;  %18050 = vst [vmem:[#allocation42_spill] sm:$0xff] %v15351_v58  ;;  %v11574_v14 = vunpack.i.l.bf16 %v11573_v61  ;;  %v11540_v23 = vunpack.i.h.bf16 %v15267_v62  ;;  %v18051_v61 = vld [vmem:[#allocation19_spill] sm:$0xff] }
 0x1ef   :  { %v3193_v15 = vsel %vm3166_vm12, %v3128_v59, %v11569_v33  ;;  %v3194_v13 = vsel %vm3166_vm12, %v3129_v46, %v11570_v9  ;;  %10584 = vmatprep.mubr.msk.bf16.mxu0 %vm3322_vm13, %v3243_v18  ;;  %v15359_v11 = vpack.i.bf16 %v15348_v24, %v15351_v58  ;;  %v1980_v18 = vsel %vm1916_vm5, %v18051_v61, %v11575_v25  ;;  %v18053_v47 = vld [vmem:[#allocation23_spill] sm:$0xff] }
 0x1f0   :  { %v776_v40 = vpop.permute.xlu1 %775  ;;  %v11578_v12 = vpop.permute.xlu0 %11577  ;;  %v3244_v52 = vpack.c.bf16 %v3194_v13, %v3193_v15  ;;  %v1979_v41 = vsel %vm1916_vm5, %v18052_v39, %v11574_v14  ;;  %v15385_v15 = vsub.s32 0, %v3844_v1  ;;  %v11876_v13 = vpack.i.bf16 %v15351_v58, %v15321_v49 }
 0x1f1   :  { %v11580_v35 = vunpack.i.h.bf16 %v11578_v12  ;;  %v11579_v8 = vunpack.i.l.bf16 %v11578_v12  ;;  %v1981_v12 = vsel %vm1916_vm5, %v18053_v47, %v776_v40  ;;  %vm6983_vm5 = vcmask 1046534  }
 0x1f2   :  { %11852 = vrot.lane.b32.xlu0 %v11851_v45, %s12178_s1  ;;  %11847 = vrot.lane.b32.xlu1 %v11851_v45, %s12177_s24 }
 0x1f3   :  { %10585 = vmatmul.mubr.msk.bf16.gmra.mrb[24].mxu0 %vm3322_vm13, %v3244_v52  ;;  %v2045_v28 = vsel %vm1982_vm6, %v1979_v41, %v11579_v8  ;;  %v2046_v59 = vsel %vm1982_vm6, %v1980_v18, %v11580_v35 }
 0x1f4   :  { %v1134_v20 = vpop.permute.xlu1 %1133  ;;  %v11583_v19 = vpop.permute.xlu0 %11582 }
 0x1f5   :  { %v11585_v27 = vunpack.i.h.bf16 %v11583_v19  ;;  %v11584_v16 = vunpack.i.l.bf16 %v11583_v19  ;;  %v18054_v19 = vld [vmem:[#allocation32_spill] sm:$0xff]  ;;  %v2047_v1 = vsel %vm1982_vm6, %v1981_v12, %v1134_v20  ;;  %vm6985_vm6 = vcmask 1047559  }
 0x1f6   :  { %11862 = vrot.lane.b32.xlu0 %v15275_v17, %s12175_s25  ;;  %11857 = vrot.lane.b32.xlu1 %v15359_v11, %s12178_s1  ;;  %v15377_v17 = vld [vmem:[%s17621_s2] ss:$0 sm:$0xff] }
 0x1f7   :  { %v2111_v62 = vsel %vm2048_vm7, %v2045_v28, %v11584_v16  ;;  %v2112_v34 = vsel %vm2048_vm7, %v2046_v59, %v11585_v27 }
 0x1f8   :  { %v1492_v9 = vpop.permute.xlu1 %1491  ;;  %v11588_v33 = vpop.permute.xlu0 %11587 }
 0x1f9   :  { %v11590_v46 = vunpack.i.h.bf16 %v11588_v33  ;;  %v11589_v44 = vunpack.i.l.bf16 %v11588_v33  ;;  %v2113_v40 = vsel %vm2048_vm7, %v2047_v1, %v1492_v9  ;;  %vm7109_vm7 = vcmask 1040384  }
 0x1fa   :  { %v10562_v21 = vpop.f32.mrb[0].mxu0  ;;  %11872 = vrot.lane.b32.xlu0 %v11871_v22, %s12176_s13  ;;  %11867 = vrot.lane.b32.xlu1 %v11851_v45, %s12175_s25  ;;  %v15400_v45 = vsel %vm2974_vm9, %v18054_v19, %v11540_v23 }
 0x1fb   :  { %v15392_v52 = vsel %vm2114_vm8, %v2111_v62, %v11589_v44  ;;  %v3465_v57 = vadd.f32 %v10562_v21, %v15377_v17  ;;  %v3456_v25 = vpop.f32.mrb[1].mxu0  ;;  %v15396_v14 = vsel %vm2114_vm8, %v2112_v34, %v11590_v46  ;;  %v18055_v34 = vld [vmem:[#allocation31_spill] sm:$0xff] }
 0x1fc   :  { %v3457_v35 = vadd.f32 %v15377_v17, %v3456_v25  ;;  %v10563_v8 = vpop.f32.mrb[2].mxu0  ;;  %v15404_v27 = vpop.permute.xlu1 %11592  ;;  %v11886_v20 = vpack.i.bf16 %v15396_v14, %v15392_v52  ;;  %v11896_v9 = vpack.i.bf16 %v15392_v52, %v15348_v24 }
 0x1fd   :  { %v3713_v16 = vmax.f32 %v3465_v57, 0.0  ;;  %v3468_v22 = vadd.f32 %v10563_v8, %v15377_v17  ;;  %v11595_v61 = vunpack.i.h.bf16 %v15404_v27  ;;  %v1850_v18 = vpop.permute.xlu0 %1849  ;;  %v3459_v39 = vpop.f32.mrb[3].mxu0  ;;  %v11594_v23 = vunpack.i.l.bf16 %v15404_v27 }
 0x1fe   :  { %v3711_v41 = vmax.f32 %v3457_v35, 0.0  ;;  %11882 = vrot.lane.b32.xlu0 %v15359_v11, %s12177_s24  ;;  %11877 = vrot.lane.b32.xlu1 %v11876_v13, %s12176_s13  ;;  %v2179_v46 = vsel %vm2114_vm8, %v2113_v40, %v1850_v18  ;;  %v3460_v13 = vadd.f32 %v15377_v17, %v3459_v39  ;;  %vm7372_vm8 = vcmask 261120  }
 0x1ff   :  { %v3873_v33 = vcombine.high %v3713_v16, %v3713_v16  ;;  %v3880_v28 = vrot.slane %v3713_v16, %v15365_v53  ;;  %v3714_v59 = vmax.f32 %v3468_v22, 0.0  ;;  %v15422_v21 = vsel %vm2974_vm9, %v18055_v34, %v11595_v61 }
 0x200   :  { %v3839_v44 = vcombine.high %v3711_v41, %v3711_v41  ;;  %v3846_v62 = vrot.slane %v3711_v41, %v15365_v53  ;;  %v15425_v47 = vpop.permute.xlu1 %11597 }
 0x201   :  { %v3887_v12 = vrot.slane %v3873_v33, %v15365_v53  ;;  %v3888_v24 = vcombine.high %v3880_v28, %v3880_v28  ;;  %v9922_v57 = vrot.slane %v3880_v28, 9  ;;  %v3890_v25 = vcombine.high %v3714_v59, %v3714_v59  ;;  %v15428_v19 = vpop.permute.xlu0 %11602 }
 0x202   :  { %v3853_v1 = vrot.slane %v3839_v44, %v15365_v53  ;;  %v3854_v35 = vcombine.high %v3846_v62, %v3846_v62  ;;  %v9914_v8 = vrot.slane %v3846_v62, 9  ;;  %v3897_v27 = vrot.slane %v3714_v59, %v15365_v53  ;;  %11887 = vrot.lane.b32.xlu0 %v11886_v20, %s12178_s1  ;;  %2736 = vrot.lane.b32.xlu1 %v15392_v52, %s12177_s24 }
 0x203   :  { %v3889_v40 = vcombine.high %v3887_v12, %v3887_v12  ;;  %v9923_v16 = vrot.slane %v3888_v24, 9  ;;  %v9924_v22 = vrot.slane %v3887_v12, 9  ;;  %v5959_v61 = vmax.f32 %v3880_v28, %v9922_v57 }
 0x204   :  { %v3855_v18 = vcombine.high %v3853_v1, %v3853_v1  ;;  %v9915_v39 = vrot.slane %v3854_v35, 9  ;;  %v9916_v41 = vrot.slane %v3853_v1, 9  ;;  %v5951_v33 = vmax.f32 %v3846_v62, %v9914_v8  ;;  %v15435_v44 = vpop.permute.xlu1 %11607 }
 0x205   :  { %v9925_v34 = vrot.slane %v3889_v40, 9  ;;  %v5960_v58 = vmax.f32 %v3888_v24, %v9923_v16  ;;  %v5961_v49 = vmax.f32 %v3887_v12, %v9924_v22  ;;  %v3904_v59 = vrot.slane %v3890_v25, %v15365_v53  ;;  %v15438_v20 = vpop.permute.xlu0 %11612  ;;  %v18056_v16 = vld [vmem:[#allocation17_spill] sm:$0xff] }
 0x206   :  { %v9917_v32 = vrot.slane %v3855_v18, 9  ;;  %v5952_v37 = vmax.f32 %v3854_v35, %v9915_v39  ;;  %v5953_v43 = vmax.f32 %v3853_v1, %v9916_v41  ;;  %v6207_v5 = vmax.f32 %v5951_v33, %v5959_v61  ;;  %11892 = vrot.lane.b32.xlu0 %v15359_v11, %s12175_s25  ;;  %2915 = vrot.lane.b32.xlu1 %v2179_v46, %s12178_s1 }
 0x207   :  { %v5962_v28 = vmax.f32 %v3889_v40, %v9925_v34  ;;  %v3905_v62 = vcombine.high %v3897_v27, %v3897_v27  ;;  %v3906_v57 = vcombine.high %v3904_v59, %v3904_v59  ;;  %v9926_v8 = vrot.slane %v3897_v27, 9 }
 0x208   :  { %v5954_v51 = vmax.f32 %v3855_v18, %v9917_v32  ;;  %v6208_v24 = vmax.f32 %v5952_v37, %v5960_v58  ;;  %v6209_v12 = vmax.f32 %v5953_v43, %v5961_v49  ;;  %v3003_v25 = vsel %vm2974_vm9, %v18056_v16, %v11594_v23  ;;  %v15445_v22 = vpop.permute.xlu1 %11617 }
 0x209   :  { %v6466_v1 = vrot.slane %v6207_v5, %v15385_v15  ;;  %v9927_v35 = vrot.slane %v3905_v62, 9  ;;  %v9928_v61 = vrot.slane %v3904_v59, 9  ;;  %v11906_v11 = vpack.i.bf16 %v2179_v46, %v15396_v14  ;;  %v15449_v39 = vpop.permute.xlu0 %11622 }
 0x20a   :  { %v6210_v40 = vmax.f32 %v5954_v51, %v5962_v28  ;;  %v6470_v41 = vrot.slane %v6208_v24, %v15385_v15  ;;  %v6474_v32 = vrot.slane %v6209_v12, %v15385_v15  ;;  %v9929_v37 = vrot.slane %v3906_v57, 9  ;;  %11897 = vrot.lane.b32.xlu0 %v11896_v9, %s12176_s13  ;;  %2361 = vrot.lane.b32.xlu1 %v15392_v52, %s12175_s25 }
 0x20b   :  { %v5963_v43 = vmax.f32 %v3897_v27, %v9926_v8  ;;  %v5964_v49 = vmax.f32 %v3905_v62, %v9927_v35  ;;  %v3712_v58 = vmax.f32 %v3460_v13, 0.0  ;;  %v11600_v51 = vunpack.i.h.bf16 %v15425_v47 }
 0x20c   :  { %v6478_v5 = vrot.slane %v6210_v40, %v15385_v15  ;;  %v6976_v14 = vsel %vm6975_vm14, %v6470_v41, %v6466_v1  ;;  %v11599_v23 = vunpack.i.l.bf16 %v15425_v47  ;;  %v11628_v46 = vpop.permute.xlu1 %11627  ;;  %v5965_v33 = vmax.f32 %v3904_v59, %v9928_v61 }
 0x20d   :  { %v6978_v18 = vsel %vm6977_vm15, %v6474_v32, %v6976_v14  ;;  %v3856_v9 = vcombine.high %v3712_v58, %v3712_v58  ;;  %v3863_v27 = vrot.slane %v3712_v58, %v15365_v53  ;;  %v15462_v13 = vpop.permute.xlu0 %11632  ;;  %v15464_v34 = vmax.f32 %v3906_v57, %v9929_v37 }
 0x20e   :  { %v6980_v52 = vsel %vm6979_vm0, %v6478_v5, %v6978_v18  ;;  %v11605_v28 = vunpack.i.h.bf16 %v15428_v19  ;;  %v11604_v62 = vunpack.i.l.bf16 %v15428_v19  ;;  %11907 = vrot.lane.b32.xlu0 %v11906_v11, %s12177_s24  ;;  %v3005_v24 = vsel %vm2974_vm9, %v14430_v4, %v11599_v23  ;;  %11902 = vrot.lane.b32.xlu1 %v11906_v11, %s12176_s13  ;;  %s12183_s13 = smov [#allocation2]  }
 0x20f   :  { %v3870_v47 = vrot.slane %v3856_v9, %v15365_v53  ;;  %v3871_v8 = vcombine.high %v3863_v27, %v3863_v27  ;;  %v9918_v59 = vrot.slane %v3863_v27, 9  ;;  %v15476_v57 = vsel %vm2974_vm9, %v17894_v36, %v11600_v51  ;;  %s9866_s24 = sshll.u32 %s12183_s13, 4  ;;  %s9867_s24 = int_to_ptr.vmem [resolvable:$true] %s9866_s24 }
 0x210   :  { %v11610_v12 = vunpack.i.h.bf16 %v15435_v44  ;;  %v11609_v16 = vunpack.i.l.bf16 %v15435_v44  ;;  %v11615_v19 = vunpack.i.h.bf16 %v15438_v20  ;;  %v15481_v1 = vpop.permute.xlu1 %11637  ;;  %v3066_v4 = vsel %vm3036_vm10, %v3003_v25, %v11605_v28  ;;  %p12151_p1 = scmp.lt.s32.totalorder %s9867_s24, %s9867_s24 }
 0x211   :  { %v3872_v35 = vcombine.high %v3870_v47, %v3870_v47  ;;  %v9919_v61 = vrot.slane %v3871_v8, 9  ;;  %v9920_v40 = vrot.slane %v3870_v47, 9  ;;  %v5955_v41 = vmax.f32 %v3863_v27, %v9918_v59  ;;  %v15483_v32 = vpop.permute.xlu0 %11642 }
 0x212   :  { %v3065_v11 = vsel %vm3036_vm10, %v15400_v45, %v11604_v62  ;;  %v3067_v37 = vsel %vm3036_vm10, %v15422_v21, %v11609_v16  ;;  %v11614_v44 = vunpack.i.l.bf16 %v15438_v20  ;;  %v3068_v23 = vsel %vm3036_vm10, %v3005_v24, %v11610_v12 }
 0x213   :  { %v9921_v58 = vrot.slane %v3872_v35, 9  ;;  %v5956_v5 = vmax.f32 %v3871_v8, %v9919_v61  ;;  %v5957_v14 = vmax.f32 %v3870_v47, %v9920_v40  ;;  %v6211_v51 = vmax.f32 %v5955_v41, %v5963_v43  ;;  %v18059_v41 = vld [vmem:[#allocation27_spill] sm:$0xff] }
 0x214   :  { %v3130_v18 = vsel %vm3101_vm11, %v3065_v11, %v11614_v44  ;;  %v3131_v9 = vsel %vm3101_vm11, %v3066_v4, %v11615_v19  ;;  %v15495_v25 = vunpack.i.l.bf16 %v15445_v22  ;;  %v15497_v27 = vpop.permute.xlu1 %11647  ;;  %v15501_v47 = vunpack.i.l.bf16 %v15449_v39 }
 0x215   :  { %v5958_v45 = vmax.f32 %v3872_v35, %v9921_v58  ;;  %v6212_v28 = vmax.f32 %v5956_v5, %v5964_v49  ;;  %v6213_v21 = vmax.f32 %v5957_v14, %v5965_v33  ;;  %v6482_v20 = vrot.slane %v6211_v51, %v15385_v15  ;;  %v11653_v62 = vpop.permute.xlu0 %11652 }
 0x216   :  { %18057 = vst [vmem:[#allocation41_spill] sm:$0xff] %v15495_v25  ;;  %18058 = vst [vmem:[#allocation68_spill] sm:$0xff] %v15501_v47  ;;  %v11630_v43 = vunpack.i.h.bf16 %v11628_v46  ;;  %v11629_v8 = vunpack.i.l.bf16 %v11628_v46  ;;  %v11635_v59 = vunpack.i.h.bf16 %v15462_v13  ;;  %v11620_v19 = vunpack.i.h.bf16 %v15445_v22 }
 0x217   :  { %v6214_v24 = vmax.f32 %v5958_v45, %v15464_v34  ;;  %v6486_v12 = vrot.slane %v6212_v28, %v15385_v15  ;;  %v6982_v16 = vsel %vm6981_vm4, %v6482_v20, %v6980_v52  ;;  %v15509_v49 = vrot.slane %v6213_v21, %v15385_v15 }
 0x218   :  { %v11625_v33 = vunpack.i.h.bf16 %v15449_v39  ;;  %v3008_v35 = vsel %vm2974_vm9, %v14724_v26, %v11630_v43  ;;  %v11634_v46 = vunpack.i.l.bf16 %v15462_v13  ;;  %v15515_v61 = vpop.permute.xlu1 %11657  ;;  %v3007_v52 = vsel %vm2974_vm9, %v17894_v36, %v11629_v8 }
 0x219   :  { %v15518_v34 = vsel %vm6983_vm5, %v6486_v12, %v6982_v16  ;;  %v3195_v22 = vsel %vm3166_vm12, %v3130_v18, %v15501_v47  ;;  %v3196_v40 = vsel %vm3166_vm12, %v3131_v9, %v15501_v47  ;;  %v11663_v39 = vpop.permute.xlu0 %11662  ;;  %v3070_v26 = vsel %vm3036_vm10, %v18059_v41, %v11635_v59 }
 0x21a   :  { %v3245_v4 = vpack.c.bf16 %v3196_v40, %v3195_v22  ;;  %v3132_v13 = vsel %vm3101_vm11, %v3067_v37, %v15495_v25  ;;  %v3133_v11 = vsel %vm3101_vm11, %v3068_v23, %v15495_v25  ;;  %v3069_v36 = vsel %vm3036_vm10, %v18059_v41, %v11634_v46 }
 0x21b   :  { %v3197_v44 = vsel %vm3166_vm12, %v3132_v13, %v15501_v47  ;;  %v3198_v58 = vsel %vm3166_vm12, %v3133_v11, %v15501_v47  ;;  %v11645_v5 = vunpack.i.h.bf16 %v15483_v32  ;;  %v11644_v51 = vunpack.i.l.bf16 %v15483_v32 }
 0x21c   :  { %10588 = vmatprep.mubr.msk.bf16.mxu0 %vm3322_vm13, %v3245_v4  ;;  %v3246_v14 = vpack.c.bf16 %v3198_v58, %v3197_v44  ;;  %v11640_v37 = vunpack.i.h.bf16 %v15481_v1  ;;  %v11639_v23 = vunpack.i.l.bf16 %v15481_v1  ;;  %v11668_v18 = vpop.permute.xlu1 %11667  ;;  %v15544_v9 = vrot.slane %v6214_v24, %v15385_v15 }
 0x21d   :  { %v11655_v45 = vunpack.i.h.bf16 %v11653_v62  ;;  %v11654_v28 = vunpack.i.l.bf16 %v11653_v62  ;;  %v11649_v21 = vunpack.i.l.bf16 %v15497_v27  ;;  %v11673_v20 = vpop.permute.xlu0 %11672  ;;  %v3134_v43 = vsel %vm3101_vm11, %v3069_v36, %v11620_v19 }
 0x21e   :  { %10589 = vmatmul.mubr.msk.bf16.gmra.mrb[28].mxu0 %vm3322_vm13, %v3246_v14  ;;  %v3135_v32 = vsel %vm3101_vm11, %v3070_v26, %v11644_v51  ;;  %v3071_v8 = vsel %vm3036_vm10, %v15476_v57, %v11639_v23  ;;  %v11665_v1 = vunpack.i.h.bf16 %v11663_v39  ;;  %v3072_v59 = vsel %vm3036_vm10, %v3007_v52, %v11640_v37 }
 0x21f   :  { %v3136_v24 = vsel %vm3101_vm11, %v3071_v8, %v11645_v5  ;;  %v3200_v12 = vsel %vm3166_vm12, %v3135_v32, %v11654_v28  ;;  %v11664_v62 = vunpack.i.l.bf16 %v11663_v39  ;;  %v11650_v46 = vunpack.i.h.bf16 %v15497_v27 }
 0x220   :  { %v3201_v16 = vsel %vm3166_vm12, %v3136_v24, %v11655_v45  ;;  %v3137_v19 = vsel %vm3101_vm11, %v3072_v59, %v11649_v21  ;;  %v11659_v22 = vunpack.i.l.bf16 %v15515_v61  ;;  %v11678_v40 = vpop.permute.xlu1 %11677  ;;  %v3010_v57 = vsel %vm2974_vm9, %v14798_v2, %v11665_v1 }
 0x221   :  { %v3199_v41 = vsel %vm3166_vm12, %v3134_v43, %v11625_v33  ;;  %v11675_v52 = vunpack.i.h.bf16 %v11673_v20  ;;  %v11674_v26 = vunpack.i.l.bf16 %v11673_v20  ;;  %v11683_v4 = vpop.permute.xlu0 %11682  ;;  %v11670_v11 = vunpack.i.h.bf16 %v11668_v18 }
 0x222   :  { %v3202_v13 = vsel %vm3166_vm12, %v3137_v19, %v11659_v22  ;;  %v3247_v39 = vpack.c.bf16 %v3200_v12, %v3199_v41  ;;  %v11669_v36 = vunpack.i.l.bf16 %v11668_v18  ;;  %v3009_v27 = vsel %vm2974_vm9, %v14836_v48, %v11664_v62 }
 0x223   :  { %v11660_v44 = vunpack.i.h.bf16 %v15515_v61  ;;  %v3073_v58 = vsel %vm3036_vm10, %v3008_v35, %v11674_v26  ;;  %v3248_v5 = vpack.c.bf16 %v3202_v13, %v3201_v16  ;;  %v3074_v2 = vsel %vm3036_vm10, %v3009_v27, %v11675_v52 }
 0x224   :  { %10592 = vmatprep.mubr.msk.bf16.mxu0 %vm3322_vm13, %v3247_v39  ;;  %v3138_v33 = vsel %vm3101_vm11, %v3073_v58, %v11650_v46  ;;  %v11685_v14 = vunpack.i.h.bf16 %v11683_v4  ;;  %v11684_v51 = vunpack.i.l.bf16 %v11683_v4  ;;  %v15570_v37 = vpop.permute.xlu1 %11687  ;;  %v15574_v23 = vsel %vm2974_vm9, %v14801_v42, %v11670_v11 }
 0x225   :  { %v11680_v48 = vunpack.i.h.bf16 %v11678_v40  ;;  %v11679_v18 = vunpack.i.l.bf16 %v11678_v40  ;;  %v11693_v61 = vpop.permute.xlu0 %11692  ;;  %v11689_v35 = vunpack.i.l.bf16 %v15570_v37  ;;  %v3011_v45 = vsel %vm2974_vm9, %v14863_v7, %v11669_v36 }
 0x226   :  { %10593 = vmatmul.mubr.msk.bf16.gmra.mrb[32].mxu0 %vm3322_vm13, %v3248_v5  ;;  %v11695_v28 = vunpack.i.h.bf16 %v11693_v61  ;;  %v11694_v21 = vunpack.i.l.bf16 %v11693_v61  ;;  %v10566_v43 = vpop.f32.mrb[4].mxu0  ;;  %v3139_v32 = vsel %vm3101_vm11, %v3074_v2, %v11684_v51  ;;  %v15587_v59 = vsel %vm6985_vm6, %v15509_v49, %v15518_v34 }
 0x227   :  { %v3075_v42 = vsel %vm3036_vm10, %v3010_v57, %v11679_v18  ;;  %v3481_v8 = vadd.f32 %v10566_v43, %v15377_v17  ;;  %v3472_v1 = vpop.f32.mrb[5].mxu0  ;;  %v3076_v7 = vsel %vm3036_vm10, %v3011_v45, %v11680_v48  ;;  %v15595_v46 = vsel %vm3166_vm12, %v3138_v33, %v11660_v44 }
 0x228   :  { %v3140_v24 = vsel %vm3101_vm11, %v3075_v42, %v11685_v14  ;;  %v3473_v12 = vadd.f32 %v15377_v17, %v3472_v1  ;;  %v10567_v62 = vpop.f32.mrb[6].mxu0  ;;  %v15592_v16 = vpop.permute.xlu1 %11697  ;;  %v15598_v19 = vsel %vm3166_vm12, %v3139_v32, %v11694_v21  ;;  %v15601_v22 = vsel %vm3101_vm11, %v3076_v7, %v11689_v35 }
 0x229   :  { %v3717_v49 = vmax.f32 %v3481_v8, 0.0  ;;  %v3484_v34 = vadd.f32 %v10567_v62, %v15377_v17  ;;  %v11703_v40 = vpop.permute.xlu0 %11702  ;;  %v3475_v57 = vpop.f32.mrb[7].mxu0  ;;  %v15605_v41 = vsel %vm3166_vm12, %v3140_v24, %v11695_v28  ;;  %v11699_v58 = vunpack.i.l.bf16 %v15592_v16 }
 0x22a   :  { %v3715_v52 = vmax.f32 %v3473_v12, 0.0  ;;  %v11705_v26 = vunpack.i.h.bf16 %v11703_v40  ;;  %v11704_v36 = vunpack.i.l.bf16 %v11703_v40  ;;  %v3476_v5 = vadd.f32 %v15377_v17, %v3475_v57 }
 0x22b   :  { %v3941_v13 = vcombine.high %v3717_v49, %v3717_v49  ;;  %v3948_v39 = vrot.slane %v3717_v49, %v15365_v53  ;;  %v3718_v11 = vmax.f32 %v3484_v34, 0.0 }
 0x22c   :  { %v3907_v27 = vcombine.high %v3715_v52, %v3715_v52  ;;  %v3914_v44 = vrot.slane %v3715_v52, %v15365_v53  ;;  %v15612_v2 = vpop.permute.xlu1 %11707 }
 0x22d   :  { %v3955_v33 = vrot.slane %v3941_v13, %v15365_v53  ;;  %v3956_v14 = vcombine.high %v3948_v39, %v3948_v39  ;;  %v9938_v51 = vrot.slane %v3948_v39, 9  ;;  %v3958_v48 = vcombine.high %v3718_v11, %v3718_v11  ;;  %v15615_v18 = vpop.permute.xlu0 %11712 }
 0x22e   :  { %v3921_v61 = vrot.slane %v3907_v27, %v15365_v53  ;;  %v3922_v35 = vcombine.high %v3914_v44, %v3914_v44  ;;  %v9930_v45 = vrot.slane %v3914_v44, 9  ;;  %v3965_v28 = vrot.slane %v3718_v11, %v15365_v53 }
 0x22f   :  { %v3957_v21 = vcombine.high %v3955_v33, %v3955_v33  ;;  %v9939_v43 = vrot.slane %v3956_v14, 9  ;;  %v9940_v32 = vrot.slane %v3955_v33, 9  ;;  %v5975_v42 = vmax.f32 %v3948_v39, %v9938_v51 }
 0x230   :  { %v3923_v8 = vcombine.high %v3921_v61, %v3921_v61  ;;  %v9931_v1 = vrot.slane %v3922_v35, 9  ;;  %v9932_v7 = vrot.slane %v3921_v61, 9  ;;  %v5967_v24 = vmax.f32 %v3914_v44, %v9930_v45  ;;  %v15619_v12 = vpop.permute.xlu1 %11717 }
 0x231   :  { %v9941_v62 = vrot.slane %v3957_v21, 9  ;;  %v5976_v49 = vmax.f32 %v3956_v14, %v9939_v43  ;;  %v5977_v34 = vmax.f32 %v3955_v33, %v9940_v32  ;;  %v3972_v40 = vrot.slane %v3958_v48, %v15365_v53  ;;  %v15622_v57 = vpop.permute.xlu0 %11722 }
 0x232   :  { %v9933_v52 = vrot.slane %v3923_v8, 9  ;;  %v5968_v13 = vmax.f32 %v3922_v35, %v9931_v1  ;;  %v5969_v11 = vmax.f32 %v3921_v61, %v9932_v7  ;;  %v6215_v27 = vmax.f32 %v5967_v24, %v5975_v42 }
 0x233   :  { %v5978_v4 = vmax.f32 %v3957_v21, %v9941_v62  ;;  %v3973_v20 = vcombine.high %v3965_v28, %v3965_v28  ;;  %v3974_v39 = vcombine.high %v3972_v40, %v3972_v40  ;;  %v9942_v51 = vrot.slane %v3965_v28, 9 }
 0x234   :  { %v5970_v47 = vmax.f32 %v3923_v8, %v9933_v52  ;;  %v6216_v25 = vmax.f32 %v5968_v13, %v5976_v49  ;;  %v6217_v44 = vmax.f32 %v5969_v11, %v5977_v34  ;;  %v3014_v45 = vsel %vm2974_vm9, %v14888_v54, %v11705_v26  ;;  %v15626_v14 = vpop.permute.xlu1 %11727 }
 0x235   :  { %v6498_v33 = vrot.slane %v6215_v27, %v15385_v15  ;;  %v9943_v48 = vrot.slane %v3973_v20, 9  ;;  %v9944_v43 = vrot.slane %v3972_v40, 9  ;;  %v3013_v61 = vsel %vm2974_vm9, %v14891_v3, %v11704_v36  ;;  %v15631_v35 = vpop.permute.xlu0 %11732 }
 0x236   :  { %v6218_v21 = vmax.f32 %v5970_v47, %v5978_v4  ;;  %v6502_v32 = vrot.slane %v6216_v25, %v15385_v15  ;;  %v6506_v42 = vrot.slane %v6217_v44, %v15385_v15  ;;  %v9945_v8 = vrot.slane %v3974_v39, 9 }
 0x237   :  { %v5979_v1 = vmax.f32 %v3965_v28, %v9942_v51  ;;  %v5980_v7 = vmax.f32 %v3973_v20, %v9943_v48  ;;  %v3206_v54 = vsel %vm3166_vm12, %v15601_v22, %v11699_v58  ;;  %v3716_v26 = vmax.f32 %v3476_v5, 0.0 }
 0x238   :  { %v6510_v24 = vrot.slane %v6218_v21, %v15385_v15  ;;  %v6987_v62 = vsel %vm6975_vm14, %v6502_v32, %v6498_v33  ;;  %v3249_v3 = vpack.c.bf16 %v15598_v19, %v15595_v46  ;;  %v11715_v47 = vunpack.i.h.bf16 %v15615_v18  ;;  %v15642_v4 = vpop.permute.xlu1 %11737 }
 0x239   :  { %v6988_v25 = vsel %vm6977_vm15, %v6506_v42, %v6987_v62  ;;  %v3924_v36 = vcombine.high %v3716_v26, %v3716_v26  ;;  %v3931_v20 = vrot.slane %v3716_v26, %v15365_v53  ;;  %v11714_v28 = vunpack.i.l.bf16 %v15615_v18  ;;  %v15647_v22 = vpop.permute.xlu0 %11742 }
 0x23a   :  { %v5981_v58 = vmax.f32 %v3972_v40, %v9944_v43  ;;  %v5982_v5 = vmax.f32 %v3974_v39, %v9945_v8  ;;  %v6989_v49 = vsel %vm6979_vm0, %v6510_v24, %v6988_v25  ;;  %10596 = vmatprep.mubr.msk.bf16.mxu0 %vm3322_vm13, %v3249_v3  ;;  %v3078_v46 = vsel %vm3036_vm10, %v3013_v61, %v11715_v47 }
 0x23b   :  { %v3938_v19 = vrot.slane %v3924_v36, %v15365_v53  ;;  %v3939_v34 = vcombine.high %v3931_v20, %v3931_v20  ;;  %v9934_v52 = vrot.slane %v3931_v20, 9  ;;  %v3077_v13 = vsel %vm3036_vm10, %v15574_v23, %v11714_v28 }
 0x23c   :  { %v18060_v11 = vunpack.i.h.bf16 %v15570_v37  ;;  %v11710_v40 = vunpack.i.h.bf16 %v15612_v2  ;;  %v11709_v27 = vunpack.i.l.bf16 %v15612_v2  ;;  %v3250_v39 = vpack.c.bf16 %v3206_v54, %v15605_v41  ;;  %v15661_v51 = vpop.permute.xlu1 %11747 }
 0x23d   :  { %v3940_v44 = vcombine.high %v3938_v19, %v3938_v19  ;;  %v9935_v33 = vrot.slane %v3939_v34, 9  ;;  %v9936_v48 = vrot.slane %v3938_v19, 9  ;;  %v5971_v43 = vmax.f32 %v3931_v20, %v9934_v52  ;;  %v11753_v61 = vpop.permute.xlu0 %11752 }
 0x23e   :  { %v3142_v18 = vsel %vm3101_vm11, %v3077_v13, %v18060_v11  ;;  %10597 = vmatmul.mubr.msk.bf16.gmra.mrb[36].mxu0 %vm3322_vm13, %v3250_v39  ;;  %v11725_v23 = vunpack.i.h.bf16 %v15622_v57  ;;  %v11724_v37 = vunpack.i.l.bf16 %v15622_v57  ;;  %v11720_v21 = vunpack.i.h.bf16 %v15619_v12 }
 0x23f   :  { %v11719_v32 = vunpack.i.l.bf16 %v15619_v12  ;;  %v9937_v2 = vrot.slane %v3940_v44, 9  ;;  %v5972_v42 = vmax.f32 %v3939_v34, %v9935_v33  ;;  %v5973_v41 = vmax.f32 %v3938_v19, %v9936_v48 }
 0x240   :  { %v6219_v8 = vmax.f32 %v5971_v43, %v5979_v1  ;;  %v3016_v54 = vsel %vm2974_vm9, %v14905_v30, %v11710_v40  ;;  %v3015_v26 = vsel %vm2974_vm9, %v14902_v6, %v11709_v27  ;;  %v11735_v62 = vunpack.i.h.bf16 %v15631_v35  ;;  %v15674_v3 = vpop.permute.xlu1 %11757 }
 0x241   :  { %v3079_v24 = vsel %vm3036_vm10, %v3014_v45, %v11719_v32  ;;  %v5974_v57 = vmax.f32 %v3940_v44, %v9937_v2  ;;  %v6220_v47 = vmax.f32 %v5972_v42, %v5980_v7  ;;  %v6221_v12 = vmax.f32 %v5973_v41, %v5981_v58  ;;  %v15677_v36 = vpop.permute.xlu0 %11762 }
 0x242   :  { %v6514_v25 = vrot.slane %v6219_v8, %v15385_v15  ;;  %v3143_v1 = vsel %vm3101_vm11, %v3078_v46, %v11724_v37  ;;  %v3080_v30 = vsel %vm3036_vm10, %v3015_v26, %v11720_v21  ;;  %v11734_v6 = vunpack.i.l.bf16 %v15631_v35 }
 0x243   :  { %v11729_v45 = vunpack.i.l.bf16 %v15626_v14  ;;  %v6222_v20 = vmax.f32 %v5974_v57, %v5982_v5  ;;  %v6518_v28 = vrot.slane %v6220_v47, %v15385_v15  ;;  %v3144_v7 = vsel %vm3101_vm11, %v3079_v24, %v11725_v23 }
 0x244   :  { %v6990_v19 = vsel %vm6981_vm4, %v6514_v25, %v6989_v49  ;;  %v6522_v58 = vrot.slane %v6221_v12, %v15385_v15  ;;  %v3208_v34 = vsel %vm3166_vm12, %v3143_v1, %v11734_v6  ;;  %v11730_v52 = vunpack.i.h.bf16 %v15626_v14  ;;  %v15690_v13 = vpop.permute.xlu1 %11767 }
 0x245   :  { %v11745_v46 = vunpack.i.h.bf16 %v15647_v22  ;;  %v6991_v35 = vsel %vm6983_vm5, %v6518_v28, %v6990_v19  ;;  %v3209_v5 = vsel %vm3166_vm12, %v3144_v7, %v11735_v62  ;;  %v3145_v11 = vsel %vm3101_vm11, %v3080_v30, %v11729_v45  ;;  %v15696_v40 = vpop.permute.xlu0 %11772 }
 0x246   :  { %v11744_v49 = vunpack.i.l.bf16 %v15647_v22  ;;  %v6526_v27 = vrot.slane %v6222_v20, %v15385_v15  ;;  %v11739_v39 = vunpack.i.l.bf16 %v15642_v4  ;;  %v18061_v14 = vunpack.i.h.bf16 %v15592_v16  ;;  %v10570_v48 = vpop.f32.mrb[8].mxu0 }
 0x247   :  { %v11755_v33 = vunpack.i.h.bf16 %v11753_v61  ;;  %v11740_v43 = vunpack.i.h.bf16 %v15642_v4  ;;  %v11754_v37 = vunpack.i.l.bf16 %v11753_v61  ;;  %v11750_v21 = vunpack.i.h.bf16 %v15661_v51  ;;  %v3488_v32 = vpop.f32.mrb[9].mxu0 }
 0x248   :  { %v3207_v44 = vsel %vm3166_vm12, %v3142_v18, %v18061_v14  ;;  %v3018_v22 = vsel %vm2974_vm9, %v14944_v56, %v11745_v46  ;;  %v3017_v2 = vsel %vm2974_vm9, %v14941_v60, %v11744_v49  ;;  %v3210_v42 = vsel %vm3166_vm12, %v3145_v11, %v11739_v39  ;;  %v10571_v18 = vpop.f32.mrb[10].mxu0  ;;  %v15711_v41 = vpop.permute.xlu1 %11777 }
 0x249   :  { %v3251_v23 = vpack.c.bf16 %v3208_v34, %v3207_v44  ;;  %v11749_v16 = vunpack.i.l.bf16 %v15661_v51  ;;  %v3081_v4 = vsel %vm3036_vm10, %v3016_v54, %v11754_v37  ;;  %v3082_v61 = vsel %vm3036_vm10, %v3017_v2, %v11755_v33  ;;  %v15717_v56 = vpop.permute.xlu0 %11782  ;;  %v15719_v24 = vpop.f32.mrb[11].mxu0 }
 0x24a   :  { %v3252_v8 = vpack.c.bf16 %v3210_v42, %v3209_v5  ;;  %v11765_v26 = vunpack.i.h.bf16 %v15677_v36  ;;  %v15723_v60 = vsel %vm2974_vm9, %v14996_v0, %v11750_v21  ;;  %v11764_v51 = vunpack.i.l.bf16 %v15677_v36 }
 0x24b   :  { %10600 = vmatprep.mubr.msk.bf16.mxu0 %vm3322_vm13, %v3251_v23  ;;  %v11760_v62 = vunpack.i.h.bf16 %v15674_v3  ;;  %v11759_v57 = vunpack.i.l.bf16 %v15674_v3  ;;  %v3146_v54 = vsel %vm3101_vm11, %v3081_v4, %v11730_v52  ;;  %v6992_v47 = vsel %vm6985_vm6, %v6522_v58, %v6991_v35 }
 0x24c   :  { %10601 = vmatmul.mubr.msk.bf16.gmra.mrb[40].mxu0 %vm3322_vm13, %v3252_v8  ;;  %v15733_v12 = vsel %vm7109_vm7, 0.0, %v15587_v59  ;;  %v15737_v0 = vsel %vm7109_vm7, %v15544_v9, 0.0  ;;  %v3019_v25 = vsel %vm2974_vm9, %v14999_v63, %v11749_v16  ;;  %v15743_v3 = vsel %vm7109_vm7, 0.0, %v6992_v47  ;;  %v15746_v30 = vpop.permute.xlu1 %11787 }
 0x24d   :  { %v3083_v36 = vsel %vm3036_vm10, %v3018_v22, %v11759_v57  ;;  %v7127_v1 = vsel %vm7109_vm7, %v6526_v27, 0.0  ;;  %v7174_v6 = vrot.slane %v15733_v12, 1  ;;  %v7175_v59 = vrot.slane %v15737_v0, 1  ;;  %v15751_v20 = vpop.permute.xlu0 %11792 }
 0x24e   :  { %v7177_v45 = vrot.slane %v15743_v3, 1  ;;  %v7178_v9 = vrot.slane %v7127_v1, 1  ;;  %v3147_v63 = vsel %vm3101_vm11, %v3082_v61, %v11764_v51  ;;  %v3084_v28 = vsel %vm3036_vm10, %v3019_v25, %v11760_v62 }
 0x24f   :  { %v11775_v19 = vunpack.i.h.bf16 %v15696_v40  ;;  %v11774_v7 = vunpack.i.l.bf16 %v15696_v40  ;;  %v7176_v58 = vsel %vm484_vm2, %v7174_v6, %v7175_v59  ;;  %v3148_v52 = vsel %vm3101_vm11, %v3083_v36, %v11765_v26 }
 0x250   :  { %v7179_v34 = vsel %vm484_vm2, %v7177_v45, %v7178_v9  ;;  %v11769_v46 = vunpack.i.l.bf16 %v15690_v13  ;;  %v3211_v5 = vsel %vm3166_vm12, %v3146_v54, %v11740_v43  ;;  %v3497_v49 = vadd.f32 %v10570_v48, %v15377_v17  ;;  %v15764_v27 = vpop.permute.xlu1 %11797 }
 0x251   :  { %v11911_v35 = vpack.i.bf16 %v7179_v34, %v7176_v58  ;;  %v3212_v11 = vsel %vm3166_vm12, %v3147_v63, %v11774_v7  ;;  %v11770_v40 = vunpack.i.h.bf16 %v15690_v13  ;;  %v3489_v14 = vadd.f32 %v15377_v17, %v3488_v32  ;;  %v15769_v33 = vpop.permute.xlu0 %11802 }
 0x252   :  { %v3253_v39 = vpack.c.bf16 %v3212_v11, %v3211_v5  ;;  %v3500_v44 = vadd.f32 %v10571_v18, %v15377_v17  ;;  %v15773_v43 = vsel %vm3166_vm12, %v3148_v52, %v11775_v19  ;;  %v15776_v23 = vsel %vm3101_vm11, %v3084_v28, %v11769_v46 }
 0x253   :  { %11912 = vrot.lane.b32.xlu1 %v11911_v35, %s12180_s22  ;;  %v3721_v48 = vmax.f32 %v3497_v49, 0.0  ;;  %v7276_v37 = vrot.slane %v15743_v3, 2  ;;  %v3719_v21 = vmax.f32 %v3489_v14, 0.0  ;;  %v7273_v32 = vrot.slane %v15733_v12, 2 }
 0x254   :  { %v3722_v22 = vmax.f32 %v3500_v44, 0.0  ;;  %v7274_v17 = vrot.slane %v15737_v0, 2  ;;  %10604 = vmatprep.mubr.msk.bf16.mxu0 %vm3322_vm13, %v3253_v39  ;;  %v7277_v16 = vrot.slane %v7127_v1, 2  ;;  %v11785_v18 = vunpack.i.h.bf16 %v15717_v56  ;;  %v15784_v4 = vpop.permute.xlu1 %11807 }
 0x255   :  { %v4009_v2 = vcombine.high %v3721_v48, %v3721_v48  ;;  %v4016_v42 = vrot.slane %v3721_v48, %v15365_v53  ;;  %v3975_v61 = vcombine.high %v3719_v21, %v3719_v21  ;;  %v3982_v8 = vrot.slane %v3719_v21, %v15365_v53  ;;  %v15788_v62 = vpop.permute.xlu0 %11812 }
 0x256   :  { %v4026_v26 = vcombine.high %v3722_v22, %v3722_v22  ;;  %v4033_v51 = vrot.slane %v3722_v22, %v15365_v53  ;;  %v7278_v0 = vsel %vm842_vm1, %v7276_v37, %v7277_v16  ;;  %v11805_v13 = vunpack.i.h.bf16 %v15769_v33 }
 0x257   :  { %v4023_v57 = vrot.slane %v4009_v2, %v15365_v53  ;;  %v4024_v54 = vcombine.high %v4016_v42, %v4016_v42  ;;  %v9954_v47 = vrot.slane %v4016_v42, 9  ;;  %v3989_v25 = vrot.slane %v3975_v61, %v15365_v53 }
 0x258   :  { %v3990_v36 = vcombine.high %v3982_v8, %v3982_v8  ;;  %v9946_v1 = vrot.slane %v3982_v8, 9  ;;  %v4040_v6 = vrot.slane %v4026_v26, %v15365_v53  ;;  %v15794_v28 = vpop.permute.xlu1 %11817  ;;  %v4041_v11 = vcombine.high %v4033_v51, %v4033_v51 }
 0x259   :  { %v4025_v59 = vcombine.high %v4023_v57, %v4023_v57  ;;  %v9955_v45 = vrot.slane %v4024_v54, 9  ;;  %v9956_v9 = vrot.slane %v4023_v57, 9  ;;  %v5991_v63 = vmax.f32 %v4016_v42, %v9954_v47  ;;  %v15796_v52 = vpop.permute.xlu0 %11822 }
 0x25a   :  { %v3991_v19 = vcombine.high %v3989_v25, %v3989_v25  ;;  %v9947_v7 = vrot.slane %v3990_v36, 9  ;;  %v9948_v58 = vrot.slane %v3989_v25, 9  ;;  %v5983_v34 = vmax.f32 %v3982_v8, %v9946_v1 }
 0x25b   :  { %v9957_v46 = vrot.slane %v4025_v59, 9  ;;  %v5992_v35 = vmax.f32 %v4024_v54, %v9955_v45  ;;  %v5993_v5 = vmax.f32 %v4023_v57, %v9956_v9  ;;  %v4042_v37 = vcombine.high %v4040_v6, %v4040_v6 }
 0x25c   :  { %v9949_v49 = vrot.slane %v3991_v19, 9  ;;  %v5984_v39 = vmax.f32 %v3990_v36, %v9947_v7  ;;  %v5985_v14 = vmax.f32 %v3989_v25, %v9948_v58  ;;  %v6223_v44 = vmax.f32 %v5983_v34, %v5991_v63  ;;  %v15799_v8 = vpop.permute.xlu1 %11827 }
 0x25d   :  { %v5994_v48 = vmax.f32 %v4025_v59, %v9957_v46  ;;  %v9958_v21 = vrot.slane %v4033_v51, 9  ;;  %v9959_v22 = vrot.slane %v4041_v11, 9  ;;  %v7275_v61 = vsel %vm842_vm1, %v7273_v32, %v7274_v17  ;;  %v15803_v36 = vpop.permute.xlu0 %11832 }
 0x25e   :  { %v5986_v2 = vmax.f32 %v3991_v19, %v9949_v49  ;;  %v6224_v42 = vmax.f32 %v5984_v39, %v5992_v35  ;;  %v6225_v16 = vmax.f32 %v5985_v14, %v5993_v5  ;;  %v6530_v26 = vrot.slane %v6223_v44, %v15385_v15 }
 0x25f   :  { %v9960_v54 = vrot.slane %v4040_v6, 9  ;;  %v9961_v57 = vrot.slane %v4042_v37, 9  ;;  %v11784_v47 = vunpack.i.l.bf16 %v15717_v56  ;;  %v11921_v45 = vpack.i.bf16 %v7278_v0, %v7275_v61 }
 0x260   :  { %v6226_v25 = vmax.f32 %v5986_v2, %v5994_v48  ;;  %v6534_v1 = vrot.slane %v6224_v42, %v15385_v15  ;;  %v6538_v59 = vrot.slane %v6225_v16, %v15385_v15  ;;  %v15807_v9 = vmax.f32 %v4033_v51, %v9958_v21 }
 0x261   :  { %v15809_v63 = vmax.f32 %v4041_v11, %v9959_v22  ;;  %v15811_v32 = vmax.f32 %v4040_v6, %v9960_v54  ;;  %v15813_v17 = vmax.f32 %v4042_v37, %v9961_v57  ;;  %11922 = vrot.lane.b32.xlu1 %v11921_v45, %s12181_s27  ;;  %v3022_v7 = vsel %vm2974_vm9, %v15058_v50, %v11785_v18  ;;  %v15825_v6 = vld [vmem:[%s17621_s2] ss:$0 sm:$0xff]  ;;  %v15838_v11 = vpop.permute.xlu1 %11837  ;;  %v15845_v14 = vpop.permute.xlu0 %11842 }
 0x262   :  { %v6542_v19 = vrot.slane %v6226_v25, %v15385_v15  ;;  %v6993_v56 = vsel %vm6975_vm14, %v6534_v1, %v6530_v26  ;;  %v11779_v0 = vunpack.i.l.bf16 %v15711_v41  ;;  %v3492_v58 = vadd.f32 %v15825_v6, %v15719_v24 }
 0x263   :  { %v6994_v51 = vsel %vm6977_vm15, %v6538_v59, %v6993_v56  ;;  %v11795_v34 = vunpack.i.h.bf16 %v15751_v20  ;;  %v11794_v46 = vunpack.i.l.bf16 %v15751_v20  ;;  %v11790_v18 = vunpack.i.h.bf16 %v15746_v30 }
 0x264   :  { %v3214_v35 = vsel %vm3166_vm12, %v15776_v23, %v11779_v0  ;;  %v15834_v50 = vsel %vm6979_vm0, %v6542_v19, %v6994_v51  ;;  %v11789_v5 = vunpack.i.l.bf16 %v15746_v30  ;;  %v3021_v49 = vsel %vm2974_vm9, %v15055_v38, %v11784_v47 }
 0x265   :  { %v3254_v24 = vpack.c.bf16 %v3214_v35, %v15773_v43  ;;  %v3720_v39 = vmax.f32 %v3492_v58, 0.0  ;;  %v3085_v20 = vsel %vm3036_vm10, %v15723_v60, %v11794_v46  ;;  %v11780_v23 = vunpack.i.h.bf16 %v15711_v41  ;;  %v15877_v57 = vpop.permute.xlu1 %11847  ;;  %v15881_v19 = vpop.permute.xlu0 %11852 }
 0x266   :  { %v3086_v44 = vsel %vm3036_vm10, %v3021_v49, %v11795_v34  ;;  %v3150_v30 = vsel %vm3101_vm11, %v3085_v20, %v11770_v40  ;;  %v15854_v48 = vsel %vm2974_vm9, %v15061_v29, %v11790_v18  ;;  %v3023_v60 = vsel %vm2974_vm9, %v15064_v10, %v11789_v5  ;;  %v15861_v37 = vpop.f32.mrb[12].mxu0 }
 0x267   :  { %v3992_v38 = vcombine.high %v3720_v39, %v3720_v39  ;;  %v3999_v43 = vrot.slane %v3720_v39, %v15365_v53  ;;  %10605 = vmatmul.mubr.msk.bf16.gmra.mrb[44].mxu0 %vm3322_vm13, %v3254_v24  ;;  %v11804_v41 = vunpack.i.l.bf16 %v15769_v33  ;;  %v11800_v40 = vunpack.i.h.bf16 %v15764_v27  ;;  %v15867_v22 = vpop.f32.mrb[13].mxu0 }
 0x268   :  { %v11799_v21 = vunpack.i.l.bf16 %v15764_v27  ;;  %v11814_v29 = vunpack.i.l.bf16 %v15788_v62  ;;  %v15871_v61 = vpop.f32.mrb[14].mxu0  ;;  %v11815_v33 = vunpack.i.h.bf16 %v15788_v62  ;;  %v3215_v54 = vsel %vm3166_vm12, %v3150_v30, %v11780_v23 }
 0x269   :  { %v4006_v2 = vrot.slane %v3992_v38, %v15365_v53  ;;  %v4007_v42 = vcombine.high %v3999_v43, %v3999_v43  ;;  %v9950_v10 = vrot.slane %v3999_v43, 9  ;;  %v3151_v16 = vsel %vm3101_vm11, %v3086_v44, %v11804_v41  ;;  %v15879_v47 = vpop.f32.mrb[15].mxu0  ;;  %v15900_v38 = vpop.permute.xlu1 %11857 }
 0x26a   :  { %v3087_v26 = vsel %vm3036_vm10, %v3022_v7, %v11799_v21  ;;  %v3216_v27 = vsel %vm3166_vm12, %v3151_v16, %v11814_v29  ;;  %v11809_v7 = vunpack.i.l.bf16 %v15784_v4  ;;  %v11825_v62 = vunpack.i.h.bf16 %v15796_v52 }
 0x26b   :  { %v4008_v25 = vcombine.high %v4006_v2, %v4006_v2  ;;  %v9951_v1 = vrot.slane %v4007_v42, 9  ;;  %v9952_v59 = vrot.slane %v4006_v2, 9  ;;  %v5987_v45 = vmax.f32 %v3999_v43, %v9950_v10 }
 0x26c   :  { %v3152_v56 = vsel %vm3101_vm11, %v3087_v26, %v11805_v13  ;;  %v3255_v0 = vpack.c.bf16 %v3216_v27, %v3215_v54  ;;  %v3088_v35 = vsel %vm3036_vm10, %v3023_v60, %v11800_v40  ;;  %v11810_v5 = vunpack.i.h.bf16 %v15784_v4  ;;  %v15908_v60 = vpop.permute.xlu0 %11862  ;;  %v18062_v26 = vld [vmem:[#allocation8_spill] sm:$0xff]  ;;  %v18063_v54 = vld [vmem:[#allocation62_spill] sm:$0xff] }
 0x26d   :  { %v9953_v51 = vrot.slane %v4008_v25, 9  ;;  %v5988_v58 = vmax.f32 %v4007_v42, %v9951_v1  ;;  %v5989_v34 = vmax.f32 %v4006_v2, %v9952_v59  ;;  %v6227_v46 = vmax.f32 %v5987_v45, %v15807_v9  ;;  %v15941_v1 = vpop.permute.xlu1 %11867 }
 0x26e   :  { %v3217_v18 = vsel %vm3166_vm12, %v3152_v56, %v11815_v33  ;;  %v11824_v49 = vunpack.i.l.bf16 %v15796_v52  ;;  %10608 = vmatprep.mubr.msk.bf16.mxu0 %vm3322_vm13, %v3255_v0  ;;  %v3153_v44 = vsel %vm3101_vm11, %v3088_v35, %v11809_v7  ;;  %v3026_v9 = vsel %vm2974_vm9, %v15139_v55, %v11825_v62 }
 0x26f   :  { %v5990_v24 = vmax.f32 %v4008_v25, %v9953_v51  ;;  %v6228_v39 = vmax.f32 %v5988_v58, %v15809_v63  ;;  %v6229_v20 = vmax.f32 %v5989_v34, %v15811_v32  ;;  %v6546_v23 = vrot.slane %v6227_v46, %v15385_v15 }
 0x270   :  { %v11819_v30 = vunpack.i.l.bf16 %v15794_v28  ;;  %v11835_v4 = vunpack.i.h.bf16 %v15803_v36  ;;  %v3025_v32 = vsel %vm2974_vm9, %v15124_v31, %v11824_v49  ;;  %v11820_v55 = vunpack.i.h.bf16 %v15794_v28  ;;  %v15947_v56 = vpop.permute.xlu0 %11872 }
 0x271   :  { %v6230_v52 = vmax.f32 %v5990_v24, %v15813_v17  ;;  %v6550_v43 = vrot.slane %v6228_v39, %v15385_v15  ;;  %v6996_v63 = vsel %vm6981_vm4, %v6546_v23, %v15834_v50  ;;  %v11834_v13 = vunpack.i.l.bf16 %v15803_v36 }
 0x272   :  { %v3218_v41 = vsel %vm3166_vm12, %v3153_v44, %v11819_v30  ;;  %v11830_v40 = vunpack.i.h.bf16 %v15799_v8  ;;  %v15915_v17 = vrot.slane %v6229_v20, %v15385_v15  ;;  %v11829_v29 = vunpack.i.l.bf16 %v15799_v8 }
 0x273   :  { %v15918_v21 = vsel %vm6983_vm5, %v6550_v43, %v6996_v63  ;;  %v3256_v50 = vpack.c.bf16 %v3218_v41, %v3217_v18  ;;  %v15922_v31 = vrot.slane %v6230_v52, %v15385_v15  ;;  %v3089_v28 = vsel %vm3036_vm10, %v15854_v48, %v11834_v13 }
 0x274   :  { %v3090_v2 = vsel %vm3036_vm10, %v3025_v32, %v11835_v4  ;;  %v11844_v36 = vunpack.i.l.bf16 %v15845_v14  ;;  %v3154_v42 = vsel %vm3101_vm11, %v3089_v28, %v11810_v5  ;;  %v11845_v10 = vunpack.i.h.bf16 %v15845_v14  ;;  %v15975_v63 = vpop.permute.xlu0 %11882 }
 0x275   :  { %10609 = vmatmul.mubr.msk.bf16.gmra.mrb[48].mxu0 %vm3322_vm13, %v3256_v50  ;;  %v11840_v16 = vunpack.i.h.bf16 %v15838_v11  ;;  %v11839_v8 = vunpack.i.l.bf16 %v15838_v11  ;;  %v15935_v33 = vsel %vm2974_vm9, %v18062_v26, %v11830_v40  ;;  %v3027_v48 = vsel %vm2974_vm9, %v18063_v54, %v11829_v29 }
 0x276   :  { %v11855_v27 = vunpack.i.h.bf16 %v15881_v19  ;;  %v11854_v25 = vunpack.i.l.bf16 %v15881_v19  ;;  %v3155_v59 = vsel %vm3101_vm11, %v3090_v2, %v11844_v36  ;;  %v3219_v45 = vsel %vm3166_vm12, %v3154_v42, %v11820_v55 }
 0x277   :  { %v3091_v14 = vsel %vm3036_vm10, %v3026_v9, %v11839_v8  ;;  %v11849_v11 = vunpack.i.l.bf16 %v15877_v57  ;;  %v3092_v0 = vsel %vm3036_vm10, %v3027_v48, %v11840_v16  ;;  %v3513_v62 = vadd.f32 %v15825_v6, %v15861_v37  ;;  %v15969_v9 = vpop.permute.xlu1 %11877 }
 0x278   :  { %v3220_v7 = vsel %vm3166_vm12, %v3155_v59, %v11854_v25  ;;  %v3505_v19 = vadd.f32 %v15825_v6, %v15867_v22  ;;  %v3156_v51 = vsel %vm3101_vm11, %v3091_v14, %v11845_v10  ;;  %v11850_v34 = vunpack.i.h.bf16 %v15877_v57 }
 0x279   :  { %v3257_v58 = vpack.c.bf16 %v3220_v7, %v3219_v45  ;;  %v3516_v46 = vadd.f32 %v15825_v6, %v15871_v61  ;;  %v15960_v35 = vsel %vm3166_vm12, %v3156_v51, %v11855_v27  ;;  %v3157_v18 = vsel %vm3101_vm11, %v3092_v0, %v11849_v11  ;;  %v15982_v0 = vpop.permute.xlu0 %11887  ;;  %v18064_v51 = vld [vmem:[#allocation10_spill] sm:$0xff] }
 0x27a   :  { %v3725_v5 = vmax.f32 %v3513_v62, 0.0  ;;  %v3723_v49 = vmax.f32 %v3505_v19, 0.0  ;;  %v11865_v37 = vunpack.i.h.bf16 %v15908_v60  ;;  %v11864_v22 = vunpack.i.l.bf16 %v15908_v60 }
 0x27b   :  { %v3726_v24 = vmax.f32 %v3516_v46, 0.0  ;;  %v11860_v39 = vunpack.i.h.bf16 %v15900_v38  ;;  %10612 = vmatprep.mubr.msk.bf16.mxu0 %vm3322_vm13, %v3257_v58  ;;  %v11859_v52 = vunpack.i.l.bf16 %v15900_v38  ;;  %v3508_v43 = vadd.f32 %v15825_v6, %v15879_v47  ;;  %v15980_v25 = vpop.permute.xlu1 %2736 }
 0x27c   :  { %v4077_v20 = vcombine.high %v3725_v5, %v3725_v5  ;;  %v4084_v23 = vrot.slane %v3725_v5, %v15365_v53  ;;  %v4043_v61 = vcombine.high %v3723_v49, %v3723_v49  ;;  %v4050_v44 = vrot.slane %v3723_v49, %v15365_v53 }
 0x27d   :  { %v4094_v30 = vcombine.high %v3726_v24, %v3726_v24  ;;  %v4101_v4 = vrot.slane %v3726_v24, %v15365_v53  ;;  %v3030_v58 = vsel %vm2974_vm9, %v18064_v51, %v11865_v37  ;;  %v11889_v57 = vunpack.i.l.bf16 %v15982_v0 }
 0x27e   :  { %v4091_v32 = vrot.slane %v4077_v20, %v15365_v53  ;;  %v4092_v60 = vcombine.high %v4084_v23, %v4084_v23  ;;  %v9970_v55 = vrot.slane %v4084_v23, 9  ;;  %v4057_v41 = vrot.slane %v4043_v61, %v15365_v53 }
 0x27f   :  { %v4058_v13 = vcombine.high %v4050_v44, %v4050_v44  ;;  %v9962_v40 = vrot.slane %v4050_v44, 9  ;;  %v4108_v50 = vrot.slane %v4094_v30, %v15365_v53  ;;  %v4109_v29 = vcombine.high %v4101_v4, %v4101_v4 }
 0x280   :  { %v4093_v28 = vcombine.high %v4091_v32, %v4091_v32  ;;  %v9971_v2 = vrot.slane %v4092_v60, 9  ;;  %v9972_v36 = vrot.slane %v4091_v32, 9  ;;  %v6007_v42 = vmax.f32 %v4084_v23, %v9970_v55 }
 0x281   :  { %v4059_v10 = vcombine.high %v4057_v41, %v4057_v41  ;;  %v9963_v16 = vrot.slane %v4058_v13, 9  ;;  %v9964_v47 = vrot.slane %v4057_v41, 9  ;;  %v5999_v8 = vmax.f32 %v4050_v44, %v9962_v40  ;;  %v18065_v44 = vld [vmem:[#allocation24_spill] sm:$0xff] }
 0x282   :  { %v9973_v26 = vrot.slane %v4093_v28, 9  ;;  %v6008_v54 = vmax.f32 %v4092_v60, %v9971_v2  ;;  %v6009_v48 = vmax.f32 %v4091_v32, %v9972_v36  ;;  %v4110_v27 = vcombine.high %v4108_v50, %v4108_v50  ;;  %v15996_v36 = vpop.permute.xlu1 %2915 }
 0x283   :  { %v9965_v59 = vrot.slane %v4059_v10, 9  ;;  %v6000_v14 = vmax.f32 %v4058_v13, %v9963_v16  ;;  %v6001_v45 = vmax.f32 %v4057_v41, %v9964_v47  ;;  %v6231_v11 = vmax.f32 %v5999_v8, %v6007_v42 }
 0x284   :  { %v6010_v7 = vmax.f32 %v4093_v28, %v9973_v26  ;;  %v9974_v62 = vrot.slane %v4101_v4, 9  ;;  %v9975_v19 = vrot.slane %v4109_v29, 9  ;;  %v9976_v24 = vrot.slane %v4108_v50, 9 }
 0x285   :  { %v6002_v46 = vmax.f32 %v4059_v10, %v9965_v59  ;;  %v6232_v5 = vmax.f32 %v6000_v14, %v6008_v54  ;;  %v6233_v49 = vmax.f32 %v6001_v45, %v6009_v48  ;;  %v6562_v20 = vrot.slane %v6231_v11, %v15385_v15 }
 0x286   :  { %v9977_v23 = vrot.slane %v4110_v27, 9  ;;  %v6011_v61 = vmax.f32 %v4101_v4, %v9974_v62  ;;  %v3029_v30 = vsel %vm2974_vm9, %v18065_v44, %v11864_v22  ;;  %v3222_v41 = vsel %vm3166_vm12, %v3157_v18, %v11859_v52  ;;  %v15992_v13 = vpop.f32.mrb[16].mxu0  ;;  %v16003_v18 = vpop.permute.xlu0 %11892 }
 0x287   :  { %v6234_v32 = vmax.f32 %v6002_v46, %v6010_v7  ;;  %v6566_v60 = vrot.slane %v6232_v5, %v15385_v15  ;;  %v6570_v55 = vrot.slane %v6233_v49, %v15385_v15  ;;  %v6012_v37 = vmax.f32 %v4109_v29, %v9975_v19  ;;  %v15998_v4 = vpop.f32.mrb[17].mxu0 }
 0x288   :  { %v3258_v40 = vpack.c.bf16 %v3222_v41, %v15960_v35  ;;  %v3724_v28 = vmax.f32 %v3508_v43, 0.0  ;;  %v11875_v2 = vunpack.i.h.bf16 %v15947_v56  ;;  %v6013_v10 = vmax.f32 %v4108_v50, %v9976_v24  ;;  %v16005_v52 = vpop.f32.mrb[18].mxu0 }
 0x289   :  { %v6574_v22 = vrot.slane %v6234_v32, %v15385_v15  ;;  %v6999_v42 = vsel %vm6975_vm14, %v6566_v60, %v6562_v20  ;;  %v11874_v16 = vunpack.i.l.bf16 %v15947_v56  ;;  %v6014_v43 = vmax.f32 %v4110_v27, %v9977_v23  ;;  %v16010_v8 = vpop.f32.mrb[19].mxu0 }
 0x28a   :  { %v7000_v35 = vsel %vm6977_vm15, %v6570_v55, %v6999_v42  ;;  %v4060_v29 = vcombine.high %v3724_v28, %v3724_v28  ;;  %v4067_v47 = vrot.slane %v3724_v28, %v15365_v53  ;;  %10613 = vmatmul.mubr.msk.bf16.gmra.mrb[52].mxu0 %vm3322_vm13, %v3258_v40  ;;  %v3094_v56 = vsel %vm3036_vm10, %v3029_v30, %v11875_v2  ;;  %v11898_v24 = vpop.permute.xlu0 %11897  ;;  %v18066_v55 = vld [vmem:[#allocation7_spill] sm:$0xff] }
 0x28b   :  { %v7001_v26 = vsel %vm6979_vm0, %v6574_v22, %v7000_v35  ;;  %v3093_v50 = vsel %vm3036_vm10, %v15935_v33, %v11874_v16  ;;  %v11870_v54 = vunpack.i.h.bf16 %v15941_v1  ;;  %v11869_v14 = vunpack.i.l.bf16 %v15941_v1  ;;  %v18067_v2 = vld [vmem:[#allocation63_spill] sm:$0xff] }
 0x28c   :  { %v4074_v48 = vrot.slane %v4060_v29, %v15365_v53  ;;  %v4075_v59 = vcombine.high %v4067_v47, %v4067_v47  ;;  %v9966_v27 = vrot.slane %v4067_v47, 9  ;;  %v3158_v45 = vsel %vm3101_vm11, %v3093_v50, %v11850_v34  ;;  %v2362_v34 = vpop.permute.xlu1 %2361 }
 0x28d   :  { %v11885_v11 = vunpack.i.h.bf16 %v15975_v63  ;;  %v11884_v7 = vunpack.i.l.bf16 %v15975_v63  ;;  %v11879_v33 = vunpack.i.l.bf16 %v15969_v9  ;;  %v11880_v49 = vunpack.i.h.bf16 %v15969_v9 }
 0x28e   :  { %v4076_v62 = vcombine.high %v4074_v48, %v4074_v48  ;;  %v9967_v19 = vrot.slane %v4075_v59, 9  ;;  %v9968_v51 = vrot.slane %v4074_v48, 9  ;;  %v6003_v46 = vmax.f32 %v4067_v47, %v9966_v27  ;;  %v11908_v50 = vpop.permute.xlu0 %11907 }
 0x28f   :  { %v3159_v5 = vsel %vm3101_vm11, %v3094_v56, %v11884_v7  ;;  %v3095_v1 = vsel %vm3036_vm10, %v3030_v58, %v11879_v33  ;;  %v11890_v30 = vunpack.i.h.bf16 %v15982_v0  ;;  %v3223_v32 = vsel %vm3166_vm12, %v3158_v45, %v11860_v39 }
 0x290   :  { %v9969_v20 = vrot.slane %v4076_v62, 9  ;;  %v6004_v23 = vmax.f32 %v4075_v59, %v9967_v19  ;;  %v6005_v44 = vmax.f32 %v4074_v48, %v9968_v51  ;;  %v6235_v63 = vmax.f32 %v6003_v46, %v6011_v61  ;;  %v11903_v56 = vpop.permute.xlu1 %11902  ;;  %v18069_v46 = vld [vmem:[#allocation37_spill] sm:$0xff] }
 0x291   :  { %v3224_v60 = vsel %vm3166_vm12, %v3159_v5, %v11889_v57  ;;  %v3031_v9 = vsel %vm2974_vm9, %v18066_v55, %v11869_v14  ;;  %v3032_v22 = vsel %vm2974_vm9, %v18067_v2, %v11870_v54  ;;  %v11894_v38 = vunpack.i.l.bf16 %v16003_v18  ;;  %v18068_v54 = vld [vmem:[#allocation36_spill] sm:$0xff] }
 0x292   :  { %v6006_v58 = vmax.f32 %v4076_v62, %v9969_v20  ;;  %v6236_v41 = vmax.f32 %v6004_v23, %v6012_v37  ;;  %v6237_v40 = vmax.f32 %v6005_v44, %v6013_v10  ;;  %v6578_v28 = vrot.slane %v6235_v63, %v15385_v15 }
 0x293   :  { %v3259_v61 = vpack.c.bf16 %v3224_v60, %v3223_v32  ;;  %v3096_v0 = vsel %vm3036_vm10, %v3031_v9, %v11880_v49  ;;  %v11895_v35 = vunpack.i.h.bf16 %v16003_v18  ;;  %v3160_v29 = vsel %vm3101_vm11, %v3095_v1, %v11885_v11  ;;  %v18070_v49 = vld [vmem:[#allocation42_spill] sm:$0xff]  ;;  %v18071_v9 = vld [vmem:[#allocation41_spill] sm:$0xff] }
 0x294   :  { %v6238_v42 = vmax.f32 %v6006_v58, %v6014_v43  ;;  %v6582_v39 = vrot.slane %v6236_v41, %v15385_v15  ;;  %v7002_v16 = vsel %vm6981_vm4, %v6578_v28, %v7001_v26  ;;  %v6586_v37 = vrot.slane %v6237_v40, %v15385_v15  ;;  %v18072_v40 = vld [vmem:[#allocation68_spill] sm:$0xff] }
 0x295   :  { %v3161_v10 = vsel %vm3101_vm11, %v3096_v0, %v15980_v25  ;;  %10616 = vmatprep.mubr.msk.bf16.mxu0 %vm3322_vm13, %v3259_v61  ;;  %v11900_v47 = vunpack.i.h.bf16 %v11898_v24  ;;  %v3033_v48 = vsel %vm2974_vm9, %v18068_v54, %v11894_v38  ;;  %v3225_v26 = vsel %vm3166_vm12, %v3160_v29, %v11890_v30 }
 0x296   :  { %v7003_v43 = vsel %vm6983_vm5, %v6582_v39, %v7002_v16  ;;  %v3226_v18 = vsel %vm3166_vm12, %v3161_v10, %v15996_v36  ;;  %v6590_v59 = vrot.slane %v6238_v42, %v15385_v15  ;;  %v11899_v27 = vunpack.i.l.bf16 %v11898_v24 }
 0x297   :  { %v3260_v25 = vpack.c.bf16 %v3226_v18, %v3225_v26  ;;  %v3098_v14 = vsel %vm3036_vm10, %v3033_v48, %v11900_v47  ;;  %v11910_v45 = vunpack.i.h.bf16 %v11908_v50  ;;  %v11909_v11 = vunpack.i.l.bf16 %v11908_v50 }
 0x298   :  { %v11905_v7 = vunpack.i.h.bf16 %v11903_v56  ;;  %v11904_v33 = vunpack.i.l.bf16 %v11903_v56  ;;  %v3097_v62 = vsel %vm3036_vm10, %v3032_v22, %v11899_v27  ;;  %v6998_v19 = vsel %vm6985_vm6, %v15915_v17, %v15918_v21 }
 0x299   :  { %10617 = vmatmul.mubr.msk.bf16.gmra.mrb[56].mxu0 %vm3322_vm13, %v3260_v25  ;;  %v7004_v36 = vsel %vm6985_vm6, %v6586_v37, %v7003_v43  ;;  %v16065_v51 = vsel %vm7109_vm7, %v15922_v31, 0.0  ;;  %v3034_v5 = vsel %vm2974_vm9, %v18069_v46, %v11895_v35  ;;  %v3035_v1 = vsel %vm2974_vm9, %v18070_v49, %v2362_v34 }
 0x29a   :  { %v3162_v57 = vsel %vm3101_vm11, %v3097_v62, %v11909_v11  ;;  %v3163_v24 = vsel %vm3101_vm11, %v3098_v14, %v11910_v45  ;;  %v3100_v20 = vsel %vm3036_vm10, %v3035_v1, %v11905_v7  ;;  %v3099_v17 = vsel %vm3036_vm10, %v3034_v5, %v11904_v33 }
 0x29b   :  { %v16076_v21 = vsel %vm7109_vm7, 0.0, %v6998_v19  ;;  %v16079_v31 = vsel %vm7109_vm7, 0.0, %v7004_v36  ;;  %v16082_v23 = vsel %vm7109_vm7, %v6590_v59, 0.0  ;;  %v7181_v34 = vrot.slane %v16065_v51, 1 }
 0x29c   :  { %v7180_v44 = vrot.slane %v16076_v21, 1  ;;  %v7183_v63 = vrot.slane %v16079_v31, 1  ;;  %v7184_v30 = vrot.slane %v16082_v23, 1  ;;  %v3529_v32 = vadd.f32 %v15825_v6, %v15992_v13 }
 0x29d   :  { %v3521_v60 = vadd.f32 %v15825_v6, %v15998_v4  ;;  %v3532_v55 = vadd.f32 %v15825_v6, %v16005_v52  ;;  %v16096_v58 = vsel %vm3101_vm11, %v3100_v20, %v18071_v9  ;;  %v3227_v28 = vsel %vm3166_vm12, %v3162_v57, %v18072_v40 }
 0x29e   :  { %v7182_v41 = vsel %vm484_vm2, %v7180_v44, %v7181_v34  ;;  %v3228_v2 = vsel %vm3166_vm12, %v3163_v24, %v18072_v40  ;;  %v7185_v13 = vsel %vm484_vm2, %v7183_v63, %v7184_v30  ;;  %v3729_v22 = vmax.f32 %v3529_v32, 0.0 }
 0x29f   :  { %v3727_v61 = vmax.f32 %v3521_v60, 0.0  ;;  %v3730_v4 = vmax.f32 %v3532_v55, 0.0  ;;  %v3164_v52 = vsel %vm3101_vm11, %v3099_v17, %v18071_v9  ;;  %v11916_v0 = vpack.i.bf16 %v7185_v13, %v7182_v41 }
 0x2a0   :  { %v3261_v38 = vpack.c.bf16 %v3228_v2, %v3227_v28  ;;  %v7279_v42 = vrot.slane %v16076_v21, 2  ;;  %v4145_v39 = vcombine.high %v3729_v22, %v3729_v22  ;;  %v4152_v16 = vrot.slane %v3729_v22, %v15365_v53 }
 0x2a1   :  { %v4111_v35 = vcombine.high %v3727_v61, %v3727_v61  ;;  %v4118_v37 = vrot.slane %v3727_v61, %v15365_v53  ;;  %11917 = vrot.lane.b32.xlu0 %v11916_v0, %s12180_s22  ;;  %v4162_v10 = vcombine.high %v3730_v4, %v3730_v4  ;;  %v4169_v29 = vrot.slane %v3730_v4, %v15365_v53 }
 0x2a2   :  { %10620 = vmatprep.mubr.msk.bf16.mxu0 %vm3322_vm13, %v3261_v38  ;;  %v7280_v47 = vrot.slane %v16065_v51, 2  ;;  %v7282_v50 = vrot.slane %v16079_v31, 2  ;;  %v4159_v56 = vrot.slane %v4145_v39, %v15365_v53  ;;  %v4160_v43 = vcombine.high %v4152_v16, %v4152_v16 }
 0x2a3   :  { %v9986_v54 = vrot.slane %v4152_v16, 9  ;;  %v4125_v48 = vrot.slane %v4111_v35, %v15365_v53  ;;  %v4126_v26 = vcombine.high %v4118_v37, %v4118_v37  ;;  %v9978_v18 = vrot.slane %v4118_v37, 9 }
 0x2a4   :  { %v4176_v59 = vrot.slane %v4162_v10, %v15365_v53  ;;  %v4177_v25 = vcombine.high %v4169_v29, %v4169_v29  ;;  %v4161_v27 = vcombine.high %v4159_v56, %v4159_v56  ;;  %v9987_v14 = vrot.slane %v4160_v43, 9 }
 0x2a5   :  { %v9988_v45 = vrot.slane %v4159_v56, 9  ;;  %v6023_v11 = vmax.f32 %v4152_v16, %v9986_v54  ;;  %v4127_v7 = vcombine.high %v4125_v48, %v4125_v48  ;;  %v9979_v33 = vrot.slane %v4126_v26, 9 }
 0x2a6   :  { %v9980_v62 = vrot.slane %v4125_v48, 9  ;;  %v6015_v19 = vmax.f32 %v4118_v37, %v9978_v18  ;;  %v9989_v36 = vrot.slane %v4161_v27, 9  ;;  %v6024_v51 = vmax.f32 %v4160_v43, %v9987_v14  ;;  %v10582_v49 = vpop.f32.mrb[20].mxu0 }
 0x2a7   :  { %v6025_v46 = vmax.f32 %v4159_v56, %v9988_v45  ;;  %v4178_v5 = vcombine.high %v4176_v59, %v4176_v59  ;;  %v9981_v1 = vrot.slane %v4127_v7, 9  ;;  %v6016_v57 = vmax.f32 %v4126_v26, %v9979_v33  ;;  %v3536_v17 = vpop.f32.mrb[21].mxu0 }
 0x2a8   :  { %v6017_v24 = vmax.f32 %v4125_v48, %v9980_v62  ;;  %v6239_v20 = vmax.f32 %v6015_v19, %v6023_v11  ;;  %v6026_v44 = vmax.f32 %v4161_v27, %v9989_v36  ;;  %v9990_v34 = vrot.slane %v4169_v29, 9  ;;  %v10583_v32 = vpop.f32.mrb[22].mxu0 }
 0x2a9   :  { %v9991_v63 = vrot.slane %v4177_v25, 9  ;;  %v7281_v30 = vsel %vm842_vm1, %v7279_v42, %v7280_v47  ;;  %v6018_v60 = vmax.f32 %v4127_v7, %v9981_v1  ;;  %v6240_v55 = vmax.f32 %v6016_v57, %v6024_v51  ;;  %v3539_v28 = vpop.f32.mrb[23].mxu0 }
 0x2aa   :  { %v6241_v9 = vmax.f32 %v6017_v24, %v6025_v46  ;;  %v7283_v41 = vrot.slane %v16082_v23, 2  ;;  %v6594_v2 = vrot.slane %v6239_v20, %v15385_v15  ;;  %v9992_v13 = vrot.slane %v4176_v59, 9 }
 0x2ab   :  { %v9993_v22 = vrot.slane %v4178_v5, 9  ;;  %v6027_v61 = vmax.f32 %v4169_v29, %v9990_v34  ;;  %v6242_v4 = vmax.f32 %v6018_v60, %v6026_v44  ;;  %v6598_v0 = vrot.slane %v6240_v55, %v15385_v15 }
 0x2ac   :  { %v6602_v38 = vrot.slane %v6241_v9, %v15385_v15  ;;  %v7284_v39 = vsel %vm842_vm1, %v7282_v50, %v7283_v41  ;;  %v6028_v42 = vmax.f32 %v4177_v25, %v9991_v63  ;;  %v3524_v35 = vadd.f32 %v15825_v6, %v16010_v8 }
 0x2ad   :  { %v11926_v16 = vpack.i.bf16 %v7284_v39, %v7281_v30  ;;  %v3229_v23 = vsel %vm3166_vm12, %v3164_v52, %v18072_v40  ;;  %v6606_v37 = vrot.slane %v6242_v4, %v15385_v15  ;;  %v7005_v10 = vsel %vm6975_vm14, %v6598_v0, %v6594_v2 }
 0x2ae   :  { %v3230_v29 = vsel %vm3166_vm12, %v16096_v58, %v18072_v40  ;;  %v3545_v47 = vadd.f32 %v15825_v6, %v10582_v49  ;;  %v7006_v50 = vsel %vm6977_vm15, %v6602_v38, %v7005_v10  ;;  %v3728_v56 = vmax.f32 %v3524_v35, 0.0 }
 0x2af   :  { %11927 = vrot.lane.b32.xlu0 %v11926_v16, %s12181_s27  ;;  %v3262_v43 = vpack.c.bf16 %v3230_v29, %v3229_v23  ;;  %v3537_v8 = vadd.f32 %v15825_v6, %v3536_v17  ;;  %v7007_v52 = vsel %vm6979_vm0, %v6606_v37, %v7006_v50  ;;  %v3548_v48 = vadd.f32 %v15825_v6, %v10583_v32 }
 0x2b0   :  { %v3733_v54 = vmax.f32 %v3545_v47, 0.0  ;;  %v3540_v26 = vadd.f32 %v15825_v6, %v3539_v28  ;;  %v16139_v18 = vmax.f32 %v4176_v59, %v9992_v13  ;;  %v4128_v58 = vcombine.high %v3728_v56, %v3728_v56 }
 0x2b1   :  { %v4135_v40 = vrot.slane %v3728_v56, %v15365_v53  ;;  %10621 = vmatmul.mubr.msk.bf16.gmra.mrb[60].mxu0 %vm3322_vm13, %v3262_v43  ;;  %v3731_v25 = vmax.f32 %v3537_v8, 0.0  ;;  %v16143_v27 = vmax.f32 %v4178_v5, %v9993_v22  ;;  %v3734_v11 = vmax.f32 %v3548_v48, 0.0 }
 0x2b2   :  { %v4213_v14 = vcombine.high %v3733_v54, %v3733_v54  ;;  %v4220_v45 = vrot.slane %v3733_v54, %v15365_v53  ;;  %v4142_v7 = vrot.slane %v4128_v58, %v15365_v53  ;;  %v16147_v19 = vmax.f32 %v3540_v26, 0.0 }
 0x2b3   :  { %v4143_v33 = vcombine.high %v4135_v40, %v4135_v40  ;;  %v9982_v62 = vrot.slane %v4135_v40, 9  ;;  %v4179_v46 = vcombine.high %v3731_v25, %v3731_v25  ;;  %v4186_v44 = vrot.slane %v3731_v25, %v15365_v53 }
 0x2b4   :  { %v4227_v59 = vrot.slane %v4213_v14, %v15365_v53  ;;  %v4228_v36 = vcombine.high %v4220_v45, %v4220_v45  ;;  %v10002_v51 = vrot.slane %v4220_v45, 9  ;;  %v4144_v49 = vcombine.high %v4142_v7, %v4142_v7 }
 0x2b5   :  { %v9983_v1 = vrot.slane %v4143_v33, 9  ;;  %v9984_v57 = vrot.slane %v4142_v7, 9  ;;  %v6019_v5 = vmax.f32 %v4135_v40, %v9982_v62  ;;  %v4193_v41 = vrot.slane %v4179_v46, %v15365_v53 }
 0x2b6   :  { %v4229_v24 = vcombine.high %v4227_v59, %v4227_v59  ;;  %v10003_v20 = vrot.slane %v4228_v36, 9  ;;  %v10004_v17 = vrot.slane %v4227_v59, 9  ;;  %v9985_v34 = vrot.slane %v4144_v49, 9 }
 0x2b7   :  { %v6020_v63 = vmax.f32 %v4143_v33, %v9983_v1  ;;  %v6021_v30 = vmax.f32 %v4142_v7, %v9984_v57  ;;  %v6243_v32 = vmax.f32 %v6019_v5, %v6027_v61  ;;  %v6039_v55 = vmax.f32 %v4220_v45, %v10002_v51 }
 0x2b8   :  { %v10005_v60 = vrot.slane %v4229_v24, 9  ;;  %v6040_v9 = vmax.f32 %v4228_v36, %v10003_v20  ;;  %v6022_v28 = vmax.f32 %v4144_v49, %v9985_v34  ;;  %v6041_v4 = vmax.f32 %v4227_v59, %v10004_v17 }
 0x2b9   :  { %v6244_v2 = vmax.f32 %v6020_v63, %v6028_v42  ;;  %v6245_v13 = vmax.f32 %v6021_v30, %v16139_v18  ;;  %v6610_v22 = vrot.slane %v6243_v32, %v15385_v15  ;;  %v4194_v0 = vcombine.high %v4186_v44, %v4186_v44 }
 0x2ba   :  { %v4195_v38 = vcombine.high %v4193_v41, %v4193_v41  ;;  %v9994_v39 = vrot.slane %v4186_v44, 9  ;;  %v6246_v16 = vmax.f32 %v6022_v28, %v16143_v27  ;;  %v6042_v23 = vmax.f32 %v4229_v24, %v10005_v60 }
 0x2bb   :  { %v6614_v35 = vrot.slane %v6244_v2, %v15385_v15  ;;  %v7008_v61 = vsel %vm6981_vm4, %v6610_v22, %v7007_v52  ;;  %v9995_v37 = vrot.slane %v4194_v0, 9  ;;  %v9996_v10 = vrot.slane %v4193_v41, 9 }
 0x2bc   :  { %v9997_v29 = vrot.slane %v4195_v38, 9  ;;  %v6031_v47 = vmax.f32 %v4186_v44, %v9994_v39  ;;  %v4230_v50 = vcombine.high %v3734_v11, %v3734_v11  ;;  %v4237_v56 = vrot.slane %v3734_v11, %v15365_v53 }
 0x2bd   :  { %v7009_v42 = vsel %vm6983_vm5, %v6614_v35, %v7008_v61  ;;  %v6032_v43 = vmax.f32 %v4194_v0, %v9995_v37  ;;  %v6033_v8 = vmax.f32 %v4193_v41, %v9996_v10  ;;  %v4196_v52 = vcombine.high %v16147_v19, %v16147_v19 }
 0x2be   :  { %v6034_v54 = vmax.f32 %v4195_v38, %v9997_v29  ;;  %v6247_v48 = vmax.f32 %v6031_v47, %v6039_v55  ;;  %v4244_v26 = vrot.slane %v4230_v50, %v15365_v53  ;;  %v4245_v18 = vcombine.high %v4237_v56, %v4237_v56 }
 0x2bf   :  { %v6248_v58 = vmax.f32 %v6032_v43, %v6040_v9  ;;  %v6249_v40 = vmax.f32 %v6033_v8, %v6041_v4  ;;  %v10006_v27 = vrot.slane %v4237_v56, 9  ;;  %v4203_v36 = vrot.slane %v16147_v19, %v15365_v53 }
 0x2c0   :  { %v6250_v25 = vmax.f32 %v6034_v54, %v6042_v23  ;;  %v6626_v14 = vrot.slane %v6247_v48, %v15385_v15  ;;  %v4246_v45 = vcombine.high %v4244_v26, %v4244_v26  ;;  %v10007_v7 = vrot.slane %v4245_v18, 9 }
 0x2c1   :  { %v10008_v33 = vrot.slane %v4244_v26, 9  ;;  %v6630_v11 = vrot.slane %v6248_v58, %v15385_v15  ;;  %v6634_v62 = vrot.slane %v6249_v40, %v15385_v15  ;;  %v6618_v51 = vrot.slane %v6245_v13, %v15385_v15 }
 0x2c2   :  { %v6638_v59 = vrot.slane %v6250_v25, %v15385_v15  ;;  %v6622_v46 = vrot.slane %v6246_v16, %v15385_v15  ;;  %v10009_v49 = vrot.slane %v4246_v45, 9  ;;  %v4210_v1 = vrot.slane %v4196_v52, %v15365_v53 }
 0x2c3   :  { %v7011_v57 = vsel %vm6975_vm14, %v6630_v11, %v6626_v14  ;;  %v6043_v5 = vmax.f32 %v4237_v56, %v10006_v27  ;;  %v4211_v24 = vcombine.high %v4203_v36, %v4203_v36  ;;  %v9998_v20 = vrot.slane %v4203_v36, 9 }
 0x2c4   :  { %v7012_v17 = vsel %vm6977_vm15, %v6634_v62, %v7011_v57  ;;  %v6045_v44 = vmax.f32 %v4244_v26, %v10008_v33  ;;  %v4212_v34 = vcombine.high %v4210_v1, %v4210_v1  ;;  %v10000_v63 = vrot.slane %v4210_v1, 9 }
 0x2c5   :  { %v6044_v30 = vmax.f32 %v4245_v18, %v10007_v7  ;;  %v9999_v32 = vrot.slane %v4211_v24, 9  ;;  %v6035_v19 = vmax.f32 %v4203_v36, %v9998_v20  ;;  %v7013_v60 = vsel %vm6979_vm0, %v6638_v59, %v7012_v17 }
 0x2c6   :  { %v6046_v55 = vmax.f32 %v4246_v45, %v10009_v49  ;;  %v10001_v9 = vrot.slane %v4212_v34, 9  ;;  %v6037_v41 = vmax.f32 %v4210_v1, %v10000_v63  ;;  %v7010_v28 = vsel %vm6985_vm6, %v6618_v51, %v7009_v42  ;;  %v10586_v2 = vpop.f32.mrb[24].mxu0 }
 0x2c7   :  { %v6036_v13 = vmax.f32 %v4211_v24, %v9999_v32  ;;  %v6251_v22 = vmax.f32 %v6035_v19, %v6043_v5  ;;  %v16176_v4 = vsel %vm7109_vm7, 0.0, %v7010_v28  ;;  %v3552_v0 = vpop.f32.mrb[25].mxu0  ;;  %v7130_v16 = vsel %vm7109_vm7, %v6622_v46, 0.0 }
 0x2c8   :  { %v6038_v38 = vmax.f32 %v4212_v34, %v10001_v9  ;;  %v6253_v39 = vmax.f32 %v6037_v41, %v6045_v44  ;;  %v10587_v35 = vpop.f32.mrb[26].mxu0  ;;  %v7285_v29 = vrot.slane %v16176_v4, 2  ;;  %v7286_v50 = vrot.slane %v7130_v16, 2 }
 0x2c9   :  { %v6252_v61 = vmax.f32 %v6036_v13, %v6044_v30  ;;  %v6642_v23 = vrot.slane %v6251_v22, %v15385_v15  ;;  %v3555_v37 = vpop.f32.mrb[27].mxu0  ;;  %v3561_v56 = vadd.f32 %v15825_v6, %v10586_v2  ;;  %v3553_v54 = vadd.f32 %v15825_v6, %v3552_v0 }
 0x2ca   :  { %v6254_v10 = vmax.f32 %v6038_v38, %v6046_v55  ;;  %v6650_v43 = vrot.slane %v6253_v39, %v15385_v15  ;;  %v3564_v48 = vadd.f32 %v15825_v6, %v10587_v35  ;;  %v7186_v18 = vrot.slane %v16176_v4, 1 }
 0x2cb   :  { %v6646_v47 = vrot.slane %v6252_v61, %v15385_v15  ;;  %v7014_v42 = vsel %vm6981_vm4, %v6642_v23, %v7013_v60  ;;  %v7187_v52 = vrot.slane %v7130_v16, 1  ;;  %v3737_v58 = vmax.f32 %v3561_v56, 0.0 }
 0x2cc   :  { %v6654_v8 = vrot.slane %v6254_v10, %v15385_v15  ;;  %v7287_v27 = vsel %vm842_vm1, %v7285_v29, %v7286_v50  ;;  %v3735_v14 = vmax.f32 %v3553_v54, 0.0  ;;  %v3738_v11 = vmax.f32 %v3564_v48, 0.0 }
 0x2cd   :  { %v7015_v26 = vsel %vm6983_vm5, %v6646_v47, %v7014_v42  ;;  %v4281_v33 = vcombine.high %v3737_v58, %v3737_v58  ;;  %v4288_v51 = vrot.slane %v3737_v58, %v15365_v53  ;;  %v7188_v46 = vsel %vm484_vm2, %v7186_v18, %v7187_v52 }
 0x2ce   :  { %v7016_v40 = vsel %vm6985_vm6, %v6650_v43, %v7015_v26  ;;  %v7131_v25 = vsel %vm7109_vm7, %v6654_v8, 0.0  ;;  %v4247_v1 = vcombine.high %v3735_v14, %v3735_v14  ;;  %v4254_v57 = vrot.slane %v3735_v14, %v15365_v53 }
 0x2cf   :  { %v16194_v45 = vsel %vm7109_vm7, 0.0, %v7016_v40  ;;  %v7289_v7 = vrot.slane %v7131_v25, 2  ;;  %v7190_v36 = vrot.slane %v7131_v25, 1  ;;  %v4295_v49 = vrot.slane %v4281_v33, %v15365_v53 }
 0x2d0   :  { %v7288_v62 = vrot.slane %v16194_v45, 2  ;;  %v7189_v59 = vrot.slane %v16194_v45, 1  ;;  %v4296_v20 = vcombine.high %v4288_v51, %v4288_v51  ;;  %v10018_v17 = vrot.slane %v4288_v51, 9 }
 0x2d1   :  { %v4297_v63 = vcombine.high %v4295_v49, %v4295_v49  ;;  %v10020_v32 = vrot.slane %v4295_v49, 9  ;;  %v4298_v19 = vcombine.high %v3738_v11, %v3738_v11  ;;  %v4261_v55 = vrot.slane %v4247_v1, %v15365_v53 }
 0x2d2   :  { %v7290_v5 = vsel %vm842_vm1, %v7288_v62, %v7289_v7  ;;  %v7191_v24 = vsel %vm484_vm2, %v7189_v59, %v7190_v36  ;;  %v10019_v30 = vrot.slane %v4296_v20, 9  ;;  %v4262_v9 = vcombine.high %v4254_v57, %v4254_v57 }
 0x2d3   :  { %v11936_v44 = vpack.i.bf16 %v7290_v5, %v7287_v27  ;;  %v11931_v34 = vpack.i.bf16 %v7191_v24, %v7188_v46  ;;  %v10021_v60 = vrot.slane %v4297_v63, 9  ;;  %v3556_v41 = vadd.f32 %v15825_v6, %v3555_v37 }
 0x2d4   :  { %v6055_v28 = vmax.f32 %v4288_v51, %v10018_v17  ;;  %v10010_v2 = vrot.slane %v4254_v57, 9  ;;  %v4305_v13 = vrot.slane %v3738_v11, %v15365_v53  ;;  %v6056_v22 = vmax.f32 %v4296_v20, %v10019_v30 }
 0x2d5   :  { %11937 = vrot.lane.b32.xlu0 %v11936_v44, %s12181_s27  ;;  %11932 = vrot.lane.b32.xlu1 %v11931_v34, %s12180_s22  ;;  %v4263_v0 = vcombine.high %v4261_v55, %v4261_v55  ;;  %v10011_v38 = vrot.slane %v4262_v9, 9  ;;  %v6057_v39 = vmax.f32 %v4295_v49, %v10020_v32  ;;  %v10012_v16 = vrot.slane %v4261_v55, 9 }
 0x2d6   :  { %v6047_v35 = vmax.f32 %v4254_v57, %v10010_v2  ;;  %v4312_v61 = vrot.slane %v4298_v19, %v15365_v53  ;;  %v6058_v23 = vmax.f32 %v4297_v63, %v10021_v60  ;;  %v3736_v47 = vmax.f32 %v3556_v41, 0.0 }
 0x2d7   :  { %v10013_v10 = vrot.slane %v4263_v0, 9  ;;  %v6048_v29 = vmax.f32 %v4262_v9, %v10011_v38  ;;  %v6049_v42 = vmax.f32 %v4261_v55, %v10012_v16  ;;  %v4313_v56 = vcombine.high %v4305_v13, %v4305_v13 }
 0x2d8   :  { %v6255_v50 = vmax.f32 %v6047_v35, %v6055_v28  ;;  %v4314_v43 = vcombine.high %v4312_v61, %v4312_v61  ;;  %v10022_v54 = vrot.slane %v4305_v13, 9  ;;  %v10024_v48 = vrot.slane %v4312_v61, 9 }
 0x2d9   :  { %v6050_v6 = vmax.f32 %v4263_v0, %v10013_v10  ;;  %v6256_v37 = vmax.f32 %v6048_v29, %v6056_v22  ;;  %v6257_v8 = vmax.f32 %v6049_v42, %v6057_v39  ;;  %v4264_v58 = vcombine.high %v3736_v47, %v3736_v47 }
 0x2da   :  { %v6658_v18 = vrot.slane %v6255_v50, %v15385_v15  ;;  %v10023_v25 = vrot.slane %v4313_v56, 9  ;;  %v4271_v27 = vrot.slane %v3736_v47, %v15365_v53  ;;  %v10025_v33 = vrot.slane %v4314_v43, 9  ;;  %v18073_v47 = vld [vmem:[#allocation5_spill] sm:$0xff]  ;;  %v18074_v50 = vld [vmem:[#allocation6_spill] sm:$0xff] }
 0x2db   :  { %v6258_v26 = vmax.f32 %v6050_v6, %v6058_v23  ;;  %v6662_v52 = vrot.slane %v6256_v37, %v15385_v15  ;;  %v6666_v40 = vrot.slane %v6257_v8, %v15385_v15  ;;  %v4278_v11 = vrot.slane %v4264_v58, %v15365_v53  ;;  %v16239_v37 = vld [vmem:[%s17621_s2] ss:$0 sm:$0xff] }
 0x2dc   :  { %v6059_v59 = vmax.f32 %v4305_v13, %v10022_v54  ;;  %v4279_v36 = vcombine.high %v4271_v27, %v4271_v27  ;;  %v10014_v51 = vrot.slane %v4271_v27, 9  ;;  %v6061_v46 = vmax.f32 %v4312_v61, %v10024_v48 }
 0x2dd   :  { %v6670_v14 = vrot.slane %v6258_v26, %v15385_v15  ;;  %v7017_v7 = vsel %vm6975_vm14, %v6662_v52, %v6658_v18  ;;  %v4280_v49 = vcombine.high %v4278_v11, %v4278_v11  ;;  %v10016_v1 = vrot.slane %v4278_v11, 9 }
 0x2de   :  { %v7018_v62 = vsel %vm6977_vm15, %v6666_v40, %v7017_v7  ;;  %v6060_v5 = vmax.f32 %v4313_v56, %v10023_v25  ;;  %v10015_v24 = vrot.slane %v4279_v36, 9  ;;  %v6051_v20 = vmax.f32 %v4271_v27, %v10014_v51 }
 0x2df   :  { %v7019_v57 = vsel %vm6979_vm0, %v6670_v14, %v7018_v62  ;;  %v6062_v17 = vmax.f32 %v4314_v43, %v10025_v33  ;;  %v10017_v44 = vrot.slane %v4280_v49, 9  ;;  %v6053_v34 = vmax.f32 %v4278_v11, %v10016_v1 }
 0x2e0   :  { %v6052_v63 = vmax.f32 %v4279_v36, %v10015_v24  ;;  %v6259_v30 = vmax.f32 %v6051_v20, %v6059_v59  ;;  %vm7390_vm9 = vcmask 523264  }
 0x2e1   :  { %v6054_v32 = vmax.f32 %v4280_v49, %v10017_v44  ;;  %v6261_v19 = vmax.f32 %v6053_v34, %v6061_v46 }
 0x2e2   :  { %v6260_v60 = vmax.f32 %v6052_v63, %v6060_v5  ;;  %v6674_v55 = vrot.slane %v6259_v30, %v15385_v15 }
 0x2e3   :  { %v6262_v9 = vmax.f32 %v6054_v32, %v6062_v17  ;;  %v6682_v2 = vrot.slane %v6261_v19, %v15385_v15 }
 0x2e4   :  { %v6678_v41 = vrot.slane %v6260_v60, %v15385_v15  ;;  %v7020_v28 = vsel %vm6981_vm4, %v6674_v55, %v7019_v57 }
 0x2e5   :  { %v6686_v13 = vrot.slane %v6262_v9, %v15385_v15 }
 0x2e6   :  { %v7021_v22 = vsel %vm6983_vm5, %v6678_v41, %v7020_v28 }
 0x2e7   :  { %v7022_v0 = vsel %vm6985_vm6, %v6682_v2, %v7021_v22  ;;  %v7132_v38 = vsel %vm7109_vm7, %v6686_v13, 0.0 }
 0x2e8   :  { %v16228_v39 = vsel %vm7109_vm7, 0.0, %v7022_v0  ;;  %v7292_v35 = vrot.slane %v7132_v38, 2  ;;  %v7193_v23 = vrot.slane %v7132_v38, 1 }
 0x2e9   :  { %v7291_v16 = vrot.slane %v16228_v39, 2  ;;  %v7192_v61 = vrot.slane %v16228_v39, 1 }
 0x2eb   :  { %v7293_v10 = vsel %vm842_vm1, %v7291_v16, %v7292_v35  ;;  %v7194_v29 = vsel %vm484_vm2, %v7192_v61, %v7193_v23 }
 0x2ec   :  { %v11946_v42 = vpack.i.bf16 %v18073_v47, %v7293_v10  ;;  %v11941_v56 = vpack.i.bf16 %v18074_v50, %v7194_v29 }
 0x2ee   :  { %11947 = vrot.lane.b32.xlu0 %v11946_v42, %s12181_s27  ;;  %11942 = vrot.lane.b32.xlu1 %v11941_v56, %s12180_s22 }
 0x2f1   :  { %v10590_v6 = vpop.f32.mrb[28].mxu0 }
 0x2f2   :  { %v3577_v43 = vadd.f32 %v16239_v37, %v10590_v6  ;;  %v3568_v8 = vpop.f32.mrb[29].mxu0 }
 0x2f3   :  { %v3569_v54 = vadd.f32 %v16239_v37, %v3568_v8  ;;  %v10591_v48 = vpop.f32.mrb[30].mxu0 }
 0x2f4   :  { %v3741_v26 = vmax.f32 %v3577_v43, 0.0  ;;  %v3580_v18 = vadd.f32 %v16239_v37, %v10591_v48  ;;  %v3571_v52 = vpop.f32.mrb[31].mxu0 }
 0x2f5   :  { %v3739_v58 = vmax.f32 %v3569_v54, 0.0  ;;  %v3572_v40 = vadd.f32 %v16239_v37, %v3571_v52 }
 0x2f6   :  { %v4349_v25 = vcombine.high %v3741_v26, %v3741_v26  ;;  %v4356_v27 = vrot.slane %v3741_v26, %v15365_v53  ;;  %v3742_v14 = vmax.f32 %v3580_v18, 0.0 }
 0x2f7   :  { %v4315_v7 = vcombine.high %v3739_v58, %v3739_v58  ;;  %v4322_v33 = vrot.slane %v3739_v58, %v15365_v53  ;;  %v3740_v11 = vmax.f32 %v3572_v40, 0.0 }
 0x2f8   :  { %v4363_v62 = vrot.slane %v4349_v25, %v15365_v53  ;;  %v4364_v59 = vcombine.high %v4356_v27, %v4356_v27  ;;  %v10034_v36 = vrot.slane %v4356_v27, 9  ;;  %v4366_v51 = vcombine.high %v3742_v14, %v3742_v14 }
 0x2f9   :  { %v4329_v46 = vrot.slane %v4315_v7, %v15365_v53  ;;  %v4330_v49 = vcombine.high %v4322_v33, %v4322_v33  ;;  %v10026_v1 = vrot.slane %v4322_v33, 9  ;;  %v4373_v57 = vrot.slane %v3742_v14, %v15365_v53  ;;  %v10594_v5 = vpop.f32.mrb[32].mxu0 }
 0x2fa   :  { %v4365_v24 = vcombine.high %v4363_v62, %v4363_v62  ;;  %v10035_v20 = vrot.slane %v4364_v59, 9  ;;  %v10036_v17 = vrot.slane %v4363_v62, 9  ;;  %v6071_v44 = vmax.f32 %v4356_v27, %v10034_v36  ;;  %v3584_v34 = vpop.f32.mrb[33].mxu0 }
 0x2fb   :  { %v4331_v63 = vcombine.high %v4329_v46, %v4329_v46  ;;  %v10027_v30 = vrot.slane %v4330_v49, 9  ;;  %v10028_v32 = vrot.slane %v4329_v46, 9  ;;  %v6063_v19 = vmax.f32 %v4322_v33, %v10026_v1  ;;  %v10595_v60 = vpop.f32.mrb[34].mxu0 }
 0x2fc   :  { %v10037_v55 = vrot.slane %v4365_v24, 9  ;;  %v6072_v9 = vmax.f32 %v4364_v59, %v10035_v20  ;;  %v6073_v41 = vmax.f32 %v4363_v62, %v10036_v17  ;;  %v4380_v28 = vrot.slane %v4366_v51, %v15365_v53  ;;  %v3587_v2 = vpop.f32.mrb[35].mxu0 }
 0x2fd   :  { %v10029_v13 = vrot.slane %v4331_v63, 9  ;;  %v6064_v22 = vmax.f32 %v4330_v49, %v10027_v30  ;;  %v6065_v0 = vmax.f32 %v4329_v46, %v10028_v32  ;;  %v6263_v38 = vmax.f32 %v6063_v19, %v6071_v44 }
 0x2fe   :  { %v6074_v16 = vmax.f32 %v4365_v24, %v10037_v55  ;;  %v4381_v35 = vcombine.high %v4373_v57, %v4373_v57  ;;  %v4382_v61 = vcombine.high %v4380_v28, %v4380_v28  ;;  %v10038_v23 = vrot.slane %v4373_v57, 9 }
 0x2ff   :  { %v6066_v10 = vmax.f32 %v4331_v63, %v10029_v13  ;;  %v6264_v29 = vmax.f32 %v6064_v22, %v6072_v9  ;;  %v6265_v42 = vmax.f32 %v6065_v0, %v6073_v41  ;;  %v6690_v56 = vrot.slane %v6263_v38, %v15385_v15 }
 0x300   :  { %v10039_v6 = vrot.slane %v4381_v35, 9  ;;  %v10040_v43 = vrot.slane %v4380_v28, 9  ;;  %v4332_v26 = vcombine.high %v3740_v11, %v3740_v11  ;;  %v10041_v18 = vrot.slane %v4382_v61, 9 }
 0x301   :  { %v6266_v8 = vmax.f32 %v6066_v10, %v6074_v16  ;;  %v6694_v54 = vrot.slane %v6264_v29, %v15385_v15  ;;  %v6698_v48 = vrot.slane %v6265_v42, %v15385_v15  ;;  %v16256_v52 = vmax.f32 %v4373_v57, %v10038_v23 }
 0x302   :  { %v4339_v58 = vrot.slane %v3740_v11, %v15365_v53  ;;  %v16260_v25 = vmax.f32 %v4381_v35, %v10039_v6  ;;  %v4346_v27 = vrot.slane %v4332_v26, %v15365_v53  ;;  %v3593_v14 = vadd.f32 %v16239_v37, %v10594_v5 }
 0x303   :  { %v7023_v40 = vsel %vm6975_vm14, %v6694_v54, %v6690_v56  ;;  %v3585_v59 = vadd.f32 %v16239_v37, %v3584_v34  ;;  %v16268_v36 = vmax.f32 %v4380_v28, %v10040_v43  ;;  %v16270_v49 = vmax.f32 %v4382_v61, %v10041_v18 }
 0x304   :  { %v16265_v7 = vsel %vm6977_vm15, %v6698_v48, %v7023_v40  ;;  %v4347_v33 = vcombine.high %v4339_v58, %v4339_v58  ;;  %v10030_v62 = vrot.slane %v4339_v58, 9  ;;  %v4348_v51 = vcombine.high %v4346_v27, %v4346_v27 }
 0x305   :  { %v10032_v46 = vrot.slane %v4346_v27, 9  ;;  %v3745_v11 = vmax.f32 %v3593_v14, 0.0  ;;  %v3743_v24 = vmax.f32 %v3585_v59, 0.0  ;;  %v3596_v41 = vadd.f32 %v16239_v37, %v10595_v60 }
 0x306   :  { %v10031_v1 = vrot.slane %v4347_v33, 9  ;;  %v16272_v57 = vmax.f32 %v4339_v58, %v10030_v62  ;;  %v10033_v20 = vrot.slane %v4348_v51, 9  ;;  %v3588_v0 = vadd.f32 %v16239_v37, %v3587_v2 }
 0x307   :  { %v16274_v5 = vmax.f32 %v4346_v27, %v10032_v46  ;;  %v4417_v17 = vcombine.high %v3745_v11, %v3745_v11  ;;  %v4424_v44 = vrot.slane %v3745_v11, %v15365_v53  ;;  %v4383_v30 = vcombine.high %v3743_v24, %v3743_v24 }
 0x308   :  { %v16277_v63 = vmax.f32 %v4347_v33, %v10031_v1  ;;  %v6267_v34 = vmax.f32 %v16272_v57, %v16256_v52  ;;  %v4390_v32 = vrot.slane %v3743_v24, %v15365_v53  ;;  %v16290_v38 = vmax.f32 %v4348_v51, %v10033_v20 }
 0x309   :  { %v6269_v19 = vmax.f32 %v16274_v5, %v16268_v36  ;;  %v4431_v55 = vrot.slane %v4417_v17, %v15365_v53  ;;  %v4432_v9 = vcombine.high %v4424_v44, %v4424_v44  ;;  %v10050_v13 = vrot.slane %v4424_v44, 9 }
 0x30a   :  { %v6268_v28 = vmax.f32 %v16277_v63, %v16260_v25  ;;  %v4397_v22 = vrot.slane %v4383_v30, %v15365_v53  ;;  %v16293_v23 = vrot.slane %v6266_v8, %v15385_v15  ;;  %v4398_v29 = vcombine.high %v4390_v32, %v4390_v32 }
 0x30b   :  { %v4433_v16 = vcombine.high %v4431_v55, %v4431_v55  ;;  %v10051_v35 = vrot.slane %v4432_v9, 9  ;;  %v10052_v61 = vrot.slane %v4431_v55, 9  ;;  %v6087_v10 = vmax.f32 %v4424_v44, %v10050_v13 }
 0x30c   :  { %v4399_v42 = vcombine.high %v4397_v22, %v4397_v22  ;;  %v10042_v43 = vrot.slane %v4390_v32, 9  ;;  %v10043_v54 = vrot.slane %v4398_v29, 9  ;;  %v10044_v48 = vrot.slane %v4397_v22, 9 }
 0x30d   :  { %v10053_v60 = vrot.slane %v4433_v16, 9  ;;  %v6088_v56 = vmax.f32 %v4432_v9, %v10051_v35  ;;  %v6089_v6 = vmax.f32 %v4431_v55, %v10052_v61  ;;  %v3746_v18 = vmax.f32 %v3596_v41, 0.0 }
 0x30e   :  { %v10045_v26 = vrot.slane %v4399_v42, 9  ;;  %v6079_v58 = vmax.f32 %v4390_v32, %v10042_v43  ;;  %v3744_v40 = vmax.f32 %v3588_v0, 0.0  ;;  %v6270_v27 = vmax.f32 %v16290_v38, %v16270_v49 }
 0x30f   :  { %v6090_v2 = vmax.f32 %v4433_v16, %v10053_v60  ;;  %v6080_v14 = vmax.f32 %v4398_v29, %v10043_v54  ;;  %v6081_v8 = vmax.f32 %v4397_v22, %v10044_v48  ;;  %v4434_v62 = vcombine.high %v3746_v18, %v3746_v18 }
 0x310   :  { %v6082_v33 = vmax.f32 %v4399_v42, %v10045_v26  ;;  %v6271_v59 = vmax.f32 %v6079_v58, %v6087_v10  ;;  %v4441_v51 = vrot.slane %v3746_v18, %v15365_v53  ;;  %v4400_v46 = vcombine.high %v3744_v40, %v3744_v40 }
 0x311   :  { %v4407_v11 = vrot.slane %v3744_v40, %v15365_v53  ;;  %v10598_v1 = vpop.f32.mrb[36].mxu0  ;;  %v6272_v24 = vmax.f32 %v6080_v14, %v6088_v56  ;;  %v6273_v20 = vmax.f32 %v6081_v8, %v6089_v6  ;;  %v4448_v44 = vrot.slane %v4434_v62, %v15365_v53 }
 0x312   :  { %v6274_v17 = vmax.f32 %v6082_v33, %v6090_v2  ;;  %v3600_v30 = vpop.f32.mrb[37].mxu0  ;;  %v6722_v32 = vrot.slane %v6271_v59, %v15385_v15  ;;  %v4449_v49 = vcombine.high %v4441_v51, %v4441_v51  ;;  %v10054_v55 = vrot.slane %v4441_v51, 9 }
 0x313   :  { %v4414_v9 = vrot.slane %v4400_v46, %v15365_v53  ;;  %v10599_v41 = vpop.f32.mrb[38].mxu0  ;;  %v6726_v13 = vrot.slane %v6272_v24, %v15385_v15  ;;  %v6730_v22 = vrot.slane %v6273_v20, %v15385_v15  ;;  %v4450_v38 = vcombine.high %v4448_v44, %v4448_v44 }
 0x314   :  { %v6734_v0 = vrot.slane %v6274_v17, %v15385_v15  ;;  %v3603_v16 = vpop.f32.mrb[39].mxu0  ;;  %v10055_v35 = vrot.slane %v4449_v49, 9  ;;  %v10056_v61 = vrot.slane %v4448_v44, 9  ;;  %v6091_v10 = vmax.f32 %v4441_v51, %v10054_v55 }
 0x315   :  { %v4415_v29 = vcombine.high %v4407_v11, %v4407_v11  ;;  %v7029_v42 = vsel %vm6975_vm14, %v6726_v13, %v6722_v32  ;;  %v10057_v60 = vrot.slane %v4450_v38, 9  ;;  %v4416_v56 = vcombine.high %v4414_v9, %v4414_v9 }
 0x316   :  { %v10046_v6 = vrot.slane %v4407_v11, 9  ;;  %v7030_v43 = vsel %vm6977_vm15, %v6730_v22, %v7029_v42  ;;  %v6092_v54 = vmax.f32 %v4449_v49, %v10055_v35  ;;  %v6093_v48 = vmax.f32 %v4448_v44, %v10056_v61 }
 0x317   :  { %v10047_v26 = vrot.slane %v4415_v29, 9  ;;  %v6094_v18 = vmax.f32 %v4450_v38, %v10057_v60  ;;  %v10048_v2 = vrot.slane %v4414_v9, 9  ;;  %v10049_v58 = vrot.slane %v4416_v56, 9 }
 0x318   :  { %v6083_v40 = vmax.f32 %v4407_v11, %v10046_v6  ;;  %v6706_v14 = vrot.slane %v6267_v34, %v15385_v15  ;;  %v6714_v8 = vrot.slane %v6269_v19, %v15385_v15  ;;  %v7031_v62 = vsel %vm6979_vm0, %v6734_v0, %v7030_v43 }
 0x319   :  { %v6084_v33 = vmax.f32 %v4415_v29, %v10047_v26  ;;  %v6085_v59 = vmax.f32 %v4414_v9, %v10048_v2  ;;  %v6086_v51 = vmax.f32 %v4416_v56, %v10049_v58  ;;  %v6718_v24 = vrot.slane %v6270_v27, %v15385_v15 }
 0x31a   :  { %v6275_v46 = vmax.f32 %v6083_v40, %v6091_v10  ;;  %v6710_v11 = vrot.slane %v6268_v28, %v15385_v15  ;;  %v7025_v57 = vsel %vm6979_vm0, %v16293_v23, %v16265_v7  ;;  %v3609_v36 = vadd.f32 %v16239_v37, %v10598_v1 }
 0x31b   :  { %v6276_v52 = vmax.f32 %v6084_v33, %v6092_v54  ;;  %v6277_v5 = vmax.f32 %v6085_v59, %v6093_v48  ;;  %v6278_v34 = vmax.f32 %v6086_v51, %v6094_v18  ;;  %v7026_v20 = vsel %vm6981_vm4, %v6706_v14, %v7025_v57 }
 0x31c   :  { %v6738_v19 = vrot.slane %v6275_v46, %v15385_v15  ;;  %v7027_v17 = vsel %vm6983_vm5, %v6710_v11, %v7026_v20  ;;  %v16330_v25 = vsel %vm7109_vm7, %v6718_v24, 0.0  ;;  %v3749_v63 = vmax.f32 %v3609_v36, 0.0 }
 0x31d   :  { %v6742_v27 = vrot.slane %v6276_v52, %v15385_v15  ;;  %v7028_v7 = vsel %vm6985_vm6, %v6714_v8, %v7027_v17  ;;  %v16337_v1 = vrot.slane %v6277_v5, %v15385_v15  ;;  %v7295_v9 = vrot.slane %v16330_v25, 2 }
 0x31e   :  { %v7032_v28 = vsel %vm6981_vm4, %v6738_v19, %v7031_v62  ;;  %v16343_v32 = vsel %vm7109_vm7, 0.0, %v7028_v7  ;;  %v4485_v13 = vcombine.high %v3749_v63, %v3749_v63  ;;  %v4492_v22 = vrot.slane %v3749_v63, %v15365_v53 }
 0x31f   :  { %v16334_v23 = vpop.f32.mrb[40].mxu0  ;;  %v16340_v44 = vsel %vm6983_vm5, %v6742_v27, %v7032_v28  ;;  %v7294_v55 = vrot.slane %v16343_v32, 2  ;;  %v16353_v38 = vrot.slane %v6278_v34, %v15385_v15  ;;  %v7196_v35 = vrot.slane %v16330_v25, 1 }
 0x320   :  { %v16345_v49 = vpop.f32.mrb[41].mxu0  ;;  %v3601_v61 = vadd.f32 %v16239_v37, %v3600_v30  ;;  %v3612_v10 = vadd.f32 %v16239_v37, %v10599_v41  ;;  %v4499_v60 = vrot.slane %v4485_v13, %v15365_v53  ;;  %v4500_v56 = vcombine.high %v4492_v22, %v4492_v22 }
 0x321   :  { %v16350_v0 = vpop.f32.mrb[42].mxu0  ;;  %v7296_v42 = vsel %vm842_vm1, %v7294_v55, %v7295_v9  ;;  %v10066_v6 = vrot.slane %v4492_v22, 9  ;;  %v7195_v43 = vrot.slane %v16343_v32, 1  ;;  %v3604_v26 = vadd.f32 %v16239_v37, %v3603_v16 }
 0x322   :  { %v16358_v29 = vpop.f32.mrb[43].mxu0  ;;  %7337 = vrot.lane.b32.xlu0 %v7296_v42, %s12181_s27  ;;  %v3747_v54 = vmax.f32 %v3601_v61, 0.0  ;;  %v3750_v48 = vmax.f32 %v3612_v10, 0.0  ;;  %v4501_v18 = vcombine.high %v4499_v60, %v4499_v60  ;;  %v10067_v30 = vrot.slane %v4500_v56, 9 }
 0x323   :  { %v10068_v2 = vrot.slane %v4499_v60, 9  ;;  %v6103_v41 = vmax.f32 %v4492_v22, %v10066_v6  ;;  %v3748_v51 = vmax.f32 %v3604_v26, 0.0  ;;  %v3628_v25 = vadd.f32 %v16239_v37, %v16350_v0 }
 0x324   :  { %v4451_v58 = vcombine.high %v3747_v54, %v3747_v54  ;;  %v4458_v40 = vrot.slane %v3747_v54, %v15365_v53  ;;  %v4502_v14 = vcombine.high %v3750_v48, %v3750_v48  ;;  %v4509_v8 = vrot.slane %v3750_v48, %v15365_v53 }
 0x325   :  { %v10069_v33 = vrot.slane %v4501_v18, 9  ;;  %v6104_v62 = vmax.f32 %v4500_v56, %v10067_v30  ;;  %v6105_v59 = vmax.f32 %v4499_v60, %v10068_v2  ;;  %v4468_v5 = vcombine.high %v3748_v51, %v3748_v51 }
 0x326   :  { %v4465_v46 = vrot.slane %v4451_v58, %v15365_v53  ;;  %v4466_v24 = vcombine.high %v4458_v40, %v4458_v40  ;;  %v10058_v11 = vrot.slane %v4458_v40, 9  ;;  %v4516_v16 = vrot.slane %v4502_v14, %v15365_v53 }
 0x327   :  { %v6106_v52 = vmax.f32 %v4501_v18, %v10069_v33  ;;  %v4517_v57 = vcombine.high %v4509_v8, %v4509_v8  ;;  %v10070_v36 = vrot.slane %v4509_v8, 9  ;;  %v4475_v60 = vrot.slane %v3748_v51, %v15365_v53 }
 0x328   :  { %v4467_v34 = vcombine.high %v4465_v46, %v4465_v46  ;;  %v10059_v19 = vrot.slane %v4466_v24, 9  ;;  %v10060_v20 = vrot.slane %v4465_v46, 9  ;;  %v6095_v27 = vmax.f32 %v4458_v40, %v10058_v11 }
 0x329   :  { %v4518_v17 = vcombine.high %v4516_v16, %v4516_v16  ;;  %v10071_v63 = vrot.slane %v4517_v57, 9  ;;  %v10072_v28 = vrot.slane %v4516_v16, 9  ;;  %v6107_v7 = vmax.f32 %v4509_v8, %v10070_v36 }
 0x32a   :  { %v10061_v55 = vrot.slane %v4467_v34, 9  ;;  %v6096_v9 = vmax.f32 %v4466_v24, %v10059_v19  ;;  %v6097_v13 = vmax.f32 %v4465_v46, %v10060_v20  ;;  %v6279_v22 = vmax.f32 %v6095_v27, %v6103_v41 }
 0x32b   :  { %v10073_v61 = vrot.slane %v4518_v17, 9  ;;  %v6108_v10 = vmax.f32 %v4517_v57, %v10071_v63  ;;  %v6109_v42 = vmax.f32 %v4516_v16, %v10072_v28  ;;  %v4482_v18 = vrot.slane %v4468_v5, %v15365_v53 }
 0x32c   :  { %v6098_v56 = vmax.f32 %v4467_v34, %v10061_v55  ;;  %v6280_v6 = vmax.f32 %v6096_v9, %v6104_v62  ;;  %v6281_v54 = vmax.f32 %v6097_v13, %v6105_v59  ;;  %v6754_v48 = vrot.slane %v6279_v22, %v15385_v15 }
 0x32d   :  { %v6110_v26 = vmax.f32 %v4518_v17, %v10073_v61  ;;  %v4483_v30 = vcombine.high %v4475_v60, %v4475_v60  ;;  %v10062_v2 = vrot.slane %v4475_v60, 9  ;;  %v7034_v14 = vsel %vm6985_vm6, %v16337_v1, %v16340_v44 }
 0x32e   :  { %v6282_v58 = vmax.f32 %v6098_v56, %v6106_v52  ;;  %v6758_v40 = vrot.slane %v6280_v6, %v15385_v15  ;;  %v6762_v41 = vrot.slane %v6281_v54, %v15385_v15  ;;  %v4484_v8 = vcombine.high %v4482_v18, %v4482_v18 }
 0x32f   :  { %v10063_v33 = vrot.slane %v4483_v30, 9  ;;  %v10064_v62 = vrot.slane %v4482_v18, 9  ;;  %v6099_v59 = vmax.f32 %v4475_v60, %v10062_v2  ;;  %v16380_v24 = vsel %vm7109_vm7, 0.0, %v7034_v14 }
 0x330   :  { %v6766_v51 = vrot.slane %v6282_v58, %v15385_v15  ;;  %v7035_v46 = vsel %vm6975_vm14, %v6758_v40, %v6754_v48  ;;  %v16384_v11 = vsel %vm7109_vm7, %v16353_v38, 0.0  ;;  %v10065_v52 = vrot.slane %v4484_v8, 9 }
 0x331   :  { %v7036_v16 = vsel %vm6977_vm15, %v6762_v41, %v7035_v46  ;;  %v6100_v57 = vmax.f32 %v4483_v30, %v10063_v33  ;;  %v6101_v1 = vmax.f32 %v4482_v18, %v10064_v62  ;;  %v6283_v44 = vmax.f32 %v6099_v59, %v6107_v7 }
 0x332   :  { %v7037_v36 = vsel %vm6979_vm0, %v6766_v51, %v7036_v16  ;;  %v7197_v5 = vsel %vm484_vm2, %v7195_v43, %v7196_v35  ;;  %v7198_v34 = vrot.slane %v16380_v24, 1  ;;  %v6102_v19 = vmax.f32 %v4484_v8, %v10065_v52 }
 0x333   :  { %v6284_v20 = vmax.f32 %v6100_v57, %v6108_v10  ;;  %v6285_v38 = vmax.f32 %v6101_v1, %v6109_v42  ;;  %v7199_v27 = vrot.slane %v16384_v11, 1  ;;  %v6770_v17 = vrot.slane %v6283_v44, %v15385_v15 }
 0x334   :  { %v3625_v63 = vadd.f32 %v16239_v37, %v16334_v23  ;;  %v3617_v28 = vadd.f32 %v16239_v37, %v16345_v49  ;;  %v6286_v7 = vmax.f32 %v6102_v19, %v6110_v26  ;;  %v3754_v49 = vmax.f32 %v3628_v25, 0.0 }
 0x335   :  { %v6774_v35 = vrot.slane %v6284_v20, %v15385_v15  ;;  %v6778_v43 = vrot.slane %v6285_v38, %v15385_v15  ;;  %v7200_v55 = vsel %vm484_vm2, %v7198_v34, %v7199_v27  ;;  %v7038_v9 = vsel %vm6981_vm4, %v6770_v17, %v7037_v36 }
 0x336   :  { %v11951_v13 = vpack.i.bf16 %v7200_v55, %v7197_v5  ;;  %v3753_v22 = vmax.f32 %v3625_v63, 0.0  ;;  %v3751_v61 = vmax.f32 %v3617_v28, 0.0  ;;  %v6782_v23 = vrot.slane %v6286_v7, %v15385_v15 }
 0x337   :  { %v7039_v10 = vsel %vm6983_vm5, %v6774_v35, %v7038_v9  ;;  %v3620_v0 = vadd.f32 %v16239_v37, %v16358_v29  ;;  %v4570_v48 = vcombine.high %v3754_v49, %v3754_v49  ;;  %v4577_v26 = vrot.slane %v3754_v49, %v15365_v53 }
 0x338   :  { %11952 = vrot.lane.b32.xlu1 %v11951_v13, %s12180_s22  ;;  %v4553_v42 = vcombine.high %v3753_v22, %v3753_v22  ;;  %v4560_v60 = vrot.slane %v3753_v22, %v15365_v53  ;;  %v4519_v56 = vcombine.high %v3751_v61, %v3751_v61  ;;  %v4526_v6 = vrot.slane %v3751_v61, %v15365_v53 }
 0x339   :  { %v3752_v18 = vmax.f32 %v3620_v0, 0.0  ;;  %v7040_v30 = vsel %vm6985_vm6, %v6778_v43, %v7039_v10  ;;  %v4584_v62 = vrot.slane %v4570_v48, %v15365_v53  ;;  %v4585_v59 = vcombine.high %v4577_v26, %v4577_v26 }
 0x33a   :  { %v16413_v54 = vpop.f32.mrb[44].mxu0  ;;  %v4567_v29 = vrot.slane %v4553_v42, %v15365_v53  ;;  %v4568_v58 = vcombine.high %v4560_v60, %v4560_v60  ;;  %v10082_v40 = vrot.slane %v4560_v60, 9  ;;  %v4533_v41 = vrot.slane %v4519_v56, %v15365_v53 }
 0x33b   :  { %v16417_v2 = vpop.f32.mrb[45].mxu0  ;;  %v4534_v8 = vcombine.high %v4526_v6, %v4526_v6  ;;  %v10074_v33 = vrot.slane %v4526_v6, 9  ;;  %v4586_v38 = vcombine.high %v4584_v62, %v4584_v62  ;;  %v10086_v7 = vrot.slane %v4577_v26, 9 }
 0x33c   :  { %v16421_v14 = vpop.f32.mrb[46].mxu0  ;;  %v4569_v46 = vcombine.high %v4567_v29, %v4567_v29  ;;  %v10083_v16 = vrot.slane %v4568_v58, 9  ;;  %v10084_v52 = vrot.slane %v4567_v29, 9  ;;  %v6119_v57 = vmax.f32 %v4560_v60, %v10082_v40 }
 0x33d   :  { %v16424_v51 = vpop.f32.mrb[47].mxu0  ;;  %v4535_v1 = vcombine.high %v4533_v41, %v4533_v41  ;;  %v10075_v44 = vrot.slane %v4534_v8, 9  ;;  %v10076_v36 = vrot.slane %v4533_v41, 9  ;;  %v6111_v5 = vmax.f32 %v4526_v6, %v10074_v33 }
 0x33e   :  { %v10085_v34 = vrot.slane %v4569_v46, 9  ;;  %v6120_v19 = vmax.f32 %v4568_v58, %v10083_v16  ;;  %v6121_v20 = vmax.f32 %v4567_v29, %v10084_v52  ;;  %v10087_v35 = vrot.slane %v4585_v59, 9 }
 0x33f   :  { %v10077_v27 = vrot.slane %v4535_v1, 9  ;;  %v6112_v17 = vmax.f32 %v4534_v8, %v10075_v44  ;;  %v6113_v63 = vmax.f32 %v4533_v41, %v10076_v36  ;;  %v6287_v28 = vmax.f32 %v6111_v5, %v6119_v57 }
 0x340   :  { %v6122_v25 = vmax.f32 %v4569_v46, %v10085_v34  ;;  %v10088_v43 = vrot.slane %v4584_v62, 9  ;;  %v10089_v61 = vrot.slane %v4586_v38, 9  ;;  %v6123_v10 = vmax.f32 %v4577_v26, %v10086_v7 }
 0x341   :  { %v6114_v55 = vmax.f32 %v4535_v1, %v10077_v27  ;;  %v6288_v9 = vmax.f32 %v6112_v17, %v6120_v19  ;;  %v6289_v13 = vmax.f32 %v6113_v63, %v6121_v20  ;;  %v6786_v22 = vrot.slane %v6287_v28, %v15385_v15 }
 0x342   :  { %v6124_v49 = vmax.f32 %v4585_v59, %v10087_v35  ;;  %v6125_v0 = vmax.f32 %v4584_v62, %v10088_v43  ;;  %v4536_v6 = vcombine.high %v3752_v18, %v3752_v18  ;;  %v6126_v48 = vmax.f32 %v4586_v38, %v10089_v61 }
 0x343   :  { %v6290_v42 = vmax.f32 %v6114_v55, %v6122_v25  ;;  %v6790_v60 = vrot.slane %v6288_v9, %v15385_v15  ;;  %v6794_v56 = vrot.slane %v6289_v13, %v15385_v15  ;;  %v4543_v29 = vrot.slane %v3752_v18, %v15365_v53 }
 0x344   :  { %v16431_v58 = vsel %vm7109_vm7, 0.0, %v7040_v30  ;;  %v16434_v40 = vsel %vm7109_vm7, %v6782_v23, 0.0  ;;  %v4550_v8 = vrot.slane %v4536_v6, %v15365_v53  ;;  %v7297_v33 = vrot.slane %v16380_v24, 2 }
 0x345   :  { %v6798_v41 = vrot.slane %v6290_v42, %v15385_v15  ;;  %v7041_v26 = vsel %vm6975_vm14, %v6790_v60, %v6786_v22  ;;  %v4551_v59 = vcombine.high %v4543_v29, %v4543_v29  ;;  %v10078_v46 = vrot.slane %v4543_v29, 9 }
 0x346   :  { %v7042_v62 = vsel %vm6977_vm15, %v6794_v56, %v7041_v26  ;;  %v7298_v18 = vrot.slane %v16384_v11, 2  ;;  %v4552_v30 = vcombine.high %v4550_v8, %v4550_v8  ;;  %v10080_v52 = vrot.slane %v4550_v8, 9 }
 0x347   :  { %v7043_v23 = vsel %vm6979_vm0, %v6798_v41, %v7042_v62  ;;  %v7300_v57 = vrot.slane %v16431_v58, 2  ;;  %v10079_v44 = vrot.slane %v4551_v59, 9  ;;  %v6115_v36 = vmax.f32 %v4543_v29, %v10078_v46 }
 0x348   :  { %v16442_v16 = vpop.f32.mrb[48].mxu0  ;;  %v7299_v5 = vsel %vm842_vm1, %v7297_v33, %v7298_v18  ;;  %v7301_v34 = vrot.slane %v16434_v40, 2  ;;  %v10081_v20 = vrot.slane %v4552_v30, 9  ;;  %v6117_v11 = vmax.f32 %v4550_v8, %v10080_v52 }
 0x349   :  { %v16446_v1 = vpop.f32.mrb[49].mxu0  ;;  %v3641_v38 = vadd.f32 %v16239_v37, %v16413_v54  ;;  %v3633_v27 = vadd.f32 %v16239_v37, %v16417_v2  ;;  %v6116_v63 = vmax.f32 %v4551_v59, %v10079_v44  ;;  %v6291_v28 = vmax.f32 %v6115_v36, %v6123_v10 }
 0x34a   :  { %v16450_v19 = vpop.f32.mrb[50].mxu0  ;;  %v7302_v25 = vsel %vm842_vm1, %v7300_v57, %v7301_v34  ;;  %v3644_v7 = vadd.f32 %v16239_v37, %v16421_v14  ;;  %v6118_v35 = vmax.f32 %v4552_v30, %v10081_v20  ;;  %v6293_v43 = vmax.f32 %v6117_v11, %v6125_v0 }
 0x34b   :  { %v16456_v17 = vpop.f32.mrb[51].mxu0  ;;  %v11956_v55 = vpack.i.bf16 %v7302_v25, %v7299_v5  ;;  %v3757_v9 = vmax.f32 %v3641_v38, 0.0  ;;  %v6292_v13 = vmax.f32 %v6116_v63, %v6124_v49  ;;  %v6802_v22 = vrot.slane %v6291_v28, %v15385_v15 }
 0x34c   :  { %v3755_v54 = vmax.f32 %v3633_v27, 0.0  ;;  %v3758_v61 = vmax.f32 %v3644_v7, 0.0  ;;  %v6294_v42 = vmax.f32 %v6118_v35, %v6126_v48  ;;  %v6810_v2 = vrot.slane %v6293_v43, %v15385_v15 }
 0x34d   :  { %11957 = vrot.lane.b32.xlu0 %v11956_v55, %s12181_s27  ;;  %v4621_v10 = vcombine.high %v3757_v9, %v3757_v9  ;;  %v4628_v60 = vrot.slane %v3757_v9, %v15365_v53  ;;  %v6806_v56 = vrot.slane %v6292_v13, %v15385_v15  ;;  %v7044_v14 = vsel %vm6981_vm4, %v6802_v22, %v7043_v23 }
 0x34e   :  { %v4587_v0 = vcombine.high %v3755_v54, %v3755_v54  ;;  %v4594_v6 = vrot.slane %v3755_v54, %v15365_v53  ;;  %v6814_v49 = vrot.slane %v6294_v42, %v15385_v15  ;;  %v4638_v20 = vcombine.high %v3758_v61, %v3758_v61 }
 0x34f   :  { %v4635_v29 = vrot.slane %v4621_v10, %v15365_v53  ;;  %v4636_v41 = vcombine.high %v4628_v60, %v4628_v60  ;;  %v10098_v48 = vrot.slane %v4628_v60, 9  ;;  %v7045_v26 = vsel %vm6983_vm5, %v6806_v56, %v7044_v14 }
 0x350   :  { %v4601_v8 = vrot.slane %v4587_v0, %v15365_v53  ;;  %v4602_v33 = vcombine.high %v4594_v6, %v4594_v6  ;;  %v10090_v62 = vrot.slane %v4594_v6, 9  ;;  %v4645_v25 = vrot.slane %v3758_v61, %v15365_v53 }
 0x351   :  { %v4637_v59 = vcombine.high %v4635_v29, %v4635_v29  ;;  %v10099_v46 = vrot.slane %v4636_v41, 9  ;;  %v10100_v18 = vrot.slane %v4635_v29, 9  ;;  %v6135_v30 = vmax.f32 %v4628_v60, %v10098_v48 }
 0x352   :  { %v4603_v52 = vcombine.high %v4601_v8, %v4601_v8  ;;  %v10091_v23 = vrot.slane %v4602_v33, 9  ;;  %v10092_v57 = vrot.slane %v4601_v8, 9  ;;  %v6127_v44 = vmax.f32 %v4594_v6, %v10090_v62 }
 0x353   :  { %v10101_v36 = vrot.slane %v4637_v59, 9  ;;  %v6136_v5 = vmax.f32 %v4636_v41, %v10099_v46  ;;  %v6137_v34 = vmax.f32 %v4635_v29, %v10100_v18  ;;  %v4652_v7 = vrot.slane %v4638_v20, %v15365_v53 }
 0x354   :  { %v10093_v11 = vrot.slane %v4603_v52, 9  ;;  %v6128_v38 = vmax.f32 %v4602_v33, %v10091_v23  ;;  %v6129_v27 = vmax.f32 %v4601_v8, %v10092_v57  ;;  %v6295_v63 = vmax.f32 %v6127_v44, %v6135_v30 }
 0x355   :  { %v6138_v28 = vmax.f32 %v4637_v59, %v10101_v36  ;;  %v3636_v35 = vadd.f32 %v16239_v37, %v16424_v51  ;;  %v4653_v22 = vcombine.high %v4645_v25, %v4645_v25  ;;  %v4654_v54 = vcombine.high %v4652_v7, %v4652_v7 }
 0x356   :  { %v6130_v43 = vmax.f32 %v4603_v52, %v10093_v11  ;;  %v6296_v55 = vmax.f32 %v6128_v38, %v6136_v5  ;;  %v6297_v9 = vmax.f32 %v6129_v27, %v6137_v34  ;;  %v6818_v13 = vrot.slane %v6295_v63, %v15385_v15 }
 0x357   :  { %v10102_v42 = vrot.slane %v4645_v25, 9  ;;  %v10104_v10 = vrot.slane %v4652_v7, 9  ;;  %v3756_v61 = vmax.f32 %v3636_v35, 0.0  ;;  %v10103_v0 = vrot.slane %v4653_v22, 9 }
 0x358   :  { %v6298_v60 = vmax.f32 %v6130_v43, %v6138_v28  ;;  %v6822_v56 = vrot.slane %v6296_v55, %v15385_v15  ;;  %v6826_v14 = vrot.slane %v6297_v9, %v15385_v15  ;;  %v10105_v6 = vrot.slane %v4654_v54, 9 }
 0x359   :  { %v6139_v29 = vmax.f32 %v4645_v25, %v10102_v42  ;;  %v16479_v41 = vmax.f32 %v4652_v7, %v10104_v10  ;;  %v4604_v8 = vcombine.high %v3756_v61, %v3756_v61  ;;  %v4611_v33 = vrot.slane %v3756_v61, %v15365_v53 }
 0x35a   :  { %v6830_v51 = vrot.slane %v6298_v60, %v15385_v15  ;;  %v7047_v48 = vsel %vm6975_vm14, %v6822_v56, %v6818_v13  ;;  %v6140_v59 = vmax.f32 %v4653_v22, %v10103_v0  ;;  %v16485_v46 = vmax.f32 %v4654_v54, %v10105_v6 }
 0x35b   :  { %v7048_v62 = vsel %vm6977_vm15, %v6826_v14, %v7047_v48  ;;  %v7046_v18 = vsel %vm6985_vm6, %v6810_v2, %v7045_v26  ;;  %v4618_v52 = vrot.slane %v4604_v8, %v15365_v53  ;;  %v4619_v23 = vcombine.high %v4611_v33, %v4611_v33 }
 0x35c   :  { %v10094_v57 = vrot.slane %v4611_v33, 9  ;;  %v7049_v44 = vsel %vm6979_vm0, %v6830_v51, %v7048_v62  ;;  %v16495_v5 = vsel %vm7109_vm7, 0.0, %v7046_v18  ;;  %v16498_v34 = vsel %vm7109_vm7, %v6814_v49, 0.0 }
 0x35d   :  { %v16488_v30 = vpop.f32.mrb[52].mxu0  ;;  %v7201_v20 = vrot.slane %v16431_v58, 1  ;;  %v7202_v2 = vrot.slane %v16434_v40, 1  ;;  %v4620_v11 = vcombine.high %v4618_v52, %v4618_v52  ;;  %v10095_v38 = vrot.slane %v4619_v23, 9 }
 0x35e   :  { %v16492_v36 = vpop.f32.mrb[53].mxu0  ;;  %v10096_v27 = vrot.slane %v4618_v52, 9  ;;  %v6131_v63 = vmax.f32 %v4611_v33, %v10094_v57  ;;  %v7204_v7 = vrot.slane %v16495_v5, 1  ;;  %v7205_v35 = vrot.slane %v16498_v34, 1 }
 0x35f   :  { %v16502_v26 = vpop.f32.mrb[54].mxu0  ;;  %v7203_v25 = vsel %vm484_vm2, %v7201_v20, %v7202_v2  ;;  %v3657_v49 = vadd.f32 %v16239_v37, %v16442_v16  ;;  %v10097_v43 = vrot.slane %v4620_v11, 9  ;;  %v6132_v55 = vmax.f32 %v4619_v23, %v10095_v38 }
 0x360   :  { %v16504_v28 = vpop.f32.mrb[55].mxu0  ;;  %v16511_v40 = vmax.f32 %v4618_v52, %v10096_v27  ;;  %v6299_v9 = vmax.f32 %v6131_v63, %v6139_v29  ;;  %v7206_v13 = vsel %vm484_vm2, %v7204_v7, %v7205_v35  ;;  %v3649_v54 = vadd.f32 %v16239_v37, %v16446_v1 }
 0x361   :  { %v3761_v22 = vmax.f32 %v3657_v49, 0.0  ;;  %v3660_v42 = vadd.f32 %v16239_v37, %v16450_v19  ;;  %v16518_v10 = vmax.f32 %v4620_v11, %v10097_v43  ;;  %v6300_v60 = vmax.f32 %v6132_v55, %v6140_v59 }
 0x362   :  { %v6301_v16 = vmax.f32 %v16511_v40, %v16479_v41  ;;  %v6834_v56 = vrot.slane %v6299_v9, %v15385_v15  ;;  %v11961_v14 = vpack.i.bf16 %v7206_v13, %v7203_v25  ;;  %v3759_v6 = vmax.f32 %v3649_v54, 0.0 }
 0x363   :  { %v4689_v61 = vcombine.high %v3761_v22, %v3761_v22  ;;  %v4696_v0 = vrot.slane %v3761_v22, %v15365_v53  ;;  %v6302_v29 = vmax.f32 %v16518_v10, %v16485_v46  ;;  %v6838_v1 = vrot.slane %v6300_v60, %v15385_v15 }
 0x364   :  { %v7050_v37 = vsel %vm6981_vm4, %v6834_v56, %v7049_v44  ;;  %11962 = vrot.lane.b32.xlu1 %v11961_v14, %s12180_s22  ;;  %v4655_v8 = vcombine.high %v3759_v6, %v3759_v6  ;;  %v4662_v62 = vrot.slane %v3759_v6, %v15365_v53  ;;  %v3762_v59 = vmax.f32 %v3660_v42, 0.0 }
 0x365   :  { %v4703_v19 = vrot.slane %v4689_v61, %v15365_v53  ;;  %v4704_v51 = vcombine.high %v4696_v0, %v4696_v0  ;;  %v10114_v48 = vrot.slane %v4696_v0, 9  ;;  %v16531_v33 = vsel %vm6983_vm5, %v6838_v1, %v7050_v37 }
 0x366   :  { %v4669_v20 = vrot.slane %v4655_v8, %v15365_v53  ;;  %v4670_v44 = vcombine.high %v4662_v62, %v4662_v62  ;;  %v10106_v2 = vrot.slane %v4662_v62, 9  ;;  %v4706_v11 = vcombine.high %v3762_v59, %v3762_v59 }
 0x367   :  { %v4705_v18 = vcombine.high %v4703_v19, %v4703_v19  ;;  %v10115_v52 = vrot.slane %v4704_v51, 9  ;;  %v10116_v23 = vrot.slane %v4703_v19, 9  ;;  %v6151_v57 = vmax.f32 %v4696_v0, %v10114_v48 }
 0x368   :  { %v4713_v25 = vrot.slane %v3762_v59, %v15365_v53  ;;  %v4671_v7 = vcombine.high %v4669_v20, %v4669_v20  ;;  %v10107_v35 = vrot.slane %v4670_v44, 9  ;;  %v10108_v49 = vrot.slane %v4669_v20, 9 }
 0x369   :  { %v10117_v38 = vrot.slane %v4705_v18, 9  ;;  %v6152_v27 = vmax.f32 %v4704_v51, %v10115_v52  ;;  %v6153_v63 = vmax.f32 %v4703_v19, %v10116_v23  ;;  %v6143_v43 = vmax.f32 %v4662_v62, %v10106_v2 }
 0x36a   :  { %v4720_v13 = vrot.slane %v4706_v11, %v15365_v53  ;;  %v10109_v54 = vrot.slane %v4671_v7, 9  ;;  %v6144_v42 = vmax.f32 %v4670_v44, %v10107_v35  ;;  %v6145_v60 = vmax.f32 %v4669_v20, %v10108_v49 }
 0x36b   :  { %v6154_v9 = vmax.f32 %v4705_v18, %v10117_v38  ;;  %v6303_v56 = vmax.f32 %v6143_v43, %v6151_v57  ;;  %v4721_v61 = vcombine.high %v4713_v25, %v4713_v25  ;;  %v7303_v48 = vrot.slane %v16495_v5, 2  ;;  %v16553_v57 = vld [vmem:[%s17621_s2] ss:$0 sm:$0xff] }
 0x36c   :  { %v16536_v55 = vpop.f32.mrb[56].mxu0  ;;  %v6146_v6 = vmax.f32 %v4671_v7, %v10109_v54  ;;  %v6304_v1 = vmax.f32 %v6144_v42, %v6152_v27  ;;  %v6305_v37 = vmax.f32 %v6145_v60, %v6153_v63  ;;  %v4722_v51 = vcombine.high %v4720_v13, %v4720_v13 }
 0x36d   :  { %v16539_v22 = vpop.f32.mrb[57].mxu0  ;;  %v6850_v19 = vrot.slane %v6303_v56, %v15385_v15  ;;  %v7304_v18 = vrot.slane %v16498_v34, 2  ;;  %v10118_v52 = vrot.slane %v4713_v25, 9  ;;  %v10119_v23 = vrot.slane %v4721_v61, 9 }
 0x36e   :  { %v16541_v14 = vpop.f32.mrb[58].mxu0  ;;  %v6306_v8 = vmax.f32 %v6146_v6, %v6154_v9  ;;  %v6854_v62 = vrot.slane %v6304_v1, %v15385_v15  ;;  %v6858_v59 = vrot.slane %v6305_v37, %v15385_v15  ;;  %v3652_v20 = vadd.f32 %v16553_v57, %v16456_v17 }
 0x36f   :  { %v16543_v0 = vpop.f32.mrb[59].mxu0  ;;  %v10120_v11 = vrot.slane %v4720_v13, 9  ;;  %v7305_v38 = vsel %vm842_vm1, %v7303_v48, %v7304_v18  ;;  %v10121_v34 = vrot.slane %v4722_v51, 9  ;;  %v3673_v7 = vadd.f32 %v16553_v57, %v16488_v30 }
 0x370   :  { %v6862_v44 = vrot.slane %v6306_v8, %v15385_v15  ;;  %v7053_v2 = vsel %vm6975_vm14, %v6854_v62, %v6850_v19  ;;  %7343 = vrot.lane.b32.xlu1 %v7305_v38, %s12181_s27  ;;  %v3760_v63 = vmax.f32 %v3652_v20, 0.0  ;;  %v3665_v17 = vadd.f32 %v16553_v57, %v16492_v36 }
 0x371   :  { %v7054_v27 = vsel %vm6977_vm15, %v6858_v59, %v7053_v2  ;;  %v3676_v49 = vadd.f32 %v16553_v57, %v16502_v26  ;;  %v6155_v43 = vmax.f32 %v4713_v25, %v10118_v52  ;;  %v6156_v42 = vmax.f32 %v4721_v61, %v10119_v23 }
 0x372   :  { %v7055_v35 = vsel %vm6979_vm0, %v6862_v44, %v7054_v27  ;;  %v4672_v9 = vcombine.high %v3760_v63, %v3760_v63  ;;  %v4679_v54 = vrot.slane %v3760_v63, %v15365_v53  ;;  %v16570_v60 = vmax.f32 %v4720_v13, %v10120_v11 }
 0x373   :  { %v3765_v56 = vmax.f32 %v3673_v7, 0.0  ;;  %v3763_v6 = vmax.f32 %v3665_v17, 0.0  ;;  %v16572_v1 = vmax.f32 %v4722_v51, %v10121_v34  ;;  %v3766_v26 = vmax.f32 %v3676_v49, 0.0 }
 0x374   :  { %v4686_v30 = vrot.slane %v4672_v9, %v15365_v53  ;;  %v4687_v37 = vcombine.high %v4679_v54, %v4679_v54  ;;  %v10110_v19 = vrot.slane %v4679_v54, 9 }
 0x375   :  { %v4757_v48 = vcombine.high %v3765_v56, %v3765_v56  ;;  %v4764_v36 = vrot.slane %v3765_v56, %v15365_v53  ;;  %v4723_v8 = vcombine.high %v3763_v6, %v3763_v6  ;;  %v4730_v51 = vrot.slane %v3763_v6, %v15365_v53 }
 0x376   :  { %v4688_v25 = vcombine.high %v4686_v30, %v4686_v30  ;;  %v10111_v62 = vrot.slane %v4687_v37, 9  ;;  %v10112_v59 = vrot.slane %v4686_v30, 9  ;;  %v6147_v18 = vmax.f32 %v4679_v54, %v10110_v19 }
 0x377   :  { %v4771_v13 = vrot.slane %v4757_v48, %v15365_v53  ;;  %v4772_v61 = vcombine.high %v4764_v36, %v4764_v36  ;;  %v10130_v52 = vrot.slane %v4764_v36, 9  ;;  %v4737_v34 = vrot.slane %v4723_v8, %v15365_v53 }
 0x378   :  { %v10113_v23 = vrot.slane %v4688_v25, 9  ;;  %v6148_v20 = vmax.f32 %v4687_v37, %v10111_v62  ;;  %v6149_v44 = vmax.f32 %v4686_v30, %v10112_v59  ;;  %v6307_v2 = vmax.f32 %v6147_v18, %v6155_v43 }
 0x379   :  { %v4773_v11 = vcombine.high %v4771_v13, %v4771_v13  ;;  %v10131_v38 = vrot.slane %v4772_v61, 9  ;;  %v10132_v27 = vrot.slane %v4771_v13, 9  ;;  %v6167_v54 = vmax.f32 %v4764_v36, %v10130_v52 }
 0x37a   :  { %v16579_v63 = vmax.f32 %v4688_v25, %v10113_v23  ;;  %v6308_v7 = vmax.f32 %v6148_v20, %v6156_v42  ;;  %v6309_v17 = vmax.f32 %v6149_v44, %v16570_v60  ;;  %v6866_v49 = vrot.slane %v6307_v2, %v15385_v15 }
 0x37b   :  { %v10133_v9 = vrot.slane %v4773_v11, 9  ;;  %v4738_v56 = vcombine.high %v4730_v51, %v4730_v51  ;;  %v3668_v6 = vadd.f32 %v16553_v57, %v16504_v28  ;;  %v6168_v19 = vmax.f32 %v4772_v61, %v10131_v38 }
 0x37c   :  { %v6310_v43 = vmax.f32 %v16579_v63, %v16572_v1  ;;  %v6870_v30 = vrot.slane %v6308_v7, %v15385_v15  ;;  %v7056_v37 = vsel %vm6981_vm4, %v6866_v49, %v7055_v35  ;;  %v6169_v48 = vmax.f32 %v4771_v13, %v10132_v27 }
 0x37d   :  { %v4739_v42 = vcombine.high %v4737_v34, %v4737_v34  ;;  %v10122_v8 = vrot.slane %v4730_v51, 9  ;;  %v10123_v60 = vrot.slane %v4738_v56, 9  ;;  %v6170_v62 = vmax.f32 %v4773_v11, %v10133_v9 }
 0x37e   :  { %v7057_v25 = vsel %vm6983_vm5, %v6870_v30, %v7056_v37  ;;  %v10124_v36 = vrot.slane %v4737_v34, 9  ;;  %v4774_v59 = vcombine.high %v3766_v26, %v3766_v26  ;;  %v4781_v23 = vrot.slane %v3766_v26, %v15365_v53 }
 0x37f   :  { %v10125_v18 = vrot.slane %v4739_v42, 9  ;;  %v6159_v52 = vmax.f32 %v4730_v51, %v10122_v8  ;;  %v6160_v28 = vmax.f32 %v4738_v56, %v10123_v60  ;;  %v3764_v61 = vmax.f32 %v3668_v6, 0.0 }
 0x380   :  { %v6161_v20 = vmax.f32 %v4737_v34, %v10124_v36  ;;  %v4788_v35 = vrot.slane %v4774_v59, %v15365_v53  ;;  %v4789_v27 = vcombine.high %v4781_v23, %v4781_v23  ;;  %v10134_v51 = vrot.slane %v4781_v23, 9 }
 0x381   :  { %v6162_v44 = vmax.f32 %v4739_v42, %v10125_v18  ;;  %v6311_v2 = vmax.f32 %v6159_v52, %v6167_v54  ;;  %v6312_v38 = vmax.f32 %v6160_v28, %v6168_v19  ;;  %v3689_v26 = vadd.f32 %v16553_v57, %v16536_v55 }
 0x382   :  { %v6313_v63 = vmax.f32 %v6161_v20, %v6169_v48  ;;  %v4790_v7 = vcombine.high %v4788_v35, %v4788_v35  ;;  %v6842_v34 = vrot.slane %v6301_v16, %v15385_v15  ;;  %v6874_v6 = vrot.slane %v6309_v17, %v15385_v15 }
 0x383   :  { %v6314_v9 = vmax.f32 %v6162_v44, %v6170_v62  ;;  %v6882_v54 = vrot.slane %v6311_v2, %v15385_v15  ;;  %v6886_v56 = vrot.slane %v6312_v38, %v15385_v15  ;;  %v10135_v37 = vrot.slane %v4789_v27, 9 }
 0x384   :  { %v16591_v1 = vpop.f32.mrb[60].mxu0  ;;  %v6890_v30 = vrot.slane %v6313_v63, %v15385_v15  ;;  %v10136_v19 = vrot.slane %v4788_v35, 9  ;;  %v10137_v42 = vrot.slane %v4790_v7, 9  ;;  %v4740_v8 = vcombine.high %v3764_v61, %v3764_v61 }
 0x385   :  { %v16594_v13 = vpop.f32.mrb[61].mxu0  ;;  %v6894_v55 = vrot.slane %v6314_v9, %v15385_v15  ;;  %v7059_v48 = vsel %vm6975_vm14, %v6886_v56, %v6882_v54  ;;  %v6171_v40 = vmax.f32 %v4781_v23, %v10134_v51  ;;  %v4747_v16 = vrot.slane %v3764_v61, %v15365_v53 }
 0x386   :  { %v16596_v11 = vpop.f32.mrb[62].mxu0  ;;  %v7060_v41 = vsel %vm6977_vm15, %v6890_v30, %v7059_v48  ;;  %v3769_v60 = vmax.f32 %v3689_v26, 0.0  ;;  %v4754_v62 = vrot.slane %v4740_v8, %v15365_v53  ;;  %v7052_v36 = vsel %vm6985_vm6, %v6842_v34, %v16531_v33 }
 0x387   :  { %v16600_v49 = vpop.f32.mrb[63].mxu0  ;;  %v7061_v17 = vsel %vm6979_vm0, %v6894_v55, %v7060_v41  ;;  %v7058_v59 = vsel %vm6985_vm6, %v6874_v6, %v7057_v25  ;;  %v4755_v18 = vcombine.high %v4747_v16, %v4747_v16  ;;  %v10126_v52 = vrot.slane %v4747_v16, 9 }
 0x388   :  { %v4825_v28 = vcombine.high %v3769_v60, %v3769_v60  ;;  %v4832_v20 = vrot.slane %v3769_v60, %v15365_v53  ;;  %v6846_v23 = vrot.slane %v6302_v29, %v15385_v15  ;;  %v16624_v61 = vmax.f32 %v4788_v35, %v10136_v19  ;;  %v12075_v60 = vld [vmem:[%s17622_s3 + $0x48] sm:$0xff]  }
 0x389   :  { %v4756_v44 = vcombine.high %v4754_v62, %v4754_v62  ;;  %v10128_v2 = vrot.slane %v4754_v62, 9  ;;  %v6878_v38 = vrot.slane %v6310_v43, %v15385_v15  ;;  %v6172_v63 = vmax.f32 %v4789_v27, %v10135_v37 }
 0x38a   :  { %v10127_v33 = vrot.slane %v4755_v18, 9  ;;  %v6163_v51 = vmax.f32 %v4747_v16, %v10126_v52  ;;  %v16627_v25 = vmax.f32 %v4790_v7, %v10137_v42  ;;  %v4839_v9 = vrot.slane %v4825_v28, %v15365_v53  ;;  %v12074_v16 = vld [vmem:[%s17622_s3] sm:$0xff]  }
 0x38b   :  { %v10129_v26 = vrot.slane %v4756_v44, 9  ;;  %v16629_v34 = vmax.f32 %v4754_v62, %v10128_v2  ;;  %v4840_v46 = vcombine.high %v4832_v20, %v4832_v20  ;;  %v16637_v43 = vsel %vm7109_vm7, 0.0, %v7052_v36 }
 0x38c   :  { %v6164_v54 = vmax.f32 %v4755_v18, %v10127_v33  ;;  %v6315_v56 = vmax.f32 %v6163_v51, %v6171_v40  ;;  %v16641_v7 = vsel %vm7109_vm7, 0.0, %v7058_v59  ;;  %v7137_v6 = vsel %vm7109_vm7, %v6846_v23, 0.0  ;;  %v12073_v40 = vld [vmem:[%s17622_s3 + $0x40] sm:$0xff]   ;;  %v12076_v33 = vld [vmem:[%s17622_s3 + $0x8] sm:$0xff]  }
 0x38d   :  { %v16632_v10 = vmax.f32 %v4756_v44, %v10129_v26  ;;  %v4841_v37 = vcombine.high %v4839_v9, %v4839_v9  ;;  %v10146_v19 = vrot.slane %v4832_v20, 9  ;;  %v7138_v55 = vsel %vm7109_vm7, %v6878_v38, 0.0  ;;  %10388 = vmatprep.subr.bf16.mxu1 %v12073_v40 }
 0x38e   :  { %v6316_v35 = vmax.f32 %v6164_v54, %v6172_v63  ;;  %v6898_v27 = vrot.slane %v6315_v56, %v15385_v15  ;;  %v10147_v8 = vrot.slane %v4840_v46, 9  ;;  %v7207_v41 = vrot.slane %v16637_v43, 1  ;;  %10389 = vmatpush3.bf16.msra.mxu1 %v12074_v16 }
 0x38f   :  { %v10148_v62 = vrot.slane %v4839_v9, 9  ;;  %v7208_v36 = vrot.slane %v7137_v6, 1  ;;  %v7210_v59 = vrot.slane %v16641_v7, 1  ;;  %v7306_v52 = vrot.slane %v16637_v43, 2  ;;  %10390 = vmatprep.subr.bf16.mxu1 %v12075_v60  ;;  %v12078_v60 = vld [vmem:[%s17622_s3 + $0x10] sm:$0xff]  }
 0x390   :  { %v6902_v48 = vrot.slane %v6316_v35, %v15385_v15  ;;  %v7062_v42 = vsel %vm6981_vm4, %v6898_v27, %v7061_v17  ;;  %v7211_v17 = vrot.slane %v7138_v55, 1  ;;  %v7307_v28 = vrot.slane %v7137_v6, 2 }
 0x391   :  { %v7309_v23 = vrot.slane %v16641_v7, 2  ;;  %v7209_v44 = vsel %vm484_vm2, %v7207_v41, %v7208_v36  ;;  %v7310_v38 = vrot.slane %v7138_v55, 2  ;;  %v3681_v63 = vadd.f32 %v16553_v57, %v16539_v22  ;;  %v12077_v22 = vld [vmem:[%s17622_s3 + $0x50] sm:$0xff]  }
 0x392   :  { %v16661_v18 = vsel %vm6983_vm5, %v6902_v48, %v7062_v42  ;;  %v7212_v2 = vsel %vm484_vm2, %v7210_v59, %v7211_v17  ;;  %v10149_v51 = vrot.slane %v4841_v37, 9  ;;  %v3692_v54 = vadd.f32 %v16553_v57, %v16541_v14  ;;  %10391 = vmatpush3.bf16.msra.mxu1 %v12076_v33 }
 0x393   :  { %v11966_v26 = vpack.i.bf16 %v7212_v2, %v7209_v44  ;;  %v3684_v56 = vadd.f32 %v16553_v57, %v16543_v0  ;;  %v7308_v35 = vsel %vm842_vm1, %v7306_v52, %v7307_v28  ;;  %v7311_v27 = vsel %vm842_vm1, %v7309_v23, %v7310_v38  ;;  %10392 = vmatprep.subr.bf16.mxu1 %v12077_v22 }
 0x394   :  { %v3767_v6 = vmax.f32 %v3681_v63, 0.0  ;;  %v6183_v55 = vmax.f32 %v4832_v20, %v10146_v19  ;;  %v11971_v48 = vpack.i.bf16 %v7311_v27, %v7308_v35  ;;  %v3770_v42 = vmax.f32 %v3692_v54, 0.0 }
 0x395   :  { %11967 = vrot.lane.b32.xlu0 %v11966_v26, %s12180_s22  ;;  %v3768_v41 = vmax.f32 %v3684_v56, 0.0  ;;  %v6184_v14 = vmax.f32 %v4840_v46, %v10147_v8  ;;  %v6185_v40 = vmax.f32 %v4839_v9, %v10148_v62  ;;  %v6186_v36 = vmax.f32 %v4841_v37, %v10149_v51 }
 0x396   :  { %v4791_v16 = vcombine.high %v3767_v6, %v3767_v6  ;;  %v4798_v0 = vrot.slane %v3767_v6, %v15365_v53  ;;  %11972 = vrot.lane.b32.xlu1 %v11971_v48, %s12181_s27  ;;  %v4842_v59 = vcombine.high %v3770_v42, %v3770_v42  ;;  %v4849_v20 = vrot.slane %v3770_v42, %v15365_v53 }
 0x397   :  { %v4808_v19 = vcombine.high %v3768_v41, %v3768_v41  ;;  %v3705_v9 = vadd.f32 %v16553_v57, %v16591_v1  ;;  %v4815_v37 = vrot.slane %v3768_v41, %v15365_v53  ;;  %10393 = vmatpush3.bf16.msra.mxu1 %v12078_v60 }
 0x398   :  { %v4805_v17 = vrot.slane %v4791_v16, %v15365_v53  ;;  %v4806_v52 = vcombine.high %v4798_v0, %v4798_v0  ;;  %v10138_v46 = vrot.slane %v4798_v0, 9  ;;  %v4856_v8 = vrot.slane %v4842_v59, %v15365_v53 }
 0x399   :  { %v4857_v62 = vcombine.high %v4849_v20, %v4849_v20  ;;  %v10150_v28 = vrot.slane %v4849_v20, 9  ;;  %v4822_v26 = vrot.slane %v4808_v19, %v15365_v53  ;;  %v4823_v48 = vcombine.high %v4815_v37, %v4815_v37 }
 0x39a   :  { %v4807_v23 = vcombine.high %v4805_v17, %v4805_v17  ;;  %v10139_v44 = vrot.slane %v4806_v52, 9  ;;  %v10140_v2 = vrot.slane %v4805_v17, 9  ;;  %v6175_v38 = vmax.f32 %v4798_v0, %v10138_v46 }
 0x39b   :  { %v4858_v63 = vcombine.high %v4856_v8, %v4856_v8  ;;  %v10151_v33 = vrot.slane %v4857_v62, 9  ;;  %v10152_v51 = vrot.slane %v4856_v8, 9  ;;  %v6187_v6 = vmax.f32 %v4849_v20, %v10150_v28 }
 0x39c   :  { %v10141_v54 = vrot.slane %v4807_v23, 9  ;;  %v6176_v56 = vmax.f32 %v4806_v52, %v10139_v44  ;;  %v6177_v1 = vmax.f32 %v4805_v17, %v10140_v2  ;;  %v6319_v35 = vmax.f32 %v6175_v38, %v6183_v55 }
 0x39d   :  { %v10153_v27 = vrot.slane %v4858_v63, 9  ;;  %v6188_v22 = vmax.f32 %v4857_v62, %v10151_v33  ;;  %v6189_v59 = vmax.f32 %v4856_v8, %v10152_v51  ;;  %v4824_v60 = vcombine.high %v4822_v26, %v4822_v26 }
 0x39e   :  { %v6178_v42 = vmax.f32 %v4807_v23, %v10141_v54  ;;  %v6320_v41 = vmax.f32 %v6176_v56, %v6184_v14  ;;  %v6321_v16 = vmax.f32 %v6177_v1, %v6185_v40  ;;  %v6914_v0 = vrot.slane %v6319_v35, %v15385_v15 }
 0x39f   :  { %v10142_v46 = vrot.slane %v4815_v37, 9  ;;  %v10143_v30 = vrot.slane %v4823_v48, 9  ;;  %v10144_v17 = vrot.slane %v4822_v26, 9  ;;  %v6190_v55 = vmax.f32 %v4858_v63, %v10153_v27 }
 0x3a0   :  { %v6322_v29 = vmax.f32 %v6178_v42, %v6186_v36  ;;  %v6918_v19 = vrot.slane %v6320_v41, %v15385_v15  ;;  %v6922_v52 = vrot.slane %v6321_v16, %v15385_v15  ;;  %v10145_v44 = vrot.slane %v4824_v60, 9 }
 0x3a1   :  { %v6179_v20 = vmax.f32 %v4815_v37, %v10142_v46  ;;  %v6180_v62 = vmax.f32 %v4823_v48, %v10143_v30  ;;  %v18075_v14 = vmax.f32 %v16629_v34, %v16624_v61  ;;  %v6181_v36 = vmax.f32 %v4822_v26, %v10144_v17 }
 0x3a2   :  { %v6926_v8 = vrot.slane %v6322_v29, %v15385_v15  ;;  %v7065_v28 = vsel %vm6975_vm14, %v6918_v19, %v6914_v0  ;;  %v6182_v2 = vmax.f32 %v4824_v60, %v10145_v44  ;;  %v18076_v30 = vmax.f32 %v16632_v10, %v16627_v25 }
 0x3a3   :  { %v16701_v40 = vrot.slane %v18075_v14, %v15385_v15  ;;  %v7066_v23 = vsel %vm6977_vm15, %v6922_v52, %v7065_v28  ;;  %v6323_v38 = vmax.f32 %v6179_v20, %v6187_v6  ;;  %v6324_v33 = vmax.f32 %v6180_v62, %v6188_v22 }
 0x3a4   :  { %v16710_v37 = vrot.slane %v18076_v30, %v15385_v15  ;;  %v6325_v63 = vmax.f32 %v6181_v36, %v6189_v59  ;;  %v7067_v61 = vsel %vm6979_vm0, %v6926_v8, %v7066_v23  ;;  %v3773_v34 = vmax.f32 %v3705_v9, 0.0 }
 0x3a5   :  { %v6326_v51 = vmax.f32 %v6182_v2, %v6190_v55  ;;  %v6930_v29 = vrot.slane %v6323_v38, %v15385_v15  ;;  %v6934_v26 = vrot.slane %v6324_v33, %v15385_v15  ;;  %v3697_v54 = vadd.f32 %v16553_v57, %v16594_v13 }
 0x3a6   :  { %v6938_v56 = vrot.slane %v6325_v63, %v15385_v15  ;;  %v4893_v1 = vcombine.high %v3773_v34, %v3773_v34  ;;  %v4900_v35 = vrot.slane %v3773_v34, %v15365_v53  ;;  %v3708_v25 = vadd.f32 %v16553_v57, %v16596_v11 }
 0x3a7   :  { %v16722_v10 = vrot.slane %v6326_v51, %v15385_v15  ;;  %v7068_v9 = vsel %vm6981_vm4, %v6930_v29, %v7067_v61  ;;  %v3771_v27 = vmax.f32 %v3697_v54, 0.0  ;;  %v3700_v6 = vadd.f32 %v16553_v57, %v16600_v49 }
 0x3a8   :  { %v7069_v22 = vsel %vm6983_vm5, %v6934_v26, %v7068_v9  ;;  %v4907_v13 = vrot.slane %v4893_v1, %v15365_v53  ;;  %v4908_v48 = vcombine.high %v4900_v35, %v4900_v35  ;;  %v10162_v42 = vrot.slane %v4900_v35, 9 }
 0x3a9   :  { %v4859_v41 = vcombine.high %v3771_v27, %v3771_v27  ;;  %v4866_v16 = vrot.slane %v3771_v27, %v15365_v53  ;;  %v3774_v59 = vmax.f32 %v3708_v25, 0.0  ;;  %v3772_v11 = vmax.f32 %v3700_v6, 0.0 }
 0x3aa   :  { %v4909_v0 = vcombine.high %v4907_v13, %v4907_v13  ;;  %v10163_v60 = vrot.slane %v4908_v48, 9  ;;  %v10164_v46 = vrot.slane %v4907_v13, 9  ;;  %v6199_v19 = vmax.f32 %v4900_v35, %v10162_v42  ;;  %v16738_v42 = vpop.permute.xlu1 %11912 }
 0x3ab   :  { %v4873_v52 = vrot.slane %v4859_v41, %v15365_v53  ;;  %v4874_v17 = vcombine.high %v4866_v16, %v4866_v16  ;;  %v10154_v55 = vrot.slane %v4866_v16, 9  ;;  %v4910_v57 = vcombine.high %v3774_v59, %v3774_v59 }
 0x3ac   :  { %v10165_v49 = vrot.slane %v4909_v0, 9  ;;  %v6200_v44 = vmax.f32 %v4908_v48, %v10163_v60  ;;  %v6201_v20 = vmax.f32 %v4907_v13, %v10164_v46  ;;  %v4917_v62 = vrot.slane %v3774_v59, %v15365_v53 }
 0x3ad   :  { %v4875_v14 = vcombine.high %v4873_v52, %v4873_v52  ;;  %v10155_v8 = vrot.slane %v4874_v17, 9  ;;  %v10156_v28 = vrot.slane %v4873_v52, 9  ;;  %v6191_v36 = vmax.f32 %v4866_v16, %v10154_v55 }
 0x3ae   :  { %v6202_v23 = vmax.f32 %v4909_v0, %v10165_v49  ;;  %v4924_v2 = vrot.slane %v4910_v57, %v15365_v53  ;;  %v4925_v38 = vcombine.high %v4917_v62, %v4917_v62  ;;  %v10166_v33 = vrot.slane %v4917_v62, 9 }
 0x3af   :  { %v10157_v30 = vrot.slane %v4875_v14, 9  ;;  %v6192_v63 = vmax.f32 %v4874_v17, %v10155_v8  ;;  %v6193_v61 = vmax.f32 %v4873_v52, %v10156_v28  ;;  %v6327_v34 = vmax.f32 %v6191_v36, %v6199_v19 }
 0x3b0   :  { %v4926_v51 = vcombine.high %v4924_v2, %v4924_v2  ;;  %v10167_v29 = vrot.slane %v4925_v38, 9  ;;  %v10168_v26 = vrot.slane %v4924_v2, 9  ;;  %v16733_v54 = vmax.f32 %v4917_v62, %v10166_v33  ;;  %v16773_v33 = vpop.permute.xlu1 %11922 }
 0x3b1   :  { %v6194_v1 = vmax.f32 %v4875_v14, %v10157_v30  ;;  %v6328_v35 = vmax.f32 %v6192_v63, %v6200_v44  ;;  %v6329_v25 = vmax.f32 %v6193_v61, %v6201_v20  ;;  %v6946_v9 = vrot.slane %v6327_v34, %v15385_v15  ;;  %v12079_v14 = vld [vmem:[%s17622_s3 + $0x58] sm:$0xff]  }
 0x3b2   :  { %v10169_v27 = vrot.slane %v4926_v51, 9  ;;  %v6204_v6 = vmax.f32 %v4925_v38, %v10167_v29  ;;  %v16736_v13 = vmax.f32 %v4924_v2, %v10168_v26  ;;  %v4876_v48 = vcombine.high %v3772_v11, %v3772_v11  ;;  %10394 = vmatprep.subr.bf16.mxu1 %v12079_v14 }
 0x3b3   :  { %v6330_v41 = vmax.f32 %v6194_v1, %v6202_v23  ;;  %v6950_v16 = vrot.slane %v6328_v35, %v15385_v15  ;;  %v6954_v59 = vrot.slane %v6329_v25, %v15385_v15  ;;  %v4883_v0 = vrot.slane %v3772_v11, %v15365_v53 }
 0x3b4   :  { %v16743_v60 = vmax.f32 %v4926_v51, %v10169_v27  ;;  %v4890_v46 = vrot.slane %v4876_v48, %v15365_v53  ;;  %v7064_v19 = vsel %vm6985_vm6, %v16701_v40, %v16661_v18  ;;  %v7070_v52 = vsel %vm6985_vm6, %v6938_v56, %v7069_v22  ;;  %v12080_v18 = vld [vmem:[%s17622_s3 + $0x18] sm:$0xff]   ;;  %v12081_v40 = vld [vmem:[%s17622_s3 + $0x60] sm:$0xff]   ;;  %v16780_v51 = vpop.permute.xlu0 %11917 }
 0x3b5   :  { %v6958_v17 = vrot.slane %v6330_v41, %v15385_v15  ;;  %v7071_v55 = vsel %vm6975_vm14, %v6950_v16, %v6946_v9  ;;  %v4891_v57 = vcombine.high %v4883_v0, %v4883_v0  ;;  %v10158_v49 = vrot.slane %v4883_v0, 9  ;;  %10395 = vmatpush3.bf16.msra.mxu1 %v12080_v18 }
 0x3b6   :  { %v7072_v44 = vsel %vm6977_vm15, %v6954_v59, %v7071_v55  ;;  %v4892_v20 = vcombine.high %v4890_v46, %v4890_v46  ;;  %v10160_v11 = vrot.slane %v4890_v46, 9  ;;  %v16754_v62 = vsel %vm7109_vm7, 0.0, %v7064_v19  ;;  %10396 = vmatprep.subr.bf16.mxu1 %v12081_v40  ;;  %v16792_v59 = vpop.permute.xlu1 %11932 }
 0x3b7   :  { %v10159_v56 = vrot.slane %v4891_v57, 9  ;;  %v6195_v22 = vmax.f32 %v4883_v0, %v10158_v49  ;;  %v16766_v8 = vsel %vm7109_vm7, 0.0, %v7070_v52  ;;  %v7139_v28 = vsel %vm7109_vm7, %v16710_v37, 0.0  ;;  %v12082_v37 = vld [vmem:[%s17622_s3 + $0x20] sm:$0xff]   ;;  %v12085_v49 = vld [vmem:[%s17622_s3 + $0x70] sm:$0xff]  }
 0x3b8   :  { %v10161_v36 = vrot.slane %v4892_v20, 9  ;;  %v6197_v23 = vmax.f32 %v4890_v46, %v10160_v11  ;;  %v7140_v2 = vsel %vm7109_vm7, %v16722_v10, 0.0  ;;  %v7213_v38 = vrot.slane %v16754_v62, 1 }
 0x3b9   :  { %v6196_v30 = vmax.f32 %v4891_v57, %v10159_v56  ;;  %v6331_v63 = vmax.f32 %v6195_v22, %v16733_v54  ;;  %v7214_v61 = vrot.slane %v7139_v28, 1  ;;  %v7216_v34 = vrot.slane %v16766_v8, 1  ;;  %v12083_v54 = vld [vmem:[%s17622_s3 + $0x68] sm:$0xff]   ;;  %10397 = vmatpush3.bf16.msra.mxu1 %v12082_v37  ;;  %v11928_v56 = vpop.permute.xlu0 %11927 }
 0x3ba   :  { %v6198_v29 = vmax.f32 %v4892_v20, %v10161_v36  ;;  %v6333_v10 = vmax.f32 %v6197_v23, %v16736_v13  ;;  %v7217_v26 = vrot.slane %v7140_v2, 1  ;;  %v7312_v1 = vrot.slane %v16754_v62, 2  ;;  %10398 = vmatprep.subr.bf16.mxu1 %v12083_v54  ;;  %v12086_v36 = vld [vmem:[%s17622_s3 + $0x30] sm:$0xff]  }
 0x3bb   :  { %v11915_v35 = vunpack.i.h.bf16 %v16738_v42  ;;  %v6332_v25 = vmax.f32 %v6196_v30, %v6204_v6  ;;  %v7215_v9 = vsel %vm484_vm2, %v7213_v38, %v7214_v61  ;;  %v7313_v48 = vrot.slane %v7139_v28, 2  ;;  %v12084_v6 = vld [vmem:[%s17622_s3 + $0x28] sm:$0xff]   ;;  %v12087_v30 = vld [vmem:[%s17622_s3 + $0x78] sm:$0xff]  }
 0x3bc   :  { %v7218_v27 = vsel %vm484_vm2, %v7216_v34, %v7217_v26  ;;  %v7315_v41 = vrot.slane %v16766_v8, 2  ;;  %v7316_v13 = vrot.slane %v7140_v2, 2  ;;  %v11914_v16 = vunpack.i.l.bf16 %v16738_v42 }
 0x3bd   :  { %v6962_v0 = vrot.slane %v6331_v63, %v15385_v15  ;;  %v11976_v46 = vpack.i.bf16 %v7218_v27, %v7215_v9  ;;  %v6334_v19 = vmax.f32 %v6198_v29, %v16743_v60  ;;  %v6966_v52 = vrot.slane %v6332_v25, %v15385_v15  ;;  %10399 = vmatpush3.bf16.msra.mxu1 %v12084_v6  ;;  %v12088_v27 = vld [vmem:[%s17622_s3 + $0x38] sm:$0xff]  }
 0x3be   :  { %v7314_v55 = vsel %vm842_vm1, %v7312_v1, %v7313_v48  ;;  %v7317_v57 = vsel %vm842_vm1, %v7315_v41, %v7316_v13  ;;  %v7073_v42 = vsel %vm6979_vm0, %v6958_v17, %v7072_v44  ;;  %v6970_v60 = vrot.slane %v6333_v10, %v15385_v15  ;;  %v16813_v44 = vpop.permute.xlu1 %11942  ;;  %10400 = vmatprep.subr.bf16.mxu1 %v12085_v49  ;;  %v11938_v10 = vpop.permute.xlu0 %11937 }
 0x3bf   :  { %11977 = vrot.lane.b32.xlu0 %v11976_v46, %s12180_s22  ;;  %v11981_v20 = vpack.i.bf16 %v7317_v57, %v7314_v55  ;;  %v6974_v11 = vrot.slane %v6334_v19, %v15385_v15  ;;  %v7074_v14 = vsel %vm6981_vm4, %v6962_v0, %v7073_v42  ;;  %v11925_v18 = vunpack.i.h.bf16 %v16773_v33 }
 0x3c0   :  { %v11924_v40 = vunpack.i.l.bf16 %v16773_v33  ;;  %v7075_v17 = vsel %vm6983_vm5, %v6966_v52, %v7074_v14  ;;  %v7375_v23 = vsel %vm7372_vm8, %v15743_v3, %v11915_v35  ;;  %v7374_v2 = vsel %vm7372_vm8, %v15733_v12, %v11914_v16 }
 0x3c1   :  { %11982 = vrot.lane.b32.xlu1 %v11981_v20, %s12181_s27  ;;  %v7076_v22 = vsel %vm6985_vm6, %v6970_v60, %v7075_v17  ;;  %v7141_v28 = vsel %vm7109_vm7, %v6974_v11, 0.0  ;;  %v11920_v38 = vunpack.i.h.bf16 %v16780_v51  ;;  %v16838_v12 = vsel %vm7390_vm9, %v7375_v23, %v11925_v18  ;;  %10401 = vmatpush3.bf16.msra.mxu1 %v12086_v36 }
 0x3c2   :  { %v16827_v33 = vsel %vm7109_vm7, 0.0, %v7076_v22  ;;  %v7220_v61 = vrot.slane %v7141_v28, 1  ;;  %v7319_v37 = vrot.slane %v7141_v28, 2  ;;  %v16835_v3 = vsel %vm7390_vm9, %v7374_v2, %v11924_v40  ;;  %v11953_v9 = vpop.permute.xlu1 %11952  ;;  %10402 = vmatprep.subr.bf16.mxu1 %v12087_v30  ;;  %v11948_v46 = vpop.permute.xlu0 %11947 }
 0x3c3   :  { %v7219_v63 = vrot.slane %v16827_v33, 1  ;;  %v7318_v34 = vrot.slane %v16827_v33, 2  ;;  %v11919_v29 = vunpack.i.l.bf16 %v16780_v51  ;;  %v11934_v26 = vunpack.i.l.bf16 %v16792_v59 }
 0x3c4   :  { %v11930_v1 = vunpack.i.h.bf16 %v11928_v56  ;;  %v11929_v54 = vunpack.i.l.bf16 %v11928_v56  ;;  %v11935_v48 = vunpack.i.h.bf16 %v16792_v59  ;;  %v11991_v41 = vpack.i.bf16 %v16838_v12, %v16835_v3 }
 0x3c5   :  { %v7221_v35 = vsel %vm484_vm2, %v7219_v63, %v7220_v61  ;;  %v7320_v25 = vsel %vm842_vm1, %v7318_v34, %v7319_v37  ;;  %v7377_v13 = vsel %vm7372_vm8, %v16079_v31, %v11920_v38  ;;  %v11939_v16 = vunpack.i.l.bf16 %v11938_v10  ;;  %10403 = vmatpush3.bf16.msra.mxu1 %v12088_v27 }
 0x3c6   :  { %7254 = vrot.lane.b32.xlu0 %v7221_v35, %s12180_s22  ;;  %v11986_v51 = vpack.i.bf16 %v16838_v12, %v7320_v25  ;;  %v7378_v0 = vsel %vm7372_vm8, %v16176_v4, %v11934_v26  ;;  %v11944_v19 = vunpack.i.l.bf16 %v16813_v44  ;;  %v7376_v59 = vsel %vm7372_vm8, %v16076_v21, %v11919_v29  ;;  %s12182_s22 = smov 96   ;;  %v7338_v60 = vpop.permute.xlu0 %7337  ;;  %v12089_v35 = vld [vmem:[%s17622_s3 + $0x80] sm:$0xff]  }
 0x3c7   :  { %v11954_v6 = vunpack.i.l.bf16 %v11953_v9  ;;  %v16861_v52 = vsel %vm7390_vm9, %v7377_v13, %v11930_v1  ;;  %v11940_v55 = vunpack.i.h.bf16 %v11938_v10  ;;  %v16864_v57 = vsel %vm7390_vm9, %v7376_v59, %v11929_v54  ;;  %10624 = vmatprep.subr.bf16.mxu1 %v12089_v35 }
 0x3c8   :  { %11987 = vrot.lane.b32.xlu1 %v11986_v51, %s12181_s27  ;;  %v7379_v31 = vsel %vm7372_vm8, %v16194_v45, %v11935_v48  ;;  %v16870_v4 = vsel %vm7390_vm9, %v7378_v0, %v11939_v16  ;;  %v11949_v42 = vunpack.i.l.bf16 %v11948_v46  ;;  %v11945_v21 = vunpack.i.h.bf16 %v16813_v44 }
 0x3c9   :  { %v7380_v49 = vsel %vm7372_vm8, %v16228_v39, %v11944_v19  ;;  %v11996_v20 = vpack.i.bf16 %v16861_v52, %v16864_v57  ;;  %v7381_v45 = vsel %vm7372_vm8, %v16343_v32, %v11954_v6  ;;  %v16882_v11 = vsel %vm7390_vm9, %v7379_v31, %v11940_v55 }
 0x3ca   :  { %11992 = vrot.lane.b32.xlu0 %v11991_v41, %s12182_s22  ;;  %v12001_v14 = vpack.i.bf16 %v16870_v4, %v16861_v52  ;;  %v11950_v18 = vunpack.i.h.bf16 %v11948_v46  ;;  %v16888_v39 = vsel %vm7390_vm9, %v7380_v49, %v11949_v42  ;;  %v7399_v40 = vsel %vm7390_vm9, %v7381_v45, %v7338_v60  ;;  %v11958_v17 = vpop.permute.xlu0 %11957 }
 0x3cb   :  { %v7373_v56 = vsel %vm7372_vm8, 0.0, %v11945_v21  ;;  %v12006_v32 = vpack.i.bf16 %v16882_v11, %v16870_v4  ;;  %v11955_v44 = vunpack.i.h.bf16 %v11953_v9  ;;  %v12011_v22 = vpack.i.bf16 %v16888_v39, %v16882_v11 }
 0x3cc   :  { %7475 = vrot.lane.b32.xlu1 %v16864_v57, %s12181_s27  ;;  %v12016_v28 = vpack.i.bf16 %v7399_v40, %v16888_v39  ;;  %v16900_v36 = vsel %vm7390_vm9, %v7373_v56, %v11950_v18  ;;  %v11959_v23 = vunpack.i.l.bf16 %v11958_v17  ;;  %v11960_v63 = vunpack.i.h.bf16 %v11958_v17 }
 0x3cd   :  { %v12021_v38 = vpack.i.bf16 %v16900_v36, %v7399_v40  ;;  %v7382_v61 = vsel %vm7372_vm8, %v16380_v24, %v11955_v44  ;;  %vm7518_vm1 = vcmask 785408   ;;  %vm9636_vm2 = vcmask 1041409  }
 0x3ce   :  { %11997 = vrot.lane.b32.xlu0 %v11996_v20, %s12182_s22  ;;  %v16910_v37 = vsel %vm7390_vm9, %v7382_v61, %v11959_v23 }
 0x3d0   :  { %12002 = vrot.lane.b32.xlu1 %v12001_v14, %s12181_s27 }
 0x3d2   :  { %12007 = vrot.lane.b32.xlu0 %v12006_v32, %s12182_s22 }
 0x3d4   :  { %12012 = vrot.lane.b32.xlu1 %v12011_v22, %s12181_s27 }
 0x3d6   :  { %v11963_v2 = vpop.permute.xlu1 %11962  ;;  %12017 = vrot.lane.b32.xlu0 %v12016_v28, %s12182_s22 }
 0x3d7   :  { %v11964_v30 = vunpack.i.l.bf16 %v11963_v2  ;;  %v11965_v26 = vunpack.i.h.bf16 %v11963_v2 }
 0x3d8   :  { %12022 = vrot.lane.b32.xlu1 %v12021_v38, %s12181_s27 }
 0x3d9   :  { %v7383_v34 = vsel %vm7372_vm8, %v16431_v58, %v11964_v30  ;;  %v7384_v24 = vsel %vm7372_vm8, %v16495_v5, %v11965_v26 }
 0x3da   :  { %v16913_v29 = vsel %vm7390_vm9, %v7383_v34, %v11960_v63 }
 0x3db   :  { %v12026_v10 = vpack.i.bf16 %v16913_v29, %v16910_v37 }
 0x3dd   :  { %12027 = vrot.lane.b32.xlu0 %v12026_v10, %s12182_s22  ;;  %v12090_v10 = vld [vmem:[%s17622_s3 + $0x88] sm:$0xff]  }
 0x3e2   :  { %v7344_v1 = vpop.permute.xlu1 %7343 }
 0x3e3   :  { %v16922_v58 = vsel %vm7390_vm9, %v7384_v24, %v7344_v1 }
 0x3e4   :  { %v12031_v54 = vpack.i.bf16 %v16922_v58, %v16913_v29 }
 0x3e6   :  { %12032 = vrot.lane.b32.xlu1 %v12031_v54, %s12181_s27 }
 0x407   :  { %v11968_v25 = vpop.permute.xlu0 %11967 }
 0x408   :  { %v11970_v9 = vunpack.i.h.bf16 %v11968_v25  ;;  %v11969_v27 = vunpack.i.l.bf16 %v11968_v25  ;;  %v11973_v48 = vpop.permute.xlu1 %11972 }
 0x409   :  { %v11975_v41 = vunpack.i.h.bf16 %v11973_v48  ;;  %v11974_v13 = vunpack.i.l.bf16 %v11973_v48 }
 0x40a   :  { %v7386_v5 = vsel %vm7372_vm8, %v16641_v7, %v11970_v9  ;;  %v7385_v51 = vsel %vm7372_vm8, %v16637_v43, %v11969_v27 }
 0x40b   :  { %v16935_v16 = vsel %vm7390_vm9, %v7386_v5, %v11975_v41  ;;  %v16938_v0 = vsel %vm7390_vm9, %v7385_v51, %v11974_v13 }
 0x40c   :  { %v12041_v46 = vpack.i.bf16 %v16935_v16, %v16938_v0  ;;  %v12036_v19 = vpack.i.bf16 %v16938_v0, %v16922_v58 }
 0x40e   :  { %12042 = vrot.lane.b32.xlu1 %v12041_v46, %s12181_s27  ;;  %12037 = vrot.lane.b32.xlu0 %v12036_v19, %s12182_s22 }
 0x431   :  { %v11978_v7 = vpop.permute.xlu0 %11977 }
 0x432   :  { %v11980_v43 = vunpack.i.h.bf16 %v11978_v7  ;;  %v11979_v59 = vunpack.i.l.bf16 %v11978_v7 }
 0x433   :  { %v11983_v6 = vpop.permute.xlu1 %11982 }
 0x434   :  { %v7388_v55 = vsel %vm7372_vm8, %v16766_v8, %v11980_v43  ;;  %v7387_v31 = vsel %vm7372_vm8, %v16754_v62, %v11979_v59  ;;  %v11985_v42 = vunpack.i.h.bf16 %v11983_v6  ;;  %v11984_v21 = vunpack.i.l.bf16 %v11983_v6 }
 0x436   :  { %v16951_v49 = vsel %vm7390_vm9, %v7388_v55, %v11985_v42  ;;  %v16954_v60 = vsel %vm7390_vm9, %v7387_v31, %v11984_v21 }
 0x437   :  { %v12051_v20 = vpack.i.bf16 %v16951_v49, %v16954_v60  ;;  %v12046_v45 = vpack.i.bf16 %v16954_v60, %v16935_v16 }
 0x438   :  { %v7255_v14 = vpop.permute.xlu0 %7254 }
 0x439   :  { %12052 = vrot.lane.b32.xlu1 %v12051_v20, %s12181_s27  ;;  %12047 = vrot.lane.b32.xlu0 %v12046_v45, %s12182_s22  ;;  %v7389_v18 = vsel %vm7372_vm8, %v16827_v33, %v7255_v14 }
 0x43a   :  { %v11988_v62 = vpop.permute.xlu1 %11987 }
 0x43b   :  { %v11989_v8 = vunpack.i.l.bf16 %v11988_v62  ;;  %v11990_v56 = vunpack.i.h.bf16 %v11988_v62 }
 0x43c   :  { %v11993_v40 = vpop.permute.xlu0 %11992 }
 0x43d   :  { %v11995_v32 = vunpack.i.h.bf16 %v11993_v40  ;;  %v11994_v17 = vunpack.i.l.bf16 %v11993_v40  ;;  %v7407_v44 = vsel %vm7390_vm9, %v7389_v18, %v11989_v8 }
 0x43e   :  { %v7476_v22 = vpop.permute.xlu1 %7475  ;;  %7501 = vrot.lane.b32.xlu1 %v7407_v44, %s12181_s27  ;;  %v12056_v28 = vpack.i.bf16 %v7407_v44, %v16951_v49 }
 0x43f   :  { %v16967_v23 = vpack.c.bf16 %v7476_v22, %v11990_v56  ;;  %v7535_v2 = vsel %vm7390_vm9, %v11994_v17, %v11990_v56  ;;  %v7536_v38 = vsel %vm7390_vm9, %v11995_v32, %v7476_v22  ;;  %v7519_v33 = vsel %vm7518_vm1, %v16900_v36, %v11994_v17 }
 0x440   :  { %12057 = vrot.lane.b32.xlu0 %v12056_v28, %s12182_s22  ;;  %v11998_v30 = vpop.permute.xlu0 %11997  ;;  %v7552_v63 = vpack.c.bf16 %v7536_v38, %v7535_v2  ;;  %v7520_v61 = vsel %vm7518_vm1, %v16835_v3, %v11995_v32 }
 0x441   :  { %v7551_v34 = vpack.c.bf16 %v7520_v61, %v7519_v33  ;;  %v12000_v26 = vunpack.i.h.bf16 %v11998_v30  ;;  %v11999_v24 = vunpack.i.l.bf16 %v11998_v30 }
 0x442   :  { %v12003_v1 = vpop.permute.xlu1 %12002  ;;  %7782 = vmatprep.mubr.bf16.mxu1 %v7552_v63 }
 0x443   :  { %v12005_v54 = vunpack.i.h.bf16 %v12003_v1  ;;  %v12004_v25 = vunpack.i.l.bf16 %v12003_v1  ;;  %7783 = vmatmul.mubr.bf16.vlgmr.msra.gmra.mrb[0].mxu1 %v7551_v34  ;;  %v7521_v51 = vsel %vm7518_vm1, %v16838_v12, %v11999_v24  ;;  %v7522_v41 = vsel %vm7518_vm1, %v16864_v57, %v12000_v26 }
 0x444   :  { %v12008_v9 = vpop.permute.xlu0 %12007  ;;  %10625 = vmatpush3.bf16.msra.mxu1 %v12089_v35  ;;  %v7554_v6 = vpack.c.bf16 %v7522_v41, %v7521_v51 }
 0x445   :  { %v16979_v27 = vpack.c.bf16 %v12005_v54, %v12004_v25  ;;  %v7537_v48 = vsel %vm7390_vm9, %v11999_v24, %v12004_v25  ;;  %10626 = vmatprep.subr.bf16.mxu1 %v12090_v10  ;;  %v7538_v5 = vsel %vm7390_vm9, %v12000_v26, %v12005_v54  ;;  %v12009_v13 = vunpack.i.l.bf16 %v12008_v9 }
 0x446   :  { %v12013_v3 = vpop.permute.xlu1 %12012  ;;  %v7555_v7 = vpack.c.bf16 %v7538_v5, %v7537_v48  ;;  %v12010_v43 = vunpack.i.h.bf16 %v12008_v9 }
 0x447   :  { %v12015_v46 = vunpack.i.h.bf16 %v12013_v3  ;;  %v12014_v19 = vunpack.i.l.bf16 %v12013_v3  ;;  %v7523_v14 = vsel %vm7518_vm1, %v16861_v52, %v12009_v13 }
 0x448   :  { %v12018_v35 = vpop.permute.xlu0 %12017  ;;  %10627 = vmatpush3.bf16.msra.mxu1 %v12090_v10  ;;  %7790 = vmatprep.mubr.bf16.mxu1 %v7555_v7  ;;  %v7524_v62 = vsel %vm7518_vm1, %v16870_v4, %v12010_v43 }
 0x449   :  { %v16987_v59 = vpack.c.bf16 %v12015_v46, %v12014_v19  ;;  %v7539_v55 = vsel %vm7390_vm9, %v12009_v13, %v12014_v19  ;;  %v12020_v31 = vunpack.i.h.bf16 %v12018_v35  ;;  %v7540_v12 = vsel %vm7390_vm9, %v12010_v43, %v12015_v46 }
 0x44a   :  { %v16990_v42 = vpop.permute.xlu1 %12022  ;;  %v12019_v21 = vunpack.i.l.bf16 %v12018_v35  ;;  %v7558_v45 = vpack.c.bf16 %v7540_v12, %v7539_v55  ;;  %v7557_v40 = vpack.c.bf16 %v7524_v62, %v7523_v14 }
 0x44b   :  { %v16994_v57 = vunpack.i.h.bf16 %v16990_v42  ;;  %v12024_v20 = vunpack.i.l.bf16 %v16990_v42  ;;  %7791 = vmatmul.mubr.bf16.gmra.mrb[4].mxu1 %v7554_v6  ;;  %v7526_v52 = vsel %vm7518_vm1, %v16888_v39, %v12020_v31 }
 0x44c   :  { %7798 = vmatprep.mubr.bf16.mxu1 %v7558_v45  ;;  %v7525_v17 = vsel %vm7518_vm1, %v16882_v11, %v12019_v21 }
 0x44d   :  { %v7541_v8 = vsel %vm7390_vm9, %v12019_v21, %v12024_v20  ;;  %v7542_v18 = vsel %vm7390_vm9, %v12020_v31, %v16994_v57  ;;  %v7560_v38 = vpack.c.bf16 %v7526_v52, %v7525_v17 }
 0x44e   :  { %v7561_v56 = vpack.c.bf16 %v7542_v18, %v7541_v8 }
 0x44f   :  { %v12028_v32 = vpop.permute.xlu0 %12027 }
 0x450   :  { %v12030_v44 = vunpack.i.h.bf16 %v12028_v32  ;;  %v12029_v4 = vunpack.i.l.bf16 %v12028_v32 }
 0x452   :  { %v7527_v11 = vsel %vm7518_vm1, %v16900_v36, %v12029_v4  ;;  %v7528_v39 = vsel %vm7518_vm1, %v16910_v37, %v12030_v44 }
 0x453   :  { %7799 = vmatmul.mubr.bf16.gmra.mrb[8].mxu1 %v7557_v40  ;;  %v7563_v34 = vpack.c.bf16 %v7528_v39, %v7527_v11 }
 0x454   :  { %7806 = vmatprep.mubr.bf16.mxu1 %v7561_v56 }
 0x458   :  { %v12033_v22 = vpop.permute.xlu1 %12032 }
 0x459   :  { %v12035_v28 = vunpack.i.h.bf16 %v12033_v22  ;;  %v12034_v2 = vunpack.i.l.bf16 %v12033_v22 }
 0x45b   :  { %v7565_v33 = vpack.c.bf16 %v12035_v28, %v12034_v2  ;;  %v7543_v30 = vsel %vm7390_vm9, %v12029_v4, %v12034_v2  ;;  %v7544_v63 = vsel %vm7390_vm9, %v12030_v44, %v12035_v28  ;;  %7807 = vmatmul.mubr.bf16.gmra.mrb[12].mxu1 %v7560_v38 }
 0x45c   :  { %v7564_v61 = vpack.c.bf16 %v7544_v63, %v7543_v30 }
 0x45e   :  { %7814 = vmatprep.mubr.bf16.mxu1 %v7564_v61 }
 0x463   :  { %7815 = vmatmul.mubr.bf16.gmra.mrb[16].mxu1 %v7563_v34 }
 0x480   :  { %v12043_v10 = vpop.permute.xlu1 %12042  ;;  %v12038_v26 = vpop.permute.xlu0 %12037 }
 0x481   :  { %v12045_v24 = vunpack.i.h.bf16 %v12043_v10  ;;  %v12044_v1 = vunpack.i.l.bf16 %v12043_v10  ;;  %v12040_v54 = vunpack.i.h.bf16 %v12038_v26  ;;  %v12039_v25 = vunpack.i.l.bf16 %v12038_v26 }
 0x483   :  { %v7568_v9 = vpack.c.bf16 %v12045_v24, %v12044_v1  ;;  %v7545_v48 = vsel %vm7390_vm9, %v12039_v25, %v12044_v1  ;;  %v7546_v3 = vsel %vm7390_vm9, %v12040_v54, %v12045_v24  ;;  %v7529_v5 = vsel %vm7518_vm1, %v16913_v29, %v12039_v25 }
 0x484   :  { %v7567_v36 = vpack.c.bf16 %v7546_v3, %v7545_v48  ;;  %v7530_v37 = vsel %vm7518_vm1, %v16922_v58, %v12040_v54 }
 0x485   :  { %v7566_v51 = vpack.c.bf16 %v7530_v37, %v7529_v5 }
 0x486   :  { %7822 = vmatprep.mubr.bf16.mxu1 %v7567_v36 }
 0x487   :  { %7823 = vmatmul.mubr.bf16.gmra.mrb[20].mxu1 %v7566_v51 }
 0x4ab   :  { %v12053_v41 = vpop.permute.xlu1 %12052  ;;  %v12048_v13 = vpop.permute.xlu0 %12047 }
 0x4ac   :  { %v12055_v46 = vunpack.i.h.bf16 %v12053_v41  ;;  %v12054_v19 = vunpack.i.l.bf16 %v12053_v41  ;;  %v12050_v7 = vunpack.i.h.bf16 %v12048_v13  ;;  %v12049_v43 = vunpack.i.l.bf16 %v12048_v13 }
 0x4ae   :  { %v7547_v35 = vsel %vm7390_vm9, %v12049_v43, %v12054_v19  ;;  %v7548_v6 = vsel %vm7390_vm9, %v12050_v7, %v12055_v46  ;;  %v7531_v29 = vsel %vm7518_vm1, %v16938_v0, %v12049_v43  ;;  %v7532_v58 = vsel %vm7518_vm1, %v16935_v16, %v12050_v7 }
 0x4af   :  { %v7570_v55 = vpack.c.bf16 %v7548_v6, %v7547_v35  ;;  %v7569_v31 = vpack.c.bf16 %v7532_v58, %v7531_v29 }
 0x4b0   :  { %v7502_v14 = vpop.permute.xlu1 %7501 }
 0x4b1   :  { %7830 = vmatprep.mubr.bf16.mxu1 %v7570_v55 }
 0x4b2   :  { %7831 = vmatmul.mubr.bf16.gmra.mrb[24].mxu1 %v7569_v31  ;;  %v12058_v12 = vpop.permute.xlu0 %12057 }
 0x4b3   :  { %v12060_v21 = vunpack.i.h.bf16 %v12058_v12  ;;  %v12059_v45 = vunpack.i.l.bf16 %v12058_v12 }
 0x4b5   :  { %v7549_v62 = vsel %vm7390_vm9, %v12059_v45, %v7502_v14  ;;  %v7550_v8 = vsel %vm7390_vm9, %v12060_v21, %v16994_v57  ;;  %v7533_v18 = vsel %vm7518_vm1, %v16954_v60, %v12059_v45  ;;  %v7534_v0 = vsel %vm7518_vm1, %v16951_v49, %v12060_v21  ;;  %v10170_v21 = vld [vmem:[%s17623_s4] ss:$0 sm:$0xff] }
 0x4b6   :  { %v7573_v40 = vpack.c.bf16 %v7550_v8, %v7549_v62  ;;  %v7572_v16 = vpack.c.bf16 %v7534_v0, %v7533_v18  ;;  %v7562_v60 = vpack.c.bf16 %v16994_v57, %v12024_v20  ;;  %v7571_v49 = vpack.c.bf16 %v12055_v46, %v12054_v19 }
 0x4b8   :  { %7838 = vmatprep.mubr.bf16.mxu1 %v7573_v40 }
 0x4ba   :  { %7839 = vmatmul.mubr.bf16.gmra.mrb[28].mxu1 %v7572_v16 }
 0x4bb   :  { %10628 = vmatprep.mubr.msk.bf16.mxu1 %vm7372_vm8, %v16967_v23  ;;  %v7574_v23 = vpack.c.bf16 %v16994_v57, %v7502_v14 }
 0x4c2   :  { %10629 = vmatmul.mubr.msk.bf16.vlgmr.msra.gmra.mrb[32].mxu1 %vm7372_vm8, %v16979_v27 }
 0x4c3   :  { %10632 = vmatprep.mubr.msk.bf16.mxu1 %vm7372_vm8, %v16987_v59 }
 0x4ca   :  { %10633 = vmatmul.mubr.msk.bf16.gmra.mrb[36].mxu1 %vm7372_vm8, %v7562_v60 }
 0x4cb   :  { %10636 = vmatprep.mubr.msk.bf16.mxu1 %vm7372_vm8, %v7565_v33 }
 0x4d2   :  { %10637 = vmatmul.mubr.msk.bf16.gmra.mrb[40].mxu1 %vm7372_vm8, %v7568_v9 }
 0x4d3   :  { %10640 = vmatprep.mubr.msk.bf16.mxu1 %vm7372_vm8, %v7571_v49 }
 0x4da   :  { %10641 = vmatmul.mubr.msk.bf16.gmra.mrb[44].mxu1 %vm7372_vm8, %v7574_v23 }
 0x516   :  { %v10404_v27 = vpop.f32.mrb[0].mxu1 }
 0x517   :  { %v10405_v56 = vpop.f32.mrb[1].mxu1 }
 0x518   :  { %v10406_v59 = vadd.f32 %v10405_v56, %v10404_v27  ;;  %v10407_v32 = vpop.f32.mrb[2].mxu1 }
 0x519   :  { %v10408_v42 = vpop.f32.mrb[3].mxu1 }
 0x51a   :  { %v10409_v17 = vadd.f32 %v10408_v42, %v10407_v32  ;;  %v7785_v62 = vadd.f32 %v10406_v59, %v10170_v21 }
 0x51c   :  { %v7788_v18 = vadd.f32 %v10409_v17, %v10170_v21 }
 0x51e   :  { %v10410_v20 = vpop.f32.mrb[4].mxu1 }
 0x51f   :  { %v10411_v52 = vpop.f32.mrb[5].mxu1 }
 0x520   :  { %v10412_v44 = vadd.f32 %v10411_v52, %v10410_v20  ;;  %v10413_v4 = vpop.f32.mrb[6].mxu1 }
 0x521   :  { %v10414_v22 = vpop.f32.mrb[7].mxu1 }
 0x522   :  { %v10415_v28 = vadd.f32 %v10414_v22, %v10413_v4  ;;  %v7793_v45 = vadd.f32 %v10412_v44, %v10170_v21 }
 0x524   :  { %v7796_v8 = vadd.f32 %v10415_v28, %v10170_v21 }
 0x526   :  { %v10416_v2 = vpop.f32.mrb[8].mxu1 }
 0x527   :  { %v10417_v38 = vpop.f32.mrb[9].mxu1 }
 0x528   :  { %v10418_v33 = vadd.f32 %v10417_v38, %v10416_v2  ;;  %v10419_v30 = vpop.f32.mrb[10].mxu1 }
 0x529   :  { %v10420_v63 = vpop.f32.mrb[11].mxu1 }
 0x52a   :  { %v10421_v57 = vadd.f32 %v10420_v63, %v10419_v30  ;;  %v17055_v60 = vadd.f32 %v10418_v33, %v10170_v21 }
 0x52c   :  { %v17057_v49 = vadd.f32 %v10421_v57, %v10170_v21 }
 0x52e   :  { %v10422_v61 = vpop.f32.mrb[12].mxu1 }
 0x52f   :  { %v10423_v11 = vpop.f32.mrb[13].mxu1 }
 0x530   :  { %v10424_v39 = vadd.f32 %v10423_v11, %v10422_v61  ;;  %v10425_v34 = vpop.f32.mrb[14].mxu1 }
 0x531   :  { %v10426_v10 = vpop.f32.mrb[15].mxu1 }
 0x532   :  { %v10427_v26 = vadd.f32 %v10426_v10, %v10425_v34  ;;  %v17053_v16 = vadd.f32 %v10424_v39, %v10170_v21 }
 0x534   :  { %v17059_v56 = vadd.f32 %v10427_v26, %v10170_v21 }
 0x536   :  { %v10428_v24 = vpop.f32.mrb[16].mxu1 }
 0x537   :  { %v10429_v1 = vpop.f32.mrb[17].mxu1 }
 0x538   :  { %v10430_v54 = vadd.f32 %v10429_v1, %v10428_v24  ;;  %v10431_v25 = vpop.f32.mrb[18].mxu1 }
 0x539   :  { %v10432_v9 = vpop.f32.mrb[19].mxu1 }
 0x53a   :  { %v10433_v48 = vadd.f32 %v10432_v9, %v10431_v25  ;;  %v17061_v32 = vadd.f32 %v10430_v54, %v10170_v21 }
 0x53c   :  { %v17063_v42 = vadd.f32 %v10433_v48, %v10170_v21 }
 0x55a   :  { %v10434_v3 = vpop.f32.mrb[20].mxu1 }
 0x55b   :  { %v10435_v5 = vpop.f32.mrb[21].mxu1 }
 0x55c   :  { %v10436_v36 = vadd.f32 %v10435_v5, %v10434_v3  ;;  %v10437_v37 = vpop.f32.mrb[22].mxu1 }
 0x55d   :  { %v10438_v51 = vpop.f32.mrb[23].mxu1 }
 0x55e   :  { %v10439_v41 = vadd.f32 %v10438_v51, %v10437_v37  ;;  %v17065_v17 = vadd.f32 %v10436_v36, %v10170_v21 }
 0x560   :  { %v17067_v44 = vadd.f32 %v10439_v41, %v10170_v21 }
 0x585   :  { %v10440_v13 = vpop.f32.mrb[24].mxu1 }
 0x586   :  { %v10441_v46 = vpop.f32.mrb[25].mxu1 }
 0x587   :  { %v10442_v19 = vadd.f32 %v10441_v46, %v10440_v13  ;;  %v10443_v7 = vpop.f32.mrb[26].mxu1 }
 0x588   :  { %v10444_v43 = vpop.f32.mrb[27].mxu1 }
 0x589   :  { %v10445_v35 = vadd.f32 %v10444_v43, %v10443_v7  ;;  %v17069_v28 = vadd.f32 %v10442_v19, %v10170_v21 }
 0x58b   :  { %v17071_v2 = vadd.f32 %v10445_v35, %v10170_v21 }
 0x58d   :  { %v10446_v6 = vpop.f32.mrb[28].mxu1 }
 0x58e   :  { %v10447_v29 = vpop.f32.mrb[29].mxu1 }
 0x58f   :  { %v10448_v55 = vadd.f32 %v10447_v29, %v10446_v6  ;;  %v10449_v58 = vpop.f32.mrb[30].mxu1 }
 0x590   :  { %v10450_v31 = vpop.f32.mrb[31].mxu1 }
 0x591   :  { %v10451_v12 = vadd.f32 %v10450_v31, %v10449_v58  ;;  %v17074_v63 = vadd.f32 %v10448_v55, %v10170_v21 }
 0x593   :  { %v17077_v39 = vadd.f32 %v10451_v12, %v10170_v21 }
 0x595   :  { %v10630_v14 = vpop.f32.mrb[32].mxu1 }
 0x596   :  { %v7890_v0 = vadd.f32 %v10630_v14, %v7793_v45  ;;  %v7881_v40 = vpop.f32.mrb[33].mxu1 }
 0x597   :  { %v7882_v23 = vadd.f32 %v7881_v40, %v7785_v62  ;;  %v10631_v27 = vpop.f32.mrb[34].mxu1 }
 0x598   :  { %v7946_v20 = vmax.f32 %v7890_v0, 0.0  ;;  %v7893_v59 = vadd.f32 %v10631_v27, %v7796_v8  ;;  %v7884_v52 = vpop.f32.mrb[35].mxu1 }
 0x599   :  { %v7944_v4 = vmax.f32 %v7882_v23, 0.0  ;;  %v7885_v22 = vadd.f32 %v7884_v52, %v7788_v18 }
 0x59a   :  { %v8010_v38 = vcombine.high %v7946_v20, %v7946_v20  ;;  %v8017_v33 = vrot.slane %v7946_v20, %v15365_v53  ;;  %v7947_v30 = vmax.f32 %v7893_v59, 0.0 }
 0x59b   :  { %v7976_v57 = vcombine.high %v7944_v4, %v7944_v4  ;;  %v7983_v61 = vrot.slane %v7944_v4, %v15365_v53  ;;  %v7945_v11 = vmax.f32 %v7885_v22, 0.0 }
 0x59c   :  { %v8024_v34 = vrot.slane %v8010_v38, %v15365_v53  ;;  %v8025_v10 = vcombine.high %v8017_v33, %v8017_v33  ;;  %v10205_v26 = vrot.slane %v8017_v33, 9  ;;  %v8027_v24 = vcombine.high %v7947_v30, %v7947_v30 }
 0x59d   :  { %v7990_v1 = vrot.slane %v7976_v57, %v15365_v53  ;;  %v7991_v54 = vcombine.high %v7983_v61, %v7983_v61  ;;  %v10197_v25 = vrot.slane %v7983_v61, 9  ;;  %v8034_v9 = vrot.slane %v7947_v30, %v15365_v53  ;;  %v10634_v48 = vpop.f32.mrb[36].mxu1 }
 0x59e   :  { %v8026_v3 = vcombine.high %v8024_v34, %v8024_v34  ;;  %v10206_v5 = vrot.slane %v8025_v10, 9  ;;  %v10207_v36 = vrot.slane %v8024_v34, 9  ;;  %v8512_v37 = vmax.f32 %v8017_v33, %v10205_v26  ;;  %v17082_v51 = vpop.f32.mrb[37].mxu1 }
 0x59f   :  { %v7992_v41 = vcombine.high %v7990_v1, %v7990_v1  ;;  %v10198_v13 = vrot.slane %v7991_v54, 9  ;;  %v10199_v46 = vrot.slane %v7990_v1, 9  ;;  %v8504_v19 = vmax.f32 %v7983_v61, %v10197_v25  ;;  %v17084_v7 = vpop.f32.mrb[38].mxu1 }
 0x5a0   :  { %v10208_v43 = vrot.slane %v8026_v3, 9  ;;  %v8513_v35 = vmax.f32 %v8025_v10, %v10206_v5  ;;  %v8514_v6 = vmax.f32 %v8024_v34, %v10207_v36  ;;  %v8041_v29 = vrot.slane %v8027_v24, %v15365_v53  ;;  %v17087_v55 = vpop.f32.mrb[39].mxu1 }
 0x5a1   :  { %v10200_v58 = vrot.slane %v7992_v41, 9  ;;  %v8505_v31 = vmax.f32 %v7991_v54, %v10198_v13  ;;  %v8506_v12 = vmax.f32 %v7990_v1, %v10199_v46  ;;  %v8042_v21 = vcombine.high %v8034_v9, %v8034_v9 }
 0x5a2   :  { %v8515_v45 = vmax.f32 %v8026_v3, %v10208_v43  ;;  %v8043_v14 = vcombine.high %v8041_v29, %v8041_v29  ;;  %v10209_v62 = vrot.slane %v8034_v9, 9  ;;  %v10211_v8 = vrot.slane %v8041_v29, 9 }
 0x5a3   :  { %v8507_v18 = vmax.f32 %v7992_v41, %v10200_v58  ;;  %v10210_v0 = vrot.slane %v8042_v21, 9  ;;  %v7993_v40 = vcombine.high %v7945_v11, %v7945_v11  ;;  %v8000_v23 = vrot.slane %v7945_v11, %v15365_v53 }
 0x5a4   :  { %v10212_v27 = vrot.slane %v8043_v14, 9  ;;  %v8516_v20 = vmax.f32 %v8034_v9, %v10209_v62  ;;  %v8518_v59 = vmax.f32 %v8041_v29, %v10211_v8  ;;  %v7906_v52 = vadd.f32 %v10634_v48, %v17053_v16 }
 0x5a5   :  { %v8517_v4 = vmax.f32 %v8042_v21, %v10210_v0  ;;  %v8007_v22 = vrot.slane %v7993_v40, %v15365_v53  ;;  %v8008_v38 = vcombine.high %v8000_v23, %v8000_v23  ;;  %v10201_v33 = vrot.slane %v8000_v23, 9  ;;  %v10638_v30 = vpop.f32.mrb[40].mxu1 }
 0x5a6   :  { %v8519_v57 = vmax.f32 %v8043_v14, %v10212_v27  ;;  %v8572_v61 = vmax.f32 %v8512_v37, %v8516_v20  ;;  %v8574_v34 = vmax.f32 %v8514_v6, %v8518_v59  ;;  %v7950_v10 = vmax.f32 %v7906_v52, 0.0  ;;  %v7913_v26 = vpop.f32.mrb[41].mxu1 }
 0x5a7   :  { %v8573_v24 = vmax.f32 %v8513_v35, %v8517_v4  ;;  %v8009_v1 = vcombine.high %v8007_v22, %v8007_v22  ;;  %v10202_v54 = vrot.slane %v8008_v38, 9  ;;  %v10203_v11 = vrot.slane %v8007_v22, 9  ;;  %v10639_v25 = vpop.f32.mrb[42].mxu1 }
 0x5a8   :  { %v8575_v9 = vmax.f32 %v8515_v45, %v8519_v57  ;;  %v8651_v3 = vrot.slane %v8572_v61, %v15385_v15  ;;  %v17094_v16 = vrot.slane %v8574_v34, %v15385_v15  ;;  %v8508_v48 = vmax.f32 %v8000_v23, %v10201_v33  ;;  %v17096_v5 = vpop.f32.mrb[43].mxu1 }
 0x5a9   :  { %v8655_v36 = vrot.slane %v8573_v24, %v15385_v15  ;;  %v10204_v37 = vrot.slane %v8009_v1, 9  ;;  %v8509_v41 = vmax.f32 %v8008_v38, %v10202_v54  ;;  %v8510_v13 = vmax.f32 %v8007_v22, %v10203_v11 }
 0x5aa   :  { %v17100_v46 = vrot.slane %v8575_v9, %v15385_v15  ;;  %v8568_v43 = vmax.f32 %v8504_v19, %v8508_v48  ;;  %v8078_v35 = vcombine.high %v7950_v10, %v7950_v10  ;;  %v8085_v6 = vrot.slane %v7950_v10, %v15365_v53 }
 0x5ab   :  { %v17104_v29 = vsel %vm6975_vm14, %v8655_v36, %v8651_v3  ;;  %v8511_v58 = vmax.f32 %v8009_v1, %v10204_v37  ;;  %v8569_v21 = vmax.f32 %v8505_v31, %v8509_v41  ;;  %v8570_v45 = vmax.f32 %v8506_v12, %v8510_v13 }
 0x5ac   :  { %v8635_v14 = vrot.slane %v8568_v43, %v15385_v15  ;;  %v8092_v62 = vrot.slane %v8078_v35, %v15365_v53  ;;  %v8093_v8 = vcombine.high %v8085_v6, %v8085_v6  ;;  %v10221_v0 = vrot.slane %v8085_v6, 9 }
 0x5ad   :  { %v8571_v40 = vmax.f32 %v8507_v18, %v8511_v58  ;;  %v8639_v23 = vrot.slane %v8569_v21, %v15385_v15  ;;  %v17110_v19 = vrot.slane %v8570_v45, %v15385_v15  ;;  %v7898_v27 = vadd.f32 %v17082_v51, %v17055_v60  ;;  %v17114_v20 = vpop.f32.mrb[44].mxu1 }
 0x5ae   :  { %v8094_v59 = vcombine.high %v8092_v62, %v8092_v62  ;;  %v10222_v31 = vrot.slane %v8093_v8, 9  ;;  %v10223_v12 = vrot.slane %v8092_v62, 9  ;;  %v8528_v52 = vmax.f32 %v8085_v6, %v10221_v0  ;;  %v17116_v4 = vpop.f32.mrb[45].mxu1 }
 0x5af   :  { %v17119_v22 = vrot.slane %v8571_v40, %v15385_v15  ;;  %v17122_v18 = vsel %vm6975_vm14, %v8639_v23, %v8635_v14  ;;  %v7948_v38 = vmax.f32 %v7898_v27, 0.0  ;;  %v7909_v33 = vadd.f32 %v17084_v7, %v17059_v56  ;;  %v17126_v57 = vpop.f32.mrb[46].mxu1 }
 0x5b0   :  { %v10224_v60 = vrot.slane %v8094_v59, 9  ;;  %v8529_v51 = vmax.f32 %v8093_v8, %v10222_v31  ;;  %v8530_v61 = vmax.f32 %v8092_v62, %v10223_v12  ;;  %v7901_v34 = vadd.f32 %v17087_v55, %v17057_v49  ;;  %v17130_v10 = vpop.f32.mrb[47].mxu1 }
 0x5b1   :  { %v8044_v24 = vcombine.high %v7948_v38, %v7948_v38  ;;  %v8051_v1 = vrot.slane %v7948_v38, %v15365_v53  ;;  %v7951_v54 = vmax.f32 %v7909_v33, 0.0  ;;  %v7922_v11 = vadd.f32 %v10638_v30, %v17065_v17 }
 0x5b2   :  { %v8531_v9 = vmax.f32 %v8094_v59, %v10224_v60  ;;  %v7949_v3 = vmax.f32 %v7901_v34, 0.0  ;;  %v7914_v56 = vadd.f32 %v7913_v26, %v17061_v32  ;;  %v17136_v7 = vadd.f32 %v10639_v25, %v17067_v44 }
 0x5b3   :  { %v8058_v48 = vrot.slane %v8044_v24, %v15365_v53  ;;  %v8059_v36 = vcombine.high %v8051_v1, %v8051_v1  ;;  %v10213_v37 = vrot.slane %v8051_v1, 9  ;;  %v8095_v49 = vcombine.high %v7951_v54, %v7951_v54 }
 0x5b4   :  { %v8102_v55 = vrot.slane %v7951_v54, %v15365_v53  ;;  %v8061_v41 = vcombine.high %v7949_v3, %v7949_v3  ;;  %v8068_v13 = vrot.slane %v7949_v3, %v15365_v53  ;;  %v7954_v43 = vmax.f32 %v7922_v11, 0.0 }
 0x5b5   :  { %v8060_v35 = vcombine.high %v8058_v48, %v8058_v48  ;;  %v10214_v17 = vrot.slane %v8059_v36, 9  ;;  %v10215_v30 = vrot.slane %v8058_v48, 9  ;;  %v8520_v6 = vmax.f32 %v8051_v1, %v10213_v37 }
 0x5b6   :  { %v8109_v32 = vrot.slane %v8095_v49, %v15365_v53  ;;  %v8110_v26 = vcombine.high %v8102_v55, %v8102_v55  ;;  %v10225_v44 = vrot.slane %v8102_v55, 9  ;;  %v8075_v25 = vrot.slane %v8061_v41, %v15365_v53 }
 0x5b7   :  { %v10216_v58 = vrot.slane %v8060_v35, 9  ;;  %v8521_v21 = vmax.f32 %v8059_v36, %v10214_v17  ;;  %v8522_v45 = vmax.f32 %v8058_v48, %v10215_v30  ;;  %v8076_v14 = vcombine.high %v8068_v13, %v8068_v13 }
 0x5b8   :  { %v8111_v62 = vcombine.high %v8109_v32, %v8109_v32  ;;  %v10226_v8 = vrot.slane %v8110_v26, 9  ;;  %v10227_v0 = vrot.slane %v8109_v32, 9  ;;  %v8532_v40 = vmax.f32 %v8102_v55, %v10225_v44 }
 0x5b9   :  { %v8523_v23 = vmax.f32 %v8060_v35, %v10216_v58  ;;  %v8077_v27 = vcombine.high %v8075_v25, %v8075_v25  ;;  %v10217_v59 = vrot.slane %v8068_v13, 9  ;;  %v10218_v31 = vrot.slane %v8076_v14, 9 }
 0x5ba   :  { %v10228_v12 = vrot.slane %v8111_v62, 9  ;;  %v8533_v38 = vmax.f32 %v8110_v26, %v10226_v8  ;;  %v8534_v33 = vmax.f32 %v8109_v32, %v10227_v0  ;;  %v8580_v60 = vmax.f32 %v8528_v52, %v8532_v40 }
 0x5bb   :  { %v10219_v34 = vrot.slane %v8075_v25, 9  ;;  %v10220_v24 = vrot.slane %v8077_v27, 9  ;;  %v8524_v1 = vmax.f32 %v8068_v13, %v10217_v59  ;;  %v8525_v54 = vmax.f32 %v8076_v14, %v10218_v31 }
 0x5bc   :  { %v8535_v11 = vmax.f32 %v8111_v62, %v10228_v12  ;;  %v8581_v3 = vmax.f32 %v8529_v51, %v8533_v38  ;;  %v8582_v48 = vmax.f32 %v8530_v61, %v8534_v33  ;;  %v8683_v36 = vrot.slane %v8580_v60, %v15385_v15 }
 0x5bd   :  { %v8526_v37 = vmax.f32 %v8075_v25, %v10219_v34  ;;  %v8527_v49 = vmax.f32 %v8077_v27, %v10220_v24  ;;  %v8576_v55 = vmax.f32 %v8520_v6, %v8524_v1  ;;  %v8577_v41 = vmax.f32 %v8521_v21, %v8525_v54 }
 0x5be   :  { %v8583_v35 = vmax.f32 %v8531_v9, %v8535_v11  ;;  %v8687_v17 = vrot.slane %v8581_v3, %v15385_v15  ;;  %v17146_v30 = vrot.slane %v8582_v48, %v15385_v15  ;;  %v8146_v52 = vcombine.high %v7954_v43, %v7954_v43 }
 0x5bf   :  { %v8578_v32 = vmax.f32 %v8522_v45, %v8526_v37  ;;  %v8579_v26 = vmax.f32 %v8523_v23, %v8527_v49  ;;  %v8667_v13 = vrot.slane %v8576_v55, %v15385_v15  ;;  %v8671_v51 = vrot.slane %v8577_v41, %v15385_v15 }
 0x5c0   :  { %v17151_v61 = vrot.slane %v8583_v35, %v15385_v15  ;;  %v17154_v44 = vsel %vm6975_vm14, %v8687_v17, %v8683_v36  ;;  %v8153_v9 = vrot.slane %v7954_v43, %v15365_v53  ;;  %v8160_v6 = vrot.slane %v8146_v52, %v15365_v53 }
 0x5c1   :  { %v17159_v25 = vrot.slane %v8578_v32, %v15385_v15  ;;  %v17162_v58 = vrot.slane %v8579_v26, %v15385_v15  ;;  %v17165_v21 = vsel %vm6975_vm14, %v8671_v51, %v8667_v13  ;;  %v7952_v45 = vmax.f32 %v7914_v56, 0.0 }
 0x5c2   :  { %v8161_v14 = vcombine.high %v8153_v9, %v8153_v9  ;;  %v8162_v62 = vcombine.high %v8160_v6, %v8160_v6  ;;  %v10237_v8 = vrot.slane %v8153_v9, 9  ;;  %v10239_v0 = vrot.slane %v8160_v6, 9 }
 0x5c3   :  { %v8112_v40 = vcombine.high %v7952_v45, %v7952_v45  ;;  %v8119_v23 = vrot.slane %v7952_v45, %v15365_v53  ;;  %v7955_v43 = vmax.f32 %v17136_v7, 0.0  ;;  %v7917_v27 = vadd.f32 %v17096_v5, %v17063_v42 }
 0x5c4   :  { %v10238_v59 = vrot.slane %v8161_v14, 9  ;;  %v10240_v31 = vrot.slane %v8162_v62, 9  ;;  %v8544_v12 = vmax.f32 %v8153_v9, %v10237_v8  ;;  %v8546_v38 = vmax.f32 %v8160_v6, %v10239_v0 }
 0x5c5   :  { %v8126_v33 = vrot.slane %v8112_v40, %v15365_v53  ;;  %v8127_v60 = vcombine.high %v8119_v23, %v8119_v23  ;;  %v10229_v56 = vrot.slane %v8119_v23, 9  ;;  %v8163_v34 = vcombine.high %v7955_v43, %v7955_v43 }
 0x5c6   :  { %v8545_v24 = vmax.f32 %v8161_v14, %v10238_v59  ;;  %v8547_v1 = vmax.f32 %v8162_v62, %v10240_v31  ;;  %v8170_v54 = vrot.slane %v7955_v43, %v15365_v53  ;;  %v7953_v11 = vmax.f32 %v7917_v27, 0.0 }
 0x5c7   :  { %v8128_v3 = vcombine.high %v8126_v33, %v8126_v33  ;;  %v10230_v48 = vrot.slane %v8127_v60, 9  ;;  %v10231_v7 = vrot.slane %v8126_v33, 9  ;;  %v8536_v36 = vmax.f32 %v8119_v23, %v10229_v56 }
 0x5c8   :  { %v8177_v42 = vrot.slane %v8163_v34, %v15365_v53  ;;  %v8178_v5 = vcombine.high %v8170_v54, %v8170_v54  ;;  %v10241_v37 = vrot.slane %v8170_v54, 9  ;;  %v8129_v49 = vcombine.high %v7953_v11, %v7953_v11 }
 0x5c9   :  { %v10232_v55 = vrot.slane %v8128_v3, 9  ;;  %v8537_v41 = vmax.f32 %v8127_v60, %v10230_v48  ;;  %v8538_v35 = vmax.f32 %v8126_v33, %v10231_v7  ;;  %v8136_v17 = vrot.slane %v7953_v11, %v15365_v53 }
 0x5ca   :  { %v8179_v52 = vcombine.high %v8177_v42, %v8177_v42  ;;  %v10242_v32 = vrot.slane %v8178_v5, 9  ;;  %v10243_v26 = vrot.slane %v8177_v42, 9  ;;  %v8548_v13 = vmax.f32 %v8170_v54, %v10241_v37 }
 0x5cb   :  { %v8539_v51 = vmax.f32 %v8128_v3, %v10232_v55  ;;  %v8143_v9 = vrot.slane %v8129_v49, %v15365_v53  ;;  %v8144_v6 = vcombine.high %v8136_v17, %v8136_v17  ;;  %v10233_v45 = vrot.slane %v8136_v17, 9 }
 0x5cc   :  { %v10244_v14 = vrot.slane %v8179_v52, 9  ;;  %v8549_v62 = vmax.f32 %v8178_v5, %v10242_v32  ;;  %v8550_v8 = vmax.f32 %v8177_v42, %v10243_v26  ;;  %v8588_v0 = vmax.f32 %v8544_v12, %v8548_v13 }
 0x5cd   :  { %v8145_v40 = vcombine.high %v8143_v9, %v8143_v9  ;;  %v10234_v23 = vrot.slane %v8144_v6, 9  ;;  %v10235_v43 = vrot.slane %v8143_v9, 9  ;;  %v8540_v27 = vmax.f32 %v8136_v17, %v10233_v45 }
 0x5ce   :  { %v8551_v59 = vmax.f32 %v8179_v52, %v10244_v14  ;;  %v8589_v31 = vmax.f32 %v8545_v24, %v8549_v62  ;;  %v8590_v33 = vmax.f32 %v8546_v38, %v8550_v8  ;;  %v8715_v60 = vrot.slane %v8588_v0, %v15385_v15 }
 0x5cf   :  { %v10236_v56 = vrot.slane %v8145_v40, 9  ;;  %v8541_v34 = vmax.f32 %v8144_v6, %v10234_v23  ;;  %v8542_v54 = vmax.f32 %v8143_v9, %v10235_v43  ;;  %v8584_v11 = vmax.f32 %v8536_v36, %v8540_v27 }
 0x5d0   :  { %v8591_v3 = vmax.f32 %v8547_v1, %v8551_v59  ;;  %v8719_v48 = vrot.slane %v8589_v31, %v15385_v15  ;;  %v17179_v7 = vrot.slane %v8590_v33, %v15385_v15  ;;  %v7938_v12 = vadd.f32 %v17114_v20, %v17074_v63 }
 0x5d1   :  { %v8543_v42 = vmax.f32 %v8145_v40, %v10236_v56  ;;  %v8585_v5 = vmax.f32 %v8537_v41, %v8541_v34  ;;  %v8586_v37 = vmax.f32 %v8538_v35, %v8542_v54  ;;  %v8699_v38 = vrot.slane %v8584_v11, %v15385_v15 }
 0x5d2   :  { %v17185_v24 = vrot.slane %v8591_v3, %v15385_v15  ;;  %v17188_v49 = vsel %vm6975_vm14, %v8719_v48, %v8715_v60  ;;  %v7958_v1 = vmax.f32 %v7938_v12, 0.0  ;;  %v7930_v36 = vadd.f32 %v17116_v4, %v17069_v28 }
 0x5d3   :  { %v8587_v55 = vmax.f32 %v8539_v51, %v8543_v42  ;;  %v8703_v17 = vrot.slane %v8585_v5, %v15385_v15  ;;  %v17194_v63 = vrot.slane %v8586_v37, %v15385_v15  ;;  %v7941_v20 = vadd.f32 %v17126_v57, %v17077_v39 }
 0x5d4   :  { %v8214_v41 = vcombine.high %v7958_v1, %v7958_v1  ;;  %v8221_v35 = vrot.slane %v7958_v1, %v15365_v53  ;;  %v7956_v52 = vmax.f32 %v7930_v36, 0.0  ;;  %v8764_v32 = vsel %vm6977_vm15, %v17094_v16, %v17104_v29 }
 0x5d5   :  { %v17203_v26 = vrot.slane %v8587_v55, %v15385_v15  ;;  %v17206_v28 = vsel %vm6975_vm14, %v8703_v17, %v8699_v38  ;;  %v7959_v4 = vmax.f32 %v7941_v20, 0.0  ;;  %v8765_v13 = vsel %vm6979_vm0, %v17100_v46, %v8764_v32 }
 0x5d6   :  { %v8228_v39 = vrot.slane %v8214_v41, %v15365_v53  ;;  %v8229_v57 = vcombine.high %v8221_v35, %v8221_v35  ;;  %v10253_v51 = vrot.slane %v8221_v35, 9  ;;  %v8180_v9 = vcombine.high %v7956_v52, %v7956_v52 }
 0x5d7   :  { %v8187_v6 = vrot.slane %v7956_v52, %v15365_v53  ;;  %v8231_v45 = vcombine.high %v7959_v4, %v7959_v4  ;;  %v8238_v16 = vrot.slane %v7959_v4, %v15365_v53  ;;  %v8793_v29 = vsel %vm7109_vm7, 0.0, %v8765_v13 }
 0x5d8   :  { %v8230_v14 = vcombine.high %v8228_v39, %v8228_v39  ;;  %v10254_v62 = vrot.slane %v8229_v57, 9  ;;  %v10255_v8 = vrot.slane %v8228_v39, 9  ;;  %v8560_v0 = vmax.f32 %v8221_v35, %v10253_v51 }
 0x5d9   :  { %v8194_v40 = vrot.slane %v8180_v9, %v15365_v53  ;;  %v8195_v23 = vcombine.high %v8187_v6, %v8187_v6  ;;  %v10245_v46 = vrot.slane %v8187_v6, 9  ;;  %v8245_v43 = vrot.slane %v8231_v45, %v15365_v53 }
 0x5da   :  { %v10256_v27 = vrot.slane %v8230_v14, 9  ;;  %v8561_v59 = vmax.f32 %v8229_v57, %v10254_v62  ;;  %v8562_v31 = vmax.f32 %v8228_v39, %v10255_v8  ;;  %v8246_v33 = vcombine.high %v8238_v16, %v8238_v16 }
 0x5db   :  { %v8196_v60 = vcombine.high %v8194_v40, %v8194_v40  ;;  %v10246_v56 = vrot.slane %v8195_v23, 9  ;;  %v10247_v34 = vrot.slane %v8194_v40, 9  ;;  %v17216_v54 = vmax.f32 %v8187_v6, %v10245_v46 }
 0x5dc   :  { %v8563_v11 = vmax.f32 %v8230_v14, %v10256_v27  ;;  %v8247_v3 = vcombine.high %v8245_v43, %v8245_v43  ;;  %v10257_v48 = vrot.slane %v8238_v16, 9  ;;  %v10258_v12 = vrot.slane %v8246_v33, 9 }
 0x5dd   :  { %v10248_v42 = vrot.slane %v8196_v60, 9  ;;  %v17218_v5 = vmax.f32 %v8195_v23, %v10246_v56  ;;  %v17220_v37 = vmax.f32 %v8194_v40, %v10247_v34  ;;  %v10259_v38 = vrot.slane %v8245_v43, 9 }
 0x5de   :  { %v10260_v1 = vrot.slane %v8247_v3, 9  ;;  %v8564_v36 = vmax.f32 %v8238_v16, %v10257_v48  ;;  %v8565_v55 = vmax.f32 %v8246_v33, %v10258_v12  ;;  %v17223_v17 = vsel %vm1200_vm3, %v8793_v29, 0.0 }
 0x5df   :  { %v17225_v20 = vmax.f32 %v8196_v60, %v10248_v42  ;;  %v8566_v41 = vmax.f32 %v8245_v43, %v10259_v38  ;;  %v8817_v35 = vrot.slane %v17223_v17, 1  ;;  %v7933_v52 = vadd.f32 %v17130_v10, %v17071_v2 }
 0x5e0   :  { %v8567_v32 = vmax.f32 %v8247_v3, %v10260_v1  ;;  %v8596_v4 = vmax.f32 %v8560_v0, %v8564_v36  ;;  %v8597_v13 = vmax.f32 %v8561_v59, %v8565_v55  ;;  %v8761_v39 = vsel %vm6977_vm15, %v17110_v19, %v17122_v18 }
 0x5e1   :  { %v8598_v57 = vmax.f32 %v8562_v31, %v8566_v41  ;;  %8828 = vrot.lane.b32.xlu1 %v8817_v35, %s12181_s27  ;;  %v7957_v51 = vmax.f32 %v7933_v52, 0.0  ;;  %v8762_v9 = vsel %vm6979_vm0, %v17119_v22, %v8761_v39  ;;  %v8770_v6 = vsel %vm6977_vm15, %v17146_v30, %v17154_v44  ;;  %v12091_v22 = vld [vmem:[%s17624_s5 + $0xc0] sm:$0xff]  }
 0x5e2   :  { %v8599_v45 = vmax.f32 %v8563_v11, %v8567_v32  ;;  %v8747_v2 = vrot.slane %v8596_v4, %v15385_v15  ;;  %v8751_v10 = vrot.slane %v8597_v13, %v15385_v15  ;;  %v8792_v16 = vsel %vm7109_vm7, 0.0, %v8762_v9  ;;  %v12092_v30 = vld [vmem:[%s17624_s5 + $0x80] sm:$0xff]   ;;  %10490 = vmatprep.subr.bf16.mxu0 %v12091_v22  ;;  %v12096_v22 = vld [vmem:[%s17624_s5 + $0x90] sm:$0xff]  }
 0x5e3   :  { %v8755_v19 = vrot.slane %v8598_v57, %v15385_v15  ;;  %v8197_v18 = vcombine.high %v7957_v51, %v7957_v51  ;;  %v8204_v29 = vrot.slane %v7957_v51, %v15365_v53  ;;  %v17245_v14 = vsel %vm1200_vm3, %v8792_v16, 0.0  ;;  %10491 = vmatpush3.bf16.msra.mxu0 %v12092_v30 }
 0x5e4   :  { %v8759_v44 = vrot.slane %v8599_v45, %v15385_v15  ;;  %v8781_v62 = vsel %vm6975_vm14, %v8751_v10, %v8747_v2  ;;  %v8816_v8 = vrot.slane %v17245_v14, 1  ;;  %v8771_v0 = vsel %vm6979_vm0, %v17151_v61, %v8770_v6  ;;  %v12093_v45 = vld [vmem:[%s17624_s5 + $0xc8] sm:$0xff]  }
 0x5e5   :  { %v8211_v40 = vrot.slane %v8197_v18, %v15365_v53  ;;  %v8212_v23 = vcombine.high %v8204_v29, %v8204_v29  ;;  %v10249_v46 = vrot.slane %v8204_v29, 9  ;;  %v8795_v43 = vsel %vm7109_vm7, 0.0, %v8771_v0  ;;  %v12094_v2 = vld [vmem:[%s17624_s5 + $0x88] sm:$0xff]   ;;  %10492 = vmatprep.subr.bf16.mxu0 %v12093_v45  ;;  %v12098_v0 = vld [vmem:[%s17624_s5 + $0x98] sm:$0xff]  }
 0x5e6   :  { %8826 = vrot.lane.b32.xlu0 %v8816_v8, %s12181_s27  ;;  %v17262_v27 = vsel %vm1200_vm3, %v8795_v43, 0.0  ;;  %v8767_v59 = vsel %vm6977_vm15, %v17159_v25, %v17165_v21  ;;  %v8776_v61 = vsel %vm6977_vm15, %v17179_v7, %v17188_v49  ;;  %v8773_v31 = vsel %vm6977_vm15, %v17194_v63, %v17206_v28  ;;  %v12097_v8 = vld [vmem:[%s17624_s5 + $0xd8] sm:$0xff]   ;;  %v12105_v43 = vld [vmem:[%s17624_s5 + $0x48] sm:$0xff]  }
 0x5e7   :  { %v8213_v33 = vcombine.high %v8211_v40, %v8211_v40  ;;  %v10250_v60 = vrot.slane %v8212_v23, 9  ;;  %v10251_v56 = vrot.slane %v8211_v40, 9  ;;  %v8556_v34 = vmax.f32 %v8204_v29, %v10249_v46  ;;  %10493 = vmatpush3.bf16.msra.mxu0 %v12094_v2  ;;  %v12095_v29 = vld [vmem:[%s17624_s5 + $0xd0] sm:$0xff]   ;;  %v12104_v46 = vld [vmem:[%s17624_s5] sm:$0xff]  }
 0x5e8   :  { %v8819_v11 = vrot.slane %v17262_v27, 1  ;;  %v8768_v3 = vsel %vm6979_vm0, %v17162_v58, %v8767_v59  ;;  %v8777_v25 = vsel %vm6979_vm0, %v17185_v24, %v8776_v61  ;;  %v8774_v21 = vsel %vm6979_vm0, %v17203_v26, %v8773_v31  ;;  %10494 = vmatprep.subr.bf16.mxu0 %v12095_v29  ;;  %v12100_v59 = vld [vmem:[%s17624_s5 + $0xa0] sm:$0xff]   ;;  %v12101_v31 = vld [vmem:[%s17624_s5 + $0xe8] sm:$0xff]  }
 0x5e9   :  { %v10252_v7 = vrot.slane %v8213_v33, 9  ;;  %v8557_v49 = vmax.f32 %v8212_v23, %v10250_v60  ;;  %v8558_v48 = vmax.f32 %v8211_v40, %v10251_v56  ;;  %v8592_v63 = vmax.f32 %v17216_v54, %v8556_v34  ;;  %v12099_v40 = vld [vmem:[%s17624_s5 + $0xe0] sm:$0xff]   ;;  %v12108_v60 = vld [vmem:[%s17624_s5 + $0x50] sm:$0xff]   ;;  %v12102_v56 = vld [vmem:[%s17624_s5 + $0xa8] sm:$0xff]  }
 0x5ea   :  { %8832 = vrot.lane.b32.xlu1 %v8819_v11, %s12181_s27  ;;  %v8794_v28 = vsel %vm7109_vm7, 0.0, %v8768_v3  ;;  %v8797_v12 = vsel %vm7109_vm7, 0.0, %v8777_v25  ;;  %v8796_v42 = vsel %vm7109_vm7, 0.0, %v8774_v21  ;;  %v8782_v58 = vsel %vm6977_vm15, %v8755_v19, %v8781_v62  ;;  %v12103_v23 = vld [vmem:[%s17624_s5 + $0x40] sm:$0xff]   ;;  %v12107_v11 = vld [vmem:[%s17624_s5 + $0xf0] sm:$0xff]   ;;  %v12111_v25 = vld [vmem:[%s17624_s5 + $0x58] sm:$0xff]  }
 0x5eb   :  { %v8559_v38 = vmax.f32 %v8213_v33, %v10252_v7  ;;  %v8593_v24 = vmax.f32 %v17218_v5, %v8557_v49  ;;  %v8594_v26 = vmax.f32 %v17220_v37, %v8558_v48  ;;  %v8731_v1 = vrot.slane %v8592_v63, %v15385_v15  ;;  %10495 = vmatpush3.bf16.msra.mxu0 %v12096_v22  ;;  %v12106_v33 = vld [vmem:[%s17624_s5 + $0x8] sm:$0xff]   ;;  %v12110_v3 = vld [vmem:[%s17624_s5 + $0x10] sm:$0xff]   ;;  %v12112_v49 = vld [vmem:[%s17624_s5 + $0x18] sm:$0xff]  }
 0x5ec   :  { %v17290_v36 = vsel %vm1200_vm3, %v8794_v28, 0.0  ;;  %v17293_v54 = vsel %vm1200_vm3, %v8797_v12, 0.0  ;;  %v17296_v55 = vsel %vm1200_vm3, %v8796_v42, 0.0  ;;  %v8783_v41 = vsel %vm6979_vm0, %v8759_v44, %v8782_v58  ;;  %10496 = vmatprep.subr.bf16.mxu0 %v12097_v8  ;;  %10462 = vmatprep.subr.bf16.mxu1 %v12103_v23  ;;  %v12109_v21 = vld [vmem:[%s17624_s5 + $0xb0] sm:$0xff]   ;;  %v12113_v48 = vld [vmem:[%s17624_s5 + $0x60] sm:$0xff]   ;;  %v12115_v28 = vld [vmem:[%s17624_s5 + $0x68] sm:$0xff]  }
 0x5ed   :  { %v8595_v35 = vmax.f32 %v17225_v20, %v8559_v38  ;;  %v8735_v52 = vrot.slane %v8593_v24, %v15385_v15  ;;  %v8739_v5 = vrot.slane %v8594_v26, %v15385_v15  ;;  %v8818_v37 = vrot.slane %v17290_v36, 1  ;;  %10463 = vmatpush3.bf16.msra.mxu1 %v12104_v46  ;;  %v12114_v63 = vld [vmem:[%s17624_s5 + $0x20] sm:$0xff]   ;;  %v12116_v12 = vld [vmem:[%s17624_s5 + $0x28] sm:$0xff]   ;;  %v12117_v42 = vld [vmem:[%s17624_s5 + $0xf8] sm:$0xff]  }
 0x5ee   :  { %v8821_v32 = vrot.slane %v17293_v54, 1  ;;  %v8799_v4 = vsel %vm7109_vm7, 0.0, %v8783_v41  ;;  %v8820_v57 = vrot.slane %v17296_v55, 1  ;;  %v8851_v18 = vrot.slane %v17245_v14, 2  ;;  %10464 = vmatprep.subr.bf16.mxu1 %v12105_v43  ;;  %v12118_v58 = vld [vmem:[%s17624_s5 + $0x70] sm:$0xff]   ;;  %v12119_v38 = vld [vmem:[%s17624_s5 + $0xb8] sm:$0xff]  }
 0x5ef   :  { %v8743_v13 = vrot.slane %v8595_v35, %v15385_v15  ;;  %v8778_v39 = vsel %vm6975_vm14, %v8735_v52, %v8731_v1  ;;  %8830 = vrot.lane.b32.xlu0 %v8818_v37, %s12181_s27  ;;  %v17310_v20 = vsel %vm1200_vm3, %v8799_v4, 0.0  ;;  %v17343_v30 = vrot.slane %v17223_v17, 2  ;;  %10497 = vmatpush3.bf16.msra.mxu0 %v12098_v0  ;;  %v12120_v24 = vld [vmem:[%s17624_s5 + $0x30] sm:$0xff]   ;;  %v12121_v52 = vld [vmem:[%s17624_s5 + $0x78] sm:$0xff]  }
 0x5f0   :  { %8836 = vrot.lane.b32.xlu1 %v8821_v32, %s12181_s27  ;;  %v8823_v51 = vrot.slane %v17310_v20, 1  ;;  %v8779_v9 = vsel %vm6977_vm15, %v8739_v5, %v8778_v39  ;;  %v8854_v44 = vrot.slane %v17262_v27, 2  ;;  %v8855_v62 = vrot.slane %v17296_v55, 2  ;;  %10498 = vmatprep.subr.bf16.mxu0 %v12099_v40  ;;  %v12122_v5 = vld [vmem:[%s17624_s5 + $0x38] sm:$0xff]   ;;  %v12123_v39 = vld [vmem:[%s17624_s5 + $0x100] sm:$0xff]  }
 0x5f1   :  { %v8780_v6 = vsel %vm6979_vm0, %v8743_v13, %v8779_v9  ;;  %v17382_v61 = vrot.slane %v17293_v54, 2  ;;  %10465 = vmatpush3.bf16.msra.mxu1 %v12106_v33  ;;  %v8858_v7 = vrot.slane %v17310_v20, 2 }
 0x5f2   :  { %v8798_v10 = vsel %vm7109_vm7, 0.0, %v8780_v6  ;;  %10466 = vmatprep.subr.bf16.mxu1 %v12108_v60 }
 0x5f3   :  { %8834 = vrot.lane.b32.xlu0 %v8820_v57, %s12181_s27  ;;  %v17325_v16 = vsel %vm1200_vm3, %v8798_v10, 0.0  ;;  %10499 = vmatpush3.bf16.msra.mxu0 %v12100_v59  ;;  %vm9858_vm3 = vcmask 74752  }
 0x5f4   :  { %8840 = vrot.lane.b32.xlu1 %v8823_v51, %s12181_s27  ;;  %v8822_v19 = vrot.slane %v17325_v16, 1  ;;  %v17399_v34 = vrot.slane %v17325_v16, 2  ;;  %10500 = vmatprep.subr.bf16.mxu0 %v12101_v31 }
 0x5f5   :  { %10467 = vmatpush3.bf16.msra.mxu1 %v12110_v3 }
 0x5f6   :  { %10468 = vmatprep.subr.bf16.mxu1 %v12111_v25 }
 0x5f7   :  { %8838 = vrot.lane.b32.xlu0 %v8822_v19, %s12181_s27  ;;  %10501 = vmatpush3.bf16.msra.mxu0 %v12102_v56 }
 0x5f8   :  { %10502 = vmatprep.subr.bf16.mxu0 %v12107_v11 }
 0x5f9   :  { %10469 = vmatpush3.bf16.msra.mxu1 %v12112_v49 }
 0x5fa   :  { %10470 = vmatprep.subr.bf16.mxu1 %v12113_v48 }
 0x5fb   :  { %8824 = vrot.lane.b32.xlu0 %v18074_v50, %s12181_s27  ;;  %v17348_v50 = vrot.slane %v17290_v36, 2  ;;  %10503 = vmatpush3.bf16.msra.mxu0 %v12109_v21 }
 0x5fc   :  { %10504 = vmatprep.subr.bf16.mxu0 %v12117_v42 }
 0x5fd   :  { %10471 = vmatpush3.bf16.msra.mxu1 %v12114_v63 }
 0x5fe   :  { %10472 = vmatprep.subr.bf16.mxu1 %v12115_v28 }
 0x5ff   :  { %8885 = vrot.lane.b32.xlu0 %v8851_v18, %s12181_s27  ;;  %10505 = vmatpush3.bf16.msra.mxu0 %v12119_v38 }
 0x600   :  { %10644 = vmatprep.subr.bf16.mxu0 %v12123_v39 }
 0x601   :  { %10473 = vmatpush3.bf16.msra.mxu1 %v12116_v12 }
 0x602   :  { %10474 = vmatprep.subr.bf16.mxu1 %v12118_v58 }
 0x603   :  { %8889 = vrot.lane.b32.xlu0 %v17343_v30, %s12181_s27 }
 0x605   :  { %10475 = vmatpush3.bf16.msra.mxu1 %v12120_v24 }
 0x606   :  { %10476 = vmatprep.subr.bf16.mxu1 %v12121_v52 }
 0x607   :  { %8893 = vrot.lane.b32.xlu0 %v17348_v50, %s12181_s27 }
 0x609   :  { %10477 = vmatpush3.bf16.msra.mxu1 %v12122_v5 }
 0x60b   :  { %8897 = vrot.lane.b32.xlu0 %v8854_v44, %s12181_s27 }
 0x60f   :  { %8901 = vrot.lane.b32.xlu0 %v8855_v62, %s12181_s27 }
 0x613   :  { %8905 = vrot.lane.b32.xlu0 %v17382_v61, %s12181_s27 }
 0x617   :  { %8909 = vrot.lane.b32.xlu0 %v17399_v34, %s12181_s27 }
 0x61b   :  { %8913 = vrot.lane.b32.xlu0 %v8858_v7, %s12181_s27 }
 0x653   :  { %v8829_v26 = vpop.permute.xlu1 %8828 }
 0x654   :  { %v8868_v1 = vsel %vm7390_vm9, %v17223_v17, %v8829_v26 }
 0x655   :  { %8887 = vrot.lane.b32.xlu1 %v8868_v1, %s12181_s27 }
 0x658   :  { %v8827_v41 = vpop.permute.xlu0 %8826 }
 0x659   :  { %v8867_v35 = vsel %vm7390_vm9, %v17245_v14, %v8827_v41 }
 0x65a   :  { %8883 = vrot.lane.b32.xlu1 %v8867_v35, %s12181_s27 }
 0x65c   :  { %v8833_v17 = vpop.permute.xlu1 %8832 }
 0x65d   :  { %v8870_v37 = vsel %vm7390_vm9, %v17262_v27, %v8833_v17 }
 0x65e   :  { %8895 = vrot.lane.b32.xlu1 %v8870_v37, %s12181_s27 }
 0x661   :  { %v8831_v32 = vpop.permute.xlu0 %8830 }
 0x662   :  { %v8869_v4 = vsel %vm7390_vm9, %v17290_v36, %v8831_v32  ;;  %v8837_v13 = vpop.permute.xlu1 %8836 }
 0x663   :  { %8891 = vrot.lane.b32.xlu1 %v8869_v4, %s12181_s27  ;;  %v8872_v57 = vsel %vm7390_vm9, %v17293_v54, %v8837_v13  ;;  %v10264_v19 = vcombine.low %v8868_v1, %v8869_v4  ;;  %v12126_v13 = vld [vmem:[%s17624_s5 + $0x118] sm:$0xff]  }
 0x665   :  { %v8835_v51 = vpop.permute.xlu0 %8834 }
 0x666   :  { %v8871_v6 = vsel %vm7390_vm9, %v17296_v55, %v8835_v51  ;;  %v8841_v45 = vpop.permute.xlu1 %8840 }
 0x667   :  { %8903 = vrot.lane.b32.xlu1 %v8872_v57, %s12181_s27  ;;  %v8874_v54 = vsel %vm7390_vm9, %v17310_v20, %v8841_v45  ;;  %v8968_v45 = vcombine.low %v17343_v30, %v17348_v50  ;;  %v12131_v20 = vld [vmem:[%s17626_s7 + $0x50] sm:$0xff]  }
 0x669   :  { %v8839_v9 = vpop.permute.xlu0 %8838 }
 0x66a   :  { %v8873_v36 = vsel %vm7390_vm9, %v17325_v16, %v8839_v9 }
 0x66b   :  { %8899 = vrot.lane.b32.xlu1 %v8871_v6, %s12181_s27  ;;  %v10272_v2 = vcombine.low %v8872_v57, %v8873_v36 }
 0x66d   :  { %v8825_v10 = vpop.permute.xlu0 %8824 }
 0x66e   :  { %v8866_v29 = vsel %vm7390_vm9, 0.0, %v8825_v10 }
 0x66f   :  { %8907 = vrot.lane.b32.xlu1 %v8873_v36, %s12181_s27  ;;  %v10261_v22 = vcombine.low %v8866_v29, %v8867_v35  ;;  %v10268_v8 = vcombine.low %v8870_v37, %v8866_v29  ;;  %v10269_v0 = vcombine.low %v8866_v29, %v8871_v6  ;;  %v10276_v40 = vcombine.low %v8874_v54, %v8866_v29  ;;  %v12125_v37 = vld [vmem:[%s17624_s5 + $0x110] sm:$0xff]  }
 0x671   :  { %v9004_v23 = vpack.c.bf16 %v10264_v19, %v10261_v22  ;;  %v9007_v46 = vpack.c.bf16 %v10268_v8, %v10264_v19  ;;  %v9012_v16 = vpack.c.bf16 %v10276_v40, %v10272_v2  ;;  %v17479_v43 = vpack.c.bf16 %v10272_v2, %v10269_v0  ;;  %v8886_v59 = vpop.permute.xlu0 %8885 }
 0x672   :  { %v8973_v2 = vcombine.low %v8854_v44, %v18073_v47  ;;  %v8978_v44 = vcombine.low %v17382_v61, %v17399_v34  ;;  %v8983_v0 = vcombine.low %v8858_v7, %v18073_v47  ;;  %v12134_v7 = vld [vmem:[%s17626_s7 + $0x18] sm:$0xff]  }
 0x673   :  { %8911 = vrot.lane.b32.xlu1 %v8874_v54, %s12181_s27  ;;  %9396 = vmatprep.mubr.bf16.mxu0 %v9007_v46  ;;  %v12128_v46 = vld [vmem:[%s17626_s7] sm:$0xff]  }
 0x674   :  { %v9008_v27 = vpack.c.bf16 %v8973_v2, %v8968_v45  ;;  %v9013_v40 = vpack.c.bf16 %v8983_v0, %v8978_v44 }
 0x675   :  { %v8890_v31 = vpop.permute.xlu0 %8889 }
 0x679   :  { %v8894_v33 = vpop.permute.xlu0 %8893 }
 0x67d   :  { %v8898_v11 = vpop.permute.xlu0 %8897 }
 0x681   :  { %v8902_v25 = vpop.permute.xlu0 %8901 }
 0x685   :  { %v8906_v35 = vpop.permute.xlu0 %8905 }
 0x689   :  { %v8910_v32 = vpop.permute.xlu0 %8909 }
 0x68d   :  { %v8914_v9 = vpop.permute.xlu0 %8913 }
 0x6c7   :  { %v8888_v60 = vpop.permute.xlu1 %8887 }
 0x6c8   :  { %v8916_v48 = vsel %vm7390_vm9, %v8888_v60, %v8890_v31  ;;  %v8932_v63 = vsel %vm7390_vm9, %v8851_v18, %v8888_v60  ;;  %v12124_v18 = vld [vmem:[%s17624_s5 + $0x108] sm:$0xff]   ;;  %v12139_v60 = vld [vmem:[%s17626_s7 + $0x70] sm:$0xff]  }
 0x6c9   :  { %v12137_v31 = vld [vmem:[%s17626_s7 + $0x68] sm:$0xff]  }
 0x6cc   :  { %v8884_v56 = vpop.permute.xlu1 %8883 }
 0x6cd   :  { %v8915_v21 = vsel %vm7390_vm9, %v8884_v56, %v8886_v59  ;;  %v8931_v49 = vsel %vm7390_vm9, %v18073_v47, %v8884_v56  ;;  %v12136_v59 = vld [vmem:[%s17626_s7 + $0x20] sm:$0xff]   ;;  %v12140_v56 = vld [vmem:[%s17626_s7 + $0x30] sm:$0xff]  }
 0x6ce   :  { %v10262_v24 = vcombine.low %v8931_v49, %v8932_v63  ;;  %v10263_v26 = vcombine.low %v8915_v21, %v8916_v48  ;;  %v10277_v49 = vld [vmem:[%s17625_s6] ss:$0 sm:$0xff] }
 0x6d0   :  { %v8896_v3 = vpop.permute.xlu1 %8895 }
 0x6d1   :  { %v8918_v12 = vsel %vm7390_vm9, %v8896_v3, %v8898_v11  ;;  %v8934_v42 = vsel %vm7390_vm9, %v17348_v50, %v8896_v3 }
 0x6d5   :  { %v8892_v28 = vpop.permute.xlu1 %8891 }
 0x6d6   :  { %v8917_v58 = vsel %vm7390_vm9, %v8892_v28, %v8894_v33  ;;  %v8933_v38 = vsel %vm7390_vm9, %v17343_v30, %v8892_v28  ;;  %v12138_v33 = vld [vmem:[%s17626_s7 + $0x28] sm:$0xff]  }
 0x6d7   :  { %v10266_v1 = vcombine.low %v8933_v38, %v8934_v42  ;;  %v10267_v41 = vcombine.low %v8917_v58, %v8918_v12 }
 0x6d9   :  { %v9006_v52 = vpack.c.bf16 %v10267_v41, %v10263_v26  ;;  %v8904_v14 = vpop.permute.xlu1 %8903  ;;  %v9005_v5 = vpack.c.bf16 %v10266_v1, %v10262_v24 }
 0x6da   :  { %v8936_v6 = vsel %vm7390_vm9, %v8855_v62, %v8904_v14 }
 0x6db   :  { %9347 = vmatprep.mubr.bf16.mxu1 %v9005_v5  ;;  %9397 = vmatmul.mubr.bf16.vlgmr.msra.gmra.mrb[64].mxu0 %v9006_v52 }
 0x6dc   :  { %9348 = vmatmul.mubr.bf16.vlgmr.msra.gmra.mrb[48].mxu1 %v9004_v23  ;;  %9404 = vmatprep.mubr.bf16.mxu0 %v9012_v16  ;;  %v12127_v23 = vld [vmem:[%s17626_s7 + $0x40] sm:$0xff]   ;;  %v12129_v16 = vld [vmem:[%s17626_s7 + $0x48] sm:$0xff]  }
 0x6dd   :  { %v8900_v17 = vpop.permute.xlu1 %8899  ;;  %10645 = vmatpush3.bf16.msra.mxu0 %v12123_v39  ;;  %v8920_v39 = vsel %vm7390_vm9, %v8904_v14, %v8906_v35  ;;  %10524 = vmatprep.subr.bf16.mxu1 %v12127_v23 }
 0x6de   :  { %10646 = vmatprep.subr.bf16.mxu0 %v12124_v18  ;;  %v8919_v57 = vsel %vm7390_vm9, %v8900_v17, %v8902_v25  ;;  %v8935_v51 = vsel %vm7390_vm9, %v18073_v47, %v8900_v17  ;;  %10525 = vmatpush3.bf16.msra.mxu1 %v12128_v46  ;;  %v12130_v47 = vld [vmem:[%s17626_s7 + $0x8] sm:$0xff]  }
 0x6df   :  { %v10270_v62 = vcombine.low %v8935_v51, %v8936_v6  ;;  %v10271_v29 = vcombine.low %v8919_v57, %v8920_v39  ;;  %10526 = vmatprep.subr.bf16.mxu1 %v12129_v16 }
 0x6e1   :  { %v8908_v4 = vpop.permute.xlu1 %8907  ;;  %10647 = vmatpush3.bf16.msra.mxu0 %v12124_v18 }
 0x6e2   :  { %10648 = vmatprep.subr.bf16.mxu0 %v12125_v37  ;;  %v8921_v10 = vsel %vm7390_vm9, %v8908_v4, %v8910_v32  ;;  %v8937_v19 = vsel %vm7390_vm9, %v17382_v61, %v8908_v4  ;;  %10527 = vmatpush3.bf16.msra.mxu1 %v12130_v47  ;;  %v12132_v61 = vld [vmem:[%s17626_s7 + $0x10] sm:$0xff]  }
 0x6e3   :  { %10528 = vmatprep.subr.bf16.mxu1 %v12131_v20 }
 0x6e5   :  { %v8912_v36 = vpop.permute.xlu1 %8911  ;;  %10649 = vmatpush3.bf16.msra.mxu0 %v12125_v37 }
 0x6e6   :  { %v8922_v54 = vsel %vm7390_vm9, %v8912_v36, %v8914_v9  ;;  %v8938_v55 = vsel %vm7390_vm9, %v17399_v34, %v8912_v36  ;;  %10650 = vmatprep.subr.bf16.mxu0 %v12126_v13  ;;  %v12133_v34 = vld [vmem:[%s17626_s7 + $0x58] sm:$0xff]   ;;  %10529 = vmatpush3.bf16.msra.mxu1 %v12132_v61 }
 0x6e7   :  { %v10274_v22 = vcombine.low %v8937_v19, %v8938_v55  ;;  %v10275_v8 = vcombine.low %v8921_v10, %v8922_v54  ;;  %10530 = vmatprep.subr.bf16.mxu1 %v12133_v34 }
 0x6e9   :  { %v9010_v30 = vpack.c.bf16 %v10274_v22, %v10270_v62  ;;  %v9011_v50 = vpack.c.bf16 %v10275_v8, %v10271_v29  ;;  %10651 = vmatpush3.bf16.msra.mxu0 %v12126_v13 }
 0x6ea   :  { %10531 = vmatpush3.bf16.msra.mxu1 %v12134_v7 }
 0x6eb   :  { %9355 = vmatprep.mubr.bf16.mxu1 %v9010_v30  ;;  %9405 = vmatmul.mubr.bf16.gmra.mrb[68].mxu0 %v9011_v50 }
 0x6ec   :  { %9356 = vmatmul.mubr.bf16.gmra.mrb[52].mxu1 %v17479_v43  ;;  %10652 = vmatprep.mubr.msk.bf16.mxu0 %vm7390_vm9, %v9008_v27  ;;  %v12135_v43 = vld [vmem:[%s17626_s7 + $0x60] sm:$0xff]  }
 0x6ed   :  { %10532 = vmatprep.subr.bf16.mxu1 %v12135_v43 }
 0x6ee   :  { %10533 = vmatpush3.bf16.msra.mxu1 %v12136_v59 }
 0x6ef   :  { %10534 = vmatprep.subr.bf16.mxu1 %v12137_v31 }
 0x6f2   :  { %10535 = vmatpush3.bf16.msra.mxu1 %v12138_v33 }
 0x6f3   :  { %10653 = vmatmul.mubr.msk.bf16.vlgmr.msra.gmra.mrb[72].mxu0 %vm7390_vm9, %v9013_v40  ;;  %10536 = vmatprep.subr.bf16.mxu1 %v12139_v60 }
 0x6f6   :  { %10537 = vmatpush3.bf16.msra.mxu1 %v12140_v56 }
 0x7ae   :  { %v10506_v11 = vpop.f32.mrb[64].mxu0 }
 0x7af   :  { %v10478_v3 = vpop.f32.mrb[48].mxu1  ;;  %v10507_v25 = vpop.f32.mrb[65].mxu0 }
 0x7b0   :  { %v10508_v21 = vadd.f32 %v10507_v25, %v10506_v11  ;;  %v10479_v48 = vpop.f32.mrb[49].mxu1  ;;  %v10509_v63 = vpop.f32.mrb[66].mxu0 }
 0x7b1   :  { %v10480_v28 = vadd.f32 %v10479_v48, %v10478_v3  ;;  %v10481_v12 = vpop.f32.mrb[50].mxu1  ;;  %v10510_v42 = vpop.f32.mrb[67].mxu0 }
 0x7b2   :  { %v10511_v58 = vadd.f32 %v10510_v42, %v10509_v63  ;;  %v10482_v38 = vpop.f32.mrb[51].mxu1 }
 0x7b3   :  { %v9350_v24 = vadd.f32 %v10480_v28, %v10277_v49  ;;  %v10483_v26 = vadd.f32 %v10482_v38, %v10481_v12 }
 0x7b5   :  { %v9353_v1 = vadd.f32 %v10483_v26, %v10277_v49  ;;  %v9399_v41 = vadd.f32 %v10508_v21, %v9350_v24 }
 0x7b7   :  { %v9402_v35 = vadd.f32 %v10511_v58, %v9353_v1 }
 0x7be   :  { %v10512_v52 = vpop.f32.mrb[68].mxu0 }
 0x7bf   :  { %v10484_v14 = vpop.f32.mrb[52].mxu1  ;;  %v10513_v5 = vpop.f32.mrb[69].mxu0 }
 0x7c0   :  { %v10514_v18 = vadd.f32 %v10513_v5, %v10512_v52  ;;  %v10485_v17 = vpop.f32.mrb[53].mxu1  ;;  %v10515_v37 = vpop.f32.mrb[70].mxu0 }
 0x7c1   :  { %v10486_v32 = vadd.f32 %v10485_v17, %v10484_v14  ;;  %v10487_v4 = vpop.f32.mrb[54].mxu1  ;;  %v10516_v13 = vpop.f32.mrb[71].mxu0 }
 0x7c2   :  { %v10517_v57 = vadd.f32 %v10516_v13, %v10515_v37  ;;  %v10488_v51 = vpop.f32.mrb[55].mxu1 }
 0x7c3   :  { %v9358_v9 = vadd.f32 %v10486_v32, %v10277_v49  ;;  %v10489_v39 = vadd.f32 %v10488_v51, %v10487_v4 }
 0x7c5   :  { %v9361_v6 = vadd.f32 %v10489_v39, %v10277_v49  ;;  %v9407_v36 = vadd.f32 %v10514_v18, %v9358_v9 }
 0x7c6   :  { %v10654_v45 = vpop.f32.mrb[72].mxu0 }
 0x7c7   :  { %v9456_v2 = vadd.f32 %v10654_v45, %v9407_v36  ;;  %v9447_v10 = vpop.f32.mrb[73].mxu0  ;;  %v9410_v19 = vadd.f32 %v10517_v57, %v9361_v6 }
 0x7c8   :  { %v9448_v54 = vadd.f32 %v9447_v10, %v9399_v41  ;;  %v10655_v55 = vpop.f32.mrb[74].mxu0 }
 0x7c9   :  { %v9464_v62 = vmax.f32 %v9456_v2, 0.0  ;;  %v9459_v29 = vadd.f32 %v10655_v55, %v9410_v19  ;;  %v9450_v22 = vpop.f32.mrb[75].mxu0 }
 0x7ca   :  { %v9462_v8 = vmax.f32 %v9448_v54, 0.0  ;;  %v9451_v30 = vadd.f32 %v9450_v22, %v9402_v35 }
 0x7cb   :  { %v9504_v50 = vcombine.high %v9464_v62, %v9464_v62  ;;  %v9511_v27 = vrot.slane %v9464_v62, %v15365_v53  ;;  %v9465_v44 = vmax.f32 %v9459_v29, 0.0 }
 0x7cc   :  { %v9470_v0 = vcombine.high %v9462_v8, %v9462_v8  ;;  %v9477_v40 = vrot.slane %v9462_v8, %v15365_v53  ;;  %v9463_v33 = vmax.f32 %v9451_v30, 0.0 }
 0x7cd   :  { %v9518_v23 = vrot.slane %v9504_v50, %v15365_v53  ;;  %v9519_v46 = vcombine.high %v9511_v27, %v9511_v27  ;;  %v10324_v16 = vrot.slane %v9511_v27, 9  ;;  %v9521_v47 = vcombine.high %v9465_v44, %v9465_v44 }
 0x7ce   :  { %v9484_v20 = vrot.slane %v9470_v0, %v15365_v53  ;;  %v9485_v61 = vcombine.high %v9477_v40, %v9477_v40  ;;  %v10316_v34 = vrot.slane %v9477_v40, 9  ;;  %v9528_v7 = vrot.slane %v9465_v44, %v15365_v53  ;;  %v12141_v44 = vld [vmem:[%s17626_s7 + $0x78] sm:$0xff]  }
 0x7cf   :  { %v9520_v43 = vcombine.high %v9518_v23, %v9518_v23  ;;  %v10325_v59 = vrot.slane %v9519_v46, 9  ;;  %v10326_v31 = vrot.slane %v9518_v23, 9  ;;  %v9610_v60 = vmax.f32 %v9511_v27, %v10324_v16  ;;  %10538 = vmatprep.subr.bf16.mxu1 %v12141_v44 }
 0x7d0   :  { %v9486_v56 = vcombine.high %v9484_v20, %v9484_v20  ;;  %v10317_v11 = vrot.slane %v9485_v61, 9  ;;  %v10318_v3 = vrot.slane %v9484_v20, 9  ;;  %v9602_v49 = vmax.f32 %v9477_v40, %v10316_v34 }
 0x7d1   :  { %v10327_v25 = vrot.slane %v9520_v43, 9  ;;  %v9612_v21 = vmax.f32 %v9518_v23, %v10326_v31  ;;  %v9535_v48 = vrot.slane %v9521_v47, %v15365_v53  ;;  %v9611_v63 = vmax.f32 %v9519_v46, %v10325_v59 }
 0x7d2   :  { %v10319_v28 = vrot.slane %v9486_v56, 9  ;;  %v9604_v12 = vmax.f32 %v9484_v20, %v10318_v3  ;;  %v9536_v42 = vcombine.high %v9528_v7, %v9528_v7  ;;  %v10328_v26 = vrot.slane %v9528_v7, 9 }
 0x7d3   :  { %v9613_v58 = vmax.f32 %v9520_v43, %v10327_v25  ;;  %v9622_v38 = vmax.f32 %v9610_v60, %v9612_v21  ;;  %v9537_v24 = vcombine.high %v9535_v48, %v9535_v48  ;;  %v9603_v1 = vmax.f32 %v9485_v61, %v10317_v11 }
 0x7d4   :  { %v9605_v41 = vmax.f32 %v9486_v56, %v10319_v28  ;;  %v9618_v35 = vmax.f32 %v9602_v49, %v9604_v12  ;;  %v10330_v52 = vrot.slane %v9535_v48, 9  ;;  %v9614_v32 = vmax.f32 %v9528_v7, %v10328_v26 }
 0x7d5   :  { %v9623_v14 = vmax.f32 %v9611_v63, %v9613_v58  ;;  %v9635_v5 = vrot.slane %v9622_v38, %v15385_v15  ;;  %v10331_v18 = vrot.slane %v9537_v24, 9  ;;  %v10329_v13 = vrot.slane %v9536_v42, 9 }
 0x7d6   :  { %v9619_v17 = vmax.f32 %v9603_v1, %v9605_v41  ;;  %v9631_v37 = vrot.slane %v9618_v35, %v15385_v15  ;;  %v9616_v4 = vmax.f32 %v9535_v48, %v10330_v52  ;;  %v9487_v57 = vcombine.high %v9463_v33, %v9463_v33 }
 0x7d7   :  { %v9494_v51 = vrot.slane %v9463_v33, %v15365_v53  ;;  %v9648_v9 = vrot.slane %v9623_v14, %v15385_v15  ;;  %v9617_v45 = vmax.f32 %v9537_v24, %v10331_v18  ;;  %v9615_v55 = vmax.f32 %v9536_v42, %v10329_v13 }
 0x7d8   :  { %v9624_v39 = vmax.f32 %v9614_v32, %v9616_v4  ;;  %v9644_v6 = vrot.slane %v9619_v17, %v15385_v15  ;;  %v9637_v36 = vsel %vm9636_vm2, %v9635_v5, %v9631_v37  ;;  %v9501_v2 = vrot.slane %v9487_v57, %v15365_v53  ;;  %v12142_v53 = vld [vmem:[%s17626_s7 + $0x38] sm:$0xff]  }
 0x7d9   :  { %v9502_v10 = vcombine.high %v9494_v51, %v9494_v51  ;;  %v10320_v19 = vrot.slane %v9494_v51, 9  ;;  %v9625_v8 = vmax.f32 %v9615_v55, %v9617_v45  ;;  %10539 = vmatpush3.bf16.msra.mxu1 %v12142_v53 }
 0x7da   :  { %v9649_v54 = vsel %vm9636_vm2, %v9648_v9, %v9644_v6  ;;  %v9503_v62 = vcombine.high %v9501_v2, %v9501_v2  ;;  %v10322_v22 = vrot.slane %v9501_v2, 9  ;;  %v9662_v46 = vrot.slane %v9624_v39, %v15385_v15 }
 0x7db   :  { %v10321_v29 = vrot.slane %v9502_v10, 9  ;;  %v9606_v50 = vmax.f32 %v9494_v51, %v10320_v19  ;;  %v9674_v47 = vrot.slane %v9625_v8, %v15385_v15 }
 0x7dc   :  { %v10323_v30 = vrot.slane %v9503_v62, 9  ;;  %v9608_v27 = vmax.f32 %v9501_v2, %v10322_v22 }
 0x7dd   :  { %v9607_v0 = vmax.f32 %v9502_v10, %v10321_v29 }
 0x7de   :  { %v9609_v40 = vmax.f32 %v9503_v62, %v10323_v30  ;;  %v9620_v23 = vmax.f32 %v9606_v50, %v9608_v27 }
 0x7e0   :  { %v9621_v16 = vmax.f32 %v9607_v0, %v9609_v40  ;;  %v9658_v20 = vrot.slane %v9620_v23, %v15385_v15 }
 0x7e2   :  { %v9670_v61 = vrot.slane %v9621_v16, %v15385_v15  ;;  %v9663_v34 = vsel %vm9636_vm2, %v9662_v46, %v9658_v20  ;;  %v10332_v15 = vld [vmem:[%s17627_s8] ss:$0 sm:$0xff] }
 0x7e4   :  { %v9675_v7 = vsel %vm9636_vm2, %v9674_v47, %v9670_v61 }
 0x7e5   :  { %v12061_v43 = vpack.i.bf16 %v9649_v54, %v9675_v7 }
 0x7e7   :  { %12062 = vrot.lane.b32.xlu1 %v12061_v43, %s12181_s27  ;;  %s12146_s27 = scalar_lea.vmem %s9867_s24, 32 }
 0x7e8   :  { %p12147_p0 = scmp.ne.s32.totalorder %s9867_s24, %s12146_s27  ;;  %p12152_p2 = scmp.lt.s32.totalorder %s12146_s27, %s12146_s27 }
 0x7ea   :  { %p12153_p3 = por %p12152_p2, %p12151_p1 }
 0x7ec   :  { %p12154_p4 = pnand %p12153_p3, %p12147_p0 }
 0x859   :  { %v12063_v59 = vpop.permute.xlu1 %12062 }
 0x85a   :  { %v12065_v31 = vunpack.i.h.bf16 %v12063_v59  ;;  %v12064_v33 = vunpack.i.l.bf16 %v12063_v59 }
 0x85c   :  { %v9679_v60 = vsel %vm7390_vm9, %v9637_v36, %v12065_v31  ;;  %v9680_v56 = vsel %vm7390_vm9, %v9663_v34, %v12064_v33 }
 0x85d   :  { %v9681_v11 = vpack.c.bf16 %v9679_v60, %v9679_v60  ;;  %v9682_v3 = vpack.c.bf16 %v9680_v56, %v9680_v56 }
 0x85f   :  { %9850 = vmatprep.mubr.bf16.mxu1 %v9682_v3 }
 0x860   :  { %9851 = vmatmul.mubr.bf16.vlgmr.msra.gmra.mrb[56].mxu1 %v9681_v11 }
 0x933   :  { %v10540_v25 = vpop.f32.mrb[56].mxu1 }
 0x934   :  { %v10541_v21 = vpop.f32.mrb[57].mxu1 }
 0x935   :  { %v10542_v49 = vadd.f32 %v10541_v21, %v10540_v25  ;;  %v10543_v48 = vpop.f32.mrb[58].mxu1 }
 0x936   :  { %v10544_v63 = vpop.f32.mrb[59].mxu1 }
 0x937   :  { %v9853_v28 = vadd.f32 %v10542_v49, %v10332_v15 }
 0x939   :  { %9859 = vst.msk [vmem:[#allocation2] sm:$0x3] %vm9858_vm3, %v9853_v28 }
 0x93a   :  { %12157 = shalt.err (!%p12154_p4)
}
 0x93b   :  { %s12158_s8 = scalar_lea.hbm %s17628_s9, 32 }
 0x93c   :  { %p12159_p5 = scmp.ne.s32.totalorder %s17628_s9, %s12158_s8  ;;  %p12162_p6 = scmp.lt.u32.totalorder %s12158_s8, %s17628_s9 }
 0x93e   :  { %p12164_p7 = pnand %p12162_p6, %p12159_p5 }
 0x940   :  { %12167 = shalt.err (!%p12164_p7)
}
 0x941   :  { %9869 = dma.vmem_to_hbm [thread:$0]  %s9867_s24, 32, %s17628_s9, [#allocation3]  }
 0x942   :  { %12168 = dma.done.wait [#allocation3], 32  }
 0x943   :  { %12169 = vsyncadd [#allocation3], 4294967264 }
 0x944   :  { %9873 = vsyncpa [#allocation3], 1 }

</bundles_post_ra>
